<compile_context>
chip_gen: v7x
topology: tpu7x:2x2x1
jax: 0.10.0
libtpu: 0.0.40
codegen_flags: <defaults>
</compile_context>

<pallas_src>
import jax
import jax.numpy as jnp
from jax.experimental import pallas as pl
from jax.experimental.pallas import tpu as pltpu

BN_EPS = 1e-3                      # matches nn.BatchNorm2d(eps=0.001)
VMEM_LIMIT = 48 * 1024 * 1024      # <= v7x's 64 MiB physical; generous on v5e/v6e


def _bn_pair(stats, gamma, beta, count):
    """Fold batch stats (biased var, eps=1e-3) + gamma/beta into (2, C) [scale; shift]."""
    mean = stats[0] / count
    var = stats[1] / count - mean * mean
    # TODO(synk): E[x^2]-E[x]^2 in f32 is cancellation-prone for very large M;
    #             switch to centered / compensated accumulation if bit-level
    #             parity with torch BatchNorm2d matters.
    inv = jax.lax.rsqrt(var + BN_EPS)
    scale = gamma * inv
    shift = beta - mean * scale
    return jnp.stack([scale, shift], axis=0)


# ---------------------------------------------------------------------------
# stage 1: fused 1x1 convs (b1|b2red|b3red) + maxpool3x3 -> b4 1x1 conv + stats
# ---------------------------------------------------------------------------
def inception_stage1(xpad, w_cat, w_pool, c1, c2r, c3r):
    n, hp2, wp2, cin = xpad.shape
    h, w = hp2 - 2, wp2 - 2
    cp = w_pool.shape[1]
    ctot = c1 + c2r + c3r + cp

    def kernel(x_ref, wc_ref, wp_ref, y1_ref, y2_ref, y3_ref, y4_ref, st_ref):
        # fused 1x1 convs on the interior pixels (padding never reaches the MXU)
        xc3 = x_ref[0, 1:1 + h, 1:1 + w, :]               # (h, w, cin) center tap
        yc = jnp.dot(xc3.reshape(h * w, cin), wc_ref[...],
                     preferred_element_type=jnp.float32)

        # maxpool 3x3 / stride 1 / pad 1 (-inf halo is only ever a max operand)
        rows = []
        for r in range(3):
            mid = xc3 if r == 1 else x_ref[0, r:r + h, 1:1 + w, :]
            a = jnp.maximum(x_ref[0, r:r + h, 0:w, :], mid)
            rows.append(jnp.maximum(a, x_ref[0, r:r + h, 2:2 + w, :]))
        pool = jnp.maximum(jnp.maximum(rows[0], rows[1]), rows[2])
        yp = jnp.dot(pool.reshape(h * w, cin), wp_ref[...],
                     preferred_element_type=jnp.float32)

        # per-branch lane-dense pre-BN slabs (bf16)
        y1_ref[0] = yc[:, 0:c1].reshape(h, w, c1).astype(y1_ref.dtype)
        y2_ref[0] = yc[:, c1:c1 + c2r].reshape(h, w, c2r).astype(y2_ref.dtype)
        y3_ref[0] = yc[:, c1 + c2r:c1 + c2r + c3r].reshape(h, w, c3r).astype(y3_ref.dtype)
        y4_ref[0] = yp.reshape(h, w, cp).astype(y4_ref.dtype)

        # per-image (sum, sum^2) partials, accumulated in f32
        s = jnp.concatenate([jnp.sum(yc, axis=0, keepdims=True),
                             jnp.sum(yp, axis=0, keepdims=True)], axis=1)
        ss = jnp.concatenate([jnp.sum(yc * yc, axis=0, keepdims=True),
                              jnp.sum(yp * yp, axis=0, keepdims=True)], axis=1)
        st_ref[0] = jnp.concatenate([s, ss], axis=0)

    return pl.pallas_call(
        kernel,
        grid=(n,),
        in_specs=[
            pl.BlockSpec((1, hp2, wp2, cin), lambda b: (b, 0, 0, 0)),
            pl.BlockSpec((cin, c1 + c2r + c3r), lambda b: (0, 0)),
            pl.BlockSpec((cin, cp), lambda b: (0, 0)),
        ],
        out_specs=(
            pl.BlockSpec((1, h, w, c1), lambda b: (b, 0, 0, 0)),
            pl.BlockSpec((1, h, w, c2r), lambda b: (b, 0, 0, 0)),
            pl.BlockSpec((1, h, w, c3r), lambda b: (b, 0, 0, 0)),
            pl.BlockSpec((1, h, w, cp), lambda b: (b, 0, 0, 0)),
            pl.BlockSpec((1, 2, ctot), lambda b: (b, 0, 0)),
        ),
        out_shape=(
            jax.ShapeDtypeStruct((n, h, w, c1), jnp.bfloat16),
            jax.ShapeDtypeStruct((n, h, w, c2r), jnp.bfloat16),
            jax.ShapeDtypeStruct((n, h, w, c3r), jnp.bfloat16),
            jax.ShapeDtypeStruct((n, h, w, cp), jnp.bfloat16),
            jax.ShapeDtypeStruct((n, 2, ctot), jnp.float32),
        ),
        compiler_params=pltpu.CompilerParams(
            dimension_semantics=("parallel",),
            vmem_limit_bytes=VMEM_LIMIT),
    )(xpad, w_cat, w_pool)


# ---------------------------------------------------------------------------
# stage 2: fused reducer-BN+ReLU + b2/b3 3x3 convs (in-kernel 9-tap im2col)
# ---------------------------------------------------------------------------
def inception_stage2(y2pad, y3pad, p2, p3, w2m, w3m):
    n, hp2, wp2, c2r = y2pad.shape
    c3r = y3pad.shape[-1]
    h, w = hp2 - 2, wp2 - 2
    c3 = w2m.shape[1]
    c5 = w3m.shape[1]
    c35 = c3 + c5

    def kernel(y2_ref, y3_ref, p2_ref, p3_ref, w2_ref, w3_ref, o_ref, st_ref):
        # torch zero-pads the *post-activation* tensor, so mask the halo back to 0
        ri = jax.lax.broadcasted_iota(jnp.int32, (hp2, wp2, 1), 0)
        ci = jax.lax.broadcasted_iota(jnp.int32, (hp2, wp2, 1), 1)
        interior = (ri >= 1) & (ri <= h) & (ci >= 1) & (ci <= w)

        outs = []
        for yref, pref, wref, cr in ((y2_ref, p2_ref, w2_ref, c2r),
                                     (y3_ref, p3_ref, w3_ref, c3r)):
            a = jnp.maximum(
                yref[0].astype(jnp.float32) * pref[0:1, :] + pref[1:2, :], 0.0)
            a = jnp.where(interior, a, 0.0).astype(jnp.bfloat16)
            # 9-tap im2col in VMEM -> one (h*w, 9*cr) x (9*cr, cout) matmul
            taps = [a[r:r + h, dx:dx + w, :] for r in range(3) for dx in range(3)]
            xt = jnp.concatenate(taps, axis=-1).reshape(h * w, 9 * cr)
            outs.append(jnp.dot(xt, wref[...], preferred_element_type=jnp.float32))

        y = jnp.concatenate(outs, axis=-1)                 # (h*w, c3+c5) pre-BN
        o_ref[0] = y.reshape(h, w, c35).astype(o_ref.dtype)
        st_ref[0] = jnp.concatenate([jnp.sum(y, axis=0, keepdims=True),
                                     jnp.sum(y * y, axis=0, keepdims=True)], axis=0)

    return pl.pallas_call(
        kernel,
        grid=(n,),
        in_specs=[
            pl.BlockSpec((1, hp2, wp2, c2r), lambda b: (b, 0, 0, 0)),
            pl.BlockSpec((1, hp2, wp2, c3r), lambda b: (b, 0, 0, 0)),
            pl.BlockSpec((2, c2r), lambda b: (0, 0)),
            pl.BlockSpec((2, c3r), lambda b: (0, 0)),
            pl.BlockSpec((9 * c2r, c3), lambda b: (0, 0)),
            pl.BlockSpec((9 * c3r, c5), lambda b: (0, 0)),
        ],
        out_specs=(
            pl.BlockSpec((1, h, w, c35), lambda b: (b, 0, 0, 0)),
            pl.BlockSpec((1, 2, c35), lambda b: (b, 0, 0)),
        ),
        out_shape=(
            jax.ShapeDtypeStruct((n, h, w, c35), jnp.bfloat16),
            jax.ShapeDtypeStruct((n, 2, c35), jnp.float32),
        ),
        compiler_params=pltpu.CompilerParams(
            dimension_semantics=("parallel",),
            vmem_limit_bytes=VMEM_LIMIT),
    )(y2pad, y3pad, p2, p3, w2m, w3m)


# ---------------------------------------------------------------------------
# finalize: BN + ReLU of all 4 branches, written as one lane-dense concat slab
# ---------------------------------------------------------------------------
def inception_finalize(y1, y23, y4, p1, p23, p4, out_dtype=jnp.float32):
    n, hw, c1 = y1.shape
    c35 = y23.shape[-1]
    cp = y4.shape[-1]
    c_out = c1 + c35 + cp

    def kernel(y1_ref, y23_ref, y4_ref, p1_ref, p23_ref, p4_ref, o_ref):
        pieces = []
        for yref, pref in ((y1_ref, p1_ref), (y23_ref, p23_ref), (y4_ref, p4_ref)):
            y = yref[0].astype(jnp.float32)
            pieces.append(jnp.maximum(y * pref[0:1, :] + pref[1:2, :], 0.0))
        o_ref[0] = jnp.concatenate(pieces, axis=-1).astype(o_ref.dtype)

    return pl.pallas_call(
        kernel,
        grid=(n,),
        in_specs=[
            pl.BlockSpec((1, hw, c1), lambda b: (b, 0, 0)),
            pl.BlockSpec((1, hw, c35), lambda b: (b, 0, 0)),
            pl.BlockSpec((1, hw, cp), lambda b: (b, 0, 0)),
            pl.BlockSpec((2, c1), lambda b: (0, 0)),
            pl.BlockSpec((2, c35), lambda b: (0, 0)),
            pl.BlockSpec((2, cp), lambda b: (0, 0)),
        ],
        out_specs=pl.BlockSpec((1, hw, c_out), lambda b: (b, 0, 0)),
        out_shape=jax.ShapeDtypeStruct((n, hw, c_out), out_dtype),
        compiler_params=pltpu.CompilerParams(
            dimension_semantics=("parallel",),
            vmem_limit_bytes=VMEM_LIMIT),
    )(y1, y23, y4, p1, p23, p4)


# ---------------------------------------------------------------------------
# parameter init (deterministic, synthetic) and Inception forward
# ---------------------------------------------------------------------------
def init_basic_conv(key, cin, cout, ksize):
    kw, kg, kb = jax.random.split(key, 3)
    # torch Conv2d layout (Cout, Cin, kh, kw) -> kernel layout (kh, kw, Cin, Cout)
    w = 0.1 * jax.random.normal(kw, (cout, cin, ksize, ksize), jnp.float32)
    w = jnp.transpose(w, (2, 3, 1, 0))
    gamma = 1.0 + 0.1 * jax.random.normal(kg, (cout,), jnp.float32)
    beta = 0.1 * jax.random.normal(kb, (cout,), jnp.float32)
    return {"w": w, "gamma": gamma, "beta": beta}


def init_inception(key, in_channels, ch1x1, ch3x3red, ch3x3,
                   ch5x5red, ch5x5, pool_proj):
    ks = jax.random.split(key, 6)
    return {
        "b1":     init_basic_conv(ks[0], in_channels, ch1x1, 1),
        "b2_red": init_basic_conv(ks[1], in_channels, ch3x3red, 1),
        "b2":     init_basic_conv(ks[2], ch3x3red, ch3x3, 3),
        "b3_red": init_basic_conv(ks[3], in_channels, ch5x5red, 1),
        "b3":     init_basic_conv(ks[4], ch5x5red, ch5x5, 3),  # torchvision quirk: 3x3
        "b4":     init_basic_conv(ks[5], in_channels, pool_proj, 1),
    }


def inception_forward(params, x_nchw, out_dtype=jnp.float32):
    p = params
    # NCHW -> NHWC, bf16 MXU inputs (all BN / accumulation math stays f32)
    x = jnp.transpose(x_nchw, (0, 2, 3, 1)).astype(jnp.bfloat16)
    n, h, w, cin = x.shape
    m = float(n * h * w)

    c1 = p["b1"]["w"].shape[-1]
    c2r = p["b2_red"]["w"].shape[-1]
    c3 = p["b2"]["w"].shape[-1]
    c3r = p["b3_red"]["w"].shape[-1]
    c5 = p["b3"]["w"].shape[-1]
    cp = p["b4"]["w"].shape[-1]

    # ---- stage 1: single padded read of x; -inf halo only ever feeds the maxpool
    xpad = jnp.pad(x, ((0, 0), (1, 1), (1, 1), (0, 0)), constant_values=-jnp.inf)
    w_cat = jnp.concatenate(
        [p["b1"]["w"].reshape(cin, c1),
         p["b2_red"]["w"].reshape(cin, c2r),
         p["b3_red"]["w"].reshape(cin, c3r)], axis=1).astype(jnp.bfloat16)
    w_pool = p["b4"]["w"].reshape(cin, cp).astype(jnp.bfloat16)
    y1, y2r, y3r, y4, st1 = inception_stage1(xpad, w_cat, w_pool, c1, c2r, c3r)

    st1 = jnp.sum(st1, axis=0)          # combine per-image (sum, sum^2) partials
    gamma1 = jnp.concatenate([p["b1"]["gamma"], p["b2_red"]["gamma"],
                              p["b3_red"]["gamma"], p["b4"]["gamma"]])
    beta1 = jnp.concatenate([p["b1"]["beta"], p["b2_red"]["beta"],
                             p["b3_red"]["beta"], p["b4"]["beta"]])
    pair1 = _bn_pair(st1, gamma1, beta1, m)            # (2, c1+c2r+c3r+cp)
    p_b1 = pair1[:, 0:c1]
    p_2r = pair1[:, c1:c1 + c2r]
    p_3r = pair1[:, c1 + c2r:c1 + c2r + c3r]
    p_b4 = pair1[:, c1 + c2r + c3r:]

    # ---- stage 2: reducer BN+ReLU fused in-kernel; zero pre-BN halo, masked post
    y2pad = jnp.pad(y2r, ((0, 0), (1, 1), (1, 1), (0, 0)))
    y3pad = jnp.pad(y3r, ((0, 0), (1, 1), (1, 1), (0, 0)))
    w2m = p["b2"]["w"].reshape(9 * c2r, c3).astype(jnp.bfloat16)
    w3m = p["b3"]["w"].reshape(9 * c3r, c5).astype(jnp.bfloat16)
    y23, st2 = inception_stage2(y2pad, y3pad, p_2r, p_3r, w2m, w3m)

    st2 = jnp.sum(st2, axis=0)
    gamma2 = jnp.concatenate([p["b2"]["gamma"], p["b3"]["gamma"]])
    beta2 = jnp.concatenate([p["b2"]["beta"], p["b3"]["beta"]])
    pair2 = _bn_pair(st2, gamma2, beta2, m)            # (2, c3+c5)

    # ---- finalize: BN+ReLU all branches -> lane-dense concat output ----
    hw = h * w
    out3d = inception_finalize(
        y1.reshape(n, hw, c1), y23.reshape(n, hw, c3 + c5), y4.reshape(n, hw, cp),
        p_b1, pair2, p_b4, out_dtype=out_dtype)

    out = out3d.reshape(n, h, w, c1 + c3 + c5 + cp)
    return jnp.transpose(out, (0, 3, 1, 2))            # NHWC -> NCHW


if __name__ == "__main__":
    key = jax.random.PRNGKey(0)
    k_x, k_p = jax.random.split(key)

    N, C_in, H, W = 2, 4, 16, 16
    ch1x1, ch3x3red, ch3x3, ch5x5red, ch5x5, pool_proj = 8, 4, 8, 4, 8, 8

    x = jax.random.normal(k_x, (N, C_in, H, W), jnp.float32)   # NCHW, like torch
    params = init_inception(k_p, C_in, ch1x1, ch3x3red, ch3x3,
                            ch5x5red, ch5x5, pool_proj)

    out = jax.jit(inception_forward)(params, x)
    jax.block_until_ready(out)
    assert out.shape == (N, ch1x1 + ch3x3 + ch5x5 + pool_proj, H, W)
    assert bool(jnp.all(jnp.isfinite(out)))
    print("KERNEL_OK")
</pallas_src>

<mosaic_0001>
module attributes {stable_mosaic.version = 11 : i64} {
  func.func @kernel(%arg0: i32, %arg1: memref<1x18x18x4xbf16, #tpu.memory_space<vmem>>, %arg2: memref<4x16xbf16, #tpu.memory_space<vmem>>, %arg3: memref<4x8xbf16, #tpu.memory_space<vmem>>, %arg4: memref<1x16x16x8xbf16, #tpu.memory_space<vmem>>, %arg5: memref<1x16x16x4xbf16, #tpu.memory_space<vmem>>, %arg6: memref<1x16x16x4xbf16, #tpu.memory_space<vmem>>, %arg7: memref<1x16x16x8xbf16, #tpu.memory_space<vmem>>, %arg8: memref<1x2x24xf32, #tpu.memory_space<vmem>>) attributes {dimension_semantics = [#tpu.dimension_semantics<parallel>], iteration_bounds = array<i64: 2>, scalar_prefetch = 0 : i64, scratch_operands = 0 : i64, tpu.core_type = #tpu.core_type<tc>, window_params = [{transform_indices = @transform_0, window_bounds = array<i64: 1, 18, 18, 4>}, {pipeline_mode = #tpu.pipeline_mode<synchronous>, transform_indices = @transform_1, window_bounds = array<i64: 4, 16>}, {pipeline_mode = #tpu.pipeline_mode<synchronous>, transform_indices = @transform_2, window_bounds = array<i64: 4, 8>}, {transform_indices = @transform_3, window_bounds = array<i64: 1, 16, 16, 8>}, {transform_indices = @transform_4, window_bounds = array<i64: 1, 16, 16, 4>}, {transform_indices = @transform_5, window_bounds = array<i64: 1, 16, 16, 4>}, {transform_indices = @transform_6, window_bounds = array<i64: 1, 16, 16, 8>}, {transform_indices = @transform_7, window_bounds = array<i64: 1, 2, 24>}]} {
    %c0 = arith.constant 0 : index
    %c1 = arith.constant 1 : index
    %c1_0 = arith.constant 1 : index
    %c0_1 = arith.constant 0 : index
    %0 = vector.load %arg1[%c0, %c1, %c1_0, %c0_1] : memref<1x18x18x4xbf16, #tpu.memory_space<vmem>>, vector<1x16x16x4xbf16>
    %1 = vector.shape_cast %0 : vector<1x16x16x4xbf16> to vector<16x16x4xbf16>
    %2 = vector.shape_cast %1 : vector<16x16x4xbf16> to vector<256x4xbf16>
    %c0_2 = arith.constant 0 : index
    %c0_3 = arith.constant 0 : index
    %3 = vector.load %arg2[%c0_2, %c0_3] : memref<4x16xbf16, #tpu.memory_space<vmem>>, vector<4x16xbf16>
    %cst = arith.constant dense<0.000000e+00> : vector<256x16xf32>
    %4 = tpu.matmul %2, %3, %cst {dimension_numbers = #tpu.dot_dimension_numbers<[1], [0], [0], [1], [0, 0, 1, 1], [], []>} : vector<256x4xbf16>, vector<4x16xbf16>, vector<256x16xf32> -> vector<256x16xf32>
    %c0_4 = arith.constant 0 : index
    %c0_5 = arith.constant 0 : index
    %c1_6 = arith.constant 1 : index
    %c0_7 = arith.constant 0 : index
    %5 = vector.load %arg1[%c0_4, %c0_5, %c1_6, %c0_7] : memref<1x18x18x4xbf16, #tpu.memory_space<vmem>>, vector<1x16x16x4xbf16>
    %6 = vector.shape_cast %5 : vector<1x16x16x4xbf16> to vector<16x16x4xbf16>
    %c0_8 = arith.constant 0 : index
    %c0_9 = arith.constant 0 : index
    %c0_10 = arith.constant 0 : index
    %c0_11 = arith.constant 0 : index
    %7 = vector.load %arg1[%c0_8, %c0_9, %c0_10, %c0_11] : memref<1x18x18x4xbf16, #tpu.memory_space<vmem>>, vector<1x16x16x4xbf16>
    %8 = vector.shape_cast %7 : vector<1x16x16x4xbf16> to vector<16x16x4xbf16>
    %9 = arith.maximumf %8, %6 : vector<16x16x4xbf16>
    %c0_12 = arith.constant 0 : index
    %c0_13 = arith.constant 0 : index
    %c2 = arith.constant 2 : index
    %c0_14 = arith.constant 0 : index
    %10 = vector.load %arg1[%c0_12, %c0_13, %c2, %c0_14] : memref<1x18x18x4xbf16, #tpu.memory_space<vmem>>, vector<1x16x16x4xbf16>
    %11 = vector.shape_cast %10 : vector<1x16x16x4xbf16> to vector<16x16x4xbf16>
    %12 = arith.maximumf %9, %11 : vector<16x16x4xbf16>
    %c0_15 = arith.constant 0 : index
    %c1_16 = arith.constant 1 : index
    %c0_17 = arith.constant 0 : index
    %c0_18 = arith.constant 0 : index
    %13 = vector.load %arg1[%c0_15, %c1_16, %c0_17, %c0_18] : memref<1x18x18x4xbf16, #tpu.memory_space<vmem>>, vector<1x16x16x4xbf16>
    %14 = vector.shape_cast %13 : vector<1x16x16x4xbf16> to vector<16x16x4xbf16>
    %15 = arith.maximumf %14, %1 : vector<16x16x4xbf16>
    %c0_19 = arith.constant 0 : index
    %c1_20 = arith.constant 1 : index
    %c2_21 = arith.constant 2 : index
    %c0_22 = arith.constant 0 : index
    %16 = vector.load %arg1[%c0_19, %c1_20, %c2_21, %c0_22] : memref<1x18x18x4xbf16, #tpu.memory_space<vmem>>, vector<1x16x16x4xbf16>
    %17 = vector.shape_cast %16 : vector<1x16x16x4xbf16> to vector<16x16x4xbf16>
    %18 = arith.maximumf %15, %17 : vector<16x16x4xbf16>
    %c0_23 = arith.constant 0 : index
    %c2_24 = arith.constant 2 : index
    %c1_25 = arith.constant 1 : index
    %c0_26 = arith.constant 0 : index
    %19 = vector.load %arg1[%c0_23, %c2_24, %c1_25, %c0_26] : memref<1x18x18x4xbf16, #tpu.memory_space<vmem>>, vector<1x16x16x4xbf16>
    %20 = vector.shape_cast %19 : vector<1x16x16x4xbf16> to vector<16x16x4xbf16>
    %c0_27 = arith.constant 0 : index
    %c2_28 = arith.constant 2 : index
    %c0_29 = arith.constant 0 : index
    %c0_30 = arith.constant 0 : index
    %21 = vector.load %arg1[%c0_27, %c2_28, %c0_29, %c0_30] : memref<1x18x18x4xbf16, #tpu.memory_space<vmem>>, vector<1x16x16x4xbf16>
    %22 = vector.shape_cast %21 : vector<1x16x16x4xbf16> to vector<16x16x4xbf16>
    %23 = arith.maximumf %22, %20 : vector<16x16x4xbf16>
    %c0_31 = arith.constant 0 : index
    %c2_32 = arith.constant 2 : index
    %c2_33 = arith.constant 2 : index
    %c0_34 = arith.constant 0 : index
    %24 = vector.load %arg1[%c0_31, %c2_32, %c2_33, %c0_34] : memref<1x18x18x4xbf16, #tpu.memory_space<vmem>>, vector<1x16x16x4xbf16>
    %25 = vector.shape_cast %24 : vector<1x16x16x4xbf16> to vector<16x16x4xbf16>
    %26 = arith.maximumf %23, %25 : vector<16x16x4xbf16>
    %27 = arith.maximumf %12, %18 : vector<16x16x4xbf16>
    %28 = arith.maximumf %27, %26 : vector<16x16x4xbf16>
    %29 = vector.shape_cast %28 : vector<16x16x4xbf16> to vector<256x4xbf16>
    %c0_35 = arith.constant 0 : index
    %c0_36 = arith.constant 0 : index
    %30 = vector.load %arg3[%c0_35, %c0_36] : memref<4x8xbf16, #tpu.memory_space<vmem>>, vector<4x8xbf16>
    %cst_37 = arith.constant dense<0.000000e+00> : vector<256x8xf32>
    %31 = tpu.matmul %29, %30, %cst_37 {dimension_numbers = #tpu.dot_dimension_numbers<[1], [0], [0], [1], [0, 0, 1, 1], [], []>} : vector<256x4xbf16>, vector<4x8xbf16>, vector<256x8xf32> -> vector<256x8xf32>
    %32 = vector.extract_strided_slice %4 {offsets = [0, 0], sizes = [256, 8], strides = [1, 1]} : vector<256x16xf32> to vector<256x8xf32>
    %33 = vector.shape_cast %32 : vector<256x8xf32> to vector<16x16x8xf32>
    %34 = arith.truncf %33 : vector<16x16x8xf32> to vector<16x16x8xbf16>
    %c0_38 = arith.constant 0 : index
    %c0_39 = arith.constant 0 : index
    %c0_40 = arith.constant 0 : index
    %c0_41 = arith.constant 0 : index
    %35 = vector.load %arg4[%c0_38, %c0_39, %c0_40, %c0_41] : memref<1x16x16x8xbf16, #tpu.memory_space<vmem>>, vector<1x16x16x8xbf16>
    %36 = vector.shape_cast %35 : vector<1x16x16x8xbf16> to vector<16x16x8xbf16>
    %37 = vector.shape_cast %34 : vector<16x16x8xbf16> to vector<1x16x16x8xbf16>
    tpu.vector_store %arg4[%c0_38, %c0_39, %c0_40, %c0_41], %37 {strides = array<i32>} : memref<1x16x16x8xbf16, #tpu.memory_space<vmem>>, vector<1x16x16x8xbf16>,
    %38 = vector.extract_strided_slice %4 {offsets = [0, 8], sizes = [256, 4], strides = [1, 1]} : vector<256x16xf32> to vector<256x4xf32>
    %39 = vector.shape_cast %38 : vector<256x4xf32> to vector<16x16x4xf32>
    %40 = arith.truncf %39 : vector<16x16x4xf32> to vector<16x16x4xbf16>
    %c0_42 = arith.constant 0 : index
    %c0_43 = arith.constant 0 : index
    %c0_44 = arith.constant 0 : index
    %c0_45 = arith.constant 0 : index
    %41 = vector.load %arg5[%c0_42, %c0_43, %c0_44, %c0_45] : memref<1x16x16x4xbf16, #tpu.memory_space<vmem>>, vector<1x16x16x4xbf16>
    %42 = vector.shape_cast %41 : vector<1x16x16x4xbf16> to vector<16x16x4xbf16>
    %43 = vector.shape_cast %40 : vector<16x16x4xbf16> to vector<1x16x16x4xbf16>
    tpu.vector_store %arg5[%c0_42, %c0_43, %c0_44, %c0_45], %43 {strides = array<i32>} : memref<1x16x16x4xbf16, #tpu.memory_space<vmem>>, vector<1x16x16x4xbf16>,
    %44 = vector.extract_strided_slice %4 {offsets = [0, 12], sizes = [256, 4], strides = [1, 1]} : vector<256x16xf32> to vector<256x4xf32>
    %45 = vector.shape_cast %44 : vector<256x4xf32> to vector<16x16x4xf32>
    %46 = arith.truncf %45 : vector<16x16x4xf32> to vector<16x16x4xbf16>
    %c0_46 = arith.constant 0 : index
    %c0_47 = arith.constant 0 : index
    %c0_48 = arith.constant 0 : index
    %c0_49 = arith.constant 0 : index
    %47 = vector.load %arg6[%c0_46, %c0_47, %c0_48, %c0_49] : memref<1x16x16x4xbf16, #tpu.memory_space<vmem>>, vector<1x16x16x4xbf16>
    %48 = vector.shape_cast %47 : vector<1x16x16x4xbf16> to vector<16x16x4xbf16>
    %49 = vector.shape_cast %46 : vector<16x16x4xbf16> to vector<1x16x16x4xbf16>
    tpu.vector_store %arg6[%c0_46, %c0_47, %c0_48, %c0_49], %49 {strides = array<i32>} : memref<1x16x16x4xbf16, #tpu.memory_space<vmem>>, vector<1x16x16x4xbf16>,
    %50 = vector.shape_cast %31 : vector<256x8xf32> to vector<16x16x8xf32>
    %51 = arith.truncf %50 : vector<16x16x8xf32> to vector<16x16x8xbf16>
    %c0_50 = arith.constant 0 : index
    %c0_51 = arith.constant 0 : index
    %c0_52 = arith.constant 0 : index
    %c0_53 = arith.constant 0 : index
    %52 = vector.load %arg7[%c0_50, %c0_51, %c0_52, %c0_53] : memref<1x16x16x8xbf16, #tpu.memory_space<vmem>>, vector<1x16x16x8xbf16>
    %53 = vector.shape_cast %52 : vector<1x16x16x8xbf16> to vector<16x16x8xbf16>
    %54 = vector.shape_cast %51 : vector<16x16x8xbf16> to vector<1x16x16x8xbf16>
    tpu.vector_store %arg7[%c0_50, %c0_51, %c0_52, %c0_53], %54 {strides = array<i32>} : memref<1x16x16x8xbf16, #tpu.memory_space<vmem>>, vector<1x16x16x8xbf16>,
    %cst_54 = arith.constant dense<0.000000e+00> : vector<16xf32>
    %55 = vector.multi_reduction <add>, %4, %cst_54 [0] : vector<256x16xf32> to vector<16xf32>
    %56 = vector.shape_cast %55 : vector<16xf32> to vector<1x16xf32>
    %cst_55 = arith.constant dense<0.000000e+00> : vector<8xf32>
    %57 = vector.multi_reduction <add>, %31, %cst_55 [0] : vector<256x8xf32> to vector<8xf32>
    %58 = vector.shape_cast %57 : vector<8xf32> to vector<1x8xf32>
    %59 = tpu.concatenate %56, %58 in 1 : vector<1x16xf32>, vector<1x8xf32> -> vector<1x24xf32>
    %60 = arith.mulf %4, %4 : vector<256x16xf32>
    %cst_56 = arith.constant dense<0.000000e+00> : vector<16xf32>
    %61 = vector.multi_reduction <add>, %60, %cst_56 [0] : vector<256x16xf32> to vector<16xf32>
    %62 = vector.shape_cast %61 : vector<16xf32> to vector<1x16xf32>
    %63 = arith.mulf %31, %31 : vector<256x8xf32>
    %cst_57 = arith.constant dense<0.000000e+00> : vector<8xf32>
    %64 = vector.multi_reduction <add>, %63, %cst_57 [0] : vector<256x8xf32> to vector<8xf32>
    %65 = vector.shape_cast %64 : vector<8xf32> to vector<1x8xf32>
    %66 = tpu.concatenate %62, %65 in 1 : vector<1x16xf32>, vector<1x8xf32> -> vector<1x24xf32>
    %67 = tpu.concatenate %59, %66 in 0 : vector<1x24xf32>, vector<1x24xf32> -> vector<2x24xf32>
    %c0_58 = arith.constant 0 : index
    %c0_59 = arith.constant 0 : index
    %c0_60 = arith.constant 0 : index
    %68 = vector.load %arg8[%c0_58, %c0_59, %c0_60] : memref<1x2x24xf32, #tpu.memory_space<vmem>>, vector<1x2x24xf32>
    %69 = vector.shape_cast %68 : vector<1x2x24xf32> to vector<2x24xf32>
    %70 = vector.shape_cast %67 : vector<2x24xf32> to vector<1x2x24xf32>
    tpu.vector_store %arg8[%c0_58, %c0_59, %c0_60], %70 {strides = array<i32>} : memref<1x2x24xf32, #tpu.memory_space<vmem>>, vector<1x2x24xf32>,
    return
  }
  func.func @transform_0(%arg0: i32) -> (i32, i32, i32, i32) {
    %c0_i32 = arith.constant 0 : i32
    %c0_i32_0 = arith.constant 0 : i32
    %c0_i32_1 = arith.constant 0 : i32
    %c0_i32_2 = arith.constant 0 : i32
    return %arg0, %c0_i32, %c0_i32_0, %c0_i32_1 : i32, i32, i32, i32
  }
  func.func @transform_1(%arg0: i32) -> (i32, i32) {
    %c0_i32 = arith.constant 0 : i32
    %c0_i32_0 = arith.constant 0 : i32
    %c0_i32_1 = arith.constant 0 : i32
    return %c0_i32, %c0_i32_0 : i32, i32
  }
  func.func @transform_2(%arg0: i32) -> (i32, i32) {
    %c0_i32 = arith.constant 0 : i32
    %c0_i32_0 = arith.constant 0 : i32
    %c0_i32_1 = arith.constant 0 : i32
    return %c0_i32, %c0_i32_0 : i32, i32
  }
  func.func @transform_3(%arg0: i32) -> (i32, i32, i32, i32) {
    %c0_i32 = arith.constant 0 : i32
    %c0_i32_0 = arith.constant 0 : i32
    %c0_i32_1 = arith.constant 0 : i32
    %c0_i32_2 = arith.constant 0 : i32
    return %arg0, %c0_i32, %c0_i32_0, %c0_i32_1 : i32, i32, i32, i32
  }
  func.func @transform_4(%arg0: i32) -> (i32, i32, i32, i32) {
    %c0_i32 = arith.constant 0 : i32
    %c0_i32_0 = arith.constant 0 : i32
    %c0_i32_1 = arith.constant 0 : i32
    %c0_i32_2 = arith.constant 0 : i32
    return %arg0, %c0_i32, %c0_i32_0, %c0_i32_1 : i32, i32, i32, i32
  }
  func.func @transform_5(%arg0: i32) -> (i32, i32, i32, i32) {
    %c0_i32 = arith.constant 0 : i32
    %c0_i32_0 = arith.constant 0 : i32
    %c0_i32_1 = arith.constant 0 : i32
    %c0_i32_2 = arith.constant 0 : i32
    return %arg0, %c0_i32, %c0_i32_0, %c0_i32_1 : i32, i32, i32, i32
  }
  func.func @transform_6(%arg0: i32) -> (i32, i32, i32, i32) {
    %c0_i32 = arith.constant 0 : i32
    %c0_i32_0 = arith.constant 0 : i32
    %c0_i32_1 = arith.constant 0 : i32
    %c0_i32_2 = arith.constant 0 : i32
    return %arg0, %c0_i32, %c0_i32_0, %c0_i32_1 : i32, i32, i32, i32
  }
  func.func @transform_7(%arg0: i32) -> (i32, i32, i32) {
    %c0_i32 = arith.constant 0 : i32
    %c0_i32_0 = arith.constant 0 : i32
    %c0_i32_1 = arith.constant 0 : i32
    return %arg0, %c0_i32, %c0_i32_0 : i32, i32, i32
  }
}

module attributes {stable_mosaic.version = 11 : i64} {
  func.func @kernel(%arg0: i32, %arg1: memref<1x18x18x4xbf16, #tpu.memory_space<vmem>>, %arg2: memref<1x18x18x4xbf16, #tpu.memory_space<vmem>>, %arg3: memref<2x4xf32, #tpu.memory_space<vmem>>, %arg4: memref<2x4xf32, #tpu.memory_space<vmem>>, %arg5: memref<36x8xbf16, #tpu.memory_space<vmem>>, %arg6: memref<36x8xbf16, #tpu.memory_space<vmem>>, %arg7: memref<1x16x16x16xbf16, #tpu.memory_space<vmem>>, %arg8: memref<1x2x16xf32, #tpu.memory_space<vmem>>) attributes {dimension_semantics = [#tpu.dimension_semantics<parallel>], iteration_bounds = array<i64: 2>, scalar_prefetch = 0 : i64, scratch_operands = 0 : i64, tpu.core_type = #tpu.core_type<tc>, window_params = [{transform_indices = @transform_0, window_bounds = array<i64: 1, 18, 18, 4>}, {transform_indices = @transform_1, window_bounds = array<i64: 1, 18, 18, 4>}, {pipeline_mode = #tpu.pipeline_mode<synchronous>, transform_indices = @transform_2, window_bounds = array<i64: 2, 4>}, {pipeline_mode = #tpu.pipeline_mode<synchronous>, transform_indices = @transform_3, window_bounds = array<i64: 2, 4>}, {pipeline_mode = #tpu.pipeline_mode<synchronous>, transform_indices = @transform_4, window_bounds = array<i64: 36, 8>}, {pipeline_mode = #tpu.pipeline_mode<synchronous>, transform_indices = @transform_5, window_bounds = array<i64: 36, 8>}, {transform_indices = @transform_6, window_bounds = array<i64: 1, 16, 16, 16>}, {transform_indices = @transform_7, window_bounds = array<i64: 1, 2, 16>}]} {
    %0 = tpu.iota {dimensions = array<i32: 0>} : vector<18x18x1xi32>
    %1 = tpu.iota {dimensions = array<i32: 1>} : vector<18x18x1xi32>
    %c1_i32 = arith.constant 1 : i32
    %2 = vector.broadcast %c1_i32 : i32 to vector<18x18x1xi32>
    %3 = arith.cmpi sge, %0, %2 : vector<18x18x1xi32>
    %c16_i32 = arith.constant 16 : i32
    %4 = vector.broadcast %c16_i32 : i32 to vector<18x18x1xi32>
    %5 = arith.cmpi sle, %0, %4 : vector<18x18x1xi32>
    %6 = arith.andi %3, %5 : vector<18x18x1xi1>
    %c1_i32_0 = arith.constant 1 : i32
    %7 = vector.broadcast %c1_i32_0 : i32 to vector<18x18x1xi32>
    %8 = arith.cmpi sge, %1, %7 : vector<18x18x1xi32>
    %9 = arith.andi %6, %8 : vector<18x18x1xi1>
    %c16_i32_1 = arith.constant 16 : i32
    %10 = vector.broadcast %c16_i32_1 : i32 to vector<18x18x1xi32>
    %11 = arith.cmpi sle, %1, %10 : vector<18x18x1xi32>
    %12 = arith.andi %9, %11 : vector<18x18x1xi1>
    %c0 = arith.constant 0 : index
    %c0_2 = arith.constant 0 : index
    %c0_3 = arith.constant 0 : index
    %c0_4 = arith.constant 0 : index
    %13 = vector.load %arg1[%c0, %c0_2, %c0_3, %c0_4] : memref<1x18x18x4xbf16, #tpu.memory_space<vmem>>, vector<1x18x18x4xbf16>
    %14 = vector.shape_cast %13 : vector<1x18x18x4xbf16> to vector<18x18x4xbf16>
    %15 = arith.extf %14 : vector<18x18x4xbf16> to vector<18x18x4xf32>
    %c0_5 = arith.constant 0 : index
    %c0_6 = arith.constant 0 : index
    %16 = vector.load %arg3[%c0_5, %c0_6] : memref<2x4xf32, #tpu.memory_space<vmem>>, vector<1x4xf32>
    %17 = vector.shape_cast %16 : vector<1x4xf32> to vector<1x1x4xf32>
    %18 = vector.broadcast %17 : vector<1x1x4xf32> to vector<18x18x4xf32>
    %19 = arith.mulf %15, %18 : vector<18x18x4xf32>
    %c1 = arith.constant 1 : index
    %c0_7 = arith.constant 0 : index
    %20 = vector.load %arg3[%c1, %c0_7] : memref<2x4xf32, #tpu.memory_space<vmem>>, vector<1x4xf32>
    %21 = vector.shape_cast %20 : vector<1x4xf32> to vector<1x1x4xf32>
    %22 = vector.broadcast %21 : vector<1x1x4xf32> to vector<18x18x4xf32>
    %23 = arith.addf %19, %22 : vector<18x18x4xf32>
    %cst = arith.constant 0.000000e+00 : f32
    %24 = vector.broadcast %cst : f32 to vector<18x18x4xf32>
    %25 = arith.maximumf %23, %24 : vector<18x18x4xf32>
    %cst_8 = arith.constant 0.000000e+00 : f32
    %26 = vector.shape_cast %12 : vector<18x18x1xi1> to vector<18x18x1xi1>
    %27 = vector.broadcast %26 : vector<18x18x1xi1> to vector<18x18x4xi1>
    %28 = vector.broadcast %cst_8 : f32 to vector<18x18x4xf32>
    %29 = arith.select %27, %25, %28 : vector<18x18x4xi1>, vector<18x18x4xf32>
    %30 = arith.truncf %29 : vector<18x18x4xf32> to vector<18x18x4xbf16>
    %31 = vector.extract_strided_slice %30 {offsets = [0, 0, 0], sizes = [16, 16, 4], strides = [1, 1, 1]} : vector<18x18x4xbf16> to vector<16x16x4xbf16>
    %32 = vector.extract_strided_slice %30 {offsets = [0, 1, 0], sizes = [16, 16, 4], strides = [1, 1, 1]} : vector<18x18x4xbf16> to vector<16x16x4xbf16>
    %33 = vector.extract_strided_slice %30 {offsets = [0, 2, 0], sizes = [16, 16, 4], strides = [1, 1, 1]} : vector<18x18x4xbf16> to vector<16x16x4xbf16>
    %34 = vector.extract_strided_slice %30 {offsets = [1, 0, 0], sizes = [16, 16, 4], strides = [1, 1, 1]} : vector<18x18x4xbf16> to vector<16x16x4xbf16>
    %35 = vector.extract_strided_slice %30 {offsets = [1, 1, 0], sizes = [16, 16, 4], strides = [1, 1, 1]} : vector<18x18x4xbf16> to vector<16x16x4xbf16>
    %36 = vector.extract_strided_slice %30 {offsets = [1, 2, 0], sizes = [16, 16, 4], strides = [1, 1, 1]} : vector<18x18x4xbf16> to vector<16x16x4xbf16>
    %37 = vector.extract_strided_slice %30 {offsets = [2, 0, 0], sizes = [16, 16, 4], strides = [1, 1, 1]} : vector<18x18x4xbf16> to vector<16x16x4xbf16>
    %38 = vector.extract_strided_slice %30 {offsets = [2, 1, 0], sizes = [16, 16, 4], strides = [1, 1, 1]} : vector<18x18x4xbf16> to vector<16x16x4xbf16>
    %39 = vector.extract_strided_slice %30 {offsets = [2, 2, 0], sizes = [16, 16, 4], strides = [1, 1, 1]} : vector<18x18x4xbf16> to vector<16x16x4xbf16>
    %40 = tpu.concatenate %31, %32, %33, %34, %35, %36, %37, %38, %39 in 2 : vector<16x16x4xbf16>, vector<16x16x4xbf16>, vector<16x16x4xbf16>, vector<16x16x4xbf16>, vector<16x16x4xbf16>, vector<16x16x4xbf16>, vector<16x16x4xbf16>, vector<16x16x4xbf16>, vector<16x16x4xbf16> -> vector<16x16x36xbf16>
    %41 = vector.shape_cast %40 : vector<16x16x36xbf16> to vector<256x36xbf16>
    %c0_9 = arith.constant 0 : index
    %c0_10 = arith.constant 0 : index
    %42 = vector.load %arg5[%c0_9, %c0_10] : memref<36x8xbf16, #tpu.memory_space<vmem>>, vector<36x8xbf16>
    %cst_11 = arith.constant dense<0.000000e+00> : vector<256x8xf32>
    %43 = tpu.matmul %41, %42, %cst_11 {dimension_numbers = #tpu.dot_dimension_numbers<[1], [0], [0], [1], [0, 0, 1, 1], [], []>} : vector<256x36xbf16>, vector<36x8xbf16>, vector<256x8xf32> -> vector<256x8xf32>
    %c0_12 = arith.constant 0 : index
    %c0_13 = arith.constant 0 : index
    %c0_14 = arith.constant 0 : index
    %c0_15 = arith.constant 0 : index
    %44 = vector.load %arg2[%c0_12, %c0_13, %c0_14, %c0_15] : memref<1x18x18x4xbf16, #tpu.memory_space<vmem>>, vector<1x18x18x4xbf16>
    %45 = vector.shape_cast %44 : vector<1x18x18x4xbf16> to vector<18x18x4xbf16>
    %46 = arith.extf %45 : vector<18x18x4xbf16> to vector<18x18x4xf32>
    %c0_16 = arith.constant 0 : index
    %c0_17 = arith.constant 0 : index
    %47 = vector.load %arg4[%c0_16, %c0_17] : memref<2x4xf32, #tpu.memory_space<vmem>>, vector<1x4xf32>
    %48 = vector.shape_cast %47 : vector<1x4xf32> to vector<1x1x4xf32>
    %49 = vector.broadcast %48 : vector<1x1x4xf32> to vector<18x18x4xf32>
    %50 = arith.mulf %46, %49 : vector<18x18x4xf32>
    %c1_18 = arith.constant 1 : index
    %c0_19 = arith.constant 0 : index
    %51 = vector.load %arg4[%c1_18, %c0_19] : memref<2x4xf32, #tpu.memory_space<vmem>>, vector<1x4xf32>
    %52 = vector.shape_cast %51 : vector<1x4xf32> to vector<1x1x4xf32>
    %53 = vector.broadcast %52 : vector<1x1x4xf32> to vector<18x18x4xf32>
    %54 = arith.addf %50, %53 : vector<18x18x4xf32>
    %cst_20 = arith.constant 0.000000e+00 : f32
    %55 = vector.broadcast %cst_20 : f32 to vector<18x18x4xf32>
    %56 = arith.maximumf %54, %55 : vector<18x18x4xf32>
    %cst_21 = arith.constant 0.000000e+00 : f32
    %57 = vector.shape_cast %12 : vector<18x18x1xi1> to vector<18x18x1xi1>
    %58 = vector.broadcast %57 : vector<18x18x1xi1> to vector<18x18x4xi1>
    %59 = vector.broadcast %cst_21 : f32 to vector<18x18x4xf32>
    %60 = arith.select %58, %56, %59 : vector<18x18x4xi1>, vector<18x18x4xf32>
    %61 = arith.truncf %60 : vector<18x18x4xf32> to vector<18x18x4xbf16>
    %62 = vector.extract_strided_slice %61 {offsets = [0, 0, 0], sizes = [16, 16, 4], strides = [1, 1, 1]} : vector<18x18x4xbf16> to vector<16x16x4xbf16>
    %63 = vector.extract_strided_slice %61 {offsets = [0, 1, 0], sizes = [16, 16, 4], strides = [1, 1, 1]} : vector<18x18x4xbf16> to vector<16x16x4xbf16>
    %64 = vector.extract_strided_slice %61 {offsets = [0, 2, 0], sizes = [16, 16, 4], strides = [1, 1, 1]} : vector<18x18x4xbf16> to vector<16x16x4xbf16>
    %65 = vector.extract_strided_slice %61 {offsets = [1, 0, 0], sizes = [16, 16, 4], strides = [1, 1, 1]} : vector<18x18x4xbf16> to vector<16x16x4xbf16>
    %66 = vector.extract_strided_slice %61 {offsets = [1, 1, 0], sizes = [16, 16, 4], strides = [1, 1, 1]} : vector<18x18x4xbf16> to vector<16x16x4xbf16>
    %67 = vector.extract_strided_slice %61 {offsets = [1, 2, 0], sizes = [16, 16, 4], strides = [1, 1, 1]} : vector<18x18x4xbf16> to vector<16x16x4xbf16>
    %68 = vector.extract_strided_slice %61 {offsets = [2, 0, 0], sizes = [16, 16, 4], strides = [1, 1, 1]} : vector<18x18x4xbf16> to vector<16x16x4xbf16>
    %69 = vector.extract_strided_slice %61 {offsets = [2, 1, 0], sizes = [16, 16, 4], strides = [1, 1, 1]} : vector<18x18x4xbf16> to vector<16x16x4xbf16>
    %70 = vector.extract_strided_slice %61 {offsets = [2, 2, 0], sizes = [16, 16, 4], strides = [1, 1, 1]} : vector<18x18x4xbf16> to vector<16x16x4xbf16>
    %71 = tpu.concatenate %62, %63, %64, %65, %66, %67, %68, %69, %70 in 2 : vector<16x16x4xbf16>, vector<16x16x4xbf16>, vector<16x16x4xbf16>, vector<16x16x4xbf16>, vector<16x16x4xbf16>, vector<16x16x4xbf16>, vector<16x16x4xbf16>, vector<16x16x4xbf16>, vector<16x16x4xbf16> -> vector<16x16x36xbf16>
    %72 = vector.shape_cast %71 : vector<16x16x36xbf16> to vector<256x36xbf16>
    %c0_22 = arith.constant 0 : index
    %c0_23 = arith.constant 0 : index
    %73 = vector.load %arg6[%c0_22, %c0_23] : memref<36x8xbf16, #tpu.memory_space<vmem>>, vector<36x8xbf16>
    %cst_24 = arith.constant dense<0.000000e+00> : vector<256x8xf32>
    %74 = tpu.matmul %72, %73, %cst_24 {dimension_numbers = #tpu.dot_dimension_numbers<[1], [0], [0], [1], [0, 0, 1, 1], [], []>} : vector<256x36xbf16>, vector<36x8xbf16>, vector<256x8xf32> -> vector<256x8xf32>
    %75 = tpu.concatenate %43, %74 in 1 : vector<256x8xf32>, vector<256x8xf32> -> vector<256x16xf32>
    %76 = vector.shape_cast %75 : vector<256x16xf32> to vector<16x16x16xf32>
    %77 = arith.truncf %76 : vector<16x16x16xf32> to vector<16x16x16xbf16>
    %c0_25 = arith.constant 0 : index
    %c0_26 = arith.constant 0 : index
    %c0_27 = arith.constant 0 : index
    %c0_28 = arith.constant 0 : index
    %78 = vector.load %arg7[%c0_25, %c0_26, %c0_27, %c0_28] : memref<1x16x16x16xbf16, #tpu.memory_space<vmem>>, vector<1x16x16x16xbf16>
    %79 = vector.shape_cast %78 : vector<1x16x16x16xbf16> to vector<16x16x16xbf16>
    %80 = vector.shape_cast %77 : vector<16x16x16xbf16> to vector<1x16x16x16xbf16>
    tpu.vector_store %arg7[%c0_25, %c0_26, %c0_27, %c0_28], %80 {strides = array<i32>} : memref<1x16x16x16xbf16, #tpu.memory_space<vmem>>, vector<1x16x16x16xbf16>,
    %cst_29 = arith.constant dense<0.000000e+00> : vector<16xf32>
    %81 = vector.multi_reduction <add>, %75, %cst_29 [0] : vector<256x16xf32> to vector<16xf32>
    %82 = vector.shape_cast %81 : vector<16xf32> to vector<1x16xf32>
    %83 = arith.mulf %75, %75 : vector<256x16xf32>
    %cst_30 = arith.constant dense<0.000000e+00> : vector<16xf32>
    %84 = vector.multi_reduction <add>, %83, %cst_30 [0] : vector<256x16xf32> to vector<16xf32>
    %85 = vector.shape_cast %84 : vector<16xf32> to vector<1x16xf32>
    %86 = tpu.concatenate %82, %85 in 0 : vector<1x16xf32>, vector<1x16xf32> -> vector<2x16xf32>
    %c0_31 = arith.constant 0 : index
    %c0_32 = arith.constant 0 : index
    %c0_33 = arith.constant 0 : index
    %87 = vector.load %arg8[%c0_31, %c0_32, %c0_33] : memref<1x2x16xf32, #tpu.memory_space<vmem>>, vector<1x2x16xf32>
    %88 = vector.shape_cast %87 : vector<1x2x16xf32> to vector<2x16xf32>
    %89 = vector.shape_cast %86 : vector<2x16xf32> to vector<1x2x16xf32>
    tpu.vector_store %arg8[%c0_31, %c0_32, %c0_33], %89 {strides = array<i32>} : memref<1x2x16xf32, #tpu.memory_space<vmem>>, vector<1x2x16xf32>,
    return
  }
  func.func @transform_0(%arg0: i32) -> (i32, i32, i32, i32) {
    %c0_i32 = arith.constant 0 : i32
    %c0_i32_0 = arith.constant 0 : i32
    %c0_i32_1 = arith.constant 0 : i32
    %c0_i32_2 = arith.constant 0 : i32
    return %arg0, %c0_i32, %c0_i32_0, %c0_i32_1 : i32, i32, i32, i32
  }
  func.func @transform_1(%arg0: i32) -> (i32, i32, i32, i32) {
    %c0_i32 = arith.constant 0 : i32
    %c0_i32_0 = arith.constant 0 : i32
    %c0_i32_1 = arith.constant 0 : i32
    %c0_i32_2 = arith.constant 0 : i32
    return %arg0, %c0_i32, %c0_i32_0, %c0_i32_1 : i32, i32, i32, i32
  }
  func.func @transform_2(%arg0: i32) -> (i32, i32) {
    %c0_i32 = arith.constant 0 : i32
    %c0_i32_0 = arith.constant 0 : i32
    %c0_i32_1 = arith.constant 0 : i32
    return %c0_i32, %c0_i32_0 : i32, i32
  }
  func.func @transform_3(%arg0: i32) -> (i32, i32) {
    %c0_i32 = arith.constant 0 : i32
    %c0_i32_0 = arith.constant 0 : i32
    %c0_i32_1 = arith.constant 0 : i32
    return %c0_i32, %c0_i32_0 : i32, i32
  }
  func.func @transform_4(%arg0: i32) -> (i32, i32) {
    %c0_i32 = arith.constant 0 : i32
    %c0_i32_0 = arith.constant 0 : i32
    %c0_i32_1 = arith.constant 0 : i32
    return %c0_i32, %c0_i32_0 : i32, i32
  }
  func.func @transform_5(%arg0: i32) -> (i32, i32) {
    %c0_i32 = arith.constant 0 : i32
    %c0_i32_0 = arith.constant 0 : i32
    %c0_i32_1 = arith.constant 0 : i32
    return %c0_i32, %c0_i32_0 : i32, i32
  }
  func.func @transform_6(%arg0: i32) -> (i32, i32, i32, i32) {
    %c0_i32 = arith.constant 0 : i32
    %c0_i32_0 = arith.constant 0 : i32
    %c0_i32_1 = arith.constant 0 : i32
    %c0_i32_2 = arith.constant 0 : i32
    return %arg0, %c0_i32, %c0_i32_0, %c0_i32_1 : i32, i32, i32, i32
  }
  func.func @transform_7(%arg0: i32) -> (i32, i32, i32) {
    %c0_i32 = arith.constant 0 : i32
    %c0_i32_0 = arith.constant 0 : i32
    %c0_i32_1 = arith.constant 0 : i32
    return %arg0, %c0_i32, %c0_i32_0 : i32, i32, i32
  }
}

module attributes {stable_mosaic.version = 11 : i64} {
  func.func @kernel(%arg0: i32, %arg1: memref<1x256x8xbf16, #tpu.memory_space<vmem>>, %arg2: memref<1x256x16xbf16, #tpu.memory_space<vmem>>, %arg3: memref<1x256x8xbf16, #tpu.memory_space<vmem>>, %arg4: memref<2x8xf32, #tpu.memory_space<vmem>>, %arg5: memref<2x16xf32, #tpu.memory_space<vmem>>, %arg6: memref<2x8xf32, #tpu.memory_space<vmem>>, %arg7: memref<1x256x32xf32, #tpu.memory_space<vmem>>) attributes {dimension_semantics = [#tpu.dimension_semantics<parallel>], iteration_bounds = array<i64: 2>, scalar_prefetch = 0 : i64, scratch_operands = 0 : i64, tpu.core_type = #tpu.core_type<tc>, window_params = [{transform_indices = @transform_0, window_bounds = array<i64: 1, 256, 8>}, {transform_indices = @transform_1, window_bounds = array<i64: 1, 256, 16>}, {transform_indices = @transform_2, window_bounds = array<i64: 1, 256, 8>}, {pipeline_mode = #tpu.pipeline_mode<synchronous>, transform_indices = @transform_3, window_bounds = array<i64: 2, 8>}, {pipeline_mode = #tpu.pipeline_mode<synchronous>, transform_indices = @transform_4, window_bounds = array<i64: 2, 16>}, {pipeline_mode = #tpu.pipeline_mode<synchronous>, transform_indices = @transform_5, window_bounds = array<i64: 2, 8>}, {transform_indices = @transform_6, window_bounds = array<i64: 1, 256, 32>}]} {
    %c0 = arith.constant 0 : index
    %c0_0 = arith.constant 0 : index
    %c0_1 = arith.constant 0 : index
    %0 = vector.load %arg1[%c0, %c0_0, %c0_1] : memref<1x256x8xbf16, #tpu.memory_space<vmem>>, vector<1x256x8xbf16>
    %1 = vector.shape_cast %0 : vector<1x256x8xbf16> to vector<256x8xbf16>
    %2 = arith.extf %1 : vector<256x8xbf16> to vector<256x8xf32>
    %c0_2 = arith.constant 0 : index
    %c0_3 = arith.constant 0 : index
    %3 = vector.load %arg4[%c0_2, %c0_3] : memref<2x8xf32, #tpu.memory_space<vmem>>, vector<1x8xf32>
    %4 = vector.broadcast %3 : vector<1x8xf32> to vector<256x8xf32>
    %5 = arith.mulf %2, %4 : vector<256x8xf32>
    %c1 = arith.constant 1 : index
    %c0_4 = arith.constant 0 : index
    %6 = vector.load %arg4[%c1, %c0_4] : memref<2x8xf32, #tpu.memory_space<vmem>>, vector<1x8xf32>
    %7 = vector.broadcast %6 : vector<1x8xf32> to vector<256x8xf32>
    %8 = arith.addf %5, %7 : vector<256x8xf32>
    %cst = arith.constant 0.000000e+00 : f32
    %9 = vector.broadcast %cst : f32 to vector<256x8xf32>
    %10 = arith.maximumf %8, %9 : vector<256x8xf32>
    %c0_5 = arith.constant 0 : index
    %c0_6 = arith.constant 0 : index
    %c0_7 = arith.constant 0 : index
    %11 = vector.load %arg2[%c0_5, %c0_6, %c0_7] : memref<1x256x16xbf16, #tpu.memory_space<vmem>>, vector<1x256x16xbf16>
    %12 = vector.shape_cast %11 : vector<1x256x16xbf16> to vector<256x16xbf16>
    %13 = arith.extf %12 : vector<256x16xbf16> to vector<256x16xf32>
    %c0_8 = arith.constant 0 : index
    %c0_9 = arith.constant 0 : index
    %14 = vector.load %arg5[%c0_8, %c0_9] : memref<2x16xf32, #tpu.memory_space<vmem>>, vector<1x16xf32>
    %15 = vector.broadcast %14 : vector<1x16xf32> to vector<256x16xf32>
    %16 = arith.mulf %13, %15 : vector<256x16xf32>
    %c1_10 = arith.constant 1 : index
    %c0_11 = arith.constant 0 : index
    %17 = vector.load %arg5[%c1_10, %c0_11] : memref<2x16xf32, #tpu.memory_space<vmem>>, vector<1x16xf32>
    %18 = vector.broadcast %17 : vector<1x16xf32> to vector<256x16xf32>
    %19 = arith.addf %16, %18 : vector<256x16xf32>
    %cst_12 = arith.constant 0.000000e+00 : f32
    %20 = vector.broadcast %cst_12 : f32 to vector<256x16xf32>
    %21 = arith.maximumf %19, %20 : vector<256x16xf32>
    %c0_13 = arith.constant 0 : index
    %c0_14 = arith.constant 0 : index
    %c0_15 = arith.constant 0 : index
    %22 = vector.load %arg3[%c0_13, %c0_14, %c0_15] : memref<1x256x8xbf16, #tpu.memory_space<vmem>>, vector<1x256x8xbf16>
    %23 = vector.shape_cast %22 : vector<1x256x8xbf16> to vector<256x8xbf16>
    %24 = arith.extf %23 : vector<256x8xbf16> to vector<256x8xf32>
    %c0_16 = arith.constant 0 : index
    %c0_17 = arith.constant 0 : index
    %25 = vector.load %arg6[%c0_16, %c0_17] : memref<2x8xf32, #tpu.memory_space<vmem>>, vector<1x8xf32>
    %26 = vector.broadcast %25 : vector<1x8xf32> to vector<256x8xf32>
    %27 = arith.mulf %24, %26 : vector<256x8xf32>
    %c1_18 = arith.constant 1 : index
    %c0_19 = arith.constant 0 : index
    %28 = vector.load %arg6[%c1_18, %c0_19] : memref<2x8xf32, #tpu.memory_space<vmem>>, vector<1x8xf32>
    %29 = vector.broadcast %28 : vector<1x8xf32> to vector<256x8xf32>
    %30 = arith.addf %27, %29 : vector<256x8xf32>
    %cst_20 = arith.constant 0.000000e+00 : f32
    %31 = vector.broadcast %cst_20 : f32 to vector<256x8xf32>
    %32 = arith.maximumf %30, %31 : vector<256x8xf32>
    %33 = tpu.concatenate %10, %21, %32 in 1 : vector<256x8xf32>, vector<256x16xf32>, vector<256x8xf32> -> vector<256x32xf32>
    %c0_21 = arith.constant 0 : index
    %c0_22 = arith.constant 0 : index
    %c0_23 = arith.constant 0 : index
    %34 = vector.load %arg7[%c0_21, %c0_22, %c0_23] : memref<1x256x32xf32, #tpu.memory_space<vmem>>, vector<1x256x32xf32>
    %35 = vector.shape_cast %34 : vector<1x256x32xf32> to vector<256x32xf32>
    %36 = vector.shape_cast %33 : vector<256x32xf32> to vector<1x256x32xf32>
    tpu.vector_store %arg7[%c0_21, %c0_22, %c0_23], %36 {strides = array<i32>} : memref<1x256x32xf32, #tpu.memory_space<vmem>>, vector<1x256x32xf32>,
    return
  }
  func.func @transform_0(%arg0: i32) -> (i32, i32, i32) {
    %c0_i32 = arith.constant 0 : i32
    %c0_i32_0 = arith.constant 0 : i32
    %c0_i32_1 = arith.constant 0 : i32
    return %arg0, %c0_i32, %c0_i32_0 : i32, i32, i32
  }
  func.func @transform_1(%arg0: i32) -> (i32, i32, i32) {
    %c0_i32 = arith.constant 0 : i32
    %c0_i32_0 = arith.constant 0 : i32
    %c0_i32_1 = arith.constant 0 : i32
    return %arg0, %c0_i32, %c0_i32_0 : i32, i32, i32
  }
  func.func @transform_2(%arg0: i32) -> (i32, i32, i32) {
    %c0_i32 = arith.constant 0 : i32
    %c0_i32_0 = arith.constant 0 : i32
    %c0_i32_1 = arith.constant 0 : i32
    return %arg0, %c0_i32, %c0_i32_0 : i32, i32, i32
  }
  func.func @transform_3(%arg0: i32) -> (i32, i32) {
    %c0_i32 = arith.constant 0 : i32
    %c0_i32_0 = arith.constant 0 : i32
    %c0_i32_1 = arith.constant 0 : i32
    return %c0_i32, %c0_i32_0 : i32, i32
  }
  func.func @transform_4(%arg0: i32) -> (i32, i32) {
    %c0_i32 = arith.constant 0 : i32
    %c0_i32_0 = arith.constant 0 : i32
    %c0_i32_1 = arith.constant 0 : i32
    return %c0_i32, %c0_i32_0 : i32, i32
  }
  func.func @transform_5(%arg0: i32) -> (i32, i32) {
    %c0_i32 = arith.constant 0 : i32
    %c0_i32_0 = arith.constant 0 : i32
    %c0_i32_1 = arith.constant 0 : i32
    return %c0_i32, %c0_i32_0 : i32, i32
  }
  func.func @transform_6(%arg0: i32) -> (i32, i32, i32) {
    %c0_i32 = arith.constant 0 : i32
    %c0_i32_0 = arith.constant 0 : i32
    %c0_i32_1 = arith.constant 0 : i32
    return %arg0, %c0_i32, %c0_i32_0 : i32, i32, i32
  }
}

</mosaic_0001>

<bundles_post_ra>
// kernel: inception_forward.5
= control target key start
LH: loop header
LB: loop body
LE: loop exit
PB: predicated region body
PF: predicated region fallthrough
CT: control target
= control target key end

     0   :  { %11 = vsyncpa [#allocation3], 0  ;;  %s2353_s0 = inlined_call_operand.vmem [shape: bf16[2,256,8], index: 0, kind: input, shape index: {}]   ;;  %s2354_s1 = inlined_call_operand.vmem [shape: bf16[2,256,16], index: 1, kind: input, shape index: {}]   ;;  %s2355_s2 = inlined_call_operand.vmem [shape: bf16[2,256,8], index: 2, kind: input, shape index: {}]   ;;  %s2356_s3 = inlined_call_operand.vmem [shape: f32[2,8], index: 3, kind: input, shape index: {}]   ;;  %s2357_s4 = inlined_call_operand.vmem [shape: f32[2,16], index: 4, kind: input, shape index: {}]   ;;  %s2358_s5 = inlined_call_operand.vmem [shape: f32[2,8], index: 5, kind: input, shape index: {}]   ;;  %s2359_s6 = inlined_call_operand.hbm [shape: f32[2,256,32], index: 6, kind: output, shape index: {}]  }
   0x1   :  { %13 = vsyncpa [#allocation3 + $0x1], 0  ;;  %s1663_s21 = smov 0   ;;  %s1665_s22 = smov 0  }
   0x2   :  { %s1667_s23 = smov 0   ;;  %s1669_s24 = smov 0  }
   0x3 LB: > { %s1684_s25 = sadd.s32 4294967295, %s1622_s24   ;;  %s1255_s26 = sadd.s32 4294967294, %s1622_s24   ;;  %s1622_s24 = sphi %s1669_s24, %s2365_s24   ;;  %s1618_s23 = sphi %s1667_s23, %s2364_s23   ;;  %s1614_s22 = sphi %s1665_s22, %s2363_s22   ;;  %s1610_s21 = sphi %s1663_s21, %s2362_s21  }
   0x4   : > { %s1688_s27 = sadd.s32 1, %s1622_s24   ;;  %s167_s28 = sadd.s32 1, %s1618_s23 }
   0x5   : > { %s164_s29 = ssub.s32 %s1622_s24, %s1688_s27  ;;  %p177_p0 = scmp.ne.s32.totalorder %s1618_s23, %s1614_s22 }
   0x6   : > { %p165_p1 = scmp.eq.s32.totalorder %s164_s29, 0  ;;  %p178_p2 = scmp.eq.s32.totalorder %s1684_s25, 1 }
   0x7   : > { %p183_p3 = scmp.ne.s32.totalorder %s1614_s22, %s1610_s21  ;;  %p184_p4 = scmp.eq.s32.totalorder %s1255_s26, 1 }
   0x8   : > { %s1699_s30 = scalar_select %p165_p1, %s1618_s23, %s167_s28  }
   0x9   : > { %p1701_p5 = por %p178_p2, %p177_p0  ;;  %p1705_p6 = por %p184_p4, %p183_p3 }
   0xa   : > { %p1258_p7 = scmp.ge.s32.totalorder %s1622_s24, 1  ;;  %p235_p8 = scmp.lt.s32.totalorder %s1622_s24, 3 }
   0xc   : > { %p236_p9 = pnand %p1258_p7, %p235_p8 }
   0xd   : > { %p275_p10 = scmp.lt.s32.totalorder (!%p236_p9), %s1684_s25, 1  ;;  %v1724_v0 = vld [vmem:[%s2357_s4] ss:$0 sm:$0xff] (!%p236_p9)  ;;  %v1733_v9 = vld [vmem:[%s2357_s4 + $0x1] ss:$0 sm:$0xff] (!%p236_p9)  ;;  %s1624_s18 = smov (!%p236_p9), 8  }
   0xe   : > { %239 = sbr.rel (%p236_p9) target bundleno = 289 (0x121), region = 44  ;;  %s1625_s12 = smov (!%p236_p9), 24   ;;  %vm1056_vm0 = vcmask (!%p236_p9), 64512   ;;  %vm1089_vm1 = vcmask (!%p236_p9), 195584   ;;  %vm1122_vm2 = vcmask (!%p236_p9), 261120  }
   0xf   : > { %s272_s20 = sand.u32 (!%p236_p9), 1, %s1614_s22   ;;  %s1280_s29 = sshll.u32 (!%p236_p9), %s1684_s25, 12 }
  0x15   : > { %s276_s9 = scalar_select %p275_p10, %s1684_s25, 1 }
  0x16   : > { %s2311_s25 = scalar_lea.sflag [#allocation3], %s272_s20 }
  0x17   : > { %s1713_s10 = sshll.u32 %s276_s9, 7 }
  0x18   : > { %s1719_s13 = scalar_lea.vmem %s2354_s1, %s1713_s10  ;;  %s1827_s26 = scalar_lea.vmem %s2355_s2, %s1713_s10 }
  0x19   : > { %v1488_v1 = vld [vmem:[%s1719_s13 + $0x8] sm:$0xff]   ;;  %v1346_v2 = vld [vmem:[%s1719_s13] sm:$0xff]   ;;  %v1489_v3 = vld [vmem:[%s1719_s13 + $0x10] sm:$0xff]   ;;  %s1934_s15 = scalar_lea.vmem %s2353_s0, %s1713_s10 }
  0x1a   : > { %v1351_v4 = vunpack.c.l.bf16 %v1488_v1  ;;  %v1352_v5 = vunpack.c.h.bf16 %v1488_v1  ;;  %v1347_v6 = vunpack.c.l.bf16 %v1346_v2  ;;  %v1348_v7 = vunpack.c.h.bf16 %v1346_v2  ;;  %v1490_v8 = vld [vmem:[%s1719_s13 + $0x18] sm:$0xff]   ;;  %v1491_v24 = vld [vmem:[%s1719_s13 + $0x20] sm:$0xff]   ;;  %v1492_v35 = vld [vmem:[%s1719_s13 + $0x28] sm:$0xff]  }
  0x1b   : > { %v1356_v10 = vunpack.c.h.bf16 %v1489_v3  ;;  %v1355_v11 = vunpack.c.l.bf16 %v1489_v3  ;;  %v1360_v18 = vunpack.c.h.bf16 %v1490_v8  ;;  %v1359_v19 = vunpack.c.l.bf16 %v1490_v8  ;;  %v1493_v44 = vld [vmem:[%s1719_s13 + $0x30] sm:$0xff]   ;;  %v1494_v53 = vld [vmem:[%s1719_s13 + $0x38] sm:$0xff]   ;;  %v1495_v62 = vld [vmem:[%s1719_s13 + $0x40] sm:$0xff]  }
  0x1c   : > { %v531_v12 = vmul.f32 %v1351_v4, %v1724_v0  ;;  %v529_v13 = vmul.f32 %v1347_v6, %v1724_v0  ;;  %v532_v14 = vmul.f32 %v1352_v5, %v1724_v0  ;;  %v530_v15 = vmul.f32 %v1348_v7, %v1724_v0  ;;  %v1496_v8 = vld [vmem:[%s1719_s13 + $0x48] sm:$0xff]  }
  0x1d   : > { %v534_v16 = vmul.f32 %v1356_v10, %v1724_v0  ;;  %v533_v17 = vmul.f32 %v1355_v11, %v1724_v0  ;;  %v536_v29 = vmul.f32 %v1360_v18, %v1724_v0  ;;  %v535_v30 = vmul.f32 %v1359_v19, %v1724_v0  ;;  %v1497_v18 = vld [vmem:[%s1719_s13 + $0x50] sm:$0xff]  }
  0x1e   : > { %v568_v20 = vadd.f32 %v1733_v9, %v531_v12  ;;  %v566_v21 = vadd.f32 %v1733_v9, %v529_v13  ;;  %v569_v22 = vadd.f32 %v1733_v9, %v532_v14  ;;  %v567_v23 = vadd.f32 %v1733_v9, %v530_v15 }
  0x1f   : > { %v571_v27 = vadd.f32 %v1733_v9, %v534_v16  ;;  %v570_v28 = vadd.f32 %v1733_v9, %v533_v17  ;;  %v1364_v33 = vunpack.c.h.bf16 %v1491_v24  ;;  %v1363_v34 = vunpack.c.l.bf16 %v1491_v24 }
  0x20   : > { %v600_v25 = vmax.f32 %v568_v20, 0.0  ;;  %v598_v26 = vmax.f32 %v566_v21, 0.0  ;;  %v601_v31 = vmax.f32 %v569_v22, 0.0  ;;  %v599_v32 = vmax.f32 %v567_v23, 0.0 }
  0x21   : > { %v603_v36 = vmax.f32 %v571_v27, 0.0  ;;  %v573_v37 = vadd.f32 %v1733_v9, %v536_v29  ;;  %v572_v38 = vadd.f32 %v1733_v9, %v535_v30  ;;  %v1368_v39 = vunpack.c.h.bf16 %v1492_v35  ;;  %v1498_v27 = vld [vmem:[%s1719_s13 + $0x58] sm:$0xff]  }
  0x22   : > { %836 = vrot.lane.b32.xlu1 %v600_v25, %s1624_s18  ;;  %832 = vrot.lane.b32.xlu0 %v598_v26, %s1624_s18  ;;  %v602_v40 = vmax.f32 %v570_v28, 0.0  ;;  %v538_v41 = vmul.f32 %v1364_v33, %v1724_v0  ;;  %v537_v42 = vmul.f32 %v1363_v34, %v1724_v0  ;;  %v1367_v43 = vunpack.c.l.bf16 %v1492_v35 }
  0x23   : > { %v605_v45 = vmax.f32 %v573_v37, 0.0  ;;  %v540_v46 = vmul.f32 %v1368_v39, %v1724_v0  ;;  %v1372_v47 = vunpack.c.h.bf16 %v1493_v44  ;;  %v1371_v48 = vunpack.c.l.bf16 %v1493_v44 }
  0x24   : > { %v604_v49 = vmax.f32 %v572_v38, 0.0  ;;  %v575_v50 = vadd.f32 %v1733_v9, %v538_v41  ;;  %v574_v51 = vadd.f32 %v1733_v9, %v537_v42  ;;  %v539_v52 = vmul.f32 %v1367_v43, %v1724_v0 }
  0x25   : > { %v542_v54 = vmul.f32 %v1372_v47, %v1724_v0  ;;  %v541_v55 = vmul.f32 %v1371_v48, %v1724_v0  ;;  %v1376_v56 = vunpack.c.h.bf16 %v1494_v53  ;;  %v1375_v57 = vunpack.c.l.bf16 %v1494_v53 }
  0x26   : > { %838 = vrot.lane.b32.xlu1 %v601_v31, %s1624_s18  ;;  %834 = vrot.lane.b32.xlu0 %v599_v32, %s1624_s18  ;;  %v607_v58 = vmax.f32 %v575_v50, 0.0  ;;  %v606_v59 = vmax.f32 %v574_v51, 0.0  ;;  %v577_v60 = vadd.f32 %v1733_v9, %v540_v46  ;;  %v576_v61 = vadd.f32 %v1733_v9, %v539_v52 }
  0x27   : > { %v579_v63 = vadd.f32 %v1733_v9, %v542_v54  ;;  %v544_v1 = vmul.f32 %v1376_v56, %v1724_v0  ;;  %v543_v2 = vmul.f32 %v1375_v57, %v1724_v0  ;;  %v1380_v3 = vunpack.c.h.bf16 %v1495_v62  ;;  %v1501_v54 = vld [vmem:[%s1719_s13 + $0x70] sm:$0xff]  }
  0x28   : > { %v609_v4 = vmax.f32 %v577_v60, 0.0  ;;  %v608_v5 = vmax.f32 %v576_v61, 0.0  ;;  %v578_v6 = vadd.f32 %v1733_v9, %v541_v55  ;;  %v1379_v7 = vunpack.c.l.bf16 %v1495_v62 }
  0x29   : > { %v611_v10 = vmax.f32 %v579_v63, 0.0  ;;  %v581_v11 = vadd.f32 %v1733_v9, %v544_v1  ;;  %v580_v12 = vadd.f32 %v1733_v9, %v543_v2  ;;  %v546_v13 = vmul.f32 %v1380_v3, %v1724_v0  ;;  %v1502_v63 = vld [vmem:[%s1719_s13 + $0x78] sm:$0xff]  }
  0x2a   : > { %842 = vrot.lane.b32.xlu1 %v603_v36, %s1624_s18  ;;  %840 = vrot.lane.b32.xlu0 %v602_v40, %s1624_s18  ;;  %v610_v14 = vmax.f32 %v578_v6, 0.0  ;;  %v545_v15 = vmul.f32 %v1379_v7, %v1724_v0  ;;  %v1384_v16 = vunpack.c.h.bf16 %v1496_v8  ;;  %v1383_v17 = vunpack.c.l.bf16 %v1496_v8  ;;  %v1499_v36 = vld [vmem:[%s1719_s13 + $0x60] sm:$0xff]  }
  0x2b   : > { %v613_v19 = vmax.f32 %v581_v11, 0.0  ;;  %v583_v20 = vadd.f32 %v1733_v9, %v546_v13  ;;  %v1388_v21 = vunpack.c.h.bf16 %v1497_v18  ;;  %v1387_v22 = vunpack.c.l.bf16 %v1497_v18  ;;  %v1845_v18 = vld [vmem:[%s2358_s5] ss:$0 sm:$0xff] }
  0x2c   : > { %v612_v23 = vmax.f32 %v580_v12, 0.0  ;;  %v582_v24 = vadd.f32 %v1733_v9, %v545_v15  ;;  %v548_v25 = vmul.f32 %v1384_v16, %v1724_v0  ;;  %v547_v26 = vmul.f32 %v1383_v17, %v1724_v0 }
  0x2d   : > { %v550_v28 = vmul.f32 %v1388_v21, %v1724_v0  ;;  %v549_v29 = vmul.f32 %v1387_v22, %v1724_v0  ;;  %v1392_v30 = vunpack.c.h.bf16 %v1498_v27  ;;  %v1391_v31 = vunpack.c.l.bf16 %v1498_v27 }
  0x2e   : > { %846 = vrot.lane.b32.xlu1 %v605_v45, %s1624_s18  ;;  %844 = vrot.lane.b32.xlu0 %v604_v49, %s1624_s18  ;;  %v615_v32 = vmax.f32 %v583_v20, 0.0  ;;  %v614_v33 = vmax.f32 %v582_v24, 0.0  ;;  %v585_v34 = vadd.f32 %v1733_v9, %v548_v25  ;;  %v584_v35 = vadd.f32 %v1733_v9, %v547_v26  ;;  %v1500_v45 = vld [vmem:[%s1719_s13 + $0x68] sm:$0xff]   ;;  %v1856_v25 = vld [vmem:[%s2358_s5 + $0x1] ss:$0 sm:$0xff]  ;;  %s2295_s13 = scalar_lea.hbm %s2359_s6, %s1280_s29 }
  0x2f   : > { %v587_v37 = vadd.f32 %v1733_v9, %v550_v28  ;;  %v552_v38 = vmul.f32 %v1392_v30, %v1724_v0  ;;  %v551_v39 = vmul.f32 %v1391_v31, %v1724_v0  ;;  %v1396_v40 = vunpack.c.h.bf16 %v1499_v36  ;;  %v1503_v20 = vld [vmem:[%s1827_s26 + $0x8] sm:$0xff]  }
  0x30   : > { %v617_v41 = vmax.f32 %v585_v34, 0.0  ;;  %v616_v42 = vmax.f32 %v584_v35, 0.0  ;;  %v586_v43 = vadd.f32 %v1733_v9, %v549_v29  ;;  %v1395_v44 = vunpack.c.l.bf16 %v1499_v36  ;;  %v1504_v29 = vld [vmem:[%s1827_s26 + $0x10] sm:$0xff]  }
  0x31   : > { %v619_v46 = vmax.f32 %v587_v37, 0.0  ;;  %v589_v47 = vadd.f32 %v1733_v9, %v552_v38  ;;  %v588_v48 = vadd.f32 %v1733_v9, %v551_v39  ;;  %v554_v49 = vmul.f32 %v1396_v40, %v1724_v0  ;;  %v1505_v37 = vld [vmem:[%s1827_s26 + $0x18] sm:$0xff]  }
  0x32   : > { %850 = vrot.lane.b32.xlu1 %v607_v58, %s1624_s18  ;;  %848 = vrot.lane.b32.xlu0 %v606_v59, %s1624_s18  ;;  %v618_v50 = vmax.f32 %v586_v43, 0.0  ;;  %v553_v51 = vmul.f32 %v1395_v44, %v1724_v0  ;;  %v1400_v52 = vunpack.c.h.bf16 %v1500_v45  ;;  %v1399_v53 = vunpack.c.l.bf16 %v1500_v45 }
  0x33   : > { %v621_v55 = vmax.f32 %v589_v47, 0.0  ;;  %v591_v56 = vadd.f32 %v1733_v9, %v554_v49  ;;  %v1404_v57 = vunpack.c.h.bf16 %v1501_v54  ;;  %v1403_v58 = vunpack.c.l.bf16 %v1501_v54 }
  0x34   : > { %v620_v59 = vmax.f32 %v588_v48, 0.0  ;;  %v590_v60 = vadd.f32 %v1733_v9, %v553_v51  ;;  %v556_v61 = vmul.f32 %v1400_v52, %v1724_v0  ;;  %v555_v62 = vmul.f32 %v1399_v53, %v1724_v0 }
  0x35   : > { %v558_v1 = vmul.f32 %v1404_v57, %v1724_v0  ;;  %v557_v2 = vmul.f32 %v1403_v58, %v1724_v0  ;;  %v1408_v3 = vunpack.c.h.bf16 %v1502_v63  ;;  %v1416_v27 = vunpack.c.h.bf16 %v1503_v20 }
  0x36   : > { %854 = vrot.lane.b32.xlu1 %v609_v4, %s1624_s18  ;;  %852 = vrot.lane.b32.xlu0 %v608_v5, %s1624_s18  ;;  %v1407_v4 = vunpack.c.l.bf16 %v1502_v63  ;;  %v623_v5 = vmax.f32 %v591_v56, 0.0  ;;  %v622_v6 = vmax.f32 %v590_v60, 0.0  ;;  %v593_v7 = vadd.f32 %v1733_v9, %v556_v61 }
  0x37   : > { %v592_v8 = vadd.f32 %v1733_v9, %v555_v62  ;;  %v595_v11 = vadd.f32 %v1733_v9, %v558_v1  ;;  %v560_v12 = vmul.f32 %v1408_v3, %v1724_v0  ;;  %v594_v17 = vadd.f32 %v1733_v9, %v557_v2  ;;  %v1508_v1 = vld [vmem:[%s1827_s26 + $0x30] sm:$0xff]  }
  0x38   : > { %v559_v13 = vmul.f32 %v1407_v4, %v1724_v0  ;;  %v625_v15 = vmax.f32 %v593_v7, 0.0  ;;  %v1415_v28 = vunpack.c.l.bf16 %v1503_v20  ;;  %v1420_v31 = vunpack.c.h.bf16 %v1504_v29 }
  0x39   : > { %v624_v16 = vmax.f32 %v592_v8, 0.0  ;;  %v627_v21 = vmax.f32 %v595_v11, 0.0  ;;  %v597_v0 = vadd.f32 %v1733_v9, %v560_v12  ;;  %v626_v24 = vmax.f32 %v594_v17, 0.0  ;;  %v1509_v11 = vld [vmem:[%s1827_s26 + $0x38] sm:$0xff]  }
  0x3a   : > { %858 = vrot.lane.b32.xlu1 %v611_v10, %s1624_s18  ;;  %856 = vrot.lane.b32.xlu0 %v610_v14, %s1624_s18  ;;  %v1410_v10 = vld [vmem:[%s1827_s26] sm:$0xff]   ;;  %v596_v22 = vadd.f32 %v1733_v9, %v559_v13  ;;  %v702_v35 = vmul.f32 %v1416_v27, %v1845_v18  ;;  %v701_v36 = vmul.f32 %v1415_v28, %v1845_v18  ;;  %v1424_v40 = vunpack.c.h.bf16 %v1505_v37 }
  0x3b   : > { %v1412_v14 = vunpack.c.h.bf16 %v1410_v10  ;;  %v629_v30 = vmax.f32 %v597_v0, 0.0  ;;  %v704_v38 = vmul.f32 %v1420_v31, %v1845_v18  ;;  %v1436_v4 = vunpack.c.h.bf16 %v1508_v1 }
  0x3c   : > { %v739_v44 = vadd.f32 %v1856_v25, %v702_v35  ;;  %v738_v45 = vadd.f32 %v1856_v25, %v701_v36  ;;  %v706_v48 = vmul.f32 %v1424_v40, %v1845_v18 }
  0x3d   : > { %v741_v47 = vadd.f32 %v1856_v25, %v704_v38  ;;  %v712_v12 = vmul.f32 %v1436_v4, %v1845_v18  ;;  %v1512_v38 = vld [vmem:[%s1827_s26 + $0x50] sm:$0xff]  }
  0x3e   : > { %862 = vrot.lane.b32.xlu1 %v613_v19, %s1624_s18  ;;  %860 = vrot.lane.b32.xlu0 %v612_v23, %s1624_s18  ;;  %v1411_v19 = vunpack.c.l.bf16 %v1410_v10  ;;  %v700_v23 = vmul.f32 %v1412_v14, %v1845_v18  ;;  %v771_v51 = vmax.f32 %v739_v44, 0.0  ;;  %v770_v52 = vmax.f32 %v738_v45, 0.0 }
  0x3f   : > { %v773_v56 = vmax.f32 %v741_v47, 0.0  ;;  %v743_v57 = vadd.f32 %v1856_v25, %v706_v48  ;;  %v1440_v14 = vunpack.c.h.bf16 %v1509_v11  ;;  %v749_v0 = vadd.f32 %v1856_v25, %v712_v12  ;;  %v1513_v47 = vld [vmem:[%s1827_s26 + $0x58] sm:$0xff]  }
  0x40   : > { %v699_v26 = vmul.f32 %v1411_v19, %v1845_v18  ;;  %v737_v9 = vadd.f32 %v1856_v25, %v700_v23 }
  0x41   : > { %v775_v2 = vmax.f32 %v743_v57, 0.0 }
  0x42   : > { %866 = vrot.lane.b32.xlu1 %v615_v32, %s1624_s18  ;;  %864 = vrot.lane.b32.xlu0 %v614_v33, %s1624_s18  ;;  %v1419_v32 = vunpack.c.l.bf16 %v1504_v29  ;;  %v628_v33 = vmax.f32 %v596_v22, 0.0  ;;  %v736_v34 = vadd.f32 %v1856_v25, %v699_v26  ;;  %v714_v22 = vmul.f32 %v1440_v14, %v1845_v18  ;;  %v1956_v14 = vld [vmem:[%s2356_s3] ss:$0 sm:$0xff] }
  0x44   : > { %v703_v39 = vmul.f32 %v1419_v32, %v1845_v18  ;;  %v768_v43 = vmax.f32 %v736_v34, 0.0  ;;  %v751_v31 = vadd.f32 %v1856_v25, %v714_v22 }
  0x46   : > { %870 = vrot.lane.b32.xlu1 %v617_v41, %s1624_s18  ;;  %868 = vrot.lane.b32.xlu0 %v616_v42, %s1624_s18  ;;  %v1423_v41 = vunpack.c.l.bf16 %v1505_v37  ;;  %v769_v42 = vmax.f32 %v737_v9, 0.0  ;;  %v740_v53 = vadd.f32 %v1856_v25, %v703_v39  ;;  %v781_v9 = vmax.f32 %v749_v0, 0.0 }
  0x47   : > { %v783_v39 = vmax.f32 %v751_v31, 0.0 }
  0x48   : > { %v705_v49 = vmul.f32 %v1423_v41, %v1845_v18  ;;  %v772_v60 = vmax.f32 %v740_v53, 0.0  ;;  %v1452_v41 = vunpack.c.h.bf16 %v1512_v38 }
  0x4a   : > { %874 = vrot.lane.b32.xlu1 %v619_v46, %s1624_s18  ;;  %872 = vrot.lane.b32.xlu0 %v618_v50, %s1624_s18  ;;  %v1506_v46 = vld [vmem:[%s1827_s26 + $0x20] sm:$0xff]   ;;  %v742_v58 = vadd.f32 %v1856_v25, %v705_v49  ;;  %v720_v48 = vmul.f32 %v1452_v41, %v1845_v18 }
  0x4b   : > { %v1428_v50 = vunpack.c.h.bf16 %v1506_v46  ;;  %v1427_v54 = vunpack.c.l.bf16 %v1506_v46 }
  0x4d   : > { %v707_v61 = vmul.f32 %v1427_v54, %v1845_v18 }
  0x4e   : > { %878 = vrot.lane.b32.xlu1 %v621_v55, %s1624_s18  ;;  %876 = vrot.lane.b32.xlu0 %v620_v59, %s1624_s18  ;;  %v1507_v55 = vld [vmem:[%s1827_s26 + $0x28] sm:$0xff]   ;;  %v708_v59 = vmul.f32 %v1428_v50, %v1845_v18  ;;  %v1456_v50 = vunpack.c.h.bf16 %v1513_v47 }
  0x4f   : > { %v1432_v62 = vunpack.c.h.bf16 %v1507_v55  ;;  %v1431_v63 = vunpack.c.l.bf16 %v1507_v55  ;;  %v744_v7 = vadd.f32 %v1856_v25, %v707_v61 }
  0x50   : > { %v745_v3 = vadd.f32 %v1856_v25, %v708_v59  ;;  %v722_v59 = vmul.f32 %v1456_v50, %v1845_v18 }
  0x51   : > { %v710_v8 = vmul.f32 %v1432_v62, %v1845_v18  ;;  %v709_v10 = vmul.f32 %v1431_v63, %v1845_v18  ;;  %v776_v17 = vmax.f32 %v744_v7, 0.0 }
  0x52   : > { %882 = vrot.lane.b32.xlu1 %v623_v5, %s1624_s18  ;;  %880 = vrot.lane.b32.xlu0 %v622_v6, %s1624_s18  ;;  %v1435_v5 = vunpack.c.l.bf16 %v1508_v1  ;;  %v774_v6 = vmax.f32 %v742_v58, 0.0  ;;  %v757_v58 = vadd.f32 %v1856_v25, %v720_v48 }
  0x53   : > { %v747_v19 = vadd.f32 %v1856_v25, %v710_v8  ;;  %v746_v20 = vadd.f32 %v1856_v25, %v709_v10 }
  0x54   : > { %v711_v13 = vmul.f32 %v1435_v5, %v1845_v18  ;;  %v759_v5 = vadd.f32 %v1856_v25, %v722_v59  ;;  %v789_v10 = vmax.f32 %v757_v58, 0.0 }
  0x55   : > { %v779_v26 = vmax.f32 %v747_v19, 0.0  ;;  %v778_v27 = vmax.f32 %v746_v20, 0.0 }
  0x56   : > { %886 = vrot.lane.b32.xlu1 %v625_v15, %s1624_s18  ;;  %884 = vrot.lane.b32.xlu0 %v624_v16, %s1624_s18  ;;  %v1439_v15 = vunpack.c.l.bf16 %v1509_v11  ;;  %v777_v16 = vmax.f32 %v745_v3, 0.0  ;;  %v748_v28 = vadd.f32 %v1856_v25, %v711_v13  ;;  %v1515_v3 = vld [vmem:[%s1827_s26 + $0x68] sm:$0xff]   ;;  %v791_v0 = vmax.f32 %v759_v5, 0.0 }
  0x57   : > { %v1464_v7 = vunpack.c.h.bf16 %v1515_v3  ;;  %v1463_v8 = vunpack.c.l.bf16 %v1515_v3 }
  0x58   : > { %v713_v23 = vmul.f32 %v1439_v15, %v1845_v18  ;;  %v780_v34 = vmax.f32 %v748_v28, 0.0  ;;  %v1516_v15 = vld [vmem:[%s1827_s26 + $0x70] sm:$0xff]  }
  0x59   : > { %v726_v19 = vmul.f32 %v1464_v7, %v1845_v18  ;;  %v725_v20 = vmul.f32 %v1463_v8, %v1845_v18 }
  0x5a   : > { %890 = vrot.lane.b32.xlu1 %v627_v21, %s1624_s18  ;;  %888 = vrot.lane.b32.xlu0 %v626_v24, %s1624_s18  ;;  %v1510_v21 = vld [vmem:[%s1827_s26 + $0x40] sm:$0xff]   ;;  %v750_v32 = vadd.f32 %v1856_v25, %v713_v23 }
  0x5b   : > { %v1444_v24 = vunpack.c.h.bf16 %v1510_v21  ;;  %v1443_v29 = vunpack.c.l.bf16 %v1510_v21  ;;  %v1468_v21 = vunpack.c.h.bf16 %v1516_v15 }
  0x5d   : > { %v715_v35 = vmul.f32 %v1443_v29, %v1845_v18  ;;  %v728_v31 = vmul.f32 %v1468_v21, %v1845_v18  ;;  %v1474_v21 = vld [vmem:[%s1934_s15 + $0x10] sm:$0xff]  }
  0x5e   : > { %894 = vrot.lane.b32.xlu1 %v629_v30, %s1624_s18  ;;  %892 = vrot.lane.b32.xlu0 %v628_v33, %s1624_s18  ;;  %v1511_v30 = vld [vmem:[%s1827_s26 + $0x48] sm:$0xff]   ;;  %v716_v33 = vmul.f32 %v1444_v24, %v1845_v18  ;;  %v1969_v24 = vld [vmem:[%s2356_s3 + $0x1] ss:$0 sm:$0xff] }
  0x5f   : > { %v1448_v36 = vunpack.c.h.bf16 %v1511_v30  ;;  %v1447_v37 = vunpack.c.l.bf16 %v1511_v30  ;;  %v752_v44 = vadd.f32 %v1856_v25, %v715_v35  ;;  %v763_v30 = vadd.f32 %v1856_v25, %v726_v19 }
  0x60   : > { %v753_v40 = vadd.f32 %v1856_v25, %v716_v33 }
  0x61   : > { %v718_v45 = vmul.f32 %v1448_v36, %v1845_v18  ;;  %v717_v46 = vmul.f32 %v1447_v37, %v1845_v18  ;;  %v784_v54 = vmax.f32 %v752_v44, 0.0  ;;  %v795_v37 = vmax.f32 %v763_v30, 0.0 }
  0x62   : > { %962 = vrot.lane.b32.xlu1 %v769_v42, %s1625_s12  ;;  %960 = vrot.lane.b32.xlu0 %v768_v43, %s1625_s12  ;;  %v1451_v42 = vunpack.c.l.bf16 %v1512_v38  ;;  %v782_v43 = vmax.f32 %v750_v32, 0.0  ;;  %v785_v53 = vmax.f32 %v753_v40, 0.0  ;;  %v765_v38 = vadd.f32 %v1856_v25, %v728_v31 }
  0x63   : > { %v755_v55 = vadd.f32 %v1856_v25, %v718_v45 }
  0x64   : > { %v719_v49 = vmul.f32 %v1451_v42, %v1845_v18 }
  0x65   : > { %v787_v61 = vmax.f32 %v755_v55, 0.0 }
  0x66   : > { %966 = vrot.lane.b32.xlu1 %v771_v51, %s1625_s12  ;;  %964 = vrot.lane.b32.xlu0 %v770_v52, %s1625_s12  ;;  %v1455_v51 = vunpack.c.l.bf16 %v1513_v47  ;;  %v1514_v52 = vld [vmem:[%s1827_s26 + $0x60] sm:$0xff]   ;;  %v756_v63 = vadd.f32 %v1856_v25, %v719_v49 }
  0x67   : > { %v1460_v57 = vunpack.c.h.bf16 %v1514_v52  ;;  %v1459_v1 = vunpack.c.l.bf16 %v1514_v52 }
  0x68   : > { %v788_v11 = vmax.f32 %v756_v63, 0.0 }
  0x69   : > { %v724_v4 = vmul.f32 %v1460_v57, %v1845_v18  ;;  %v723_v13 = vmul.f32 %v1459_v1, %v1845_v18 }
  0x6a   : > { %970 = vrot.lane.b32.xlu1 %v773_v56, %s1625_s12  ;;  %968 = vrot.lane.b32.xlu0 %v772_v60, %s1625_s12  ;;  %v754_v56 = vadd.f32 %v1856_v25, %v717_v46  ;;  %v721_v60 = vmul.f32 %v1455_v51, %v1845_v18  ;;  %v797_v46 = vmax.f32 %v765_v38, 0.0  ;;  %v1476_v38 = vld [vmem:[%s1934_s15 + $0x20] sm:$0xff]  }
  0x6b   : > { %v760_v23 = vadd.f32 %v1856_v25, %v723_v13 }
  0x6c   : > { %v786_v62 = vmax.f32 %v754_v56, 0.0  ;;  %v758_v12 = vadd.f32 %v1856_v25, %v721_v60 }
  0x6d   : > { %v792_v32 = vmax.f32 %v760_v23, 0.0 }
  0x6e   : > { %974 = vrot.lane.b32.xlu1 %v775_v2, %s1625_s12  ;;  %972 = vrot.lane.b32.xlu0 %v774_v6, %s1625_s12  ;;  %v1943_v2 = vld [vmem:[%s1934_s15 + $0x8] sm:$0xff]   ;;  %v790_v22 = vmax.f32 %v758_v12, 0.0 }
  0x6f   : > { %v1287_v6 = vunpack.c.l.bf16 %v1943_v2 }
  0x72   : > { %978 = vrot.lane.b32.xlu1 %v777_v16, %s1625_s12  ;;  %976 = vrot.lane.b32.xlu0 %v776_v17, %s1625_s12  ;;  %v761_v16 = vadd.f32 %v1856_v25, %v724_v4  ;;  %v361_v17 = vmul.f32 %v1287_v6, %v1956_v14 }
  0x74   : > { %v793_v28 = vmax.f32 %v761_v16, 0.0  ;;  %v398_v29 = vadd.f32 %v1969_v24, %v361_v17  ;;  %v1288_v17 = vunpack.c.h.bf16 %v1943_v2  ;;  %v1291_v2 = vunpack.c.l.bf16 %v1474_v21 }
  0x76   : > { %982 = vrot.lane.b32.xlu1 %v779_v26, %s1625_s12  ;;  %980 = vrot.lane.b32.xlu0 %v778_v27, %s1625_s12  ;;  %v1467_v26 = vunpack.c.l.bf16 %v1516_v15  ;;  %v1517_v27 = vld [vmem:[%s1827_s26 + $0x78] sm:$0xff]   ;;  %v430_v36 = vmax.f32 %v398_v29, 0.0  ;;  %v362_v23 = vmul.f32 %v1288_v17, %v1956_v14  ;;  %s1259_s26 = sshll.u32 %s272_s20, 8 }
  0x77   : > { %v1471_v35 = vunpack.c.l.bf16 %v1517_v27  ;;  %s2087_s28 = scalar_lea.vmem [#allocation2], %s1259_s26 }
  0x78   : > { %v727_v33 = vmul.f32 %v1467_v26, %v1845_v18  ;;  %v1292_v26 = vunpack.c.h.bf16 %v1474_v21  ;;  %s1169_s9 = sshll.u32 %s2087_s28, 4  ;;  %s2301_s9 = int_to_ptr.vmem [resolvable:$true] %s1169_s9 }
  0x79   : > { %v729_v42 = vmul.f32 %v1471_v35, %v1845_v18  ;;  %s1560_s14 = scalar_lea.vmem %s2301_s9, 4096 }
  0x7a   : > { %986 = vrot.lane.b32.xlu1 %v781_v9, %s1625_s12  ;;  %984 = vrot.lane.b32.xlu0 %v780_v34, %s1625_s12  ;;  %v762_v9 = vadd.f32 %v1856_v25, %v725_v20  ;;  %v1472_v34 = vunpack.c.h.bf16 %v1517_v27  ;;  %v764_v40 = vadd.f32 %v1856_v25, %v727_v33  ;;  %v1475_v27 = vld [vmem:[%s1934_s15 + $0x18] sm:$0xff]   ;;  %v399_v33 = vadd.f32 %v1969_v24, %v362_v23  ;;  %p1561_p11 = scmp.ne.s32.totalorder %s2301_s9, %s1560_s14 }
  0x7b   : > { %v766_v49 = vadd.f32 %v1856_v25, %v729_v42  ;;  %v1296_v31 = vunpack.c.h.bf16 %v1475_v27 }
  0x7c   : > { %v730_v41 = vmul.f32 %v1472_v34, %v1845_v18  ;;  %v796_v47 = vmax.f32 %v764_v40, 0.0  ;;  %v364_v34 = vmul.f32 %v1292_v26, %v1956_v14  ;;  %p1562_p12 = pnand %p1561_p11, %p1701_p5 }
  0x7d   : > { %v798_v52 = vmax.f32 %v766_v49, 0.0 }
  0x7e   : > { %990 = vrot.lane.b32.xlu1 %v783_v39, %s1625_s12  ;;  %988 = vrot.lane.b32.xlu0 %v782_v43, %s1625_s12  ;;  %v794_v39 = vmax.f32 %v762_v9, 0.0  ;;  %v767_v48 = vadd.f32 %v1856_v25, %v730_v41  ;;  %v366_v41 = vmul.f32 %v1296_v31, %v1956_v14  ;;  %p1563_p13 = pneg %p1562_p12 }
  0x80   : > { %v799_v18 = vmax.f32 %v767_v48, 0.0 }
  0x82   : > { %994 = vrot.lane.b32.xlu1 %v785_v53, %s1625_s12  ;;  %992 = vrot.lane.b32.xlu0 %v784_v54, %s1625_s12 }
  0x86   : > { %998 = vrot.lane.b32.xlu1 %v787_v61, %s1625_s12  ;;  %996 = vrot.lane.b32.xlu0 %v786_v62, %s1625_s12 }
  0x8a   : > { %1002 = vrot.lane.b32.xlu1 %v789_v10, %s1625_s12  ;;  %1000 = vrot.lane.b32.xlu0 %v788_v11, %s1625_s12  ;;  %v1282_v11 = vld [vmem:[%s1934_s15] sm:$0xff]  }
  0x8b   : > { %v1283_v12 = vunpack.c.l.bf16 %v1282_v11  ;;  %v1284_v13 = vunpack.c.h.bf16 %v1282_v11  ;;  %v1477_v11 = vld [vmem:[%s1934_s15 + $0x28] sm:$0xff]  }
  0x8c   : > { %v1304_v23 = vunpack.c.h.bf16 %v1477_v11 }
  0x8d   : > { %v359_v19 = vmul.f32 %v1283_v12, %v1956_v14  ;;  %v360_v20 = vmul.f32 %v1284_v13, %v1956_v14 }
  0x8e   : > { %1006 = vrot.lane.b32.xlu1 %v791_v0, %s1625_s12  ;;  %1004 = vrot.lane.b32.xlu0 %v790_v22, %s1625_s12 }
  0x8f   : > { %v397_v29 = vadd.f32 %v1969_v24, %v360_v20  ;;  %v403_v20 = vadd.f32 %v1969_v24, %v366_v41 }
  0x92   : > { %1010 = vrot.lane.b32.xlu1 %v793_v28, %s1625_s12  ;;  %1008 = vrot.lane.b32.xlu0 %v792_v32, %s1625_s12  ;;  %v396_v28 = vadd.f32 %v1969_v24, %v359_v19  ;;  %v1295_v32 = vunpack.c.l.bf16 %v1475_v27 }
  0x94   : > { %v837_v43 = vpop.permute.xlu1 %836  ;;  %v1985_v44 = vpop.permute.xlu0 %832  ;;  %v428_v35 = vmax.f32 %v396_v28, 0.0  ;;  %v365_v42 = vmul.f32 %v1295_v32, %v1956_v14 }
  0x95   : > { %v1988_v45 = vsel %vm1056_vm0, %v430_v36, %v837_v43  ;;  %v429_v36 = vmax.f32 %v397_v29, 0.0  ;;  %v431_v43 = vmax.f32 %v399_v33, 0.0  ;;  %v1303_v29 = vunpack.c.l.bf16 %v1477_v11 }
  0x96   : > { %1014 = vrot.lane.b32.xlu1 %v795_v37, %s1625_s12  ;;  %1012 = vrot.lane.b32.xlu0 %v794_v39, %s1625_s12  ;;  %v363_v37 = vmul.f32 %v1291_v2, %v1956_v14  ;;  %v1057_v48 = vsel %vm1056_vm0, %v428_v35, %v1985_v44  ;;  %v402_v21 = vadd.f32 %v1969_v24, %v365_v42  ;;  %v1478_v2 = vld [vmem:[%s1934_s15 + $0x30] sm:$0xff]   ;;  %v435_v35 = vmax.f32 %v403_v20, 0.0  ;;  %v1479_v42 = vld [vmem:[%s1934_s15 + $0x38] sm:$0xff]  }
  0x97   : > { %v1307_v41 = vunpack.c.l.bf16 %v1478_v2  ;;  %v1312_v11 = vunpack.c.h.bf16 %v1479_v42 }
  0x98   : > { %v1994_v50 = vpop.permute.xlu1 %838  ;;  %v1996_v51 = vpop.permute.xlu0 %834 }
  0x99   : > { %v1058_v49 = vsel %vm1056_vm0, %v429_v36, %v1996_v51  ;;  %v1060_v26 = vsel %vm1056_vm0, %v431_v43, %v1994_v50  ;;  %v434_v36 = vmax.f32 %v402_v21, 0.0 }
  0x9a   : > { %1018 = vrot.lane.b32.xlu1 %v797_v46, %s1625_s12  ;;  %1016 = vrot.lane.b32.xlu0 %v796_v47, %s1625_s12  ;;  %v401_v46 = vadd.f32 %v1969_v24, %v364_v34  ;;  %v1300_v47 = vunpack.c.h.bf16 %v1476_v38 }
  0x9c   : > { %v2000_v53 = vpop.permute.xlu1 %842  ;;  %v2002_v54 = vpop.permute.xlu0 %840  ;;  %v433_v44 = vmax.f32 %v401_v46, 0.0  ;;  %v368_v51 = vmul.f32 %v1300_v47, %v1956_v14  ;;  %v369_v47 = vmul.f32 %v1303_v29, %v1956_v14  ;;  %v374_v29 = vmul.f32 %v1312_v11, %v1956_v14  ;;  %v1482_v11 = vld [vmem:[%s1934_s15 + $0x50] sm:$0xff]  }
  0x9e   : > { %1022 = vrot.lane.b32.xlu1 %v799_v18, %s1625_s12  ;;  %1020 = vrot.lane.b32.xlu0 %v798_v52, %s1625_s12  ;;  %v400_v18 = vadd.f32 %v1969_v24, %v363_v37  ;;  %v1299_v52 = vunpack.c.l.bf16 %v1476_v38  ;;  %v405_v50 = vadd.f32 %v1969_v24, %v368_v51  ;;  %v370_v37 = vmul.f32 %v1304_v23, %v1956_v14  ;;  %v1480_v51 = vld [vmem:[%s1934_s15 + $0x40] sm:$0xff]  }
  0x9f   : > { %v1308_v38 = vunpack.c.h.bf16 %v1478_v2  ;;  %v1062_v43 = vsel %vm1056_vm0, %v433_v44, %v2000_v53  ;;  %v406_v44 = vadd.f32 %v1969_v24, %v369_v47 }
  0xa0   : > { %v2006_v55 = vpop.permute.xlu1 %846  ;;  %v2008_v25 = vpop.permute.xlu0 %844  ;;  %v432_v27 = vmax.f32 %v400_v18, 0.0  ;;  %v367_v28 = vmul.f32 %v1299_v52, %v1956_v14  ;;  %v437_v53 = vmax.f32 %v405_v50, 0.0  ;;  %v1481_v50 = vld [vmem:[%s1934_s15 + $0x48] sm:$0xff]  }
  0xa1   : > { %v1063_v20 = vsel %vm1056_vm0, %v434_v36, %v2008_v25  ;;  %v1315_v36 = vunpack.c.l.bf16 %v1480_v51  ;;  %v1320_v47 = vunpack.c.h.bf16 %v1481_v50 }
  0xa2   : > { %v404_v46 = vadd.f32 %v1969_v24, %v367_v28 }
  0xa4   : > { %v2010_v56 = vpop.permute.xlu1 %850  ;;  %v2012_v57 = vpop.permute.xlu0 %848  ;;  %v436_v21 = vmax.f32 %v404_v46, 0.0 }
  0xa8   : > { %v2014_v58 = vpop.permute.xlu1 %854  ;;  %v2016_v59 = vpop.permute.xlu0 %852 }
  0xac   : > { %v2018_v60 = vpop.permute.xlu1 %858  ;;  %v2020_v61 = vpop.permute.xlu0 %856 }
  0xb0   : > { %v2022_v62 = vpop.permute.xlu1 %862  ;;  %v2024_v63 = vpop.permute.xlu0 %860 }
  0xb4   : > { %v2026_v1 = vpop.permute.xlu1 %866  ;;  %v2028_v3 = vpop.permute.xlu0 %864 }
  0xb8   : > { %v2030_v4 = vpop.permute.xlu1 %870  ;;  %v2032_v5 = vpop.permute.xlu0 %868 }
  0xbc   : > { %v2034_v6 = vpop.permute.xlu1 %874  ;;  %v2036_v7 = vpop.permute.xlu0 %872 }
  0xc0   : > { %v2038_v8 = vpop.permute.xlu1 %878  ;;  %v2040_v10 = vpop.permute.xlu0 %876 }
  0xc4   : > { %v2043_v15 = vpop.permute.xlu1 %882  ;;  %v2045_v16 = vpop.permute.xlu0 %880 }
  0xc8   : > { %v2051_v0 = vpop.permute.xlu1 %886  ;;  %v2053_v22 = vpop.permute.xlu0 %884 }
  0xcc   : > { %v2059_v30 = vpop.permute.xlu1 %890  ;;  %v2061_v9 = vpop.permute.xlu0 %888 }
  0xd0   : > { %v2068_v39 = vpop.permute.xlu1 %894  ;;  %v2070_v40 = vpop.permute.xlu0 %892 }
  0xd4   : > { %v963_v12 = vpop.permute.xlu1 %962  ;;  %v961_v13 = vpop.permute.xlu0 %960 }
  0xd5   : > { %v1091_v17 = vsel %vm1089_vm1, %v1058_v49, %v963_v12  ;;  %v1090_v19 = vsel %vm1089_vm1, %v1057_v48, %v961_v13  ;;  %v1311_v12 = vunpack.c.l.bf16 %v1479_v42  ;;  %v372_v13 = vmul.f32 %v1308_v38, %v1956_v14 }
  0xd6   : > { %1124 = vst.msk [vmem:[%s2087_s28 + $0x8] sm:$0xff] %vm1122_vm2, %v1091_v17  ;;  %1123 = vst.msk [vmem:[%s2087_s28] sm:$0xff] %vm1122_vm2, %v1090_v19  ;;  %v371_v17 = vmul.f32 %v1307_v41, %v1956_v14  ;;  %v1064_v19 = vsel %vm1056_vm0, %v435_v35, %v2006_v55  ;;  %v438_v35 = vmax.f32 %v406_v44, 0.0  ;;  %v1483_v44 = vld [vmem:[%s1934_s15 + $0x58] sm:$0xff]  }
  0xd7   : > { %v373_v2 = vmul.f32 %v1311_v12, %v1956_v14  ;;  %v409_v25 = vadd.f32 %v1969_v24, %v372_v13 }
  0xd8   : > { %v967_v31 = vpop.permute.xlu1 %966  ;;  %v965_v32 = vpop.permute.xlu0 %964 }
  0xd9   : > { %v1093_v33 = vsel %vm1089_vm1, %v1060_v26, %v967_v31  ;;  %v1092_v34 = vsel %vm1089_vm1, %v1988_v45, %v965_v32  ;;  %v1061_v45 = vsel %vm1056_vm0, %v432_v27, %v2002_v54  ;;  %v407_v54 = vadd.f32 %v1969_v24, %v370_v37 }
  0xda   : > { %1126 = vst.msk [vmem:[%s2087_s28 + $0x18] sm:$0xff] %vm1122_vm2, %v1093_v33  ;;  %1125 = vst.msk [vmem:[%s2087_s28 + $0x10] sm:$0xff] %vm1122_vm2, %v1092_v34  ;;  %v408_v31 = vadd.f32 %v1969_v24, %v371_v17  ;;  %v1316_v32 = vunpack.c.h.bf16 %v1480_v51  ;;  %v1066_v33 = vsel %vm1056_vm0, %v437_v53, %v2010_v56  ;;  %v1065_v34 = vsel %vm1056_vm0, %v436_v21, %v2012_v57 }
  0xdb   : > { %v439_v55 = vmax.f32 %v407_v54, 0.0  ;;  %v441_v56 = vmax.f32 %v409_v25, 0.0  ;;  %v1323_v21 = vunpack.c.l.bf16 %v1482_v11  ;;  %v1328_v25 = vunpack.c.h.bf16 %v1483_v44 }
  0xdc   : > { %v971_v48 = vpop.permute.xlu1 %970  ;;  %v969_v49 = vpop.permute.xlu0 %968  ;;  %v440_v57 = vmax.f32 %v408_v31, 0.0  ;;  %v376_v46 = vmul.f32 %v1316_v32, %v1956_v14  ;;  %v1327_v31 = vunpack.c.l.bf16 %v1483_v44 }
  0xdd   : > { %v1095_v18 = vsel %vm1089_vm1, %v1062_v43, %v971_v48  ;;  %v1094_v52 = vsel %vm1089_vm1, %v1061_v45, %v969_v49  ;;  %v411_v43 = vadd.f32 %v1969_v24, %v374_v29  ;;  %v410_v45 = vadd.f32 %v1969_v24, %v373_v2 }
  0xde   : > { %1128 = vst.msk [vmem:[%s2087_s28 + $0x28] sm:$0xff] %vm1122_vm2, %v1095_v18  ;;  %1127 = vst.msk [vmem:[%s2087_s28 + $0x20] sm:$0xff] %vm1122_vm2, %v1094_v52  ;;  %v1068_v48 = vsel %vm1056_vm0, %v439_v55, %v2014_v58  ;;  %v1067_v49 = vsel %vm1056_vm0, %v438_v35, %v2016_v59  ;;  %v375_v18 = vmul.f32 %v1315_v36, %v1956_v14  ;;  %v1319_v52 = vunpack.c.l.bf16 %v1481_v50 }
  0xdf   : > { %v443_v17 = vmax.f32 %v411_v43, 0.0  ;;  %v413_v58 = vadd.f32 %v1969_v24, %v376_v46  ;;  %v378_v59 = vmul.f32 %v1320_v47, %v1956_v14  ;;  %v1070_v51 = vsel %vm1056_vm0, %v441_v56, %v2018_v60 }
  0xe0   : > { %v975_v23 = vpop.permute.xlu1 %974  ;;  %v973_v26 = vpop.permute.xlu0 %972  ;;  %v381_v56 = vmul.f32 %v1327_v31, %v1956_v14  ;;  %v1487_v31 = vld [vmem:[%s1934_s15 + $0x78] sm:$0xff]  }
  0xe1   : > { %v1097_v27 = vsel %vm1089_vm1, %v1064_v19, %v975_v23  ;;  %v1096_v28 = vsel %vm1089_vm1, %v1063_v20, %v973_v26  ;;  %v442_v19 = vmax.f32 %v410_v45, 0.0  ;;  %v1324_v20 = vunpack.c.h.bf16 %v1482_v11 }
  0xe2   : > { %1130 = vst.msk [vmem:[%s2087_s28 + $0x38] sm:$0xff] %vm1122_vm2, %v1097_v27  ;;  %1129 = vst.msk [vmem:[%s2087_s28 + $0x30] sm:$0xff] %vm1122_vm2, %v1096_v28  ;;  %v1069_v23 = vsel %vm1056_vm0, %v440_v57, %v2020_v61  ;;  %v412_v26 = vadd.f32 %v1969_v24, %v375_v18  ;;  %v377_v27 = vmul.f32 %v1319_v52, %v1956_v14  ;;  %v445_v60 = vmax.f32 %v413_v58, 0.0  ;;  %v1485_v52 = vld [vmem:[%s1934_s15 + $0x68] sm:$0xff]  }
  0xe3   : > { %v415_v61 = vadd.f32 %v1969_v24, %v378_v59  ;;  %v380_v32 = vmul.f32 %v1324_v20, %v1956_v14  ;;  %v1071_v35 = vsel %vm1056_vm0, %v442_v19, %v2024_v63  ;;  %v382_v45 = vmul.f32 %v1328_v25, %v1956_v14 }
  0xe4   : > { %v979_v37 = vpop.permute.xlu1 %978  ;;  %v977_v38 = vpop.permute.xlu0 %976  ;;  %v444_v36 = vmax.f32 %v412_v26, 0.0  ;;  %v414_v50 = vadd.f32 %v1969_v24, %v377_v27  ;;  %v1074_v47 = vsel %vm1056_vm0, %v445_v60, %v2026_v1  ;;  %v1336_v58 = vunpack.c.h.bf16 %v1485_v52 }
  0xe5   : > { %v1099_v41 = vsel %vm1089_vm1, %v1066_v33, %v979_v37  ;;  %v1098_v42 = vsel %vm1089_vm1, %v1065_v34, %v977_v38  ;;  %v379_v33 = vmul.f32 %v1323_v21, %v1956_v14  ;;  %v1072_v34 = vsel %vm1056_vm0, %v443_v17, %v2022_v62  ;;  %v1484_v37 = vld [vmem:[%s1934_s15 + $0x60] sm:$0xff]  }
  0xe6   : > { %1132 = vst.msk [vmem:[%s2087_s28 + $0x48] sm:$0xff] %vm1122_vm2, %v1099_v41  ;;  %1131 = vst.msk [vmem:[%s2087_s28 + $0x40] sm:$0xff] %vm1122_vm2, %v1098_v42  ;;  %v447_v62 = vmax.f32 %v415_v61, 0.0  ;;  %v417_v63 = vadd.f32 %v1969_v24, %v380_v32  ;;  %v1332_v46 = vunpack.c.h.bf16 %v1484_v37  ;;  %v1331_v18 = vunpack.c.l.bf16 %v1484_v37 }
  0xe7   : > { %v416_v57 = vadd.f32 %v1969_v24, %v379_v33  ;;  %v418_v17 = vadd.f32 %v1969_v24, %v381_v56  ;;  %v1335_v44 = vunpack.c.l.bf16 %v1485_v52  ;;  %v1344_v37 = vunpack.c.h.bf16 %v1487_v31 }
  0xe8   : > { %v983_v12 = vpop.permute.xlu1 %982  ;;  %v981_v53 = vpop.permute.xlu0 %980  ;;  %v449_v1 = vmax.f32 %v417_v63, 0.0  ;;  %v384_v19 = vmul.f32 %v1332_v46, %v1956_v14  ;;  %v1076_v59 = vsel %vm1056_vm0, %v447_v62, %v2030_v4  ;;  %v383_v21 = vmul.f32 %v1331_v18, %v1956_v14 }
  0xe9   : > { %v1101_v54 = vsel %vm1089_vm1, %v1068_v48, %v983_v12  ;;  %v1100_v13 = vsel %vm1089_vm1, %v1067_v49, %v981_v53  ;;  %v1073_v48 = vsel %vm1056_vm0, %v444_v36, %v2028_v3  ;;  %v446_v49 = vmax.f32 %v414_v50, 0.0 }
  0xea   : > { %1134 = vst.msk [vmem:[%s2087_s28 + $0x58] sm:$0xff] %vm1122_vm2, %v1101_v54  ;;  %1133 = vst.msk [vmem:[%s2087_s28 + $0x50] sm:$0xff] %vm1122_vm2, %v1100_v13  ;;  %v419_v13 = vadd.f32 %v1969_v24, %v382_v45  ;;  %v448_v3 = vmax.f32 %v416_v57, 0.0  ;;  %v421_v4 = vadd.f32 %v1969_v24, %v384_v19  ;;  %v1078_v60 = vsel %vm1056_vm0, %v449_v1, %v2034_v6 }
  0xeb   : > { %v1075_v20 = vsel %vm1056_vm0, %v446_v49, %v2032_v5  ;;  %v386_v5 = vmul.f32 %v1336_v58, %v1956_v14  ;;  %v420_v32 = vadd.f32 %v1969_v24, %v383_v21  ;;  %v385_v33 = vmul.f32 %v1335_v44, %v1956_v14 }
  0xec   : > { %v987_v28 = vpop.permute.xlu1 %986  ;;  %v985_v29 = vpop.permute.xlu0 %984  ;;  %v1077_v61 = vsel %vm1056_vm0, %v448_v3, %v2036_v7  ;;  %v453_v6 = vmax.f32 %v421_v4, 0.0 }
  0xed   : > { %v1103_v2 = vsel %vm1089_vm1, %v1070_v51, %v987_v28  ;;  %v1102_v55 = vsel %vm1089_vm1, %v1069_v23, %v985_v29  ;;  %v1486_v51 = vld [vmem:[%s1934_s15 + $0x70] sm:$0xff]   ;;  %v451_v29 = vmax.f32 %v419_v13, 0.0  ;;  %v423_v7 = vadd.f32 %v1969_v24, %v386_v5  ;;  %s1626_s15 = smov [#allocation2]  }
  0xee   : > { %1136 = vst.msk [vmem:[%s2087_s28 + $0x68] sm:$0xff] %vm1122_vm2, %v1103_v2  ;;  %1135 = vst.msk [vmem:[%s2087_s28 + $0x60] sm:$0xff] %vm1122_vm2, %v1102_v55  ;;  %v450_v2 = vmax.f32 %v418_v17, 0.0  ;;  %v1340_v55 = vunpack.c.h.bf16 %v1486_v51  ;;  %v1339_v25 = vunpack.c.l.bf16 %v1486_v51  ;;  %v452_v56 = vmax.f32 %v420_v32, 0.0  ;;  %s1564_s10 = sshll.u32 %s1626_s15, 4  ;;  %s1565_s10 = int_to_ptr.vmem [resolvable:$false] %s1564_s10 }
  0xef   : > { %v422_v62 = vadd.f32 %v1969_v24, %v385_v33  ;;  %v1082_v18 = vsel %vm1056_vm0, %v453_v6, %v2043_v15  ;;  %s1566_s16 = scalar_lea.vmem %s1565_s10, 8192  ;;  %p1567_p0 = scmp.lt.s32.totalorder %s2301_s9, %s1565_s10 }
  0xf0   : > { %v991_v38 = vpop.permute.xlu1 %990  ;;  %v989_v41 = vpop.permute.xlu0 %988  ;;  %v1079_v45 = vsel %vm1056_vm0, %v450_v2, %v2040_v10  ;;  %v390_v10 = vmul.f32 %v1344_v37, %v1956_v14  ;;  %v1081_v52 = vsel %vm1056_vm0, %v452_v56, %v2045_v16  ;;  %p1568_p1 = scmp.lt.s32.totalorder %s1566_s16, %s1560_s14 }
  0xf1   : > { %v1105_v42 = vsel %vm1089_vm1, %v1072_v34, %v991_v38  ;;  %v1104_v43 = vsel %vm1089_vm1, %v1071_v35, %v989_v41  ;;  %v1343_v38 = vunpack.c.l.bf16 %v1487_v31  ;;  %v388_v41 = vmul.f32 %v1340_v55, %v1956_v14 }
  0xf2   : > { %1138 = vst.msk [vmem:[%s2087_s28 + $0x78] sm:$0xff] %vm1122_vm2, %v1105_v42  ;;  %1137 = vst.msk [vmem:[%s2087_s28 + $0x70] sm:$0xff] %vm1122_vm2, %v1104_v43  ;;  %v387_v42 = vmul.f32 %v1339_v25, %v1956_v14  ;;  %v1080_v43 = vsel %vm1056_vm0, %v451_v29, %v2038_v8  ;;  %p1569_p2 = por %p1568_p1, %p1567_p0 }
  0xf3   : > { %v425_v8 = vadd.f32 %v1969_v24, %v388_v41  ;;  %v389_v49 = vmul.f32 %v1343_v38, %v1956_v14  ;;  %v427_v14 = vadd.f32 %v1969_v24, %v390_v10 }
  0xf4   : > { %v995_v11 = vpop.permute.xlu1 %994  ;;  %v993_v12 = vpop.permute.xlu0 %992  ;;  %p1570_p3 = pnand %p1569_p2, %p1563_p13 }
  0xf5   : > { %v1107_v53 = vsel %vm1089_vm1, %v1074_v47, %v995_v11  ;;  %v1106_v54 = vsel %vm1089_vm1, %v1073_v48, %v993_v12  ;;  %v424_v48 = vadd.f32 %v1969_v24, %v387_v42  ;;  %v455_v11 = vmax.f32 %v423_v7, 0.0 }
  0xf6   : > { %1140 = vst.msk [vmem:[%s2087_s28 + $0x88] sm:$0xff] %vm1122_vm2, %v1107_v53  ;;  %1139 = vst.msk [vmem:[%s2087_s28 + $0x80] sm:$0xff] %vm1122_vm2, %v1106_v54  ;;  %v454_v12 = vmax.f32 %v422_v62, 0.0  ;;  %v426_v15 = vadd.f32 %v1969_v24, %v389_v49  ;;  %v457_v3 = vmax.f32 %v425_v8, 0.0 }
  0xf7   : > { %v1084_v16 = vsel %vm1056_vm0, %v455_v11, %v2051_v0  ;;  %v456_v19 = vmax.f32 %v424_v48, 0.0 }
  0xf8   : > { %v999_v23 = vpop.permute.xlu1 %998  ;;  %v997_v26 = vpop.permute.xlu0 %996  ;;  %v1083_v1 = vsel %vm1056_vm0, %v454_v12, %v2053_v22  ;;  %v1086_v24 = vsel %vm1056_vm0, %v457_v3, %v2059_v30  ;;  %v459_v22 = vmax.f32 %v427_v14, 0.0  ;;  %v458_v44 = vmax.f32 %v426_v15, 0.0 }
  0xf9   : > { %v1109_v27 = vsel %vm1089_vm1, %v1076_v59, %v999_v23  ;;  %v1108_v28 = vsel %vm1089_vm1, %v1075_v20, %v997_v26  ;;  %v1085_v0 = vsel %vm1056_vm0, %v456_v19, %v2061_v9 }
  0xfa   : > { %1142 = vst.msk [vmem:[%s2087_s28 + $0x98] sm:$0xff] %vm1122_vm2, %v1109_v27  ;;  %1141 = vst.msk [vmem:[%s2087_s28 + $0x90] sm:$0xff] %vm1122_vm2, %v1108_v28  ;;  %v1088_v30 = vsel %vm1056_vm0, %v459_v22, %v2068_v39  ;;  %v1087_v9 = vsel %vm1056_vm0, %v458_v44, %v2070_v40 }
  0xfc   : > { %v1003_v34 = vpop.permute.xlu1 %1002  ;;  %v1001_v35 = vpop.permute.xlu0 %1000 }
  0xfd   : > { %v1111_v36 = vsel %vm1089_vm1, %v1078_v60, %v1003_v34  ;;  %v1110_v50 = vsel %vm1089_vm1, %v1077_v61, %v1001_v35 }
  0xfe   : > { %1144 = vst.msk [vmem:[%s2087_s28 + $0xa8] sm:$0xff] %vm1122_vm2, %v1111_v36  ;;  %1143 = vst.msk [vmem:[%s2087_s28 + $0xa0] sm:$0xff] %vm1122_vm2, %v1110_v50 }
 0x100   : > { %v1007_v63 = vpop.permute.xlu1 %1006  ;;  %v1005_v57 = vpop.permute.xlu0 %1004 }
 0x101   : > { %v1113_v46 = vsel %vm1089_vm1, %v1080_v43, %v1007_v63  ;;  %v1112_v47 = vsel %vm1089_vm1, %v1079_v45, %v1005_v57 }
 0x102   : > { %1146 = vst.msk [vmem:[%s2087_s28 + $0xb8] sm:$0xff] %vm1122_vm2, %v1113_v46  ;;  %1145 = vst.msk [vmem:[%s2087_s28 + $0xb0] sm:$0xff] %vm1122_vm2, %v1112_v47 }
 0x104   : > { %v1011_v53 = vpop.permute.xlu1 %1010  ;;  %v1009_v54 = vpop.permute.xlu0 %1008 }
 0x105   : > { %v1115_v13 = vsel %vm1089_vm1, %v1082_v18, %v1011_v53  ;;  %v1114_v17 = vsel %vm1089_vm1, %v1081_v52, %v1009_v54 }
 0x106   : > { %1148 = vst.msk [vmem:[%s2087_s28 + $0xc8] sm:$0xff] %vm1122_vm2, %v1115_v13  ;;  %1147 = vst.msk [vmem:[%s2087_s28 + $0xc0] sm:$0xff] %vm1122_vm2, %v1114_v17 }
 0x108   : > { %v1015_v58 = vpop.permute.xlu1 %1014  ;;  %v1013_v59 = vpop.permute.xlu0 %1012 }
 0x109   : > { %v1117_v20 = vsel %vm1089_vm1, %v1084_v16, %v1015_v58  ;;  %v1116_v21 = vsel %vm1089_vm1, %v1083_v1, %v1013_v59 }
 0x10a   : > { %1150 = vst.msk [vmem:[%s2087_s28 + $0xd8] sm:$0xff] %vm1122_vm2, %v1117_v20  ;;  %1149 = vst.msk [vmem:[%s2087_s28 + $0xd0] sm:$0xff] %vm1122_vm2, %v1116_v21 }
 0x10c   : > { %v1019_v51 = vpop.permute.xlu1 %1018  ;;  %v1017_v23 = vpop.permute.xlu0 %1016 }
 0x10d   : > { %v1119_v26 = vsel %vm1089_vm1, %v1086_v24, %v1019_v51  ;;  %v1118_v27 = vsel %vm1089_vm1, %v1085_v0, %v1017_v23 }
 0x10e   : > { %1152 = vst.msk [vmem:[%s2087_s28 + $0xe8] sm:$0xff] %vm1122_vm2, %v1119_v26  ;;  %1151 = vst.msk [vmem:[%s2087_s28 + $0xe0] sm:$0xff] %vm1122_vm2, %v1118_v27 }
 0x110   : > { %v1023_v28 = vpop.permute.xlu1 %1022  ;;  %v1021_v29 = vpop.permute.xlu0 %1020 }
 0x111   : > { %v1121_v2 = vsel %vm1089_vm1, %v1088_v30, %v1023_v28  ;;  %v1120_v4 = vsel %vm1089_vm1, %v1087_v9, %v1021_v29 }
 0x112   : > { %1154 = vst.msk [vmem:[%s2087_s28 + $0xf8] sm:$0xff] %vm1122_vm2, %v1121_v2  ;;  %1153 = vst.msk [vmem:[%s2087_s28 + $0xf0] sm:$0xff] %vm1122_vm2, %v1120_v4 }
 0x113   : > { %1573 = shalt.err (!%p1570_p3)
}
 0x114   : > { %s1574_s17 = scalar_lea.hbm %s2295_s13, 4096  ;;  %s1578_s26 = scalar_lea.hbm %s2359_s6, 8192 }
 0x115   : > { %p1575_p4 = scmp.ne.s32.totalorder %s2295_s13, %s1574_s17  ;;  %p1579_p9 = scmp.lt.u32.totalorder %s2295_s13, %s2359_s6 }
 0x116   : > { %p1580_p10 = scmp.lt.u32.totalorder %s1578_s26, %s1574_s17  ;;  %p1582_p12 = scmp.lt.u32.totalorder %s1574_s17, %s2295_s13 }
 0x117   : > { %p1576_p7 = pnand %p1575_p4, %p1701_p5 }
 0x118   : > { %p1581_p11 = por %p1580_p10, %p1579_p9 }
 0x119   : > { %p1577_p8 = pneg %p1576_p7 }
 0x11a   : > { %p1583_p13 = por %p1582_p12, %p1581_p11 }
 0x11c   : > { %p1584_p0 = pnand %p1583_p13, %p1577_p8 }
 0x11e   : > { %1587 = shalt.err (!%p1584_p0)
}
 0x11f   : > { %s1627_s11 = smov 128  }
 0x120   : > { %1518 = dma.vmem_to_hbm [thread:$0]  (%p1701_p5), %s2301_s9, 4096, %s2295_s13, %s2311_s25, %s1627_s11, %s1627_s11, %s1624_s18  }
 0x121 PF: > { %p1524_p1 = scmp.ge.s32.totalorder %s1622_s24, 2  ;;  %s1184_s12 = sand.u32 1, %s1610_s21  }
 0x122   : > { %s1185_s14 = scalar_lea.sflag [#allocation3], %s1184_s12 }
 0x123   : > { %p1521_p2 = pnand %p1524_p1, %p1705_p6 }
 0x125   : > { %1605 = dma.done.wait (!%p1521_p2), %s1185_s14, 4096  }
 0x126   : > { %1607 = vsyncadd (!%p1521_p2), %s1185_s14, 4294963200  ;;  %p16_p3 = scmp.ge.s32.totalorder %s1688_s27, 4   ;;  %s2362_s21 = smov %s1614_s22 }
 0x127   : > { %s2363_s22 = smov %s1618_s23  ;;  %s2364_s23 = smov %s1699_s30 }
 0x128   : > { %s2365_s24 = smov %s1688_s27  ;;  %18 = sbr.rel (!%p16_p3) target bundleno = 3 (0x3), region = 85 }
 0x12f   :  { %1190 = vsyncpa [#allocation3], 1 }
 0x130   :  { %1192 = vsyncpa [#allocation3 + $0x1], 1 }

// kernel: inception_forward.4
= control target key start
LH: loop header
LB: loop body
LE: loop exit
PB: predicated region body
PF: predicated region fallthrough
CT: control target
= control target key end

     0   :  { %s4163_s24 = smov 0   ;;  %s6195_s0 = inlined_call_operand.vmem [shape: bf16[2,18,18,4], index: 0, kind: input, shape index: {}]   ;;  %s6196_s1 = inlined_call_operand.vmem [shape: bf16[2,18,18,4], index: 1, kind: input, shape index: {}]   ;;  %s6197_s2 = inlined_call_operand.vmem [shape: f32[2,4], index: 2, kind: input, shape index: {}]   ;;  %s6198_s3 = inlined_call_operand.vmem [shape: f32[2,4], index: 3, kind: input, shape index: {}]   ;;  %s6199_s4 = inlined_call_operand.vmem [shape: bf16[36,8], index: 4, kind: input, shape index: {}]   ;;  %s6200_s5 = inlined_call_operand.vmem [shape: bf16[36,8], index: 5, kind: input, shape index: {}]   ;;  %s6201_s6 = inlined_call_operand.vmem [shape: bf16[2,16,16,16], index: 6, kind: output, shape index: {0}]   ;;  %s6202_s7 = inlined_call_operand.vmem [shape: f32[2,2,16], index: 7, kind: output, shape index: {1}]  }
   0x1 LB: > { %s3758_s25 = sadd.s32 4294967295, %s4111_s24   ;;  %p3762_p0 = scmp.ge.s32.totalorder %s4111_s24, 1  ;;  %s4111_s24 = sphi %s4163_s24, %s18_s24  }
   0x2   : > { %p250_p1 = scmp.lt.s32.totalorder %s4111_s24, 3 }
   0x4   : > { %p251_p2 = pnand %p3762_p0, %p250_p1 }
   0x6   : > { %254 = sbr.rel (%p251_p2) target bundleno = 966 (0x3c6), region = 44 }
   0xd   : > { %p291_p3 = scmp.lt.s32.totalorder %s3758_s25, 1  ;;  %v311_v0 = vlaneseq  ;;  %v4113_v1 = vmov 0   ;;  %s4114_s27 = smov 4   ;;  %v4194_v6 = vld [vmem:[%s6197_s2] ss:$0 sm:$0xff]  ;;  %vm972_vm3 = vcmask 1046528  }
   0xe   : > { %v4171_v2 = vrot.slane %v4113_v1, 1  ;;  %v4207_v17 = vld [vmem:[%s6197_s2 + $0x1] ss:$0 sm:$0xff]  ;;  %vm715_vm2 = vsmask.f32 7424  ;;  %s4116_s12 = smov 8  }
   0xf   : > { %s6462_s25 = smov (!%p291_p3, %s3758_s25), 1  ;;  %v4175_v3 = vshrl.u32 %v311_v0, 7  ;;  %s4117_s13 = smov 12   ;;  %vm1596_vm4 = vcmask 1041408   ;;  %vm1279_vm5 = vcmask 31744   ;;  %vm1312_vm6 = vcmask 64512  }
  0x10   : > { %6244 = vst [vmem:[#allocation2_spill] sm:$0xff] %v4171_v2  ;;  %v4092_v4 = vpack.i.bf16 %v4171_v2, %v4171_v2  ;;  %s4073_s26 = smul.u32 216, %s6462_s25  ;;  %s4118_s14 = smov 16   ;;  %vm1345_vm7 = vcmask 97280   ;;  %vm1378_vm8 = vcmask 130048   ;;  %vm1411_vm9 = vcmask 162816  }
  0x11   : > { %v4181_v5 = vadd.s32 16, %v4175_v3  ;;  %vm315_vm0 = vcmp.ge.s32.totalorder %v4175_v3, 1  ;;  %s4119_s20 = smov 20   ;;  %s4120_s9 = smov 24   ;;  %vm1444_vm10 = vcmask 195584   ;;  %vm1477_vm11 = vcmask 228352  }
  0x12   : > { %4093 = vrot.lane.b32.xlu0 %v4092_v4, %s4114_s27  ;;  %s4189_s30 = scalar_lea.vmem %s6195_s0, %s4073_s26  ;;  %s4763_s17 = scalar_lea.vmem %s6196_s1, %s4073_s26  ;;  %vm1510_vm12 = vcmask 261120   ;;  %vm1563_vm13 = vcmask 293888   ;;  %vm3453_vm14 = vcmask 125952   ;;  %vm3656_vm15 = vcmask 1040384  }
  0x13   : > { %vm326_vm1 = vcmp.le.s32.totalorder %v4181_v5, 16  ;;  %v3941_v7 = vld [vmem:[%s4189_s30 + $0x18] sm:$0xff]   ;;  %v341_v8 = vld [vmem:[%s4189_s30 + $0x20] sm:$0x1]  ;;  %v336_v9 = vld [vmem:[%s4189_s30 + $0xc] sm:$0xff]   ;;  %s4121_s10 = smov 28  }
  0x14   : > { %v3879_v10 = vunpack.c.l.bf16 %v3941_v7  ;;  %v3880_v11 = vunpack.c.h.bf16 %v3941_v7  ;;  %v395_v12 = vunpack.c.l.bf16 %v341_v8  ;;  %v338_v13 = vld [vmem:[%s4189_s30 + $0x14] sm:$0x1]  ;;  %v390_v14 = vunpack.c.l.bf16 %v336_v9  ;;  %v342_v15 = vld [vmem:[%s4189_s30 + $0x24] sm:$0xff]   ;;  %v344_v16 = vld [vmem:[%s4189_s30 + $0x2c] sm:$0x1]  ;;  %s4122_s11 = smov 32  }
  0x15   : > { %v391_v18 = vunpack.c.h.bf16 %v336_v9  ;;  %v392_v19 = vunpack.c.l.bf16 %v338_v13  ;;  %v396_v20 = vunpack.c.l.bf16 %v342_v15  ;;  %v397_v21 = vunpack.c.h.bf16 %v342_v15  ;;  %v3942_v58 = vld [vmem:[%s4189_s30 + $0x30] sm:$0xff]  }
  0x16   : > { %v452_v22 = vmul.f32 %v3879_v10, %v4194_v6  ;;  %v453_v23 = vmul.f32 %v3880_v11, %v4194_v6  ;;  %v454_v24 = vmul.f32 %v4194_v6, %v395_v12  ;;  %v449_v25 = vmul.f32 %v4194_v6, %v390_v14  ;;  %v347_v11 = vld [vmem:[%s4189_s30 + $0x38] sm:$0x1] }
  0x17   : > { %v450_v26 = vmul.f32 %v4194_v6, %v391_v18  ;;  %v451_v27 = vmul.f32 %v4194_v6, %v392_v19  ;;  %v398_v28 = vunpack.c.l.bf16 %v344_v16  ;;  %v455_v29 = vmul.f32 %v4194_v6, %v396_v20  ;;  %v348_v16 = vld [vmem:[%s4189_s30 + $0x3c] sm:$0xff]  }
  0x18   : > { %v511_v30 = vadd.f32 %v4207_v17, %v452_v22  ;;  %v512_v31 = vadd.f32 %v4207_v17, %v453_v23  ;;  %v513_v32 = vadd.f32 %v4207_v17, %v454_v24  ;;  %v508_v33 = vadd.f32 %v4207_v17, %v449_v25 }
  0x19   : > { %v509_v34 = vadd.f32 %v4207_v17, %v450_v26  ;;  %v510_v35 = vadd.f32 %v4207_v17, %v451_v27  ;;  %v456_v36 = vmul.f32 %v4194_v6, %v397_v21  ;;  %v457_v37 = vmul.f32 %v4194_v6, %v398_v28  ;;  %v350_v26 = vld [vmem:[%s4189_s30 + $0x44] sm:$0x1] }
  0x1a   : > { %v565_v38 = vmax.f32 %v511_v30, 0.0  ;;  %v566_v39 = vmax.f32 %v512_v31, 0.0  ;;  %v567_v40 = vmax.f32 %v513_v32, 0.0  ;;  %v562_v41 = vmax.f32 %v508_v33, 0.0  ;;  %v3943_v31 = vld [vmem:[%s4189_s30 + $0x48] sm:$0xff]  }
  0x1b   : > { %v563_v42 = vmax.f32 %v509_v34, 0.0  ;;  %v564_v43 = vmax.f32 %v510_v35, 0.0  ;;  %v514_v44 = vadd.f32 %v4207_v17, %v455_v29  ;;  %v515_v45 = vadd.f32 %v4207_v17, %v456_v36 }
  0x1c   : > { %v631_v46 = vsel %vm315_vm0, %v565_v38, 0.0  ;;  %v633_v47 = vsel %vm326_vm1, %v567_v40, 0.0  ;;  %v628_v48 = vsel %vm315_vm0, %v562_v41, 0.0  ;;  %v516_v49 = vadd.f32 %v4207_v17, %v457_v37  ;;  %v353_v40 = vld [vmem:[%s4189_s30 + $0x50] sm:$0x1] }
  0x1d   : > { %v4233_v50 = vpack.c.bf16 %v566_v39, %v631_v46  ;;  %v4235_v51 = vpack.c.bf16 %v633_v47, %v633_v47  ;;  %v630_v52 = vsel %vm326_vm1, %v564_v43, 0.0  ;;  %v4239_v53 = vpack.c.bf16 %v563_v42, %v628_v48 }
  0x1e   : > { %v4241_v54 = vpack.c.bf16 %v630_v52, %v630_v52  ;;  %v568_v55 = vmax.f32 %v514_v44, 0.0  ;;  %v569_v56 = vmax.f32 %v515_v45, 0.0  ;;  %v570_v57 = vmax.f32 %v516_v49, 0.0 }
  0x1f   : > { %6245 = vst [vmem:[#allocation3_spill] sm:$0xff] %v4239_v53  ;;  %v741_v59 = vshrl.u32 %v4233_v50, 16  ;;  %v743_v60 = vshll.u32 %v4233_v50, 16  ;;  %v748_v61 = vshll.u32 %v4235_v51, 16  ;;  %v729_v62 = vshrl.u32 %v4239_v53, 16 }
  0x20   : > { %v731_v63 = vshll.u32 %v4239_v53, 16  ;;  %v736_v0 = vshll.u32 %v4241_v54, 16  ;;  %v634_v1 = vsel %vm315_vm0, %v568_v55, 0.0  ;;  %v636_v4 = vsel %vm326_vm1, %v570_v57, 0.0 }
  0x21   : > { %v745_v7 = vrot.slane %v743_v60, 1  ;;  %v750_v8 = vrot.slane %v748_v61, 1  ;;  %v4254_v9 = vpack.c.bf16 %v569_v56, %v634_v1  ;;  %v4256_v10 = vpack.c.bf16 %v636_v4, %v636_v4 }
  0x22   : > { %v733_v12 = vrot.slane %v731_v63, 1  ;;  %v738_v13 = vrot.slane %v736_v0, 1  ;;  %v3883_v14 = vunpack.c.l.bf16 %v3942_v58  ;;  %v3884_v15 = vunpack.c.h.bf16 %v3942_v58 }
  0x23   : > { %v746_v18 = vor.u32 %v745_v7, %v741_v59  ;;  %v753_v19 = vshrl.u32 %v4254_v9, 16  ;;  %v755_v20 = vshll.u32 %v4254_v9, 16  ;;  %v760_v21 = vshll.u32 %v4256_v10, 16 }
  0x24   : > { %v734_v22 = vor.u32 %v733_v12, %v729_v62  ;;  %v401_v23 = vunpack.c.l.bf16 %v347_v11  ;;  %v458_v24 = vmul.f32 %v3883_v14, %v4194_v6  ;;  %v459_v25 = vmul.f32 %v3884_v15, %v4194_v6  ;;  %v354_v11 = vld [vmem:[%s4189_s30 + $0x54] sm:$0xff]  }
  0x25   : > { %v4267_v27 = vsel %vm715_vm2, %v746_v18, %v750_v8  ;;  %v757_v28 = vrot.slane %v755_v20, 1  ;;  %v762_v29 = vrot.slane %v760_v21, 1  ;;  %v402_v30 = vunpack.c.l.bf16 %v348_v16 }
  0x26   : > { %912 = vrot.lane.b32.xlu1 %v4267_v27, %s4114_s27  ;;  %v4273_v32 = vsel %vm715_vm2, %v734_v22, %v738_v13  ;;  %v460_v33 = vmul.f32 %v4194_v6, %v401_v23  ;;  %v517_v34 = vadd.f32 %v4207_v17, %v458_v24  ;;  %v518_v35 = vadd.f32 %v4207_v17, %v459_v25  ;;  %v356_v24 = vld [vmem:[%s4189_s30 + $0x5c] sm:$0x1] }
  0x27   : > { %910 = vrot.lane.b32.xlu0 %v4273_v32, %s4114_s27  ;;  %v758_v36 = vor.u32 %v757_v28, %v753_v19  ;;  %v403_v37 = vunpack.c.h.bf16 %v348_v16  ;;  %v404_v38 = vunpack.c.l.bf16 %v350_v26  ;;  %v461_v39 = vmul.f32 %v4194_v6, %v402_v30 }
  0x28   : > { %v519_v41 = vadd.f32 %v4207_v17, %v460_v33  ;;  %v571_v42 = vmax.f32 %v517_v34, 0.0  ;;  %v572_v43 = vmax.f32 %v518_v35, 0.0  ;;  %v3887_v44 = vunpack.c.l.bf16 %v3943_v31 }
  0x29   : > { %v4284_v45 = vsel %vm715_vm2, %v758_v36, %v762_v29  ;;  %v462_v46 = vmul.f32 %v4194_v6, %v403_v37  ;;  %v463_v47 = vmul.f32 %v4194_v6, %v404_v38  ;;  %v520_v48 = vadd.f32 %v4207_v17, %v461_v39 }
  0x2a   : > { %914 = vrot.lane.b32.xlu1 %v4284_v45, %s4114_s27  ;;  %v573_v49 = vmax.f32 %v519_v41, 0.0  ;;  %v637_v52 = vsel %vm315_vm0, %v571_v42, 0.0  ;;  %v3888_v55 = vunpack.c.h.bf16 %v3943_v31  ;;  %v407_v56 = vunpack.c.l.bf16 %v353_v40 }
  0x2b   : > { %v4293_v57 = vpack.c.bf16 %v572_v43, %v637_v52  ;;  %v521_v58 = vadd.f32 %v4207_v17, %v462_v46  ;;  %v522_v59 = vadd.f32 %v4207_v17, %v463_v47  ;;  %v574_v60 = vmax.f32 %v520_v48, 0.0 }
  0x2c   : > { %v639_v61 = vsel %vm326_vm1, %v573_v49, 0.0  ;;  %v464_v62 = vmul.f32 %v3887_v44, %v4194_v6  ;;  %v465_v63 = vmul.f32 %v3888_v55, %v4194_v6  ;;  %v466_v0 = vmul.f32 %v4194_v6, %v407_v56  ;;  %v3944_v44 = vld [vmem:[%s4189_s30 + $0x60] sm:$0xff]  }
  0x2d   : > { %v4302_v1 = vpack.c.bf16 %v639_v61, %v639_v61  ;;  %v765_v4 = vshrl.u32 %v4293_v57, 16  ;;  %v767_v7 = vshll.u32 %v4293_v57, 16  ;;  %v575_v8 = vmax.f32 %v521_v58, 0.0 }
  0x2e   : > { %v576_v12 = vmax.f32 %v522_v59, 0.0  ;;  %v640_v13 = vsel %vm315_vm0, %v574_v60, 0.0  ;;  %v523_v14 = vadd.f32 %v4207_v17, %v464_v62  ;;  %v524_v15 = vadd.f32 %v4207_v17, %v465_v63  ;;  %v359_v59 = vld [vmem:[%s4189_s30 + $0x68] sm:$0x1] }
  0x2f   : > { %v769_v16 = vrot.slane %v767_v7, 1  ;;  %v772_v18 = vshll.u32 %v4302_v1, 16  ;;  %v4312_v19 = vpack.c.bf16 %v575_v8, %v640_v13  ;;  %v525_v20 = vadd.f32 %v4207_v17, %v466_v0  ;;  %v360_v0 = vld [vmem:[%s4189_s30 + $0x6c] sm:$0xff]  }
  0x30   : > { %v642_v21 = vsel %vm326_vm1, %v576_v12, 0.0  ;;  %v577_v22 = vmax.f32 %v523_v14, 0.0  ;;  %v578_v23 = vmax.f32 %v524_v15, 0.0  ;;  %v408_v25 = vunpack.c.l.bf16 %v354_v11 }
  0x31   : > { %v770_v26 = vor.u32 %v769_v16, %v765_v4  ;;  %v774_v28 = vrot.slane %v772_v18, 1  ;;  %v4318_v29 = vpack.c.bf16 %v642_v21, %v642_v21  ;;  %v777_v30 = vshrl.u32 %v4312_v19, 16  ;;  %v362_v16 = vld [vmem:[%s4189_s30 + $0x74] sm:$0x1] }
  0x32   : > { %v779_v31 = vshll.u32 %v4312_v19, 16  ;;  %v579_v33 = vmax.f32 %v525_v20, 0.0  ;;  %v643_v34 = vsel %vm315_vm0, %v577_v22, 0.0  ;;  %v409_v35 = vunpack.c.h.bf16 %v354_v11 }
  0x33   : > { %v4325_v36 = vsel %vm715_vm2, %v770_v26, %v774_v28  ;;  %v784_v37 = vshll.u32 %v4318_v29, 16  ;;  %v4328_v38 = vpack.c.bf16 %v578_v23, %v643_v34  ;;  %v410_v39 = vunpack.c.l.bf16 %v356_v24 }
  0x34   : > { %916 = vrot.lane.b32.xlu0 %v4325_v36, %s4114_s27  ;;  %v781_v40 = vrot.slane %v779_v31, 1  ;;  %v645_v41 = vsel %vm326_vm1, %v579_v33, 0.0  ;;  %v467_v42 = vmul.f32 %v4194_v6, %v408_v25  ;;  %v468_v43 = vmul.f32 %v4194_v6, %v409_v35 }
  0x35   : > { %v786_v46 = vrot.slane %v784_v37, 1  ;;  %v4337_v47 = vpack.c.bf16 %v645_v41, %v645_v41  ;;  %v789_v48 = vshrl.u32 %v4328_v38, 16  ;;  %v791_v49 = vshll.u32 %v4328_v38, 16 }
  0x36   : > { %v782_v52 = vor.u32 %v781_v40, %v777_v30  ;;  %v469_v55 = vmul.f32 %v4194_v6, %v410_v39  ;;  %v526_v56 = vadd.f32 %v4207_v17, %v467_v42  ;;  %v527_v58 = vadd.f32 %v4207_v17, %v468_v43  ;;  %v3945_v40 = vld [vmem:[%s4189_s30 + $0x78] sm:$0xff]  }
  0x37   : > { %v793_v60 = vrot.slane %v791_v49, 1  ;;  %v796_v61 = vshll.u32 %v4337_v47, 16  ;;  %v3891_v62 = vunpack.c.l.bf16 %v3944_v44  ;;  %v3892_v63 = vunpack.c.h.bf16 %v3944_v44 }
  0x38   : > { %v4348_v4 = vsel %vm715_vm2, %v782_v52, %v786_v46  ;;  %v528_v7 = vadd.f32 %v4207_v17, %v469_v55  ;;  %v580_v8 = vmax.f32 %v526_v56, 0.0  ;;  %v581_v11 = vmax.f32 %v527_v58, 0.0 }
  0x39   : > { %918 = vrot.lane.b32.xlu1 %v4348_v4, %s4114_s27  ;;  %v794_v12 = vor.u32 %v793_v60, %v789_v48  ;;  %v798_v13 = vrot.slane %v796_v61, 1  ;;  %v413_v14 = vunpack.c.l.bf16 %v359_v59  ;;  %v470_v15 = vmul.f32 %v3891_v62, %v4194_v6 }
  0x3a   : > { %v582_v18 = vmax.f32 %v528_v7, 0.0  ;;  %v646_v20 = vsel %vm315_vm0, %v580_v8, 0.0  ;;  %v471_v21 = vmul.f32 %v3892_v63, %v4194_v6  ;;  %v414_v22 = vunpack.c.l.bf16 %v360_v0 }
  0x3b   : > { %v4359_v23 = vsel %vm715_vm2, %v794_v12, %v798_v13  ;;  %v4361_v24 = vpack.c.bf16 %v581_v11, %v646_v20  ;;  %v472_v25 = vmul.f32 %v4194_v6, %v413_v14  ;;  %v529_v26 = vadd.f32 %v4207_v17, %v470_v15 }
  0x3c   : > { %920 = vrot.lane.b32.xlu0 %v4359_v23, %s4114_s27  ;;  %v648_v28 = vsel %vm326_vm1, %v582_v18, 0.0  ;;  %v530_v30 = vadd.f32 %v4207_v17, %v471_v21  ;;  %v415_v31 = vunpack.c.h.bf16 %v360_v0  ;;  %v416_v33 = vunpack.c.l.bf16 %v362_v16  ;;  %v365_v0 = vld [vmem:[%s4189_s30 + $0x80] sm:$0x1]  ;;  %v366_v18 = vld [vmem:[%s4189_s30 + $0x84] sm:$0xff]  }
  0x3d   : > { %v4370_v34 = vpack.c.bf16 %v648_v28, %v648_v28  ;;  %v801_v35 = vshrl.u32 %v4361_v24, 16  ;;  %v803_v37 = vshll.u32 %v4361_v24, 16  ;;  %v531_v39 = vadd.f32 %v4207_v17, %v472_v25 }
  0x3e   : > { %v583_v41 = vmax.f32 %v529_v26, 0.0  ;;  %v584_v42 = vmax.f32 %v530_v30, 0.0  ;;  %v473_v43 = vmul.f32 %v4194_v6, %v414_v22  ;;  %v474_v44 = vmul.f32 %v4194_v6, %v415_v31 }
  0x3f   : > { %v805_v46 = vrot.slane %v803_v37, 1  ;;  %v808_v48 = vshll.u32 %v4370_v34, 16  ;;  %v585_v49 = vmax.f32 %v531_v39, 0.0  ;;  %v475_v52 = vmul.f32 %v4194_v6, %v416_v33  ;;  %v368_v39 = vld [vmem:[%s4189_s30 + $0x8c] sm:$0x1] }
  0x40   : > { %v649_v55 = vsel %vm315_vm0, %v583_v41, 0.0  ;;  %v532_v56 = vadd.f32 %v4207_v17, %v473_v43  ;;  %v533_v58 = vadd.f32 %v4207_v17, %v474_v44  ;;  %v3895_v59 = vunpack.c.l.bf16 %v3945_v40 }
  0x41   : > { %v806_v60 = vor.u32 %v805_v46, %v801_v35  ;;  %v810_v61 = vrot.slane %v808_v48, 1  ;;  %v651_v62 = vsel %vm326_vm1, %v585_v49, 0.0  ;;  %v4386_v63 = vpack.c.bf16 %v584_v42, %v649_v55 }
  0x42   : > { %v4389_v7 = vpack.c.bf16 %v651_v62, %v651_v62  ;;  %v534_v8 = vadd.f32 %v4207_v17, %v475_v52  ;;  %v586_v11 = vmax.f32 %v532_v56, 0.0  ;;  %v587_v12 = vmax.f32 %v533_v58, 0.0 }
  0x43   : > { %v4393_v13 = vsel %vm715_vm2, %v806_v60, %v810_v61  ;;  %v813_v14 = vshrl.u32 %v4386_v63, 16  ;;  %v815_v15 = vshll.u32 %v4386_v63, 16  ;;  %v3896_v16 = vunpack.c.h.bf16 %v3945_v40  ;;  %v3946_v60 = vld [vmem:[%s4189_s30 + $0x90] sm:$0xff]  }
  0x44   : > { %922 = vrot.lane.b32.xlu1 %v4393_v13, %s4114_s27  ;;  %v820_v20 = vshll.u32 %v4389_v7, 16  ;;  %v588_v21 = vmax.f32 %v534_v8, 0.0  ;;  %v652_v22 = vsel %vm315_vm0, %v586_v11, 0.0  ;;  %v419_v25 = vunpack.c.l.bf16 %v365_v0 }
  0x45   : > { %v817_v26 = vrot.slane %v815_v15, 1  ;;  %v4403_v28 = vpack.c.bf16 %v587_v12, %v652_v22  ;;  %v476_v30 = vmul.f32 %v3895_v59, %v4194_v6  ;;  %v477_v31 = vmul.f32 %v3896_v16, %v4194_v6  ;;  %v371_v16 = vld [vmem:[%s4189_s30 + $0x98] sm:$0x1] }
  0x46   : > { %v822_v33 = vrot.slane %v820_v20, 1  ;;  %v654_v35 = vsel %vm326_vm1, %v588_v21, 0.0  ;;  %v478_v37 = vmul.f32 %v4194_v6, %v419_v25  ;;  %v420_v40 = vunpack.c.l.bf16 %v366_v18 }
  0x47   : > { %6246 = vst [vmem:[#allocation4_spill] sm:$0xff] %v4403_v28  ;;  %v818_v41 = vor.u32 %v817_v26, %v813_v14  ;;  %v4411_v42 = vpack.c.bf16 %v654_v35, %v654_v35  ;;  %v825_v43 = vshrl.u32 %v4403_v28, 16  ;;  %v827_v44 = vshll.u32 %v4403_v28, 16 }
  0x48   : > { %v535_v46 = vadd.f32 %v4207_v17, %v476_v30  ;;  %v536_v48 = vadd.f32 %v4207_v17, %v477_v31  ;;  %v537_v49 = vadd.f32 %v4207_v17, %v478_v37  ;;  %v421_v52 = vunpack.c.h.bf16 %v366_v18 }
  0x49   : > { %v4419_v55 = vsel %vm715_vm2, %v818_v41, %v822_v33  ;;  %v829_v56 = vrot.slane %v827_v44, 1  ;;  %v832_v58 = vshll.u32 %v4411_v42, 16  ;;  %v422_v59 = vunpack.c.l.bf16 %v368_v39 }
  0x4a   : > { %6247 = vst [vmem:[#allocation5_spill] sm:$0xff] %v4419_v55  ;;  %924 = vrot.lane.b32.xlu0 %v4419_v55, %s4114_s27  ;;  %v589_v61 = vmax.f32 %v535_v46, 0.0  ;;  %v590_v62 = vmax.f32 %v536_v48, 0.0  ;;  %v591_v0 = vmax.f32 %v537_v49, 0.0  ;;  %v479_v8 = vmul.f32 %v4194_v6, %v420_v40  ;;  %v372_v46 = vld [vmem:[%s4189_s30 + $0x9c] sm:$0xff]  }
  0x4b   : > { %v830_v11 = vor.u32 %v829_v56, %v825_v43  ;;  %v834_v12 = vrot.slane %v832_v58, 1  ;;  %v480_v14 = vmul.f32 %v4194_v6, %v421_v52  ;;  %v481_v15 = vmul.f32 %v4194_v6, %v422_v59 }
  0x4c   : > { %v655_v18 = vsel %vm315_vm0, %v589_v61, 0.0  ;;  %v657_v20 = vsel %vm326_vm1, %v591_v0, 0.0  ;;  %v538_v21 = vadd.f32 %v4207_v17, %v479_v8  ;;  %v3899_v22 = vunpack.c.l.bf16 %v3946_v60 }
  0x4d   : > { %v4435_v25 = vsel %vm715_vm2, %v830_v11, %v834_v12  ;;  %v4437_v26 = vpack.c.bf16 %v590_v62, %v655_v18  ;;  %v4439_v30 = vpack.c.bf16 %v657_v20, %v657_v20  ;;  %v539_v31 = vadd.f32 %v4207_v17, %v480_v14  ;;  %v374_v11 = vld [vmem:[%s4189_s30 + $0xa4] sm:$0x1] }
  0x4e   : > { %6248 = vst [vmem:[#allocation6_spill] sm:$0xff] %v4435_v25  ;;  %926 = vrot.lane.b32.xlu1 %v4435_v25, %s4114_s27  ;;  %v540_v33 = vadd.f32 %v4207_v17, %v481_v15  ;;  %v592_v35 = vmax.f32 %v538_v21, 0.0  ;;  %v3900_v37 = vunpack.c.h.bf16 %v3946_v60  ;;  %v425_v39 = vunpack.c.l.bf16 %v371_v16 }
  0x4f   : > { %6249 = vst [vmem:[#allocation7_spill] sm:$0xff] %v4437_v26  ;;  %v837_v40 = vshrl.u32 %v4437_v26, 16  ;;  %v839_v41 = vshll.u32 %v4437_v26, 16  ;;  %v844_v43 = vshll.u32 %v4439_v30, 16  ;;  %v593_v44 = vmax.f32 %v539_v31, 0.0 }
  0x50   : > { %v594_v48 = vmax.f32 %v540_v33, 0.0  ;;  %v658_v49 = vsel %vm315_vm0, %v592_v35, 0.0  ;;  %v482_v52 = vmul.f32 %v3899_v22, %v4194_v6  ;;  %v483_v56 = vmul.f32 %v3900_v37, %v4194_v6 }
  0x51   : > { %v841_v58 = vrot.slane %v839_v41, 1  ;;  %v846_v59 = vrot.slane %v844_v43, 1  ;;  %v4453_v60 = vpack.c.bf16 %v593_v44, %v658_v49  ;;  %v484_v61 = vmul.f32 %v4194_v6, %v425_v39 }
  0x52   : > { %v660_v62 = vsel %vm326_vm1, %v594_v48, 0.0  ;;  %v541_v0 = vadd.f32 %v4207_v17, %v482_v52  ;;  %v542_v8 = vadd.f32 %v4207_v17, %v483_v56  ;;  %v426_v12 = vunpack.c.l.bf16 %v372_v46 }
  0x53   : > { %6250 = vst [vmem:[#allocation8_spill] sm:$0xff] %v4453_v60  ;;  %v842_v14 = vor.u32 %v841_v58, %v837_v40  ;;  %v4461_v15 = vpack.c.bf16 %v660_v62, %v660_v62  ;;  %v849_v16 = vshrl.u32 %v4453_v60, 16  ;;  %v851_v18 = vshll.u32 %v4453_v60, 16  ;;  %v3947_v40 = vld [vmem:[%s4189_s30 + $0xa8] sm:$0xff]  }
  0x54   : > { %v543_v20 = vadd.f32 %v4207_v17, %v484_v61  ;;  %v595_v21 = vmax.f32 %v541_v0, 0.0  ;;  %v596_v22 = vmax.f32 %v542_v8, 0.0  ;;  %v427_v31 = vunpack.c.h.bf16 %v372_v46  ;;  %v377_v0 = vld [vmem:[%s4189_s30 + $0xb0] sm:$0x1] }
  0x55   : > { %v4467_v33 = vsel %vm715_vm2, %v842_v14, %v846_v59  ;;  %v853_v35 = vrot.slane %v851_v18, 1  ;;  %v856_v37 = vshll.u32 %v4461_v15, 16  ;;  %v428_v39 = vunpack.c.l.bf16 %v374_v11 }
  0x56   : > { %6251 = vst [vmem:[#allocation9_spill] sm:$0xff] %v4467_v33  ;;  %928 = vrot.lane.b32.xlu0 %v4467_v33, %s4114_s27  ;;  %v597_v41 = vmax.f32 %v543_v20, 0.0  ;;  %v661_v43 = vsel %vm315_vm0, %v595_v21, 0.0  ;;  %v485_v44 = vmul.f32 %v4194_v6, %v426_v12  ;;  %v486_v46 = vmul.f32 %v4194_v6, %v427_v31 }
  0x57   : > { %v854_v48 = vor.u32 %v853_v35, %v849_v16  ;;  %v858_v49 = vrot.slane %v856_v37, 1  ;;  %v4477_v52 = vpack.c.bf16 %v596_v22, %v661_v43  ;;  %v487_v56 = vmul.f32 %v4194_v6, %v428_v39  ;;  %v378_v16 = vld [vmem:[%s4189_s30 + $0xb4] sm:$0xff]  }
  0x58   : > { %v663_v58 = vsel %vm326_vm1, %v597_v41, 0.0  ;;  %v544_v59 = vadd.f32 %v4207_v17, %v485_v44  ;;  %v545_v61 = vadd.f32 %v4207_v17, %v486_v46  ;;  %v3903_v62 = vunpack.c.l.bf16 %v3947_v40 }
  0x59   : > { %6252 = vst [vmem:[#allocation10_spill] sm:$0xff] %v4477_v52  ;;  %v4486_v8 = vsel %vm715_vm2, %v854_v48, %v858_v49  ;;  %v4488_v11 = vpack.c.bf16 %v663_v58, %v663_v58  ;;  %v861_v12 = vshrl.u32 %v4477_v52, 16  ;;  %v863_v14 = vshll.u32 %v4477_v52, 16 }
  0x5a   : > { %6253 = vst [vmem:[#allocation11_spill] sm:$0xff] %v4486_v8  ;;  %930 = vrot.lane.b32.xlu1 %v4486_v8, %s4114_s27  ;;  %v546_v18 = vadd.f32 %v4207_v17, %v487_v56  ;;  %v598_v20 = vmax.f32 %v544_v59, 0.0  ;;  %v599_v21 = vmax.f32 %v545_v61, 0.0  ;;  %v3904_v22 = vunpack.c.h.bf16 %v3947_v40  ;;  %v380_v40 = vld [vmem:[%s4189_s30 + $0xbc] sm:$0x1] }
  0x5b   : > { %v865_v31 = vrot.slane %v863_v14, 1  ;;  %v868_v35 = vshll.u32 %v4488_v11, 16  ;;  %v431_v37 = vunpack.c.l.bf16 %v377_v0  ;;  %v488_v39 = vmul.f32 %v3903_v62, %v4194_v6 }
  0x5c   : > { %v600_v41 = vmax.f32 %v546_v18, 0.0  ;;  %v664_v43 = vsel %vm315_vm0, %v598_v20, 0.0  ;;  %v489_v44 = vmul.f32 %v3904_v22, %v4194_v6  ;;  %v432_v46 = vunpack.c.l.bf16 %v378_v16 }
  0x5d   : > { %v866_v48 = vor.u32 %v865_v31, %v861_v12  ;;  %v870_v49 = vrot.slane %v868_v35, 1  ;;  %v4501_v56 = vpack.c.bf16 %v599_v21, %v664_v43  ;;  %v490_v58 = vmul.f32 %v4194_v6, %v431_v37 }
  0x5e   : > { %v666_v59 = vsel %vm326_vm1, %v600_v41, 0.0  ;;  %v547_v61 = vadd.f32 %v4207_v17, %v488_v39  ;;  %v548_v62 = vadd.f32 %v4207_v17, %v489_v44  ;;  %v433_v0 = vunpack.c.h.bf16 %v378_v16 }
  0x5f   : > { %6254 = vst [vmem:[#allocation12_spill] sm:$0xff] %v4501_v56  ;;  %v4510_v14 = vsel %vm715_vm2, %v866_v48, %v870_v49  ;;  %v4512_v18 = vpack.c.bf16 %v666_v59, %v666_v59  ;;  %v873_v12 = vshrl.u32 %v4501_v56, 16  ;;  %v875_v20 = vshll.u32 %v4501_v56, 16 }
  0x60   : > { %6255 = vst [vmem:[#allocation13_spill] sm:$0xff] %v4510_v14  ;;  %932 = vrot.lane.b32.xlu0 %v4510_v14, %s4114_s27  ;;  %v549_v21 = vadd.f32 %v4207_v17, %v490_v58  ;;  %v601_v22 = vmax.f32 %v547_v61, 0.0  ;;  %v602_v31 = vmax.f32 %v548_v62, 0.0  ;;  %v434_v35 = vunpack.c.l.bf16 %v380_v40 }
  0x61   : > { %v877_v37 = vrot.slane %v875_v20, 1  ;;  %v880_v16 = vshll.u32 %v4512_v18, 16  ;;  %v491_v39 = vmul.f32 %v4194_v6, %v432_v46  ;;  %v492_v41 = vmul.f32 %v4194_v6, %v433_v0 }
  0x62   : > { %v603_v43 = vmax.f32 %v549_v21, 0.0  ;;  %v667_v44 = vsel %vm315_vm0, %v601_v22, 0.0  ;;  %v493_v48 = vmul.f32 %v4194_v6, %v434_v35 }
  0x63   : > { %v878_v49 = vor.u32 %v877_v37, %v873_v12  ;;  %v882_v59 = vrot.slane %v880_v16, 1  ;;  %v4525_v2 = vpack.c.bf16 %v602_v31, %v667_v44  ;;  %v550_v58 = vadd.f32 %v4207_v17, %v491_v39 }
  0x64   : > { %v669_v40 = vsel %vm326_vm1, %v603_v43, 0.0  ;;  %v551_v61 = vadd.f32 %v4207_v17, %v492_v41  ;;  %v552_v46 = vadd.f32 %v4207_v17, %v493_v48 }
  0x65   : > { %6256 = vst [vmem:[#allocation14_spill] sm:$0xff] %v4525_v2  ;;  %v4533_v62 = vsel %vm715_vm2, %v878_v49, %v882_v59  ;;  %v4535_v0 = vpack.c.bf16 %v669_v40, %v669_v40  ;;  %v885_v20 = vshrl.u32 %v4525_v2, 16  ;;  %v887_v12 = vshll.u32 %v4525_v2, 16 }
  0x66   : > { %6257 = vst [vmem:[#allocation15_spill] sm:$0xff] %v4533_v62  ;;  %934 = vrot.lane.b32.xlu1 %v4533_v62, %s4114_s27  ;;  %v604_v21 = vmax.f32 %v550_v58, 0.0  ;;  %v605_v22 = vmax.f32 %v551_v61, 0.0  ;;  %v606_v31 = vmax.f32 %v552_v46, 0.0  ;;  %v6205_v61 = vmov 0.0|0.0  }
  0x67   : > { %v889_v35 = vrot.slane %v887_v12, 1  ;;  %v892_v37 = vshll.u32 %v4535_v0, 16  ;;  %v4559_v46 = vrot.slane %v6205_v61, 1 }
  0x68   : > { %v670_v16 = vsel %vm315_vm0, %v604_v21, 0.0  ;;  %v672_v39 = vsel %vm326_vm1, %v606_v31, 0.0  ;;  %v979_v21 = vrot.slane %v4233_v50, 1 }
  0x69   : > { %v890_v41 = vor.u32 %v889_v35, %v885_v20  ;;  %v894_v43 = vrot.slane %v892_v37, 1  ;;  %v4546_v44 = vpack.c.bf16 %v605_v22, %v670_v16  ;;  %v4548_v48 = vpack.c.bf16 %v672_v39, %v672_v39 }
  0x6a   : > { %v980_v22 = vrot.slane %v4235_v51, 1  ;;  %v976_v35 = vrot.slane %v4239_v53, 1  ;;  %v977_v37 = vrot.slane %v4241_v54, 1  ;;  %v986_v51 = vrot.slane %v4302_v1, 1 }
  0x6b   : > { %6258 = vst [vmem:[#allocation16_spill] sm:$0xff] %v4546_v44  ;;  %v4551_v49 = vsel %vm715_vm2, %v890_v41, %v894_v43  ;;  %v897_v59 = vshrl.u32 %v4546_v44, 16  ;;  %v899_v58 = vshll.u32 %v4546_v44, 16  ;;  %v904_v40 = vshll.u32 %v4548_v48, 16 }
  0x6c   : > { %6259 = vst [vmem:[#allocation17_spill] sm:$0xff] %v4551_v49  ;;  %936 = vrot.lane.b32.xlu0 %v4551_v49, %s4114_s27  ;;  %v4571_v39 = vsel %vm972_vm3, %v979_v21, %v980_v22  ;;  %v985_v41 = vrot.slane %v4293_v57, 1  ;;  %v4578_v43 = vsel %vm972_vm3, %v976_v35, %v977_v37  ;;  %v982_v54 = vrot.slane %v4254_v9, 1 }
  0x6d   : > { %v901_v20 = vrot.slane %v899_v58, 1  ;;  %v906_v12 = vrot.slane %v904_v40, 1  ;;  %v991_v40 = vrot.slane %v4328_v38, 1  ;;  %v992_v1 = vrot.slane %v4337_v47, 1 }
  0x6e   : > { %v4585_v58 = vsel %vm972_vm3, %v985_v41, %v986_v51  ;;  %v997_v22 = vrot.slane %v4386_v63, 1  ;;  %v998_v47 = vrot.slane %v4389_v7, 1  ;;  %v994_v35 = vrot.slane %v4361_v24, 1 }
  0x6f   : > { %v902_v31 = vor.u32 %v901_v20, %v897_v59  ;;  %v983_v59 = vrot.slane %v4256_v10, 1  ;;  %v989_v10 = vrot.slane %v4318_v29, 1  ;;  %v4599_v21 = vsel %vm972_vm3, %v991_v40, %v992_v1 }
  0x70   : > { %1021 = vrot.lane.b32.xlu0 %v4559_v46, %s4116_s12  ;;  %v995_v29 = vrot.slane %v4370_v34, 1  ;;  %v4613_v37 = vsel %vm972_vm3, %v997_v22, %v998_v47  ;;  %v1003_v41 = vrot.slane %v4437_v26, 1  ;;  %v1004_v7 = vrot.slane %v4439_v30, 1 }
  0x71   : > { %v4568_v16 = vsel %vm715_vm2, %v902_v31, %v906_v12  ;;  %v4592_v20 = vsel %vm972_vm3, %v982_v54, %v983_v59  ;;  %v988_v12 = vrot.slane %v4312_v19, 1  ;;  %6261 = vst [vmem:[#allocation19_spill] sm:$0xff] %v4613_v37  ;;  %v1000_v54 = vrot.slane %v4403_v28, 1 }
  0x72   : > { %6260 = vst [vmem:[#allocation18_spill] sm:$0xff] %v4568_v16  ;;  %938 = vrot.lane.b32.xlu1 %v4568_v16, %s4114_s27  ;;  %v4620_v51 = vsel %vm972_vm3, %v994_v35, %v995_v29  ;;  %v1001_v34 = vrot.slane %v4411_v42, 1  ;;  %v4627_v59 = vsel %vm972_vm3, %v1003_v41, %v1004_v7  ;;  %v1009_v40 = vrot.slane %v4477_v52, 1 }
  0x73   : > { %v4606_v31 = vsel %vm972_vm3, %v988_v12, %v989_v10  ;;  %6262 = vst [vmem:[#allocation20_spill] sm:$0xff] %v4620_v51  ;;  %6263 = vst [vmem:[#allocation21_spill] sm:$0xff] %v4627_v59  ;;  %v1010_v30 = vrot.slane %v4488_v11, 1  ;;  %v1006_v12 = vrot.slane %v4453_v60, 1  ;;  %v1007_v42 = vrot.slane %v4461_v15, 1 }
  0x74   : > { %1025 = vrot.lane.b32.xlu0 %v4571_v39, %s4116_s12  ;;  %v4634_v1 = vsel %vm972_vm3, %v1000_v54, %v1001_v34  ;;  %v1015_v22 = vrot.slane %v4525_v2, 1  ;;  %v1016_v11 = vrot.slane %v4535_v0, 1  ;;  %v1012_v35 = vrot.slane %v4501_v56, 1 }
  0x75   : > { %6264 = vst [vmem:[#allocation22_spill] sm:$0xff] %v4634_v1  ;;  %v4641_v10 = vsel %vm972_vm3, %v1009_v40, %v1010_v30  ;;  %v4648_v47 = vsel %vm972_vm3, %v1006_v12, %v1007_v42  ;;  %v1013_v15 = vrot.slane %v4512_v18, 1  ;;  %v1018_v41 = vrot.slane %v4546_v44, 1 }
  0x76   : > { %1023 = vrot.lane.b32.xlu1 %v4578_v43, %s4116_s12  ;;  %6265 = vst [vmem:[#allocation23_spill] sm:$0xff] %v4641_v10  ;;  %6266 = vst [vmem:[#allocation24_spill] sm:$0xff] %v4648_v47  ;;  %v4655_v29 = vsel %vm972_vm3, %v1015_v22, %v1016_v11  ;;  %v1019_v7 = vrot.slane %v4548_v48, 1  ;;  %v3948_v48 = vld [vmem:[%s4189_s30 + $0xc0] sm:$0xff]  }
  0x77   : > { %6267 = vst [vmem:[#allocation25_spill] sm:$0xff] %v4655_v29  ;;  %v4660_v0 = vsel %vm972_vm3, %v1012_v35, %v1013_v15  ;;  %v3907_v54 = vunpack.c.l.bf16 %v3948_v48  ;;  %v3908_v34 = vunpack.c.h.bf16 %v3948_v48  ;;  %v383_v15 = vld [vmem:[%s4189_s30 + $0xc8] sm:$0x1] }
  0x78   : > { %1029 = vrot.lane.b32.xlu0 %v4585_v58, %s4116_s12  ;;  %6268 = vst [vmem:[#allocation26_spill] sm:$0xff] %v4660_v0  ;;  %v4669_v18 = vsel %vm972_vm3, %v1018_v41, %v1019_v7  ;;  %v437_v7 = vunpack.c.l.bf16 %v383_v15 }
  0x79   : > { %6269 = vst [vmem:[#allocation27_spill] sm:$0xff] %v4669_v18  ;;  %v494_v40 = vmul.f32 %v3907_v54, %v4194_v6  ;;  %v495_v30 = vmul.f32 %v3908_v34, %v4194_v6 }
  0x7a   : > { %1027 = vrot.lane.b32.xlu1 %v4592_v20, %s4116_s12  ;;  %v496_v54 = vmul.f32 %v4194_v6, %v437_v7 }
  0x7b   : > { %v553_v12 = vadd.f32 %v4207_v17, %v494_v40  ;;  %v554_v42 = vadd.f32 %v4207_v17, %v495_v30 }
  0x7c   : > { %1033 = vrot.lane.b32.xlu0 %v4599_v21, %s4116_s12  ;;  %v555_v34 = vadd.f32 %v4207_v17, %v496_v54 }
  0x7d   : > { %v607_v22 = vmax.f32 %v553_v12, 0.0  ;;  %v608_v11 = vmax.f32 %v554_v42, 0.0 }
  0x7e   : > { %1031 = vrot.lane.b32.xlu1 %v4606_v31, %s4116_s12  ;;  %v609_v6 = vmax.f32 %v555_v34, 0.0  ;;  %v1764_v34 = vld [vmem:[%s4763_s17 + $0xc] sm:$0xff]  }
  0x7f   : > { %v673_v35 = vsel %vm315_vm0, %v607_v22, 0.0 }
  0x80   : > { %1037 = vrot.lane.b32.xlu0 %v4613_v37, %s4116_s12  ;;  %v4711_v41 = vpack.c.bf16 %v608_v11, %v673_v35  ;;  %v675_v12 = vsel %vm326_vm1, %v609_v6, 0.0 }
  0x81   : > { %v4747_v42 = vpack.c.bf16 %v675_v12, %v675_v12 }
  0x82   : > { %1035 = vrot.lane.b32.xlu1 %v4620_v51, %s4116_s12  ;;  %6270 = vst [vmem:[#allocation28_spill] sm:$0xff] %v4711_v41  ;;  %v1089_v22 = vshll.u32 %v4711_v41, 16  ;;  %v1087_v15 = vshrl.u32 %v4711_v41, 16 }
  0x83   : > { %6276 = vst [vmem:[#allocation34_spill] sm:$0xff] %v4747_v42  ;;  %v1094_v54 = vshll.u32 %v4747_v42, 16 }
  0x84   : > { %1041 = vrot.lane.b32.xlu0 %v4627_v59, %s4116_s12  ;;  %v4719_v48 = vpop.permute.xlu0 %4093  ;;  %v1091_v7 = vrot.slane %v1089_v22, 1  ;;  %v1766_v22 = vld [vmem:[%s4763_s17 + $0x14] sm:$0x1] }
  0x85   : > { %6271 = vst [vmem:[#allocation29_spill] sm:$0xff] %v4719_v48  ;;  %v1096_v12 = vrot.slane %v1094_v54, 1  ;;  %v1820_v54 = vunpack.c.l.bf16 %v1766_v22 }
  0x86   : > { %1039 = vrot.lane.b32.xlu1 %v4634_v1, %s4116_s12  ;;  %v1092_v6 = vor.u32 %v1091_v7, %v1087_v15  ;;  %v1819_v7 = vunpack.c.h.bf16 %v1764_v34 }
  0x88   : > { %1045 = vrot.lane.b32.xlu0 %v4641_v10, %s4116_s12  ;;  %v4787_v15 = vsel %vm715_vm2, %v1092_v6, %v1096_v12  ;;  %v3949_v12 = vld [vmem:[%s4763_s17 + $0x18] sm:$0xff]  }
  0x89   : > { %6281 = vst [vmem:[#allocation39_spill] sm:$0xff] %v4787_v15 }
  0x8a   : > { %1043 = vrot.lane.b32.xlu1 %v4648_v47, %s4116_s12 }
  0x8c   : > { %1049 = vrot.lane.b32.xlu0 %v4655_v29, %s4116_s12 }
  0x8e   : > { %1047 = vrot.lane.b32.xlu1 %v4660_v0, %s4116_s12 }
  0x90   : > { %1054 = vrot.lane.b32.xlu0 %v4239_v53, %s4117_s13  ;;  %v3911_v53 = vunpack.c.l.bf16 %v3949_v12 }
  0x92   : > { %1051 = vrot.lane.b32.xlu1 %v4669_v18, %s4116_s12 }
  0x94   : > { %1058 = vrot.lane.b32.xlu0 %v4254_v9, %s4117_s13 }
  0x96   : > { %1056 = vrot.lane.b32.xlu1 %v4233_v50, %s4117_s13 }
  0x98   : > { %1062 = vrot.lane.b32.xlu0 %v4312_v19, %s4117_s13 }
  0x99   : > { %v4731_v40 = vpop.permute.xlu0 %910 }
  0x9a   : > { %1060 = vrot.lane.b32.xlu1 %v4293_v57, %s4117_s13  ;;  %6273 = vst [vmem:[#allocation31_spill] sm:$0xff] %v4731_v40 }
  0x9c   : > { %1066 = vrot.lane.b32.xlu0 %v4361_v24, %s4117_s13 }
  0x9e   : > { %1064 = vrot.lane.b32.xlu1 %v4328_v38, %s4117_s13 }
  0xa0   : > { %1070 = vrot.lane.b32.xlu0 %v4403_v28, %s4117_s13 }
  0xa2   : > { %1068 = vrot.lane.b32.xlu1 %v4386_v63, %s4117_s13 }
  0xa4   : > { %1074 = vrot.lane.b32.xlu0 %v4453_v60, %s4117_s13 }
  0xa6   : > { %1072 = vrot.lane.b32.xlu1 %v4437_v26, %s4117_s13  ;;  %v4741_v17 = vpop.permute.xlu0 %916 }
  0xa7   : > { %6275 = vst [vmem:[#allocation33_spill] sm:$0xff] %v4741_v17  ;;  %v4782_v17 = vld [vmem:[%s6198_s3] ss:$0 sm:$0xff] }
  0xa8   : > { %1078 = vrot.lane.b32.xlu0 %v4501_v56, %s4117_s13  ;;  %v1784_v56 = vld [vmem:[%s4763_s17 + $0x5c] sm:$0x1] }
  0xaa   : > { %1076 = vrot.lane.b32.xlu1 %v4477_v52, %s4117_s13 }
  0xac   : > { %1082 = vrot.lane.b32.xlu0 %v4546_v44, %s4117_s13 }
  0xae   : > { %1080 = vrot.lane.b32.xlu1 %v4525_v2, %s4117_s13  ;;  %v4756_v35 = vpop.permute.xlu0 %920 }
  0xaf   : > { %6278 = vst [vmem:[#allocation36_spill] sm:$0xff] %v4756_v35 }
  0xb0   : > { %1098 = vrot.lane.b32.xlu0 %v4273_v32, %s4118_s14  ;;  %v4729_v32 = vpop.permute.xlu1 %912 }
  0xb1   : > { %6272 = vst [vmem:[#allocation30_spill] sm:$0xff] %v4729_v32 }
  0xb2   : > { %1084 = vrot.lane.b32.xlu1 %v4711_v41, %s4117_s13 }
  0xb4   : > { %1102 = vrot.lane.b32.xlu0 %v4284_v45, %s4118_s14  ;;  %v4739_v30 = vpop.permute.xlu1 %914 }
  0xb5   : > { %6274 = vst [vmem:[#allocation32_spill] sm:$0xff] %v4739_v30 }
  0xb6   : > { %1100 = vrot.lane.b32.xlu1 %v4267_v27, %s4118_s14 }
  0xb8   : > { %1106 = vrot.lane.b32.xlu0 %v4348_v4, %s4118_s14  ;;  %v4754_v11 = vpop.permute.xlu1 %918 }
  0xb9   : > { %6277 = vst [vmem:[#allocation35_spill] sm:$0xff] %v4754_v11  ;;  %v1818_v11 = vunpack.c.l.bf16 %v1764_v34  ;;  %v1878_v34 = vmul.f32 %v4782_v17, %v1819_v7 }
  0xba   : > { %1104 = vrot.lane.b32.xlu1 %v4325_v36, %s4118_s14 }
  0xbc   : > { %1110 = vrot.lane.b32.xlu0 %v4393_v13, %s4118_s14  ;;  %v4774_v61 = vpop.permute.xlu1 %922  ;;  %v4776_v35 = vpop.permute.xlu0 %924 }
  0xbd   : > { %6279 = vst [vmem:[#allocation37_spill] sm:$0xff] %v4774_v61  ;;  %6280 = vst [vmem:[#allocation38_spill] sm:$0xff] %v4776_v35  ;;  %v1877_v35 = vmul.f32 %v4782_v17, %v1818_v11  ;;  %v4795_v61 = vld [vmem:[%s6198_s3 + $0x1] ss:$0 sm:$0xff] }
  0xbe   : > { %1108 = vrot.lane.b32.xlu1 %v4359_v23, %s4118_s14  ;;  %v1937_v22 = vadd.f32 %v4795_v61, %v1878_v34 }
  0xbf   : > { %v1936_v11 = vadd.f32 %v4795_v61, %v1877_v35  ;;  %v3912_v35 = vunpack.c.h.bf16 %v3949_v12 }
  0xc0   : > { %1114 = vrot.lane.b32.xlu0 %v4435_v25, %s4118_s14  ;;  %v4799_v30 = vpop.permute.xlu1 %926  ;;  %v1991_v40 = vmax.f32 %v1937_v22, 0.0 }
  0xc1   : > { %6282 = vst [vmem:[#allocation40_spill] sm:$0xff] %v4799_v30  ;;  %v1990_v32 = vmax.f32 %v1936_v11, 0.0  ;;  %v1881_v12 = vmul.f32 %v3912_v35, %v4782_v17 }
  0xc2   : > { %1112 = vrot.lane.b32.xlu1 %v4419_v55, %s4118_s14 }
  0xc4   : > { %1118 = vrot.lane.b32.xlu0 %v4486_v8, %s4118_s14 }
  0xc6   : > { %1116 = vrot.lane.b32.xlu1 %v4467_v33, %s4118_s14 }
  0xc8   : > { %1122 = vrot.lane.b32.xlu0 %v4533_v62, %s4118_s14  ;;  %v4801_v6 = vpop.permute.xlu0 %928 }
  0xc9   : > { %6283 = vst [vmem:[#allocation41_spill] sm:$0xff] %v4801_v6 }
  0xca   : > { %1120 = vrot.lane.b32.xlu1 %v4510_v14, %s4118_s14 }
  0xcc   : > { %1126 = vrot.lane.b32.xlu0 %v4568_v16, %s4118_s14  ;;  %v4814_v30 = vpop.permute.xlu1 %930  ;;  %v1772_v16 = vld [vmem:[%s4763_s17 + $0x2c] sm:$0x1] }
  0xcd   : > { %6284 = vst [vmem:[#allocation42_spill] sm:$0xff] %v4814_v30  ;;  %v2044_v30 = vsel %vm315_vm0, %v1990_v32, 0.0  ;;  %v1826_v2 = vunpack.c.l.bf16 %v1772_v16 }
  0xce   : > { %1124 = vrot.lane.b32.xlu1 %v4551_v49, %s4118_s14  ;;  %v4834_v22 = vpack.c.bf16 %v1991_v40, %v2044_v30  ;;  %v1940_v40 = vadd.f32 %v4795_v61, %v1881_v12 }
  0xd0   : > { %1134 = vrot.lane.b32.xlu0 %v4578_v43, %s4119_s20  ;;  %v1879_v43 = vmul.f32 %v4782_v17, %v1820_v54  ;;  %v1769_v54 = vld [vmem:[%s4763_s17 + $0x20] sm:$0x1]  ;;  %v2146_v35 = vshll.u32 %v4834_v22, 16  ;;  %v2144_v12 = vshrl.u32 %v4834_v22, 16 }
  0xd2   : > { %1128 = vrot.lane.b32.xlu1 %v4787_v15, %s4118_s14  ;;  %v4816_v6 = vpop.permute.xlu0 %932  ;;  %v1938_v7 = vadd.f32 %v4795_v61, %v1879_v43  ;;  %v1823_v15 = vunpack.c.l.bf16 %v1769_v54  ;;  %v1770_v54 = vld [vmem:[%s4763_s17 + $0x24] sm:$0xff]  }
  0xd3   : > { %6285 = vst [vmem:[#allocation43_spill] sm:$0xff] %v4816_v6  ;;  %v1880_v6 = vmul.f32 %v3911_v53, %v4782_v17  ;;  %v1825_v41 = vunpack.c.h.bf16 %v1770_v54 }
  0xd4   : > { %1138 = vrot.lane.b32.xlu0 %v4592_v20, %s4119_s20  ;;  %v1992_v34 = vmax.f32 %v1938_v7, 0.0  ;;  %v1882_v7 = vmul.f32 %v4782_v17, %v1823_v15  ;;  %v1824_v15 = vunpack.c.l.bf16 %v1770_v54 }
  0xd5   : > { %v1939_v53 = vadd.f32 %v4795_v61, %v1880_v6 }
  0xd6   : > { %1136 = vrot.lane.b32.xlu1 %v4571_v39, %s4119_s20  ;;  %v2046_v32 = vsel %vm326_vm1, %v1992_v34, 0.0  ;;  %v1941_v6 = vadd.f32 %v4795_v61, %v1882_v7  ;;  %v1883_v49 = vmul.f32 %v4782_v17, %v1824_v15 }
  0xd7   : > { %v2098_v30 = vpack.c.bf16 %v2046_v32, %v2046_v32  ;;  %v1993_v34 = vmax.f32 %v1939_v53, 0.0  ;;  %v2148_v32 = vrot.slane %v2146_v35, 1 }
  0xd8   : > { %1142 = vrot.lane.b32.xlu0 %v4606_v31, %s4119_s20  ;;  %v4829_v43 = vpop.permute.xlu1 %934  ;;  %v1995_v7 = vmax.f32 %v1941_v6, 0.0  ;;  %v1942_v16 = vadd.f32 %v4795_v61, %v1883_v49  ;;  %v1885_v6 = vmul.f32 %v4782_v17, %v1826_v2 }
  0xd9   : > { %6286 = vst [vmem:[#allocation44_spill] sm:$0xff] %v4829_v43  ;;  %v2151_v42 = vshll.u32 %v2098_v30, 16  ;;  %v2047_v53 = vsel %vm315_vm0, %v1993_v34, 0.0  ;;  %v2149_v35 = vor.u32 %v2148_v32, %v2144_v12 }
  0xda   : > { %1140 = vrot.lane.b32.xlu1 %v4585_v58, %s4119_s20  ;;  %v2049_v34 = vsel %vm326_vm1, %v1995_v7, 0.0  ;;  %v1996_v2 = vmax.f32 %v1942_v16, 0.0  ;;  %v1944_v49 = vadd.f32 %v4795_v61, %v1885_v6 }
  0xdb   : > { %v2100_v12 = vpack.c.bf16 %v2049_v34, %v2049_v34 }
  0xdc   : > { %1146 = vrot.lane.b32.xlu0 %v4620_v51, %s4119_s20  ;;  %v2050_v16 = vsel %vm315_vm0, %v1996_v2, 0.0  ;;  %v1998_v6 = vmax.f32 %v1944_v49, 0.0  ;;  %v1805_v51 = vld [vmem:[%s4763_s17 + $0xb0] sm:$0x1] }
  0xdd   : > { %v2163_v34 = vshll.u32 %v2100_v12, 16 }
  0xde   : > { %1144 = vrot.lane.b32.xlu1 %v4599_v21, %s4119_s20  ;;  %v4831_v11 = vpop.permute.xlu0 %936  ;;  %v2052_v2 = vsel %vm326_vm1, %v1998_v6, 0.0 }
  0xdf   : > { %6287 = vst [vmem:[#allocation45_spill] sm:$0xff] %v4831_v11 }
  0xe0   : > { %1150 = vrot.lane.b32.xlu0 %v4634_v1, %s4119_s20 }
  0xe2   : > { %1148 = vrot.lane.b32.xlu1 %v4613_v37, %s4119_s20  ;;  %v4845_v11 = vpop.permute.xlu0 %1021 }
  0xe3   : > { %6288 = vst [vmem:[#allocation46_spill] sm:$0xff] %v4845_v11  ;;  %v1994_v11 = vmax.f32 %v1940_v40, 0.0 }
  0xe4   : > { %v4849_v43 = vpop.permute.xlu1 %938  ;;  %1154 = vrot.lane.b32.xlu0 %v4648_v47, %s4119_s20  ;;  %v1790_v47 = vld [vmem:[%s4763_s17 + $0x74] sm:$0x1] }
  0xe5   : > { %6289 = vst [vmem:[#allocation47_spill] sm:$0xff] %v4849_v43  ;;  %v4871_v54 = vpack.c.bf16 %v1994_v11, %v2047_v53  ;;  %v2390_v11 = vrot.slane %v4834_v22, 1 }
  0xe6   : > { %1152 = vrot.lane.b32.xlu1 %v4627_v59, %s4119_s20  ;;  %v4857_v44 = vpop.permute.xlu0 %1025  ;;  %v1796_v59 = vld [vmem:[%s4763_s17 + $0x8c] sm:$0x1] }
  0xe7   : > { %6290 = vst [vmem:[#allocation48_spill] sm:$0xff] %v4857_v44  ;;  %v2153_v44 = vrot.slane %v2151_v42, 1  ;;  %v2158_v32 = vshll.u32 %v4871_v54, 16  ;;  %v1850_v60 = vunpack.c.l.bf16 %v1796_v59 }
  0xe8   : > { %v4860_v43 = vpop.permute.xlu1 %1023  ;;  %1158 = vrot.lane.b32.xlu0 %v4660_v0, %s4119_s20  ;;  %v1778_v0 = vld [vmem:[%s4763_s17 + $0x44] sm:$0x1] }
  0xe9   : > { %6291 = vst [vmem:[#allocation49_spill] sm:$0xff] %v4860_v43  ;;  %v1884_v43 = vmul.f32 %v4782_v17, %v1825_v41  ;;  %v2391_v41 = vrot.slane %v2098_v30, 1  ;;  %v2154_v15 = vsel %vm715_vm2, %v2149_v35, %v2153_v44  ;;  %v2156_v30 = vshrl.u32 %v4871_v54, 16 }
  0xea   : > { %1156 = vrot.lane.b32.xlu1 %v4641_v10, %s4119_s20  ;;  %v4869_v40 = vpop.permute.xlu0 %1029  ;;  %v2160_v35 = vrot.slane %v2158_v32, 1  ;;  %v1909_v59 = vmul.f32 %v4782_v17, %v1850_v60 }
  0xeb   : > { %6292 = vst [vmem:[#allocation50_spill] sm:$0xff] %v4869_v40  ;;  %v1943_v53 = vadd.f32 %v4795_v61, %v1884_v43  ;;  %v2392_v44 = vsel %vm972_vm3, %v2390_v11, %v2391_v41  ;;  %v3950_v11 = vld [vmem:[%s4763_s17 + $0x30] sm:$0xff]  }
  0xec   : > { %v4874_v62 = vpop.permute.xlu1 %1027  ;;  %1162 = vrot.lane.b32.xlu0 %v4669_v18, %s4119_s20  ;;  %v2161_v32 = vor.u32 %v2160_v35, %v2156_v30  ;;  %v3915_v49 = vunpack.c.l.bf16 %v3950_v11  ;;  %v1775_v18 = vld [vmem:[%s4763_s17 + $0x38] sm:$0x1]  ;;  %v2394_v35 = vrot.slane %v2100_v12, 1  ;;  %v4099_v12 = vld [vmem:[%s6200_s5 + $0x10] ss:$0 sps:$4 sm:$0x33]  }
  0xed   : > { %6293 = vst [vmem:[#allocation51_spill] sm:$0xff] %v4874_v62  ;;  %v1997_v43 = vmax.f32 %v1943_v53, 0.0  ;;  %v2165_v53 = vrot.slane %v2163_v34, 1  ;;  %v4098_v62 = vld [vmem:[%s6200_s5 + $0x8] sm:$0xff]   ;;  %v2102_v34 = vpack.c.bf16 %v2052_v2, %v2052_v2 }
  0xee   : > { %1160 = vrot.lane.b32.xlu1 %v4655_v29, %s4119_s20  ;;  %v4884_v42 = vpop.permute.xlu0 %1033 }
  0xef   : > { %6294 = vst [vmem:[#allocation52_spill] sm:$0xff] %v4884_v42  ;;  %v2397_v29 = vrot.slane %v2102_v34, 1 }
  0xf0   : > { %v4890_v7 = vpop.permute.xlu1 %1031  ;;  %2435 = vrot.lane.b32.xlu0 %v4559_v46, %s4116_s12 }
  0xf1   : > { %6295 = vst [vmem:[#allocation53_spill] sm:$0xff] %v4890_v7 }
  0xf2   : > { %2325 = vrot.lane.b32.xlu1 %v2154_v15, %s4114_s27  ;;  %v4896_v42 = vpop.permute.xlu0 %1037 }
  0xf3   : > { %6296 = vst [vmem:[#allocation54_spill] sm:$0xff] %v4896_v42  ;;  %v4097_v42 = vld [vmem:[%s6200_s5] sm:$0xff]  }
  0xf4   : > { %v4900_v40 = vpop.permute.xlu1 %1035  ;;  %2468 = vrot.lane.b32.xlu0 %v4834_v22, %s4117_s13  ;;  %4033 = vmatprep.subr.bf16.mxu1 %v4097_v42 }
  0xf5   : > { %6297 = vst [vmem:[#allocation55_spill] sm:$0xff] %v4900_v40  ;;  %v4913_v40 = vpack.c.bf16 %v1997_v43, %v2050_v16  ;;  %4034 = vmatpush3.bf16.msra.mxu1 %v4097_v42  ;;  %v2393_v42 = vrot.slane %v4871_v54, 1  ;;  %v3916_v16 = vunpack.c.h.bf16 %v3950_v11 }
  0xf6   : > { %2437 = vrot.lane.b32.xlu1 %v2392_v44, %s4116_s12  ;;  %v4911_v41 = vpop.permute.xlu0 %1041  ;;  %4035 = vmatprep.subr.bf16.mxu1 %v4098_v62 }
  0xf7   : > { %6298 = vst [vmem:[#allocation56_spill] sm:$0xff] %v4911_v41  ;;  %v2170_v43 = vshll.u32 %v4913_v40, 16  ;;  %v1886_v41 = vmul.f32 %v3915_v49, %v4782_v17  ;;  %v2168_v11 = vshrl.u32 %v4913_v40, 16  ;;  %v1887_v2 = vmul.f32 %v3916_v16, %v4782_v17 }
  0xf8   : > { %v4915_v7 = vpop.permute.xlu1 %1039  ;;  %2512 = vrot.lane.b32.xlu0 %v2154_v15, %s4118_s14  ;;  %v4930_v15 = vsel %vm715_vm2, %v2161_v32, %v2165_v53  ;;  %v2175_v53 = vshll.u32 %v2102_v34, 16 }
  0xf9   : > { %6299 = vst [vmem:[#allocation57_spill] sm:$0xff] %v4915_v7  ;;  %4036 = vmatpush3.bf16.msra.mxu1 %v4098_v62  ;;  %v1829_v7 = vunpack.c.l.bf16 %v1775_v18  ;;  %v2395_v62 = vsel %vm972_vm3, %v2393_v42, %v2394_v35  ;;  %v2172_v18 = vrot.slane %v2170_v43, 1  ;;  %v1776_v35 = vld [vmem:[%s4763_s17 + $0x3c] sm:$0xff]   ;;  %v1946_v16 = vadd.f32 %v4795_v61, %v1887_v2 }
  0xfa   : > { %2470 = vrot.lane.b32.xlu1 %v4871_v54, %s4117_s13  ;;  %v4926_v30 = vpop.permute.xlu0 %1045  ;;  %4072 = vmatprep.subr.msk.bf16.mxu1 %vm1596_vm4, %v4099_v12  ;;  %v1831_v2 = vunpack.c.h.bf16 %v1776_v35 }
  0xfb   : > { %6300 = vst [vmem:[#allocation58_spill] sm:$0xff] %v4926_v30  ;;  %v1888_v42 = vmul.f32 %v4782_v17, %v1829_v7  ;;  %v2173_v43 = vor.u32 %v2172_v18, %v2168_v11  ;;  %v2177_v30 = vrot.slane %v2175_v53, 1  ;;  %v2396_v7 = vrot.slane %v4913_v40, 1 }
  0xfc   : > { %v4933_v6 = vpop.permute.xlu1 %1043  ;;  %2548 = vrot.lane.b32.xlu0 %v2392_v44, %s4119_s20  ;;  %v3002_v44 = vsel %vm1596_vm4, %v4099_v12, 0  ;;  %v2000_v53 = vmax.f32 %v1946_v16, 0.0 }
  0xfd   : > { %6301 = vst [vmem:[#allocation59_spill] sm:$0xff] %v4933_v6  ;;  %4038 = vmatpush3.bf16.msra.mxu1 %v3002_v44  ;;  %v1830_v6 = vunpack.c.l.bf16 %v1776_v35  ;;  %v2178_v18 = vsel %vm715_vm2, %v2173_v43, %v2177_v30  ;;  %v2398_v10 = vsel %vm972_vm3, %v2396_v7, %v2397_v29  ;;  %v1890_v35 = vmul.f32 %v4782_v17, %v1831_v2 }
  0xfe   : > { %2514 = vrot.lane.b32.xlu1 %v4930_v15, %s4118_s14  ;;  %v4942_v32 = vpop.permute.xlu0 %1049 }
  0xff   : > { %6302 = vst [vmem:[#allocation60_spill] sm:$0xff] %v4942_v32  ;;  %v1945_v32 = vadd.f32 %v4795_v61, %v1886_v41  ;;  %v1947_v41 = vadd.f32 %v4795_v61, %v1888_v42  ;;  %v1889_v34 = vmul.f32 %v4782_v17, %v1830_v6  ;;  %v1949_v7 = vadd.f32 %v4795_v61, %v1890_v35 }
 0x100   : > { %v4949_v49 = vpop.permute.xlu1 %1047  ;;  %2581 = vrot.lane.b32.xlu0 %v4871_v54, %s4120_s9 }
 0x101   : > { %6303 = vst [vmem:[#allocation61_spill] sm:$0xff] %v4949_v49  ;;  %v1999_v49 = vmax.f32 %v1945_v32, 0.0  ;;  %v2001_v42 = vmax.f32 %v1947_v41, 0.0  ;;  %v1948_v6 = vadd.f32 %v4795_v61, %v1889_v34 }
 0x102   : > { %2550 = vrot.lane.b32.xlu1 %v2395_v62, %s4119_s20  ;;  %v4957_v12 = vpop.permute.xlu0 %1054 }
 0x103   : > { %6304 = vst [vmem:[#allocation62_spill] sm:$0xff] %v4957_v12  ;;  %v2053_v32 = vsel %vm315_vm0, %v1999_v49, 0.0  ;;  %v1832_v12 = vunpack.c.l.bf16 %v1778_v0  ;;  %v2055_v49 = vsel %vm326_vm1, %v2001_v42, 0.0  ;;  %v2002_v2 = vmax.f32 %v1948_v6, 0.0  ;;  %v3951_v6 = vld [vmem:[%s4763_s17 + $0x48] sm:$0xff]  }
 0x104   : > { %v4960_v44 = vpop.permute.xlu1 %1051  ;;  %2625 = vrot.lane.b32.xlu0 %v4930_v15, %s4121_s10  ;;  %v4982_v30 = vpack.c.bf16 %v2000_v53, %v2053_v32  ;;  %v2104_v16 = vpack.c.bf16 %v2055_v49, %v2055_v49  ;;  %v2003_v49 = vmax.f32 %v1949_v7, 0.0 }
 0x105   : > { %6305 = vst [vmem:[#allocation63_spill] sm:$0xff] %v4960_v44  ;;  %v1891_v0 = vmul.f32 %v4782_v17, %v1832_v12 }
 0x106   : > { %2583 = vrot.lane.b32.xlu1 %v4913_v40, %s4120_s9  ;;  %v4969_v11 = vpop.permute.xlu0 %1058  ;;  %v2182_v41 = vshll.u32 %v4982_v30, 16  ;;  %v2187_v34 = vshll.u32 %v2104_v16, 16 }
 0x107   : > { %6306 = vst [vmem:[#allocation64_spill] sm:$0xff] %v4969_v11  ;;  %v1950_v32 = vadd.f32 %v4795_v61, %v1891_v0 }
 0x108   : > { %v4972_v44 = vpop.permute.xlu1 %1056  ;;  %2661 = vrot.lane.b32.xlu0 %v2395_v62, %s4122_s11  ;;  %v2184_v42 = vrot.slane %v2182_v41, 1 }
 0x109   : > { %6307 = vst [vmem:[#allocation65_spill] sm:$0xff] %v4972_v44  ;;  %v2004_v35 = vmax.f32 %v1950_v32, 0.0  ;;  %v2399_v32 = vrot.slane %v4982_v30, 1 }
 0x10a   : > { %2627 = vrot.lane.b32.xlu1 %v2178_v18, %s4121_s10  ;;  %v4980_v11 = vpop.permute.xlu0 %1062 }
 0x10b   : > { %6308 = vst [vmem:[#allocation66_spill] sm:$0xff] %v4980_v11  ;;  %v2058_v7 = vsel %vm326_vm1, %v2004_v35, 0.0 }
 0x10c   : > { %v4985_v43 = vpop.permute.xlu1 %1060  ;;  %2663 = vrot.lane.b32.xlu0 %v2398_v10, %s4122_s11 }
 0x10d   : > { %6309 = vst [vmem:[#allocation67_spill] sm:$0xff] %v4985_v43  ;;  %v1781_v43 = vld [vmem:[%s4763_s17 + $0x50] sm:$0x1] }
 0x10e   : > { %2327 = vrot.lane.b32.xlu1 %v4930_v15, %s4114_s27  ;;  %v4994_v29 = vpop.permute.xlu0 %1066  ;;  %v2180_v15 = vshrl.u32 %v4982_v30, 16 }
 0x10f   : > { %6310 = vst [vmem:[#allocation68_spill] sm:$0xff] %v4994_v29 }
 0x110   : > { %v4998_v53 = vpop.permute.xlu1 %1064  ;;  %2439 = vrot.lane.b32.xlu0 %v2395_v62, %s4116_s12  ;;  %v2056_v62 = vsel %vm315_vm0, %v2002_v2, 0.0 }
 0x111   : > { %6311 = vst [vmem:[#allocation69_spill] sm:$0xff] %v4998_v53  ;;  %v2189_v53 = vrot.slane %v2187_v34, 1  ;;  %v5016_v41 = vpack.c.bf16 %v2003_v49, %v2056_v62  ;;  %v2106_v34 = vpack.c.bf16 %v2058_v7, %v2058_v7  ;;  %v3920_v62 = vunpack.c.h.bf16 %v3951_v6 }
 0x112   : > { %2329 = vrot.lane.b32.xlu1 %v2178_v18, %s4114_s27  ;;  %v5003_v12 = vpop.permute.xlu0 %1070 }
 0x113   : > { %6312 = vst [vmem:[#allocation70_spill] sm:$0xff] %v5003_v12  ;;  %v2185_v12 = vor.u32 %v2184_v42, %v2180_v15  ;;  %v2400_v15 = vrot.slane %v2104_v16, 1  ;;  %v2194_v49 = vshll.u32 %v5016_v41, 16  ;;  %v2199_v7 = vshll.u32 %v2106_v34, 16 }
 0x114   : > { %v5006_v29 = vpop.permute.xlu1 %1068  ;;  %2472 = vrot.lane.b32.xlu0 %v4913_v40, %s4117_s13 }
 0x115   : > { %6313 = vst [vmem:[#allocation71_spill] sm:$0xff] %v5006_v29  ;;  %v3919_v29 = vunpack.c.l.bf16 %v3951_v6  ;;  %v2190_v42 = vsel %vm715_vm2, %v2185_v12, %v2189_v53  ;;  %v2401_v16 = vsel %vm972_vm3, %v2399_v32, %v2400_v15  ;;  %v2192_v53 = vshrl.u32 %v5016_v41, 16 }
 0x116   : > { %2441 = vrot.lane.b32.xlu1 %v2398_v10, %s4116_s12  ;;  %v5014_v0 = vpop.permute.xlu0 %1074  ;;  %v2196_v12 = vrot.slane %v2194_v49, 1  ;;  %v1893_v6 = vmul.f32 %v3920_v62, %v4782_v17  ;;  %v2201_v49 = vrot.slane %v2199_v7, 1 }
 0x117   : > { %6314 = vst [vmem:[#allocation72_spill] sm:$0xff] %v5014_v0  ;;  %v1892_v35 = vmul.f32 %v3919_v29, %v4782_v17  ;;  %v1835_v0 = vunpack.c.l.bf16 %v1781_v43  ;;  %v1782_v29 = vld [vmem:[%s4763_s17 + $0x54] sm:$0xff]  }
 0x118   : > { %v5018_v11 = vpop.permute.xlu1 %1072  ;;  %2516 = vrot.lane.b32.xlu0 %v2178_v18, %s4118_s14  ;;  %v2197_v15 = vor.u32 %v2196_v12, %v2192_v53  ;;  %v1836_v44 = vunpack.c.l.bf16 %v1782_v29  ;;  %v1837_v7 = vunpack.c.h.bf16 %v1782_v29 }
 0x119   : > { %6315 = vst [vmem:[#allocation73_spill] sm:$0xff] %v5018_v11  ;;  %v1894_v43 = vmul.f32 %v4782_v17, %v1835_v0  ;;  %v2403_v0 = vrot.slane %v2106_v34, 1 }
 0x11a   : > { %2474 = vrot.lane.b32.xlu1 %v4982_v30, %s4117_s13  ;;  %v5026_v2 = vpop.permute.xlu0 %1078  ;;  %v2202_v53 = vsel %vm715_vm2, %v2197_v15, %v2201_v49  ;;  %v1895_v34 = vmul.f32 %v4782_v17, %v1836_v44 }
 0x11b   : > { %6316 = vst [vmem:[#allocation74_spill] sm:$0xff] %v5026_v2 }
 0x11c   : > { %v5031_v18 = vpop.permute.xlu1 %1076  ;;  %2552 = vrot.lane.b32.xlu0 %v2398_v10, %s4119_s20  ;;  %v1951_v10 = vadd.f32 %v4795_v61, %v1892_v35  ;;  %v2402_v35 = vrot.slane %v5016_v41, 1  ;;  %v1954_v44 = vadd.f32 %v4795_v61, %v1895_v34 }
 0x11d   : > { %6317 = vst [vmem:[#allocation75_spill] sm:$0xff] %v5031_v18  ;;  %v1953_v18 = vadd.f32 %v4795_v61, %v1894_v43 }
 0x11e   : > { %2518 = vrot.lane.b32.xlu1 %v2190_v42, %s4118_s14  ;;  %v5036_v2 = vpop.permute.xlu0 %1082  ;;  %v2404_v14 = vsel %vm972_vm3, %v2402_v35, %v2403_v0 }
 0x11f   : > { %6318 = vst [vmem:[#allocation76_spill] sm:$0xff] %v5036_v2  ;;  %v1952_v2 = vadd.f32 %v4795_v61, %v1893_v6  ;;  %v2007_v43 = vmax.f32 %v1953_v18, 0.0 }
 0x120   : > { %v5041_v11 = vpop.permute.xlu1 %1080  ;;  %2585 = vrot.lane.b32.xlu0 %v4982_v30, %s4120_s9 }
 0x121   : > { %6319 = vst [vmem:[#allocation77_spill] sm:$0xff] %v5041_v11  ;;  %v2005_v11 = vmax.f32 %v1951_v10, 0.0  ;;  %v2006_v12 = vmax.f32 %v1952_v2, 0.0  ;;  %v1896_v2 = vmul.f32 %v4782_v17, %v1837_v7  ;;  %v2008_v7 = vmax.f32 %v1954_v44, 0.0  ;;  %v3952_v44 = vld [vmem:[%s4763_s17 + $0x60] sm:$0xff]  }
 0x122   : > { %2554 = vrot.lane.b32.xlu1 %v2401_v16, %s4119_s20  ;;  %v5049_v32 = vpop.permute.xlu0 %1098 }
 0x123   : > { %6320 = vst [vmem:[#allocation78_spill] sm:$0xff] %v5049_v32  ;;  %v2059_v10 = vsel %vm315_vm0, %v2005_v11, 0.0  ;;  %v2061_v11 = vsel %vm326_vm1, %v2007_v43, 0.0  ;;  %v1955_v0 = vadd.f32 %v4795_v61, %v1896_v2 }
 0x124   : > { %v5052_v62 = vpop.permute.xlu1 %1084  ;;  %2629 = vrot.lane.b32.xlu0 %v2190_v42, %s4121_s10  ;;  %v5073_v15 = vpack.c.bf16 %v2006_v12, %v2059_v10  ;;  %v2108_v49 = vpack.c.bf16 %v2061_v11, %v2061_v11 }
 0x125   : > { %6321 = vst [vmem:[#allocation79_spill] sm:$0xff] %v5052_v62  ;;  %v1838_v62 = vunpack.c.l.bf16 %v1784_v56  ;;  %v2009_v11 = vmax.f32 %v1955_v0, 0.0 }
 0x126   : > { %2587 = vrot.lane.b32.xlu1 %v5016_v41, %s4120_s9  ;;  %v5060_v32 = vpop.permute.xlu0 %1102  ;;  %v2206_v35 = vshll.u32 %v5073_v15, 16  ;;  %v2211_v34 = vshll.u32 %v2108_v49, 16 }
 0x127   : > { %6322 = vst [vmem:[#allocation80_spill] sm:$0xff] %v5060_v32  ;;  %v1897_v56 = vmul.f32 %v4782_v17, %v1838_v62 }
 0x128   : > { %v5063_v6 = vpop.permute.xlu1 %1100  ;;  %2665 = vrot.lane.b32.xlu0 %v2401_v16, %s4122_s11  ;;  %v2208_v43 = vrot.slane %v2206_v35, 1 }
 0x129   : > { %6323 = vst [vmem:[#allocation81_spill] sm:$0xff] %v5063_v6  ;;  %v1956_v10 = vadd.f32 %v4795_v61, %v1897_v56 }
 0x12a   : > { %2631 = vrot.lane.b32.xlu1 %v2202_v53, %s4121_s10  ;;  %v5071_v32 = vpop.permute.xlu0 %1106 }
 0x12b   : > { %6324 = vst [vmem:[#allocation82_spill] sm:$0xff] %v5071_v32  ;;  %v2010_v2 = vmax.f32 %v1956_v10, 0.0  ;;  %v2405_v10 = vrot.slane %v5073_v15, 1 }
 0x12c   : > { %v5076_v29 = vpop.permute.xlu1 %1104  ;;  %2667 = vrot.lane.b32.xlu0 %v2404_v14, %s4122_s11 }
 0x12d   : > { %6325 = vst [vmem:[#allocation83_spill] sm:$0xff] %v5076_v29  ;;  %v2064_v0 = vsel %vm326_vm1, %v2010_v2, 0.0  ;;  %v1787_v29 = vld [vmem:[%s4763_s17 + $0x68] sm:$0x1] }
 0x12e   : > { %2331 = vrot.lane.b32.xlu1 %v2190_v42, %s4114_s27  ;;  %v5084_v18 = vpop.permute.xlu0 %1110  ;;  %v2204_v42 = vshrl.u32 %v5073_v15, 16 }
 0x12f   : > { %6326 = vst [vmem:[#allocation84_spill] sm:$0xff] %v5084_v18 }
 0x130   : > { %v5088_v12 = vpop.permute.xlu1 %1108  ;;  %2443 = vrot.lane.b32.xlu0 %v2401_v16, %s4116_s12  ;;  %v2062_v16 = vsel %vm315_vm0, %v2008_v7, 0.0 }
 0x131   : > { %6327 = vst [vmem:[#allocation85_spill] sm:$0xff] %v5088_v12  ;;  %v2213_v12 = vrot.slane %v2211_v34, 1  ;;  %v5106_v35 = vpack.c.bf16 %v2009_v11, %v2062_v16  ;;  %v2110_v34 = vpack.c.bf16 %v2064_v0, %v2064_v0  ;;  %v3924_v16 = vunpack.c.h.bf16 %v3952_v44 }
 0x132   : > { %2333 = vrot.lane.b32.xlu1 %v2202_v53, %s4114_s27  ;;  %v5093_v62 = vpop.permute.xlu0 %1114 }
 0x133   : > { %6328 = vst [vmem:[#allocation86_spill] sm:$0xff] %v5093_v62  ;;  %v2209_v62 = vor.u32 %v2208_v43, %v2204_v42  ;;  %v2406_v42 = vrot.slane %v2108_v49, 1  ;;  %v2218_v11 = vshll.u32 %v5106_v35, 16  ;;  %v2223_v0 = vshll.u32 %v2110_v34, 16 }
 0x134   : > { %v5096_v18 = vpop.permute.xlu1 %1112  ;;  %2476 = vrot.lane.b32.xlu0 %v5016_v41, %s4117_s13 }
 0x135   : > { %6329 = vst [vmem:[#allocation87_spill] sm:$0xff] %v5096_v18  ;;  %v3923_v18 = vunpack.c.l.bf16 %v3952_v44  ;;  %v2214_v43 = vsel %vm715_vm2, %v2209_v62, %v2213_v12  ;;  %v2407_v49 = vsel %vm972_vm3, %v2405_v10, %v2406_v42  ;;  %v2216_v12 = vshrl.u32 %v5106_v35, 16 }
 0x136   : > { %2445 = vrot.lane.b32.xlu1 %v2404_v14, %s4116_s12  ;;  %v5104_v56 = vpop.permute.xlu0 %1118  ;;  %v2220_v62 = vrot.slane %v2218_v11, 1  ;;  %v1899_v44 = vmul.f32 %v3924_v16, %v4782_v17  ;;  %v2225_v11 = vrot.slane %v2223_v0, 1 }
 0x137   : > { %6330 = vst [vmem:[#allocation88_spill] sm:$0xff] %v5104_v56  ;;  %v1898_v2 = vmul.f32 %v3923_v18, %v4782_v17  ;;  %v1841_v56 = vunpack.c.l.bf16 %v1787_v29  ;;  %v1788_v18 = vld [vmem:[%s4763_s17 + $0x6c] sm:$0xff]  }
 0x138   : > { %v5108_v32 = vpop.permute.xlu1 %1116  ;;  %2520 = vrot.lane.b32.xlu0 %v2202_v53, %s4118_s14  ;;  %v2221_v42 = vor.u32 %v2220_v62, %v2216_v12  ;;  %v1842_v6 = vunpack.c.l.bf16 %v1788_v18  ;;  %v1843_v0 = vunpack.c.h.bf16 %v1788_v18 }
 0x139   : > { %6331 = vst [vmem:[#allocation89_spill] sm:$0xff] %v5108_v32  ;;  %v1900_v29 = vmul.f32 %v4782_v17, %v1841_v56  ;;  %v2409_v56 = vrot.slane %v2110_v34, 1 }
 0x13a   : > { %2478 = vrot.lane.b32.xlu1 %v5073_v15, %s4117_s13  ;;  %v5116_v7 = vpop.permute.xlu0 %1122  ;;  %v2226_v12 = vsel %vm715_vm2, %v2221_v42, %v2225_v11  ;;  %v1901_v34 = vmul.f32 %v4782_v17, %v1842_v6 }
 0x13b   : > { %6332 = vst [vmem:[#allocation90_spill] sm:$0xff] %v5116_v7 }
 0x13c   : > { %v5121_v53 = vpop.permute.xlu1 %1120  ;;  %2556 = vrot.lane.b32.xlu0 %v2404_v14, %s4119_s20  ;;  %v1957_v14 = vadd.f32 %v4795_v61, %v1898_v2  ;;  %v2408_v2 = vrot.slane %v5106_v35, 1 }
 0x13d   : > { %6333 = vst [vmem:[#allocation91_spill] sm:$0xff] %v5121_v53  ;;  %v1959_v53 = vadd.f32 %v4795_v61, %v1900_v29 }
 0x13e   : > { %2522 = vrot.lane.b32.xlu1 %v2214_v43, %s4118_s14  ;;  %v5126_v7 = vpop.permute.xlu0 %1126  ;;  %v2410_v52 = vsel %vm972_vm3, %v2408_v2, %v2409_v56 }
 0x13f   : > { %6334 = vst [vmem:[#allocation92_spill] sm:$0xff] %v5126_v7  ;;  %v1958_v7 = vadd.f32 %v4795_v61, %v1899_v44  ;;  %v2013_v29 = vmax.f32 %v1959_v53, 0.0 }
 0x140   : > { %v5131_v32 = vpop.permute.xlu1 %1124  ;;  %2589 = vrot.lane.b32.xlu0 %v5073_v15, %s4120_s9 }
 0x141   : > { %6335 = vst [vmem:[#allocation93_spill] sm:$0xff] %v5131_v32  ;;  %v2011_v32 = vmax.f32 %v1957_v14, 0.0  ;;  %v2012_v62 = vmax.f32 %v1958_v7, 0.0  ;;  %v1902_v7 = vmul.f32 %v4782_v17, %v1843_v0 }
 0x142   : > { %2558 = vrot.lane.b32.xlu1 %v2407_v49, %s4119_s20  ;;  %v5139_v10 = vpop.permute.xlu0 %1134 }
 0x143   : > { %6336 = vst [vmem:[#allocation94_spill] sm:$0xff] %v5139_v10  ;;  %v2065_v14 = vsel %vm315_vm0, %v2011_v32, 0.0  ;;  %v2067_v32 = vsel %vm326_vm1, %v2013_v29, 0.0  ;;  %v1961_v56 = vadd.f32 %v4795_v61, %v1902_v7  ;;  %v3953_v29 = vld [vmem:[%s4763_s17 + $0x78] sm:$0xff]  }
 0x144   : > { %v5142_v16 = vpop.permute.xlu1 %1128  ;;  %2633 = vrot.lane.b32.xlu0 %v2214_v43, %s4121_s10  ;;  %v5163_v42 = vpack.c.bf16 %v2012_v62, %v2065_v14  ;;  %v2112_v11 = vpack.c.bf16 %v2067_v32, %v2067_v32 }
 0x145   : > { %6337 = vst [vmem:[#allocation95_spill] sm:$0xff] %v5142_v16  ;;  %v1844_v16 = vunpack.c.l.bf16 %v1790_v47  ;;  %v1960_v47 = vadd.f32 %v4795_v61, %v1901_v34 }
 0x146   : > { %2591 = vrot.lane.b32.xlu1 %v5106_v35, %s4120_s9  ;;  %v5150_v10 = vpop.permute.xlu0 %1138  ;;  %v2230_v2 = vshll.u32 %v5163_v42, 16  ;;  %v2235_v32 = vshll.u32 %v2112_v11, 16 }
 0x147   : > { %6338 = vst [vmem:[#allocation96_spill] sm:$0xff] %v5150_v10  ;;  %v1903_v6 = vmul.f32 %v4782_v17, %v1844_v16  ;;  %v2014_v0 = vmax.f32 %v1960_v47, 0.0  ;;  %v3927_v47 = vunpack.c.l.bf16 %v3953_v29 }
 0x148   : > { %v5153_v44 = vpop.permute.xlu1 %1136  ;;  %2669 = vrot.lane.b32.xlu0 %v2407_v49, %s4122_s11  ;;  %v2232_v34 = vrot.slane %v2230_v2, 1 }
 0x149   : > { %6339 = vst [vmem:[#allocation97_spill] sm:$0xff] %v5153_v44  ;;  %v1962_v14 = vadd.f32 %v4795_v61, %v1903_v6  ;;  %v1793_v6 = vld [vmem:[%s4763_s17 + $0x80] sm:$0x1] }
 0x14a   : > { %2635 = vrot.lane.b32.xlu1 %v2226_v12, %s4121_s10  ;;  %v5161_v10 = vpop.permute.xlu0 %1142 }
 0x14b   : > { %6340 = vst [vmem:[#allocation98_spill] sm:$0xff] %v5161_v10  ;;  %v2016_v7 = vmax.f32 %v1962_v14, 0.0  ;;  %v1847_v14 = vunpack.c.l.bf16 %v1793_v6 }
 0x14c   : > { %v5166_v18 = vpop.permute.xlu1 %1140  ;;  %2671 = vrot.lane.b32.xlu0 %v2410_v52, %s4122_s11 }
 0x14d   : > { %6341 = vst [vmem:[#allocation99_spill] sm:$0xff] %v5166_v18  ;;  %v2237_v18 = vrot.slane %v2235_v32, 1 }
 0x14e   : > { %2335 = vrot.lane.b32.xlu1 %v2214_v43, %s4114_s27  ;;  %v5174_v53 = vpop.permute.xlu0 %1146  ;;  %v2228_v43 = vshrl.u32 %v5163_v42, 16 }
 0x14f   : > { %6342 = vst [vmem:[#allocation100_spill] sm:$0xff] %v5174_v53  ;;  %v2015_v53 = vmax.f32 %v1961_v56, 0.0  ;;  %v3928_v56 = vunpack.c.h.bf16 %v3953_v29 }
 0x150   : > { %v5178_v62 = vpop.permute.xlu1 %1144  ;;  %2447 = vrot.lane.b32.xlu0 %v2407_v49, %s4116_s12  ;;  %v2068_v49 = vsel %vm315_vm0, %v2014_v0, 0.0  ;;  %v1904_v0 = vmul.f32 %v3927_v47, %v4782_v17  ;;  %v1906_v47 = vmul.f32 %v4782_v17, %v1847_v14  ;;  %v1794_v14 = vld [vmem:[%s4763_s17 + $0x84] sm:$0xff]  }
 0x151   : > { %6343 = vst [vmem:[#allocation101_spill] sm:$0xff] %v5178_v62  ;;  %v5197_v2 = vpack.c.bf16 %v2015_v53, %v2068_v49  ;;  %v2412_v53 = vrot.slane %v2112_v11, 1 }
 0x152   : > { %2337 = vrot.lane.b32.xlu1 %v2226_v12, %s4114_s27  ;;  %v5184_v16 = vpop.permute.xlu0 %1150 }
 0x153   : > { %6344 = vst [vmem:[#allocation102_spill] sm:$0xff] %v5184_v16  ;;  %v2233_v16 = vor.u32 %v2232_v34, %v2228_v43  ;;  %v2411_v43 = vrot.slane %v5163_v42, 1  ;;  %v2242_v32 = vshll.u32 %v5197_v2, 16 }
 0x154   : > { %v5187_v10 = vpop.permute.xlu1 %1148  ;;  %2480 = vrot.lane.b32.xlu0 %v5106_v35, %s4117_s13 }
 0x155   : > { %6345 = vst [vmem:[#allocation103_spill] sm:$0xff] %v5187_v10  ;;  %v2070_v10 = vsel %vm326_vm1, %v2016_v7, 0.0  ;;  %v2238_v29 = vsel %vm715_vm2, %v2233_v16, %v2237_v18  ;;  %v1963_v7 = vadd.f32 %v4795_v61, %v1904_v0  ;;  %v2413_v18 = vsel %vm972_vm3, %v2411_v43, %v2412_v53 }
 0x156   : > { %2449 = vrot.lane.b32.xlu1 %v2410_v52, %s4116_s12  ;;  %v5195_v62 = vpop.permute.xlu0 %1154  ;;  %v2114_v34 = vpack.c.bf16 %v2070_v10, %v2070_v10  ;;  %v2240_v10 = vshrl.u32 %v5197_v2, 16  ;;  %v2244_v11 = vrot.slane %v2242_v32, 1  ;;  %v1965_v0 = vadd.f32 %v4795_v61, %v1906_v47 }
 0x157   : > { %6346 = vst [vmem:[#allocation104_spill] sm:$0xff] %v5195_v62  ;;  %v1848_v62 = vunpack.c.l.bf16 %v1794_v14 }
 0x158   : > { %v5199_v44 = vpop.permute.xlu1 %1152  ;;  %2524 = vrot.lane.b32.xlu0 %v2226_v12, %s4118_s14  ;;  %v1905_v12 = vmul.f32 %v3928_v56, %v4782_v17  ;;  %v2247_v16 = vshll.u32 %v2114_v34, 16  ;;  %v2245_v43 = vor.u32 %v2244_v11, %v2240_v10 }
 0x159   : > { %6347 = vst [vmem:[#allocation105_spill] sm:$0xff] %v5199_v44  ;;  %v2414_v44 = vrot.slane %v5197_v2, 1 }
 0x15a   : > { %2482 = vrot.lane.b32.xlu1 %v5163_v42, %s4117_s13  ;;  %v5207_v8 = vpop.permute.xlu0 %1158  ;;  %v1964_v56 = vadd.f32 %v4795_v61, %v1905_v12  ;;  %v2249_v53 = vrot.slane %v2247_v16, 1  ;;  %v1849_v16 = vunpack.c.h.bf16 %v1794_v14 }
 0x15b   : > { %6348 = vst [vmem:[#allocation106_spill] sm:$0xff] %v5207_v8 }
 0x15c   : > { %v5213_v49 = vpop.permute.xlu1 %1156  ;;  %2560 = vrot.lane.b32.xlu0 %v2410_v52, %s4119_s20  ;;  %v2017_v52 = vmax.f32 %v1963_v7, 0.0  ;;  %v2415_v7 = vrot.slane %v2114_v34, 1  ;;  %v2250_v10 = vsel %vm715_vm2, %v2245_v43, %v2249_v53  ;;  %v1908_v14 = vmul.f32 %v4782_v17, %v1849_v16 }
 0x15d   : > { %6349 = vst [vmem:[#allocation107_spill] sm:$0xff] %v5213_v49  ;;  %v2018_v49 = vmax.f32 %v1964_v56, 0.0  ;;  %v4096_v16 = vunpack.i.h.bf16 %v4719_v48 }
 0x15e   : > { %2526 = vrot.lane.b32.xlu1 %v2238_v29, %s4118_s14  ;;  %v5219_v6 = vpop.permute.xlu0 %1162  ;;  %v2071_v12 = vsel %vm315_vm0, %v2017_v52, 0.0  ;;  %v5246_v34 = vsel %vm972_vm3, %v2414_v44, %v2415_v7  ;;  %v1967_v7 = vadd.f32 %v4795_v61, %v1908_v14 }
 0x15f   : > { %6350 = vst [vmem:[#allocation108_spill] sm:$0xff] %v5219_v6  ;;  %v5239_v11 = vpack.c.bf16 %v2018_v49, %v2071_v12  ;;  %v2694_v14 = vsel %vm1279_vm5, 0.0|0.0, %v4096_v16 }
 0x160   : > { %v5224_v8 = vpop.permute.xlu1 %1160  ;;  %2593 = vrot.lane.b32.xlu0 %v5163_v42, %s4120_s9  ;;  %v2021_v37 = vmax.f32 %v1967_v7, 0.0  ;;  %v1799_v7 = vld [vmem:[%s4763_s17 + $0x98] sm:$0x1] }
 0x161   : > { %6351 = vst [vmem:[#allocation109_spill] sm:$0xff] %v5224_v8  ;;  %v2019_v8 = vmax.f32 %v1965_v0, 0.0  ;;  %v1907_v0 = vmul.f32 %v4782_v17, %v1848_v62  ;;  %v2254_v49 = vshll.u32 %v5239_v11, 16  ;;  %v2252_v62 = vshrl.u32 %v5239_v11, 16 }
 0x162   : > { %2562 = vrot.lane.b32.xlu1 %v2413_v18, %s4119_s20  ;;  %v2436_v6 = vpop.permute.xlu0 %2435 }
 0x163   : > { %v2073_v52 = vsel %vm326_vm1, %v2019_v8, 0.0  ;;  %v1966_v8 = vadd.f32 %v4795_v61, %v1907_v0  ;;  %v2256_v53 = vrot.slane %v2254_v49, 1  ;;  %v1968_v0 = vadd.f32 %v4795_v61, %v1909_v59 }
 0x164   : > { %v2326_v32 = vpop.permute.xlu1 %2325  ;;  %2637 = vrot.lane.b32.xlu0 %v2238_v29, %s4121_s10  ;;  %v5249_v1 = vpack.c.bf16 %v2073_v52, %v2073_v52  ;;  %v2726_v59 = vsel %vm1312_vm6, %v2694_v14, %v2436_v6 }
 0x165   : > { %v2020_v26 = vmax.f32 %v1966_v8, 0.0  ;;  %v2257_v25 = vor.u32 %v2256_v53, %v2252_v62  ;;  %v2022_v8 = vmax.f32 %v1968_v0, 0.0  ;;  %v2696_v62 = vsel %vm1279_vm5, %v4834_v22, %v2326_v32 }
 0x166   : > { %2595 = vrot.lane.b32.xlu1 %v5197_v2, %s4120_s9  ;;  %v2469_v47 = vpop.permute.xlu0 %2468  ;;  %v2259_v12 = vshll.u32 %v5249_v1, 16 }
 0x167   : > { %v2758_v53 = vsel %vm1345_vm7, %v2726_v59, %v2469_v47  ;;  %v2076_v32 = vsel %vm326_vm1, %v2022_v8, 0.0  ;;  %v2418_v8 = vrot.slane %v5249_v1, 1  ;;  %v5307_v59 = vld [vmem:[%s6198_s3] ss:$0 sm:$0xff] }
 0x168   : > { %v2438_v56 = vpop.permute.xlu1 %2437  ;;  %2673 = vrot.lane.b32.xlu0 %v2413_v18, %s4122_s11  ;;  %v2261_v49 = vrot.slane %v2259_v12, 1 }
 0x169   : > { %v2728_v14 = vsel %vm1312_vm6, %v2696_v62, %v2438_v56 }
 0x16a   : > { %2639 = vrot.lane.b32.xlu1 %v2250_v10, %s4121_s10  ;;  %v2513_v33 = vpop.permute.xlu0 %2512  ;;  %v5280_v16 = vsel %vm715_vm2, %v2257_v25, %v2261_v49  ;;  %v1853_v49 = vunpack.c.l.bf16 %v1799_v7 }
 0x16c   : > { %v2471_v43 = vpop.permute.xlu1 %2470  ;;  %2675 = vrot.lane.b32.xlu0 %v5246_v34, %s4122_s11 }
 0x16e   : > { %2339 = vrot.lane.b32.xlu1 %v2238_v29, %s4114_s27  ;;  %v2549_v44 = vpop.permute.xlu0 %2548  ;;  %v3954_v29 = vld [vmem:[%s4763_s17 + $0x90] sm:$0xff]  }
 0x16f   : > { %v3931_v28 = vunpack.c.l.bf16 %v3954_v29  ;;  %v3932_v47 = vunpack.c.h.bf16 %v3954_v29 }
 0x170   : > { %v2515_v52 = vpop.permute.xlu1 %2514  ;;  %2451 = vrot.lane.b32.xlu0 %v2413_v18, %s4116_s12  ;;  %v2074_v18 = vsel %vm315_vm0, %v2020_v26, 0.0  ;;  %v2790_v26 = vsel %vm1378_vm8, %v2758_v53, %v2513_v33  ;;  %v1912_v53 = vmul.f32 %v5307_v59, %v1853_v49 }
 0x171   : > { %v5282_v6 = vpack.c.bf16 %v2021_v37, %v2074_v18  ;;  %v2822_v0 = vsel %vm1411_vm9, %v2790_v26, %v2549_v44  ;;  %v1910_v25 = vmul.f32 %v3931_v28, %v4782_v17  ;;  %v2760_v37 = vsel %vm1345_vm7, %v2728_v14, %v2471_v43 }
 0x172   : > { %2341 = vrot.lane.b32.xlu1 %v2250_v10, %s4114_s27  ;;  %v2582_v60 = vpop.permute.xlu0 %2581  ;;  %v2417_v44 = vrot.slane %v5239_v11, 1  ;;  %v2792_v29 = vsel %vm1378_vm8, %v2760_v37, %v2515_v52  ;;  %v1911_v1 = vmul.f32 %v5307_v59, %v3932_v47 }
 0x173   : > { %v2854_v33 = vsel %vm1444_vm10, %v2822_v0, %v2582_v60  ;;  %v2118_v60 = vpack.c.bf16 %v2076_v32, %v2076_v32  ;;  %v2266_v28 = vshll.u32 %v5282_v6, 16  ;;  %v1969_v62 = vadd.f32 %v4795_v61, %v1910_v25  ;;  %v5325_v61 = vld [vmem:[%s6198_s3 + $0x1] ss:$0 sm:$0xff] }
 0x174   : > { %v2551_v48 = vpop.permute.xlu1 %2550  ;;  %2484 = vrot.lane.b32.xlu0 %v5197_v2, %s4117_s13  ;;  %v2264_v26 = vshrl.u32 %v5282_v6, 16  ;;  %v1970_v47 = vadd.f32 %v5325_v61, %v1911_v1  ;;  %v1800_v25 = vld [vmem:[%s4763_s17 + $0x9c] sm:$0xff]  }
 0x175   : > { %v2824_v17 = vsel %vm1411_vm9, %v2792_v29, %v2551_v48  ;;  %v2268_v0 = vrot.slane %v2266_v28, 1  ;;  %v2271_v32 = vshll.u32 %v2118_v60, 16  ;;  %v2023_v14 = vmax.f32 %v1969_v62, 0.0 }
 0x176   : > { %2453 = vrot.lane.b32.xlu1 %v5246_v34, %s4116_s12  ;;  %v2626_v12 = vpop.permute.xlu0 %2625  ;;  %v2420_v29 = vrot.slane %v5282_v6, 1  ;;  %v1855_v62 = vunpack.c.h.bf16 %v1800_v25 }
 0x177   : > { %v2886_v18 = vsel %vm1477_vm11, %v2854_v33, %v2626_v12  ;;  %v2419_v12 = vsel %vm972_vm3, %v2417_v44, %v2418_v8  ;;  %v1971_v33 = vadd.f32 %v5325_v61, %v1912_v53  ;;  %v2269_v37 = vor.u32 %v2268_v0, %v2264_v26 }
 0x178   : > { %v2584_v22 = vpop.permute.xlu1 %2583  ;;  %2528 = vrot.lane.b32.xlu0 %v2250_v10, %s4118_s14  ;;  %v2024_v44 = vmax.f32 %v1970_v47, 0.0  ;;  %v1854_v8 = vunpack.c.l.bf16 %v1800_v25  ;;  %v2077_v28 = vsel %vm315_vm0, %v2023_v14, 0.0 }
 0x179   : > { %v2856_v52 = vsel %vm1444_vm10, %v2824_v17, %v2584_v22  ;;  %v2025_v17 = vmax.f32 %v1971_v33, 0.0 }
 0x17a   : > { %2486 = vrot.lane.b32.xlu1 %v5239_v11, %s4117_s13  ;;  %v2662_v10 = vpop.permute.xlu0 %2661 }
 0x17b   : > { %v2918_v56 = vsel %vm1510_vm12, %v2886_v18, %v2662_v10  ;;  %v2273_v18 = vrot.slane %v2271_v32, 1  ;;  %v2079_v26 = vsel %vm326_vm1, %v2025_v17, 0.0  ;;  %v1914_v32 = vmul.f32 %v5307_v59, %v1855_v62 }
 0x17c   : > { %v2628_v43 = vpop.permute.xlu1 %2627  ;;  %2564 = vrot.lane.b32.xlu0 %v5246_v34, %s4119_s20  ;;  %4039 = vmatprep.mubr.msk.bf16.mxu1 %vm1563_vm13, %v2918_v56  ;;  %v2421_v56 = vrot.slane %v2118_v60, 1  ;;  %v5353_v14 = vpack.c.bf16 %v2079_v26, %v2079_v26 }
 0x17d   : > { %v2888_v48 = vsel %vm1477_vm11, %v2856_v52, %v2628_v43  ;;  %v1802_v43 = vld [vmem:[%s4763_s17 + $0xa4] sm:$0x1]  ;;  %v2274_v52 = vsel %vm715_vm2, %v2269_v37, %v2273_v18 }
 0x17e   : > { %2530 = vrot.lane.b32.xlu1 %v5280_v16, %s4118_s14  ;;  %v2664_v34 = vpop.permute.xlu0 %2663  ;;  %v1856_v60 = vunpack.c.l.bf16 %v1802_v43 }
 0x17f   : > { %v2920_v7 = vsel %vm1510_vm12, %v2888_v48, %v2664_v34  ;;  %v5341_v48 = vpack.c.bf16 %v2024_v44, %v2077_v28  ;;  %v1913_v34 = vmul.f32 %v5307_v59, %v1854_v8  ;;  %v1973_v8 = vadd.f32 %v5325_v61, %v1914_v32 }
 0x180   : > { %v2328_v22 = vpop.permute.xlu1 %2327  ;;  %2597 = vrot.lane.b32.xlu0 %v5239_v11, %s4120_s9  ;;  %4040 = vmatmul.mubr.msk.bf16.vlgmr.msra.gmra.mrb[0].mxu1 %vm1563_vm13, %v2920_v7  ;;  %v5345_v7 = vsel %vm972_vm3, %v2420_v29, %v2421_v56  ;;  %v1915_v37 = vmul.f32 %v5307_v59, %v1856_v60  ;;  %v2283_v28 = vshll.u32 %v5353_v14, 16 }
 0x181   : > { %v2278_v33 = vshll.u32 %v5341_v48, 16  ;;  %v1972_v25 = vadd.f32 %v5325_v61, %v1913_v34  ;;  %v2276_v44 = vshrl.u32 %v5341_v48, 16  ;;  %v2698_v62 = vsel %vm1279_vm5, %v4871_v54, %v2328_v22  ;;  %v3955_v34 = vld [vmem:[%s4763_s17 + $0xa8] sm:$0xff]  }
 0x182   : > { %2566 = vrot.lane.b32.xlu1 %v2419_v12, %s4119_s20  ;;  %v2440_v49 = vpop.permute.xlu0 %2439  ;;  %v1974_v43 = vadd.f32 %v5325_v61, %v1915_v37  ;;  %v2027_v60 = vmax.f32 %v1973_v8, 0.0  ;;  %v2285_v32 = vrot.slane %v2283_v28, 1  ;;  %v3935_v55 = vunpack.c.l.bf16 %v3955_v34 }
 0x183   : > { %v2280_v56 = vrot.slane %v2278_v33, 1  ;;  %v2026_v17 = vmax.f32 %v1972_v25, 0.0  ;;  %v2730_v37 = vsel %vm1312_vm6, %v2698_v62, %v2440_v49  ;;  %v1859_v62 = vunpack.c.l.bf16 %v1805_v51 }
 0x184   : > { %v2330_v10 = vpop.permute.xlu1 %2329  ;;  %2641 = vrot.lane.b32.xlu0 %v5280_v16, %s4121_s10  ;;  %v2028_v25 = vmax.f32 %v1974_v43, 0.0 }
 0x185   : > { %v2080_v33 = vsel %vm315_vm0, %v2026_v17, 0.0  ;;  %v2700_v54 = vsel %vm1279_vm5, %v4913_v40, %v2330_v10  ;;  %v3936_v10 = vunpack.c.h.bf16 %v3955_v34 }
 0x186   : > { %2599 = vrot.lane.b32.xlu1 %v5282_v6, %s4120_s9  ;;  %v2473_v1 = vpop.permute.xlu0 %2472  ;;  %v2082_v40 = vsel %vm326_vm1, %v2028_v25, 0.0  ;;  %v1918_v25 = vmul.f32 %v5307_v59, %v1859_v62 }
 0x187   : > { %v2762_v22 = vsel %vm1345_vm7, %v2730_v37, %v2473_v1 }
 0x188   : > { %v2442_v53 = vpop.permute.xlu1 %2441  ;;  %2677 = vrot.lane.b32.xlu0 %v2419_v12, %s4122_s11 }
 0x189   : > { %v2732_v1 = vsel %vm1312_vm6, %v2700_v54, %v2442_v53 }
 0x18a   : > { %2643 = vrot.lane.b32.xlu1 %v2274_v52, %s4121_s10  ;;  %v2517_v0 = vpop.permute.xlu0 %2516 }
 0x18c   : > { %v2475_v47 = vpop.permute.xlu1 %2474  ;;  %2679 = vrot.lane.b32.xlu0 %v5345_v7, %s4122_s11 }
 0x18e   : > { %2343 = vrot.lane.b32.xlu1 %v5280_v16, %s4114_s27  ;;  %v2553_v18 = vpop.permute.xlu0 %2552 }
 0x190   : > { %v2519_v29 = vpop.permute.xlu1 %2518  ;;  %2455 = vrot.lane.b32.xlu0 %v2419_v12, %s4116_s12  ;;  %v2281_v12 = vor.u32 %v2280_v56, %v2276_v44  ;;  %v2794_v44 = vsel %vm1378_vm8, %v2762_v22, %v2517_v0  ;;  %v5381_v56 = vpack.c.bf16 %v2027_v60, %v2080_v33  ;;  %v1916_v0 = vmul.f32 %v5307_v59, %v3935_v55 }
 0x191   : > { %v2826_v28 = vsel %vm1411_vm9, %v2794_v44, %v2553_v18  ;;  %v2764_v60 = vsel %vm1345_vm7, %v2732_v1, %v2475_v47  ;;  %v1917_v33 = vmul.f32 %v5307_v59, %v3936_v10  ;;  %v1977_v1 = vadd.f32 %v5325_v61, %v1918_v25 }
 0x192   : > { %2345 = vrot.lane.b32.xlu1 %v2274_v52, %s4114_s27  ;;  %v2586_v16 = vpop.permute.xlu0 %2585  ;;  %v5386_v49 = vsel %vm715_vm2, %v2281_v12, %v2285_v32  ;;  %v2423_v12 = vrot.slane %v5341_v48, 1  ;;  %v2424_v32 = vrot.slane %v5353_v14, 1  ;;  %v2796_v34 = vsel %vm1378_vm8, %v2764_v60, %v2519_v29 }
 0x193   : > { %v2858_v43 = vsel %vm1444_vm10, %v2826_v28, %v2586_v16  ;;  %v2122_v16 = vpack.c.bf16 %v2082_v40, %v2082_v40  ;;  %v2290_v55 = vshll.u32 %v5381_v56, 16  ;;  %v1975_v29 = vadd.f32 %v5325_v61, %v1916_v0  ;;  %v1806_v40 = vld [vmem:[%s4763_s17 + $0xb4] sm:$0xff]  }
 0x194   : > { %v2555_v26 = vpop.permute.xlu1 %2554  ;;  %2488 = vrot.lane.b32.xlu0 %v5282_v6, %s4117_s13  ;;  %v2425_v54 = vsel %vm972_vm3, %v2423_v12, %v2424_v32  ;;  %v2288_v22 = vshrl.u32 %v5381_v56, 16  ;;  %v1860_v60 = vunpack.c.l.bf16 %v1806_v40  ;;  %v2426_v32 = vrot.slane %v5381_v56, 1 }
 0x195   : > { %v2828_v51 = vsel %vm1411_vm9, %v2796_v34, %v2555_v26  ;;  %v2295_v44 = vshll.u32 %v2122_v16, 16  ;;  %v2029_v10 = vmax.f32 %v1975_v29, 0.0  ;;  %v2427_v34 = vrot.slane %v2122_v16, 1 }
 0x196   : > { %2457 = vrot.lane.b32.xlu1 %v5345_v7, %s4116_s12  ;;  %v2630_v8 = vpop.permute.xlu0 %2629  ;;  %v1919_v29 = vmul.f32 %v5307_v59, %v1860_v60 }
 0x197   : > { %v2890_v18 = vsel %vm1477_vm11, %v2858_v43, %v2630_v8  ;;  %v2292_v8 = vrot.slane %v2290_v55, 1  ;;  %v2297_v62 = vrot.slane %v2295_v44, 1  ;;  %v2031_v55 = vmax.f32 %v1977_v1, 0.0 }
 0x198   : > { %v2588_v17 = vpop.permute.xlu1 %2587  ;;  %2532 = vrot.lane.b32.xlu0 %v2274_v52, %s4118_s14  ;;  %v5437_v16 = vsel %vm972_vm3, %v2426_v32, %v2427_v34  ;;  %v1978_v44 = vadd.f32 %v5325_v61, %v1919_v29 }
 0x199   : > { %v2860_v14 = vsel %vm1444_vm10, %v2828_v51, %v2588_v17  ;;  %v1976_v17 = vadd.f32 %v5325_v61, %v1917_v33  ;;  %v2293_v0 = vor.u32 %v2292_v8, %v2288_v22 }
 0x19a   : > { %2490 = vrot.lane.b32.xlu1 %v5341_v48, %s4117_s13  ;;  %v2666_v52 = vpop.permute.xlu0 %2665  ;;  %v2032_v60 = vmax.f32 %v1978_v44, 0.0 }
 0x19b   : > { %v2922_v53 = vsel %vm1510_vm12, %v2890_v18, %v2666_v52  ;;  %v1808_v18 = vld [vmem:[%s4763_s17 + $0xbc] sm:$0x1]  ;;  %v2030_v12 = vmax.f32 %v1976_v17, 0.0 }
 0x19c   : > { %v2632_v47 = vpop.permute.xlu1 %2631  ;;  %2568 = vrot.lane.b32.xlu0 %v5345_v7, %s4119_s20  ;;  %4043 = vmatprep.mubr.msk.bf16.mxu1 %vm1563_vm13, %v2922_v53  ;;  %v2083_v53 = vsel %vm315_vm0, %v2029_v10, 0.0  ;;  %v1862_v33 = vunpack.c.l.bf16 %v1808_v18 }
 0x19d   : > { %v2892_v37 = vsel %vm1477_vm11, %v2860_v14, %v2632_v47  ;;  %v1861_v47 = vunpack.c.h.bf16 %v1806_v40  ;;  %v2298_v14 = vsel %vm715_vm2, %v2293_v0, %v2297_v62 }
 0x19e   : > { %2534 = vrot.lane.b32.xlu1 %v5386_v49, %s4118_s14  ;;  %v2668_v26 = vpop.permute.xlu0 %2667  ;;  %v1921_v8 = vmul.f32 %v5307_v59, %v1862_v33  ;;  %v2086_v33 = vsel %vm315_vm0, %v2032_v60, 0.0 }
 0x19f   : > { %v2924_v7 = vsel %vm1510_vm12, %v2892_v37, %v2668_v26  ;;  %v5434_v37 = vpack.c.bf16 %v2030_v12, %v2083_v53  ;;  %v2085_v26 = vsel %vm326_vm1, %v2031_v55, 0.0  ;;  %v1920_v22 = vmul.f32 %v5307_v59, %v1861_v47 }
 0x1a0   : > { %v2332_v28 = vpop.permute.xlu1 %2331  ;;  %2601 = vrot.lane.b32.xlu0 %v5341_v48, %s4120_s9  ;;  %4044 = vmatmul.mubr.msk.bf16.gmra.mrb[4].mxu1 %vm1563_vm13, %v2924_v7  ;;  %v2124_v40 = vpack.c.bf16 %v2085_v26, %v2085_v26  ;;  %v1980_v62 = vadd.f32 %v5325_v61, %v1921_v8 }
 0x1a1   : > { %v2302_v10 = vshll.u32 %v5434_v37, 16  ;;  %v1979_v0 = vadd.f32 %v5325_v61, %v1920_v22  ;;  %v2300_v12 = vshrl.u32 %v5434_v37, 16  ;;  %v2702_v53 = vsel %vm1279_vm5, %v4982_v30, %v2332_v28  ;;  %v3956_v22 = vld [vmem:[%s4763_s17 + $0xc0] sm:$0xff]  }
 0x1a2   : > { %2570 = vrot.lane.b32.xlu1 %v2425_v54, %s4119_s20  ;;  %v2444_v43 = vpop.permute.xlu0 %2443  ;;  %v2307_v34 = vshll.u32 %v2124_v40, 16  ;;  %v2034_v47 = vmax.f32 %v1980_v62, 0.0  ;;  %v3939_v60 = vunpack.c.l.bf16 %v3956_v22 }
 0x1a3   : > { %v2304_v32 = vrot.slane %v2302_v10, 1  ;;  %v2033_v55 = vmax.f32 %v1979_v0, 0.0  ;;  %v2734_v8 = vsel %vm1312_vm6, %v2702_v53, %v2444_v43  ;;  %v2430_v53 = vrot.slane %v2124_v40, 1 }
 0x1a4   : > { %v2334_v52 = vpop.permute.xlu1 %2333  ;;  %2645 = vrot.lane.b32.xlu0 %v5386_v49, %s4121_s10  ;;  %v2309_v26 = vrot.slane %v2307_v34, 1  ;;  %v2088_v0 = vsel %vm326_vm1, %v2034_v47, 0.0 }
 0x1a5   : > { %v2704_v30 = vsel %vm1279_vm5, %v5016_v41, %v2334_v52  ;;  %v5468_v10 = vpack.c.bf16 %v2033_v55, %v2086_v33  ;;  %v2429_v52 = vrot.slane %v5434_v37, 1  ;;  %v2126_v55 = vpack.c.bf16 %v2088_v0, %v2088_v0 }
 0x1a6   : > { %2603 = vrot.lane.b32.xlu1 %v5381_v56, %s4120_s9  ;;  %v2477_v51 = vpop.permute.xlu0 %2476  ;;  %v3940_v33 = vunpack.c.h.bf16 %v3956_v22 }
 0x1a7   : > { %v2766_v28 = vsel %vm1345_vm7, %v2734_v8, %v2477_v51  ;;  %v1811_v51 = vld [vmem:[%s4763_s17 + $0xc8] sm:$0x1] }
 0x1a8   : > { %v2446_v25 = vpop.permute.xlu1 %2445  ;;  %2681 = vrot.lane.b32.xlu0 %v2425_v54, %s4122_s11 }
 0x1aa   : > { %2647 = vrot.lane.b32.xlu1 %v2298_v14, %s4121_s10  ;;  %v2521_v7 = vpop.permute.xlu0 %2520 }
 0x1ab   : > { %v2798_v62 = vsel %vm1378_vm8, %v2766_v28, %v2521_v7  ;;  %v2312_v28 = vshrl.u32 %v5468_v10, 16 }
 0x1ac   : > { %v2479_v17 = vpop.permute.xlu1 %2478  ;;  %2683 = vrot.lane.b32.xlu0 %v5437_v16, %s4122_s11 }
 0x1ae   : > { %2347 = vrot.lane.b32.xlu1 %v5386_v49, %s4114_s27  ;;  %v2557_v1 = vpop.permute.xlu0 %2556 }
 0x1b0   : > { %v2523_v18 = vpop.permute.xlu1 %2522  ;;  %2459 = vrot.lane.b32.xlu0 %v2425_v54, %s4116_s12  ;;  %v2305_v54 = vor.u32 %v2304_v32, %v2300_v12  ;;  %v2830_v12 = vsel %vm1411_vm9, %v2798_v62, %v2557_v1  ;;  %v2736_v32 = vsel %vm1312_vm6, %v2704_v30, %v2446_v25  ;;  %v1922_v25 = vmul.f32 %v5307_v59, %v3939_v60 }
 0x1b1   : > { %v2768_v47 = vsel %vm1345_vm7, %v2736_v32, %v2479_v17  ;;  %v2431_v30 = vsel %vm972_vm3, %v2429_v52, %v2430_v53 }
 0x1b2   : > { %2349 = vrot.lane.b32.xlu1 %v2298_v14, %s4114_s27  ;;  %v2590_v49 = vpop.permute.xlu0 %2589  ;;  %v2310_v41 = vsel %vm715_vm2, %v2305_v54, %v2309_v26  ;;  %v2800_v54 = vsel %vm1378_vm8, %v2768_v47, %v2523_v18 }
 0x1b3   : > { %v2862_v34 = vsel %vm1444_vm10, %v2830_v12, %v2590_v49  ;;  %v1865_v49 = vunpack.c.l.bf16 %v1811_v51 }
 0x1b4   : > { %v2559_v29 = vpop.permute.xlu1 %2558  ;;  %2492 = vrot.lane.b32.xlu0 %v5381_v56, %s4117_s13 }
 0x1b5   : > { %v2832_v40 = vsel %vm1411_vm9, %v2800_v54, %v2559_v29  ;;  %v1923_v29 = vmul.f32 %v5307_v59, %v3940_v33  ;;  %v1924_v60 = vmul.f32 %v5307_v59, %v1865_v49  ;;  %v2432_v59 = vrot.slane %v5468_v10, 1 }
 0x1b6   : > { %2461 = vrot.lane.b32.xlu1 %v5437_v16, %s4116_s12  ;;  %v2634_v44 = vpop.permute.xlu0 %2633 }
 0x1b7   : > { %v2894_v7 = vsel %vm1477_vm11, %v2862_v34, %v2634_v44  ;;  %v2319_v44 = vshll.u32 %v2126_v55, 16  ;;  %v1982_v52 = vadd.f32 %v5325_v61, %v1923_v29  ;;  %v1983_v53 = vadd.f32 %v5325_v61, %v1924_v60 }
 0x1b8   : > { %v2592_v43 = vpop.permute.xlu1 %2591  ;;  %2536 = vrot.lane.b32.xlu0 %v2298_v14, %s4118_s14  ;;  %v2314_v14 = vshll.u32 %v5468_v10, 16 }
 0x1b9   : > { %v2864_v17 = vsel %vm1444_vm10, %v2832_v40, %v2592_v43  ;;  %v2321_v32 = vrot.slane %v2319_v44, 1 }
 0x1ba   : > { %2494 = vrot.lane.b32.xlu1 %v5434_v37, %s4117_s13  ;;  %v2670_v1 = vpop.permute.xlu0 %2669  ;;  %v2316_v62 = vrot.slane %v2314_v14, 1  ;;  %v2036_v14 = vmax.f32 %v1982_v52, 0.0 }
 0x1bb   : > { %v2926_v26 = vsel %vm1510_vm12, %v2894_v7, %v2670_v1  ;;  %v2433_v7 = vrot.slane %v2126_v55, 1 }
 0x1bc   : > { %v2636_v8 = vpop.permute.xlu1 %2635  ;;  %2572 = vrot.lane.b32.xlu0 %v5437_v16, %s4119_s20  ;;  %4047 = vmatprep.mubr.msk.bf16.mxu1 %vm1563_vm13, %v2926_v26  ;;  %v1981_v16 = vadd.f32 %v5325_v61, %v1922_v25  ;;  %v2317_v51 = vor.u32 %v2316_v62, %v2312_v28  ;;  %v2037_v26 = vmax.f32 %v1983_v53, 0.0 }
 0x1bd   : > { %v2896_v22 = vsel %vm1477_vm11, %v2864_v17, %v2636_v8  ;;  %v2434_v61 = vsel %vm972_vm3, %v2432_v59, %v2433_v7 }
 0x1be   : > { %2538 = vrot.lane.b32.xlu1 %v2310_v41, %s4118_s14  ;;  %v2672_v18 = vpop.permute.xlu0 %2671  ;;  %v2035_v34 = vmax.f32 %v1981_v16, 0.0  ;;  %v2322_v33 = vsel %vm715_vm2, %v2317_v51, %v2321_v32  ;;  %v2091_v40 = vsel %vm326_vm1, %v2037_v26, 0.0 }
 0x1bf   : > { %v2928_v0 = vsel %vm1510_vm12, %v2896_v22, %v2672_v18  ;;  %v2128_v17 = vpack.c.bf16 %v2091_v40, %v2091_v40 }
 0x1c0   : > { %v2336_v12 = vpop.permute.xlu1 %2335  ;;  %2605 = vrot.lane.b32.xlu0 %v5434_v37, %s4120_s9  ;;  %4048 = vmatmul.mubr.msk.bf16.gmra.mrb[8].mxu1 %vm1563_vm13, %v2928_v0  ;;  %v2089_v54 = vsel %vm315_vm0, %v2035_v34, 0.0  ;;  %vm3658_vm0 = vcmask 123904  }
 0x1c1   : > { %v2127_v55 = vpack.c.bf16 %v2036_v14, %v2089_v54  ;;  %v2706_v28 = vsel %vm1279_vm5, %v5073_v15, %v2336_v12  ;;  %v2508_v0 = vshll.u32 %v2128_v17, 16  ;;  %v2546_v54 = vrot.slane %v2128_v17, 1 }
 0x1c2   : > { %2574 = vrot.lane.b32.xlu1 %v2431_v30, %s4119_s20  ;;  %v2448_v43 = vpop.permute.xlu0 %2447 }
 0x1c3   : > { %v2503_v22 = vshll.u32 %v2127_v55, 16  ;;  %v2501_v29 = vshrl.u32 %v2127_v55, 16  ;;  %v2510_v12 = vrot.slane %v2508_v0, 1  ;;  %v2545_v14 = vrot.slane %v2127_v55, 1 }
 0x1c4   : > { %v2338_v47 = vpop.permute.xlu1 %2337  ;;  %2649 = vrot.lane.b32.xlu0 %v2310_v41, %s4121_s10  ;;  %v4102_v0 = vld [vmem:[%s6199_s4 + $0x10] ss:$0 sps:$4 sm:$0x33]  }
 0x1c5   : > { %v2505_v5 = vrot.slane %v2503_v22, 1  ;;  %v2708_v16 = vsel %vm1279_vm5, %v5106_v35, %v2338_v47 }
 0x1c6   : > { %2607 = vrot.lane.b32.xlu1 %v5468_v10, %s4120_s9  ;;  %v2481_v1 = vpop.permute.xlu0 %2480 }
 0x1c7   : > { %v2506_v60 = vor.u32 %v2505_v5, %v2501_v29  ;;  %v6353_v5 = vld [vmem:[#allocation2_spill] sm:$0xff] }
 0x1c8   : > { %v2450_v25 = vpop.permute.xlu1 %2449  ;;  %2685 = vrot.lane.b32.xlu0 %v2431_v30, %s4122_s11 }
 0x1c9   : > { %v2740_v34 = vsel %vm1312_vm6, %v2708_v16, %v2450_v25  ;;  %v2511_v59 = vsel %vm715_vm2, %v2506_v60, %v2510_v12 }
 0x1ca   : > { %2651 = vrot.lane.b32.xlu1 %v2322_v33, %s4121_s10  ;;  %v2525_v49 = vpop.permute.xlu0 %2524 }
 0x1cc   : > { %v2483_v8 = vpop.permute.xlu1 %2482  ;;  %2687 = vrot.lane.b32.xlu0 %v2434_v61, %s4122_s11 }
 0x1cd   : > { %v2772_v35 = vsel %vm1345_vm7, %v2740_v34, %v2483_v8 }
 0x1ce   : > { %2351 = vrot.lane.b32.xlu1 %v2310_v41, %s4114_s27  ;;  %v2561_v3 = vpop.permute.xlu0 %2560  ;;  %v2738_v41 = vsel %vm1312_vm6, %v2706_v28, %v2448_v43  ;;  %v4101_v28 = vld [vmem:[%s6199_s4 + $0x8] sm:$0xff]  }
 0x1d0   : > { %v2527_v18 = vpop.permute.xlu1 %2526  ;;  %2463 = vrot.lane.b32.xlu0 %v2431_v30, %s4116_s12  ;;  %v2770_v30 = vsel %vm1345_vm7, %v2738_v41, %v2481_v1  ;;  %v1598_v41 = vsel %vm1596_vm4, %v4102_v0, 0 }
 0x1d1   : > { %v2802_v52 = vsel %vm1378_vm8, %v2770_v30, %v2525_v49  ;;  %v2804_v7 = vsel %vm1378_vm8, %v2772_v35, %v2527_v18 }
 0x1d2   : > { %2353 = vrot.lane.b32.xlu1 %v2322_v33, %s4114_s27  ;;  %v2594_v44 = vpop.permute.xlu0 %2593  ;;  %v2834_v51 = vsel %vm1411_vm9, %v2802_v52, %v2561_v3  ;;  %v2547_v3 = vsel %vm972_vm3, %v2545_v14, %v2546_v54 }
 0x1d3   : > { %v2866_v43 = vsel %vm1444_vm10, %v2834_v51, %v2594_v44 }
 0x1d4   : > { %v2563_v62 = vpop.permute.xlu1 %2562  ;;  %2496 = vrot.lane.b32.xlu0 %v5468_v10, %s4117_s13 }
 0x1d6   : > { %2465 = vrot.lane.b32.xlu1 %v2434_v61, %s4116_s12  ;;  %v2638_v15 = vpop.permute.xlu0 %2637 }
 0x1d7   : > { %v2898_v53 = vsel %vm1477_vm11, %v2866_v43, %v2638_v15 }
 0x1d8   : > { %v2596_v32 = vpop.permute.xlu1 %2595  ;;  %2540 = vrot.lane.b32.xlu0 %v2322_v33, %s4118_s14  ;;  %v2836_v33 = vsel %vm1411_vm9, %v2804_v7, %v2563_v62 }
 0x1d9   : > { %v2868_v25 = vsel %vm1444_vm10, %v2836_v33, %v2596_v32 }
 0x1da   : > { %2498 = vrot.lane.b32.xlu1 %v2127_v55, %s4117_s13  ;;  %v2674_v47 = vpop.permute.xlu0 %2673 }
 0x1db   : > { %v2930_v1 = vsel %vm1510_vm12, %v2898_v53, %v2674_v47 }
 0x1dc   : > { %v2640_v26 = vpop.permute.xlu1 %2639  ;;  %2576 = vrot.lane.b32.xlu0 %v2434_v61, %s4119_s20  ;;  %4051 = vmatprep.mubr.msk.bf16.mxu1 %vm1563_vm13, %v2930_v1  ;;  %v4100_v61 = vld [vmem:[%s6199_s4] sm:$0xff]  }
 0x1dd   : > { %v2900_v49 = vsel %vm1477_vm11, %v2868_v25, %v2640_v26  ;;  %3995 = vmatprep.subr.bf16.mxu0 %v4100_v61 }
 0x1de   : > { %2542 = vrot.lane.b32.xlu1 %v2511_v59, %s4118_s14  ;;  %v2676_v40 = vpop.permute.xlu0 %2675  ;;  %3996 = vmatpush3.bf16.msra.mxu0 %v4100_v61 }
 0x1df   : > { %v2932_v8 = vsel %vm1510_vm12, %v2900_v49, %v2676_v40  ;;  %3997 = vmatprep.subr.bf16.mxu0 %v4101_v28 }
 0x1e0   : > { %v2340_v22 = vpop.permute.xlu1 %2339  ;;  %2609 = vrot.lane.b32.xlu0 %v2127_v55, %s4120_s9  ;;  %4052 = vmatmul.mubr.msk.bf16.gmra.mrb[12].mxu1 %vm1563_vm13, %v2932_v8  ;;  %v6352_v55 = vmov 0.0|0.0  }
 0x1e1   : > { %v2710_v60 = vsel %vm1279_vm5, %v5163_v42, %v2340_v22 }
 0x1e2   : > { %2578 = vrot.lane.b32.xlu1 %v2547_v3, %s4119_s20  ;;  %v2452_v17 = vpop.permute.xlu0 %2451  ;;  %3998 = vmatpush3.bf16.msra.mxu0 %v4101_v28 }
 0x1e3   : > { %4071 = vmatprep.subr.msk.bf16.mxu0 %vm1596_vm4, %v4102_v0  ;;  %v2742_v51 = vsel %vm1312_vm6, %v2710_v60, %v2452_v17  ;;  %v6358_v60 = vld [vmem:[#allocation6_spill] sm:$0xff] }
 0x1e4   : > { %v2342_v18 = vpop.permute.xlu1 %2341  ;;  %2653 = vrot.lane.b32.xlu0 %v2511_v59, %s4121_s10 }
 0x1e5   : > { %v2712_v32 = vsel %vm1279_vm5, %v5197_v2, %v2342_v18  ;;  %v6355_v18 = vld [vmem:[#allocation5_spill] sm:$0xff] }
 0x1e6   : > { %2611 = vrot.lane.b32.xlu1 %v6352_v55, %s4120_s9  ;;  %v2485_v44 = vpop.permute.xlu0 %2484  ;;  %4000 = vmatpush3.bf16.msra.mxu0 %v1598_v41  ;;  %v6357_v41 = vld [vmem:[#allocation19_spill] sm:$0xff] }
 0x1e7   : > { %v2774_v34 = vsel %vm1345_vm7, %v2742_v51, %v2485_v44  ;;  %v6356_v44 = vld [vmem:[#allocation4_spill] sm:$0xff] }
 0x1e8   : > { %v2454_v29 = vpop.permute.xlu1 %2453  ;;  %2655 = vrot.lane.b32.xlu0 %v6353_v5, %s4121_s10 }
 0x1ea   : > { %1167 = vrot.lane.b32.xlu1 %v4233_v50, %s4120_s9  ;;  %v2529_v62 = vpop.permute.xlu0 %2528 }
 0x1eb   : > { %v2806_v42 = vsel %vm1378_vm8, %v2774_v34, %v2529_v62 }
 0x1ec   : > { %v2487_v16 = vpop.permute.xlu1 %2486  ;;  %1169 = vrot.lane.b32.xlu0 %v4254_v9, %s4120_s9 }
 0x1ee   : > { %2689 = vrot.lane.b32.xlu1 %v2547_v3, %s4122_s11  ;;  %v2565_v30 = vpop.permute.xlu0 %2564 }
 0x1f0   : > { %v2531_v15 = vpop.permute.xlu1 %2530  ;;  %2691 = vrot.lane.b32.xlu0 %v4559_v46, %s4122_s11 }
 0x1f2   : > { %1211 = vrot.lane.b32.xlu1 %v4267_v27, %s4121_s10  ;;  %v2598_v12 = vpop.permute.xlu0 %2597  ;;  %v2838_v27 = vsel %vm1411_vm9, %v2806_v42, %v2565_v30 }
 0x1f3   : > { %v2870_v53 = vsel %vm1444_vm10, %v2838_v27, %v2598_v12 }
 0x1f4   : > { %v2567_v52 = vpop.permute.xlu1 %2566  ;;  %1247 = vrot.lane.b32.xlu0 %v4571_v39, %s4122_s11  ;;  %v2744_v39 = vsel %vm1312_vm6, %v2712_v32, %v2454_v29 }
 0x1f5   : > { %v2776_v2 = vsel %vm1345_vm7, %v2744_v39, %v2487_v16 }
 0x1f6   : > { %1213 = vrot.lane.b32.xlu1 %v4284_v45, %s4121_s10  ;;  %v2642_v43 = vpop.permute.xlu0 %2641  ;;  %v2808_v59 = vsel %vm1378_vm8, %v2776_v2, %v2531_v15 }
 0x1f7   : > { %v2902_v47 = vsel %vm1477_vm11, %v2870_v53, %v2642_v43  ;;  %v2840_v1 = vsel %vm1411_vm9, %v2808_v59, %v2567_v52  ;;  %v6359_v43 = vld [vmem:[#allocation7_spill] sm:$0xff] }
 0x1f8   : > { %v2600_v35 = vpop.permute.xlu1 %2599  ;;  %1171 = vrot.lane.b32.xlu0 %v4293_v57, %s4120_s9 }
 0x1f9   : > { %v2872_v54 = vsel %vm1444_vm10, %v2840_v1, %v2600_v35  ;;  %v6360_v35 = vld [vmem:[#allocation22_spill] sm:$0xff]  ;;  %v6363_v1 = vld [vmem:[#allocation21_spill] sm:$0xff] }
 0x1fa   : > { %1249 = vrot.lane.b32.xlu1 %v4592_v20, %s4122_s11  ;;  %v2678_v45 = vpop.permute.xlu0 %2677 }
 0x1fb   : > { %v2934_v7 = vsel %vm1510_vm12, %v2902_v47, %v2678_v45  ;;  %v6361_v47 = vld [vmem:[#allocation9_spill] sm:$0xff]  ;;  %v6362_v45 = vld [vmem:[#allocation8_spill] sm:$0xff] }
 0x1fc   : > { %v2644_v14 = vpop.permute.xlu1 %2643  ;;  %1215 = vrot.lane.b32.xlu0 %v4325_v36, %s4121_s10  ;;  %4055 = vmatprep.mubr.msk.bf16.mxu1 %vm1563_vm13, %v2934_v7 }
 0x1fd   : > { %v2904_v33 = vsel %vm1477_vm11, %v2872_v54, %v2644_v14  ;;  %v6364_v14 = vld [vmem:[#allocation11_spill] sm:$0xff] }
 0x1fe   : > { %1173 = vrot.lane.b32.xlu1 %v4312_v19, %s4120_s9  ;;  %v2680_v20 = vpop.permute.xlu0 %2679 }
 0x1ff   : > { %v2936_v26 = vsel %vm1510_vm12, %v2904_v33, %v2680_v20  ;;  %v6365_v20 = vld [vmem:[#allocation10_spill] sm:$0xff] }
 0x200   : > { %v2344_v25 = vpop.permute.xlu1 %2343  ;;  %1251 = vrot.lane.b32.xlu0 %v4585_v58, %s4122_s11  ;;  %4056 = vmatmul.mubr.msk.bf16.gmra.mrb[16].mxu1 %vm1563_vm13, %v2936_v26  ;;  %v6366_v26 = vld [vmem:[#allocation24_spill] sm:$0xff] }
 0x202   : > { %1217 = vrot.lane.b32.xlu1 %v4348_v4, %s4121_s10  ;;  %v2456_v36 = vpop.permute.xlu0 %2455 }
 0x204   : > { %v2346_v49 = vpop.permute.xlu1 %2345  ;;  %1175 = vrot.lane.b32.xlu0 %v4328_v38, %s4120_s9 }
 0x206   : > { %1253 = vrot.lane.b32.xlu1 %v4606_v31, %s4122_s11  ;;  %v2489_v40 = vpop.permute.xlu0 %2488  ;;  %v2714_v31 = vsel %vm1279_vm5, %v5239_v11, %v2344_v25 }
 0x208   : > { %v2458_v8 = vpop.permute.xlu1 %2457  ;;  %1219 = vrot.lane.b32.xlu0 %v4359_v23, %s4121_s10  ;;  %v6354_v23 = vld [vmem:[#allocation20_spill] sm:$0xff] }
 0x20a   : > { %1177 = vrot.lane.b32.xlu1 %v4361_v24, %s4120_s9  ;;  %v2533_v58 = vpop.permute.xlu0 %2532 }
 0x20c   : > { %v2491_v3 = vpop.permute.xlu1 %2490  ;;  %1255 = vrot.lane.b32.xlu0 %v4599_v21, %s4122_s11  ;;  %v2746_v21 = vsel %vm1312_vm6, %v2714_v31, %v2456_v36 }
 0x20d   : > { %v2778_v28 = vsel %vm1345_vm7, %v2746_v21, %v2489_v40  ;;  %v6368_v40 = vld [vmem:[#allocation12_spill] sm:$0xff] }
 0x20e   : > { %1221 = vrot.lane.b32.xlu1 %v4393_v13, %s4121_s10  ;;  %v2569_v4 = vpop.permute.xlu0 %2568  ;;  %v2716_v13 = vsel %vm1279_vm5, %v5282_v6, %v2346_v49  ;;  %v2810_v11 = vsel %vm1378_vm8, %v2778_v28, %v2533_v58  ;;  %v6367_v49 = vld [vmem:[#allocation13_spill] sm:$0xff] }
 0x20f   : > { %v2842_v0 = vsel %vm1411_vm9, %v2810_v11, %v2569_v4  ;;  %v2748_v16 = vsel %vm1312_vm6, %v2716_v13, %v2458_v8  ;;  %v6372_v13 = vld [vmem:[#allocation26_spill] sm:$0xff] }
 0x210   : > { %v2535_v22 = vpop.permute.xlu1 %2534  ;;  %1179 = vrot.lane.b32.xlu0 %v4386_v63, %s4120_s9  ;;  %v2780_v6 = vsel %vm1345_vm7, %v2748_v16, %v2491_v3  ;;  %v6369_v3 = vld [vmem:[#allocation23_spill] sm:$0xff]  ;;  %v6374_v16 = vld [vmem:[#allocation28_spill] sm:$0xff] }
 0x211   : > { %v2812_v52 = vsel %vm1378_vm8, %v2780_v6, %v2535_v22  ;;  %v6370_v22 = vld [vmem:[#allocation15_spill] sm:$0xff] }
 0x212   : > { %1257 = vrot.lane.b32.xlu1 %v6354_v23, %s4122_s11  ;;  %v2602_v61 = vpop.permute.xlu0 %2601 }
 0x213   : > { %v2874_v30 = vsel %vm1444_vm10, %v2842_v0, %v2602_v61  ;;  %v6371_v61 = vld [vmem:[#allocation14_spill] sm:$0xff]  ;;  %v6373_v0 = vld [vmem:[#allocation17_spill] sm:$0xff] }
 0x214   : > { %v2571_v17 = vpop.permute.xlu1 %2570  ;;  %1223 = vrot.lane.b32.xlu0 %v6355_v18, %s4121_s10 }
 0x215   : > { %v2844_v32 = vsel %vm1411_vm9, %v2812_v52, %v2571_v17 }
 0x216   : > { %1181 = vrot.lane.b32.xlu1 %v6356_v44, %s4120_s9  ;;  %v2646_v29 = vpop.permute.xlu0 %2645 }
 0x217   : > { %v2906_v15 = vsel %vm1477_vm11, %v2874_v30, %v2646_v29  ;;  %v6375_v30 = vld [vmem:[#allocation34_spill] sm:$0xff] }
 0x218   : > { %v2604_v62 = vpop.permute.xlu1 %2603  ;;  %1259 = vrot.lane.b32.xlu0 %v6357_v41, %s4122_s11  ;;  %v1132_v6 = vrot.slane %v6375_v30, 1 }
 0x219   : > { %v2876_v42 = vsel %vm1444_vm10, %v2844_v32, %v2604_v62 }
 0x21a   : > { %1225 = vrot.lane.b32.xlu1 %v6358_v60, %s4121_s10  ;;  %v2682_v12 = vpop.permute.xlu0 %2681 }
 0x21b   : > { %v2938_v51 = vsel %vm1510_vm12, %v2906_v15, %v2682_v12  ;;  %v6376_v12 = vld [vmem:[#allocation16_spill] sm:$0xff] }
 0x21c   : > { %v2648_v34 = vpop.permute.xlu1 %2647  ;;  %1183 = vrot.lane.b32.xlu0 %v6359_v43, %s4120_s9  ;;  %4059 = vmatprep.mubr.msk.bf16.mxu1 %vm1563_vm13, %v2938_v51 }
 0x21d   : > { %v2908_v27 = vsel %vm1477_vm11, %v2876_v42, %v2648_v34 }
 0x21e   : > { %1261 = vrot.lane.b32.xlu1 %v6360_v35, %s4122_s11  ;;  %v2684_v39 = vpop.permute.xlu0 %2683 }
 0x21f   : > { %v2940_v53 = vsel %vm1510_vm12, %v2908_v27, %v2684_v39  ;;  %v6377_v27 = vld [vmem:[#allocation25_spill] sm:$0xff] }
 0x220   : > { %v2348_v2 = vpop.permute.xlu1 %2347  ;;  %1227 = vrot.lane.b32.xlu0 %v6361_v47, %s4121_s10  ;;  %4060 = vmatmul.mubr.msk.bf16.gmra.mrb[20].mxu1 %vm1563_vm13, %v2940_v53 }
 0x221   : > { %v2718_v4 = vsel %vm1279_vm5, %v5341_v48, %v2348_v2  ;;  %v6378_v2 = vld [vmem:[#allocation18_spill] sm:$0xff] }
 0x222   : > { %1185 = vrot.lane.b32.xlu1 %v6362_v45, %s4120_s9  ;;  %v2460_v59 = vpop.permute.xlu0 %2459 }
 0x223   : > { %v2750_v17 = vsel %vm1312_vm6, %v2718_v4, %v2460_v59 }
 0x224   : > { %v2350_v7 = vpop.permute.xlu1 %2349  ;;  %1263 = vrot.lane.b32.xlu0 %v6363_v1, %s4122_s11  ;;  %v6379_v1 = vld [vmem:[#allocation27_spill] sm:$0xff] }
 0x225   : > { %v2720_v18 = vsel %vm1279_vm5, %v5381_v56, %v2350_v7  ;;  %v1131_v56 = vrot.slane %v6374_v16, 1 }
 0x226   : > { %1229 = vrot.lane.b32.xlu1 %v6364_v14, %s4121_s10  ;;  %v2493_v54 = vpop.permute.xlu0 %2492 }
 0x227   : > { %v2782_v21 = vsel %vm1345_vm7, %v2750_v17, %v2493_v54  ;;  %v1133_v39 = vsel %vm972_vm3, %v1131_v56, %v1132_v6 }
 0x228   : > { %v2462_v33 = vpop.permute.xlu1 %2461  ;;  %1187 = vrot.lane.b32.xlu0 %v6365_v20, %s4120_s9 }
 0x229   : > { %v2752_v62 = vsel %vm1312_vm6, %v2720_v18, %v2462_v33 }
 0x22a   : > { %1265 = vrot.lane.b32.xlu1 %v6366_v26, %s4122_s11  ;;  %v2537_v25 = vpop.permute.xlu0 %2536 }
 0x22b   : > { %v2814_v48 = vsel %vm1378_vm8, %v2782_v21, %v2537_v25  ;;  %v6380_v25 = vld [vmem:[#allocation39_spill] sm:$0xff] }
 0x22c   : > { %v2495_v36 = vpop.permute.xlu1 %2494  ;;  %1231 = vrot.lane.b32.xlu0 %v6367_v49, %s4121_s10 }
 0x22d   : > { %v2784_v15 = vsel %vm1345_vm7, %v2752_v62, %v2495_v36 }
 0x22e   : > { %1189 = vrot.lane.b32.xlu1 %v6368_v40, %s4120_s9  ;;  %v2573_v8 = vpop.permute.xlu0 %2572 }
 0x22f   : > { %v2846_v29 = vsel %vm1411_vm9, %v2814_v48, %v2573_v8 }
 0x230   : > { %v2539_v58 = vpop.permute.xlu1 %2538  ;;  %1267 = vrot.lane.b32.xlu0 %v6369_v3, %s4122_s11 }
 0x231   : > { %v2816_v51 = vsel %vm1378_vm8, %v2784_v15, %v2539_v58 }
 0x232   : > { %1233 = vrot.lane.b32.xlu1 %v6370_v22, %s4121_s10  ;;  %v2606_v31 = vpop.permute.xlu0 %2605 }
 0x233   : > { %v2878_v41 = vsel %vm1444_vm10, %v2846_v29, %v2606_v31 }
 0x234   : > { %v2575_v23 = vpop.permute.xlu1 %2574  ;;  %1191 = vrot.lane.b32.xlu0 %v6371_v61, %s4120_s9 }
 0x235   : > { %v2848_v34 = vsel %vm1411_vm9, %v2816_v51, %v2575_v23 }
 0x236   : > { %1269 = vrot.lane.b32.xlu1 %v6372_v13, %s4122_s11  ;;  %v2650_v28 = vpop.permute.xlu0 %2649 }
 0x237   : > { %v2910_v60 = vsel %vm1477_vm11, %v2878_v41, %v2650_v28  ;;  %v6381_v28 = vld [vmem:[#allocation29_spill] sm:$0xff] }
 0x238   : > { %v2608_v11 = vpop.permute.xlu1 %2607  ;;  %1235 = vrot.lane.b32.xlu0 %v6373_v0, %s4121_s10  ;;  %v4095_v48 = vunpack.i.l.bf16 %v6381_v28 }
 0x239   : > { %v2880_v35 = vsel %vm1444_vm10, %v2848_v34, %v2608_v11 }
 0x23a   : > { %1193 = vrot.lane.b32.xlu1 %v6376_v12, %s4120_s9  ;;  %v2686_v52 = vpop.permute.xlu0 %2685  ;;  %v1281_v30 = vsel %vm1279_vm5, 0.0|0.0, %v4095_v48  ;;  %v6393_v48 = vld [vmem:[#allocation48_spill] sm:$0xff] }
 0x23b   : > { %v2942_v32 = vsel %vm1510_vm12, %v2910_v60, %v2686_v52  ;;  %v6382_v52 = vld [vmem:[#allocation46_spill] sm:$0xff] }
 0x23c   : > { %v2652_v42 = vpop.permute.xlu1 %2651  ;;  %1271 = vrot.lane.b32.xlu0 %v6377_v27, %s4122_s11  ;;  %4063 = vmatprep.mubr.msk.bf16.mxu1 %vm1563_vm13, %v2942_v32  ;;  %v1314_v51 = vsel %vm1312_vm6, %v1281_v30, %v6382_v52 }
 0x23d   : > { %v2912_v53 = vsel %vm1477_vm11, %v2880_v35, %v2652_v42  ;;  %v6383_v42 = vld [vmem:[#allocation62_spill] sm:$0xff] }
 0x23e   : > { %1237 = vrot.lane.b32.xlu1 %v6378_v2, %s4121_s10  ;;  %v2688_v47 = vpop.permute.xlu0 %2687  ;;  %v1347_v27 = vsel %vm1345_vm7, %v1314_v51, %v6383_v42  ;;  %v6398_v51 = vld [vmem:[#allocation51_spill] sm:$0xff] }
 0x23f   : > { %v2944_v59 = vsel %vm1510_vm12, %v2912_v53, %v2688_v47  ;;  %v6384_v53 = vld [vmem:[#allocation78_spill] sm:$0xff] }
 0x240   : > { %v2352_v7 = vpop.permute.xlu1 %2351  ;;  %1164 = vrot.lane.b32.xlu0 %v1133_v39, %s4119_s20  ;;  %4064 = vmatmul.mubr.msk.bf16.gmra.mrb[24].mxu1 %vm1563_vm13, %v2944_v59  ;;  %v1380_v2 = vsel %vm1378_vm8, %v1347_v27, %v6384_v53  ;;  %v6385_v59 = vld [vmem:[#allocation94_spill] sm:$0xff]  ;;  %v6399_v27 = vld [vmem:[#allocation67_spill] sm:$0xff]  ;;  %s3844_s20 = sshll.u32 %s6462_s25, 7 }
 0x241   : > { %v2722_v17 = vsel %vm1279_vm5, %v5434_v37, %v2352_v7  ;;  %v1413_v7 = vsel %vm1411_vm9, %v1380_v2, %v6385_v59  ;;  %v6400_v2 = vld [vmem:[#allocation83_spill] sm:$0xff]  ;;  %s6026_s28 = scalar_lea.vmem %s6201_s6, %s3844_s20 }
 0x242   : > { %1273 = vrot.lane.b32.xlu1 %v6379_v1, %s4122_s11  ;;  %v2464_v14 = vpop.permute.xlu0 %2463  ;;  %v6401_v59 = vld [vmem:[#allocation99_spill] sm:$0xff] }
 0x243   : > { %v2754_v13 = vsel %vm1312_vm6, %v2722_v17, %v2464_v14 }
 0x244   : > { %v2354_v54 = vpop.permute.xlu1 %2353  ;;  %1197 = vrot.lane.b32.xlu0 %v6352_v55, %s4120_s9 }
 0x246   : > { %1195 = vrot.lane.b32.xlu1 %v6374_v16, %s4120_s9  ;;  %v2497_v33 = vpop.permute.xlu0 %2496 }
 0x247   : > { %v2786_v29 = vsel %vm1345_vm7, %v2754_v13, %v2497_v33  ;;  %v6387_v33 = vld [vmem:[#allocation3_spill] sm:$0xff] }
 0x248   : > { %v2466_v26 = vpop.permute.xlu1 %2465  ;;  %1241 = vrot.lane.b32.xlu0 %v6353_v5, %s4121_s10 }
 0x24a   : > { %1239 = vrot.lane.b32.xlu1 %v6380_v25, %s4121_s10  ;;  %v2541_v36 = vpop.permute.xlu0 %2540 }
 0x24b   : > { %v2818_v37 = vsel %vm1378_vm8, %v2786_v29, %v2541_v36 }
 0x24c   : > { %v2499_v49 = vpop.permute.xlu1 %2498  ;;  %1277 = vrot.lane.b32.xlu0 %v4559_v46, %s4122_s11  ;;  %v2724_v46 = vsel %vm1279_vm5, %v5468_v10, %v2354_v54  ;;  %v6386_v54 = vld [vmem:[#allocation31_spill] sm:$0xff] }
 0x24d   : > { %v2756_v0 = vsel %vm1312_vm6, %v2724_v46, %v2466_v26  ;;  %v1283_v26 = vsel %vm1279_vm5, %v6387_v33, %v6386_v54  ;;  %v6392_v46 = vld [vmem:[#allocation30_spill] sm:$0xff]  ;;  %v6402_v33 = vld [vmem:[#allocation33_spill] sm:$0xff] }
 0x24e   : > { %1275 = vrot.lane.b32.xlu1 %v1133_v39, %s4122_s11  ;;  %v2577_v8 = vpop.permute.xlu0 %2576  ;;  %v2788_v62 = vsel %vm1345_vm7, %v2756_v0, %v2499_v49  ;;  %v6388_v49 = vld [vmem:[#allocation49_spill] sm:$0xff]  ;;  %v6394_v0 = vld [vmem:[#allocation64_spill] sm:$0xff] }
 0x24f   : > { %v2850_v41 = vsel %vm1411_vm9, %v2818_v37, %v2577_v8  ;;  %v1316_v8 = vsel %vm1312_vm6, %v1283_v26, %v6388_v49  ;;  %v1289_v26 = vsel %vm1279_vm5, %v4293_v57, %v6402_v33  ;;  %v6403_v49 = vld [vmem:[#allocation50_spill] sm:$0xff]  ;;  %v6419_v33 = vld [vmem:[#allocation71_spill] sm:$0xff] }
 0x250   : > { %v2543_v55 = vpop.permute.xlu1 %2542  ;;  %v6406_v57 = vld [vmem:[#allocation98_spill] sm:$0xff] }
 0x251   : > { %v2820_v10 = vsel %vm1378_vm8, %v2788_v62, %v2543_v55 }
 0x252   : > { %v2610_v58 = vpop.permute.xlu0 %2609 }
 0x253   : > { %v4041_v3 = vpop.f32.mrb[0].mxu1  ;;  %v2882_v56 = vsel %vm1444_vm10, %v2850_v41, %v2610_v58  ;;  %v6389_v58 = vld [vmem:[#allocation65_spill] sm:$0xff]  ;;  %v6395_v41 = vld [vmem:[#allocation80_spill] sm:$0xff] }
 0x254   : > { %v2579_v4 = vpop.permute.xlu1 %2578  ;;  %v3038_v22 = vpop.f32.mrb[1].mxu1 }
 0x255   : > { %3197 = vrot.lane.b32.xlu1 %v3038_v22, %s4116_s12  ;;  %v4042_v31 = vpop.f32.mrb[2].mxu1  ;;  %v2852_v6 = vsel %vm1411_vm9, %v2820_v10, %v2579_v4  ;;  %v6390_v22 = vld [vmem:[#allocation81_spill] sm:$0xff]  ;;  %v6396_v10 = vld [vmem:[#allocation96_spill] sm:$0xff] }
 0x256   : > { %v3041_v5 = vpop.f32.mrb[3].mxu1  ;;  %v2654_v23 = vpop.permute.xlu0 %2653 }
 0x257   : > { %3199 = vrot.lane.b32.xlu0 %v3041_v5, %s4116_s12  ;;  %v2914_v15 = vsel %vm1477_vm11, %v2882_v56, %v2654_v23  ;;  %v6391_v5 = vld [vmem:[#allocation97_spill] sm:$0xff] }
 0x258   : > { %v2612_v18 = vpop.permute.xlu1 %2611 }
 0x259   : > { %3201 = vrot.lane.b32.xlu1 %v4041_v3, %s4116_s12  ;;  %v2884_v32 = vsel %vm1444_vm10, %v2852_v6, %v2612_v18  ;;  %v1349_v3 = vsel %vm1345_vm7, %v1316_v8, %v6389_v58  ;;  %v6397_v6 = vld [vmem:[#allocation32_spill] sm:$0xff]  ;;  %v1322_v8 = vsel %vm1312_vm6, %v1289_v26, %v6403_v49  ;;  %v6404_v58 = vld [vmem:[#allocation66_spill] sm:$0xff] }
 0x25a   : > { %v2656_v21 = vpop.permute.xlu0 %2655 }
 0x25b   : > { %3203 = vrot.lane.b32.xlu0 %v4042_v31, %s4116_s12  ;;  %v2916_v35 = vsel %vm1477_vm11, %v2884_v32, %v2656_v21  ;;  %v1382_v31 = vsel %vm1378_vm8, %v1349_v3, %v6390_v22  ;;  %v1285_v21 = vsel %vm1279_vm5, %v4233_v50, %v6392_v46  ;;  %v1355_v3 = vsel %vm1345_vm7, %v1322_v8, %v6404_v58  ;;  %v6405_v22 = vld [vmem:[#allocation82_spill] sm:$0xff]  ;;  %v6421_v8 = vld [vmem:[#allocation103_spill] sm:$0xff] }
 0x25c   : > { %v1168_v11 = vpop.permute.xlu1 %1167  ;;  %v1415_v23 = vsel %vm1411_vm9, %v1382_v31, %v6391_v5  ;;  %v1318_v29 = vsel %vm1312_vm6, %v1285_v21, %v6393_v48  ;;  %v1388_v31 = vsel %vm1378_vm8, %v1355_v3, %v6405_v22  ;;  %v6422_v3 = vld [vmem:[#allocation38_spill] sm:$0xff] }
 0x25d   : > { %v1446_v14 = vsel %vm1444_vm10, %v1413_v7, %v1168_v11  ;;  %v1351_v37 = vsel %vm1345_vm7, %v1318_v29, %v6394_v0  ;;  %v1421_v5 = vsel %vm1411_vm9, %v1388_v31, %v6406_v57  ;;  %v6423_v57 = vld [vmem:[#allocation54_spill] sm:$0xff] }
 0x25e   : > { %v1170_v16 = vpop.permute.xlu0 %1169 }
 0x25f   : > { %v1448_v18 = vsel %vm1444_vm10, %v1415_v23, %v1170_v16  ;;  %v1384_v16 = vsel %vm1378_vm8, %v1351_v37, %v6395_v41 }
 0x260   : > { %v2690_v60 = vpop.permute.xlu1 %2689  ;;  %v1417_v50 = vsel %vm1411_vm9, %v1384_v16, %v6396_v10  ;;  %v6411_v16 = vld [vmem:[#allocation101_spill] sm:$0xff] }
 0x261   : > { %v2946_v34 = vsel %vm1510_vm12, %v2914_v15, %v2690_v60  ;;  %v1287_v15 = vsel %vm1279_vm5, %v4254_v9, %v6397_v6 }
 0x262   : > { %4067 = vmatprep.mubr.msk.bf16.mxu1 %vm1563_vm13, %v2946_v34  ;;  %v2692_v39 = vpop.permute.xlu0 %2691  ;;  %v1320_v32 = vsel %vm1312_vm6, %v1287_v15, %v6398_v51 }
 0x263   : > { %v2948_v47 = vsel %vm1510_vm12, %v2916_v35, %v2692_v39  ;;  %v1353_v35 = vsel %vm1345_vm7, %v1320_v32, %v6399_v27  ;;  %v6414_v32 = vld [vmem:[#allocation68_spill] sm:$0xff] }
 0x264   : > { %v1212_v1 = vpop.permute.xlu1 %1211  ;;  %4068 = vmatmul.mubr.msk.bf16.gmra.mrb[28].mxu1 %vm1563_vm13, %v2948_v47  ;;  %v1386_v47 = vsel %vm1378_vm8, %v1353_v35, %v6400_v2  ;;  %v6415_v27 = vld [vmem:[#allocation84_spill] sm:$0xff] }
 0x265   : > { %v1479_v25 = vsel %vm1477_vm11, %v1446_v14, %v1212_v1  ;;  %v1419_v7 = vsel %vm1411_vm9, %v1386_v47, %v6401_v59  ;;  %v6417_v47 = vld [vmem:[#allocation37_spill] sm:$0xff] }
 0x266   : > { %v1248_v36 = vpop.permute.xlu0 %1247 }
 0x267   : > { %v1512_v55 = vsel %vm1510_vm12, %v1479_v25, %v1248_v36 }
 0x268   : > { %v1214_v4 = vpop.permute.xlu1 %1213  ;;  %4001 = vmatprep.mubr.msk.bf16.mxu0 %vm1563_vm13, %v1512_v55 }
 0x269   : > { %v1481_v13 = vsel %vm1477_vm11, %v1448_v18, %v1214_v4  ;;  %v6407_v18 = vld [vmem:[#allocation35_spill] sm:$0xff] }
 0x26a   : > { %v1172_v17 = vpop.permute.xlu0 %1171  ;;  %v1291_v46 = vsel %vm1279_vm5, %v4312_v19, %v6407_v18 }
 0x26b   : > { %v1450_v30 = vsel %vm1444_vm10, %v1417_v50, %v1172_v17 }
 0x26c   : > { %v1250_v28 = vpop.permute.xlu1 %1249 }
 0x26d   : > { %v1514_v11 = vsel %vm1510_vm12, %v1481_v13, %v1250_v28  ;;  %v6408_v28 = vld [vmem:[#allocation53_spill] sm:$0xff] }
 0x26e   : > { %4002 = vmatmul.mubr.msk.bf16.vlgmr.msra.gmra.mrb[0].mxu0 %vm1563_vm13, %v1514_v11  ;;  %v1216_v62 = vpop.permute.xlu0 %1215  ;;  %v1324_v48 = vsel %vm1312_vm6, %v1291_v46, %v6408_v28  ;;  %v6409_v11 = vld [vmem:[#allocation69_spill] sm:$0xff] }
 0x26f   : > { %v1483_v60 = vsel %vm1477_vm11, %v1450_v30, %v1216_v62  ;;  %v1357_v0 = vsel %vm1345_vm7, %v1324_v48, %v6409_v11  ;;  %v6410_v62 = vld [vmem:[#allocation85_spill] sm:$0xff]  ;;  %v6426_v48 = vld [vmem:[#allocation102_spill] sm:$0xff] }
 0x270   : > { %v1174_v56 = vpop.permute.xlu1 %1173  ;;  %v1390_v41 = vsel %vm1378_vm8, %v1357_v0, %v6410_v62  ;;  %v6427_v62 = vld [vmem:[#allocation40_spill] sm:$0xff] }
 0x271   : > { %v1452_v54 = vsel %vm1444_vm10, %v1419_v7, %v1174_v56  ;;  %v1423_v19 = vsel %vm1411_vm9, %v1390_v41, %v6411_v16  ;;  %v6412_v56 = vld [vmem:[#allocation36_spill] sm:$0xff]  ;;  %v1299_v41 = vsel %vm1279_vm5, %v6356_v44, %v6427_v62 }
 0x272   : > { %v1252_v52 = vpop.permute.xlu0 %1251  ;;  %v1293_v30 = vsel %vm1279_vm5, %v4328_v38, %v6412_v56 }
 0x273   : > { %v1516_v34 = vsel %vm1510_vm12, %v1483_v60, %v1252_v52  ;;  %v4045_v42 = vpop.f32.mrb[4].mxu1  ;;  %v6413_v60 = vld [vmem:[#allocation52_spill] sm:$0xff] }
 0x274   : > { %v1218_v39 = vpop.permute.xlu1 %1217  ;;  %4005 = vmatprep.mubr.msk.bf16.mxu0 %vm1563_vm13, %v1516_v34  ;;  %v3054_v53 = vpop.f32.mrb[5].mxu1  ;;  %v1326_v52 = vsel %vm1312_vm6, %v1293_v30, %v6413_v60 }
 0x275   : > { %3205 = vrot.lane.b32.xlu1 %v3054_v53, %s4116_s12  ;;  %v4046_v9 = vpop.f32.mrb[6].mxu1  ;;  %v1485_v25 = vsel %vm1477_vm11, %v1452_v54, %v1218_v39  ;;  %v1359_v34 = vsel %vm1345_vm7, %v1326_v52, %v6414_v32  ;;  %v6416_v39 = vld [vmem:[#allocation100_spill] sm:$0xff]  ;;  %v6430_v52 = vld [vmem:[#allocation89_spill] sm:$0xff] }
 0x276   : > { %v3057_v1 = vpop.f32.mrb[7].mxu1  ;;  %v1176_v14 = vpop.permute.xlu0 %1175  ;;  %v1392_v35 = vsel %vm1378_vm8, %v1359_v34, %v6415_v27  ;;  %v6432_v27 = vld [vmem:[#allocation41_spill] sm:$0xff] }
 0x277   : > { %3207 = vrot.lane.b32.xlu0 %v3057_v1, %s4116_s12  ;;  %v1454_v17 = vsel %vm1444_vm10, %v1421_v5, %v1176_v14  ;;  %v1425_v38 = vsel %vm1411_vm9, %v1392_v35, %v6416_v39  ;;  %v6418_v1 = vld [vmem:[#allocation55_spill] sm:$0xff]  ;;  %v1301_v35 = vsel %vm1279_vm5, %v6359_v43, %v6432_v27 }
 0x278   : > { %v1254_v36 = vpop.permute.xlu1 %1253 }
 0x279   : > { %v1518_v55 = vsel %vm1510_vm12, %v1485_v25, %v1254_v36  ;;  %3209 = vrot.lane.b32.xlu1 %v4045_v42, %s4116_s12  ;;  %v6420_v36 = vld [vmem:[#allocation87_spill] sm:$0xff] }
 0x27a   : > { %4006 = vmatmul.mubr.msk.bf16.gmra.mrb[4].mxu0 %vm1563_vm13, %v1518_v55  ;;  %v1220_v4 = vpop.permute.xlu0 %1219 }
 0x27b   : > { %3211 = vrot.lane.b32.xlu0 %v4046_v9, %s4116_s12  ;;  %v1487_v21 = vsel %vm1477_vm11, %v1454_v17, %v1220_v4  ;;  %v1295_v9 = vsel %vm1279_vm5, %v4361_v24, %v6417_v47  ;;  %v1297_v4 = vsel %vm1279_vm5, %v4386_v63, %v6422_v3  ;;  %v6424_v17 = vld [vmem:[#allocation70_spill] sm:$0xff]  ;;  %v6439_v3 = vld [vmem:[#allocation75_spill] sm:$0xff] }
 0x27c   : > { %v1178_v23 = vpop.permute.xlu1 %1177  ;;  %v1328_v14 = vsel %vm1312_vm6, %v1295_v9, %v6418_v1  ;;  %v1330_v5 = vsel %vm1312_vm6, %v1297_v4, %v6423_v57  ;;  %v6434_v9 = vld [vmem:[#allocation72_spill] sm:$0xff] }
 0x27d   : > { %v1456_v50 = vsel %vm1444_vm10, %v1423_v19, %v1178_v23  ;;  %v1361_v26 = vsel %vm1345_vm7, %v1328_v14, %v6419_v33  ;;  %v1363_v18 = vsel %vm1345_vm7, %v1330_v5, %v6424_v17  ;;  %v6435_v1 = vld [vmem:[#allocation88_spill] sm:$0xff]  ;;  %v6441_v5 = vld [vmem:[#allocation107_spill] sm:$0xff] }
 0x27e   : > { %v1256_v13 = vpop.permute.xlu0 %1255  ;;  %v1394_v49 = vsel %vm1378_vm8, %v1361_v26, %v6420_v36 }
 0x27f   : > { %v1520_v29 = vsel %vm1510_vm12, %v1487_v21, %v1256_v13  ;;  %v1427_v24 = vsel %vm1411_vm9, %v1394_v49, %v6421_v8  ;;  %v6425_v21 = vld [vmem:[#allocation86_spill] sm:$0xff] }
 0x280   : > { %v1222_v37 = vpop.permute.xlu1 %1221  ;;  %4009 = vmatprep.mubr.msk.bf16.mxu0 %vm1563_vm13, %v1520_v29  ;;  %v1396_v13 = vsel %vm1378_vm8, %v1363_v18, %v6425_v21  ;;  %v6442_v18 = vld [vmem:[#allocation43_spill] sm:$0xff] }
 0x281   : > { %v1489_v6 = vsel %vm1477_vm11, %v1456_v50, %v1222_v37  ;;  %v1429_v63 = vsel %vm1411_vm9, %v1396_v13, %v6426_v48  ;;  %v6428_v50 = vld [vmem:[#allocation57_spill] sm:$0xff] }
 0x282   : > { %v1180_v10 = vpop.permute.xlu0 %1179  ;;  %v1332_v56 = vsel %vm1312_vm6, %v1299_v41, %v6428_v50  ;;  %v6446_v41 = vld [vmem:[#allocation106_spill] sm:$0xff] }
 0x283   : > { %v1458_v2 = vsel %vm1444_vm10, %v1425_v38, %v1180_v10 }
 0x284   : > { %v1258_v15 = vpop.permute.xlu1 %1257 }
 0x285   : > { %v1522_v51 = vsel %vm1510_vm12, %v1489_v6, %v1258_v15  ;;  %v6429_v6 = vld [vmem:[#allocation73_spill] sm:$0xff] }
 0x286   : > { %4010 = vmatmul.mubr.msk.bf16.gmra.mrb[8].mxu0 %vm1563_vm13, %v1522_v51  ;;  %v1224_v42 = vpop.permute.xlu0 %1223  ;;  %v1365_v15 = vsel %vm1345_vm7, %v1332_v56, %v6429_v6  ;;  %v6431_v51 = vld [vmem:[#allocation105_spill] sm:$0xff] }
 0x287   : > { %v1491_v59 = vsel %vm1477_vm11, %v1458_v2, %v1224_v42  ;;  %v1398_v44 = vsel %vm1378_vm8, %v1365_v15, %v6430_v52  ;;  %v6448_v6 = vld [vmem:[#allocation61_spill] sm:$0xff] }
 0x288   : > { %v1182_v53 = vpop.permute.xlu1 %1181  ;;  %v1431_v32 = vsel %vm1411_vm9, %v1398_v44, %v6431_v51  ;;  %v6449_v52 = vld [vmem:[#allocation77_spill] sm:$0xff] }
 0x289   : > { %v1460_v58 = vsel %vm1444_vm10, %v1427_v24, %v1182_v53  ;;  %v6433_v53 = vld [vmem:[#allocation56_spill] sm:$0xff]  ;;  %v6438_v24 = vld [vmem:[#allocation59_spill] sm:$0xff] }
 0x28a   : > { %v1260_v7 = vpop.permute.xlu0 %1259  ;;  %v1334_v2 = vsel %vm1312_vm6, %v1301_v35, %v6433_v53 }
 0x28b   : > { %v1524_v54 = vsel %vm1510_vm12, %v1491_v59, %v1260_v7  ;;  %v1367_v59 = vsel %vm1345_vm7, %v1334_v2, %v6434_v9 }
 0x28c   : > { %v1226_v25 = vpop.permute.xlu1 %1225  ;;  %4013 = vmatprep.mubr.msk.bf16.mxu0 %vm1563_vm13, %v1524_v54  ;;  %v1400_v14 = vsel %vm1378_vm8, %v1367_v59, %v6435_v1  ;;  %v6436_v54 = vld [vmem:[#allocation104_spill] sm:$0xff] }
 0x28d   : > { %v1493_v22 = vsel %vm1477_vm11, %v1460_v58, %v1226_v25  ;;  %v1433_v43 = vsel %vm1411_vm9, %v1400_v14, %v6436_v54  ;;  %v6437_v25 = vld [vmem:[#allocation42_spill] sm:$0xff]  ;;  %v6452_v14 = vld [vmem:[#allocation47_spill] sm:$0xff] }
 0x28e   : > { %v1184_v55 = vpop.permute.xlu0 %1183  ;;  %v1303_v36 = vsel %vm1279_vm5, %v6362_v45, %v6437_v25  ;;  %v1311_v54 = vsel %vm1279_vm5, %v6376_v12, %v6452_v14 }
 0x28f   : > { %v1462_v0 = vsel %vm1444_vm10, %v1429_v63, %v1184_v55  ;;  %v1336_v55 = vsel %vm1312_vm6, %v1303_v36, %v6438_v24  ;;  %v6456_v24 = vld [vmem:[#allocation79_spill] sm:$0xff] }
 0x290   : > { %v1262_v31 = vpop.permute.xlu1 %1261  ;;  %v1369_v4 = vsel %vm1345_vm7, %v1336_v55, %v6439_v3  ;;  %v6458_v3 = vld [vmem:[#allocation95_spill] sm:$0xff] }
 0x291   : > { %v1526_v23 = vsel %vm1510_vm12, %v1493_v22, %v1262_v31  ;;  %v6440_v31 = vld [vmem:[#allocation91_spill] sm:$0xff] }
 0x292   : > { %4014 = vmatmul.mubr.msk.bf16.gmra.mrb[12].mxu0 %vm1563_vm13, %v1526_v23  ;;  %v1228_v46 = vpop.permute.xlu0 %1227  ;;  %v1402_v57 = vsel %vm1378_vm8, %v1369_v4, %v6440_v31 }
 0x293   : > { %v4049_v28 = vpop.f32.mrb[8].mxu1  ;;  %v1495_v16 = vsel %vm1477_vm11, %v1462_v0, %v1228_v46  ;;  %v1435_v45 = vsel %vm1411_vm9, %v1402_v57, %v6441_v5  ;;  %v1305_v46 = vsel %vm1279_vm5, %v6365_v20, %v6442_v18  ;;  %v6460_v5 = vld [vmem:[#allocation108_spill] sm:$0xff] }
 0x294   : > { %v1186_v29 = vpop.permute.xlu1 %1185  ;;  %v3070_v11 = vpop.f32.mrb[9].mxu1 }
 0x295   : > { %3213 = vrot.lane.b32.xlu1 %v3070_v11, %s4116_s12  ;;  %v4050_v37 = vpop.f32.mrb[10].mxu1  ;;  %v1464_v42 = vsel %vm1444_vm10, %v1431_v32, %v1186_v29  ;;  %v6444_v29 = vld [vmem:[#allocation74_spill] sm:$0xff]  ;;  %v6450_v32 = vld [vmem:[#allocation93_spill] sm:$0xff] }
 0x296   : > { %v3073_v19 = vpop.f32.mrb[11].mxu1  ;;  %v1264_v10 = vpop.permute.xlu0 %1263 }
 0x297   : > { %v1528_v30 = vsel %vm1510_vm12, %v1495_v16, %v1264_v10  ;;  %3215 = vrot.lane.b32.xlu0 %v3073_v19, %s4116_s12  ;;  %v6447_v10 = vld [vmem:[#allocation44_spill] sm:$0xff] }
 0x298   : > { %v1230_v60 = vpop.permute.xlu1 %1229  ;;  %4017 = vmatprep.mubr.msk.bf16.mxu0 %vm1563_vm13, %v1528_v30  ;;  %v1307_v50 = vsel %vm1279_vm5, %v6368_v40, %v6447_v10 }
 0x299   : > { %3217 = vrot.lane.b32.xlu1 %v4049_v28, %s4116_s12  ;;  %v1497_v39 = vsel %vm1477_vm11, %v1464_v42, %v1230_v60  ;;  %v6443_v28 = vld [vmem:[#allocation58_spill] sm:$0xff]  ;;  %v1340_v15 = vsel %vm1312_vm6, %v1307_v50, %v6448_v6  ;;  %v6451_v42 = vld [vmem:[#allocation109_spill] sm:$0xff] }
 0x29a   : > { %v1188_v34 = vpop.permute.xlu0 %1187  ;;  %v1338_v48 = vsel %vm1312_vm6, %v1305_v46, %v6443_v28  ;;  %v1373_v44 = vsel %vm1345_vm7, %v1340_v15, %v6449_v52 }
 0x29b   : > { %3219 = vrot.lane.b32.xlu0 %v4050_v37, %s4116_s12  ;;  %v1466_v26 = vsel %vm1444_vm10, %v1433_v43, %v1188_v34  ;;  %v1371_v11 = vsel %vm1345_vm7, %v1338_v48, %v6444_v29  ;;  %v6445_v37 = vld [vmem:[#allocation90_spill] sm:$0xff]  ;;  %v1406_v34 = vsel %vm1378_vm8, %v1373_v44, %v6450_v32  ;;  %v6453_v43 = vld [vmem:[#allocation45_spill] sm:$0xff] }
 0x29c   : > { %v1266_v38 = vpop.permute.xlu1 %1265  ;;  %v1404_v62 = vsel %vm1378_vm8, %v1371_v11, %v6445_v37  ;;  %v1439_v40 = vsel %vm1411_vm9, %v1406_v34, %v6451_v42 }
 0x29d   : > { %v1530_v47 = vsel %vm1510_vm12, %v1497_v39, %v1266_v38  ;;  %v1437_v20 = vsel %vm1411_vm9, %v1404_v62, %v6446_v41 }
 0x29e   : > { %4018 = vmatmul.mubr.msk.bf16.gmra.mrb[16].mxu0 %vm1563_vm13, %v1530_v47  ;;  %v1232_v7 = vpop.permute.xlu0 %1231 }
 0x29f   : > { %v1499_v49 = vsel %vm1477_vm11, %v1466_v26, %v1232_v7  ;;  %v6454_v26 = vld [vmem:[#allocation63_spill] sm:$0xff] }
 0x2a0   : > { %v1190_v33 = vpop.permute.xlu1 %1189  ;;  %v1344_v25 = vsel %vm1312_vm6, %v1311_v54, %v6454_v26 }
 0x2a1   : > { %v1468_v17 = vsel %vm1444_vm10, %v1435_v45, %v1190_v33  ;;  %v1309_v33 = vsel %vm1279_vm5, %v6371_v61, %v6453_v43  ;;  %v1377_v55 = vsel %vm1345_vm7, %v1344_v25, %v6456_v24  ;;  %v6459_v61 = vld [vmem:[#allocation92_spill] sm:$0xff] }
 0x2a2   : > { %v1268_v8 = vpop.permute.xlu0 %1267  ;;  %v1410_v4 = vsel %vm1378_vm8, %v1377_v55, %v6458_v3 }
 0x2a3   : > { %v1532_v58 = vsel %vm1510_vm12, %v1499_v49, %v1268_v8  ;;  %v6455_v49 = vld [vmem:[#allocation60_spill] sm:$0xff] }
 0x2a4   : > { %v1234_v22 = vpop.permute.xlu1 %1233  ;;  %4021 = vmatprep.mubr.msk.bf16.mxu0 %vm1563_vm13, %v1532_v58  ;;  %v1342_v8 = vsel %vm1312_vm6, %v1309_v33, %v6455_v49  ;;  %v6457_v58 = vld [vmem:[#allocation76_spill] sm:$0xff] }
 0x2a5   : > { %v1501_v21 = vsel %vm1477_vm11, %v1468_v17, %v1234_v22  ;;  %v1375_v12 = vsel %vm1345_vm7, %v1342_v8, %v6457_v58 }
 0x2a6   : > { %v1192_v23 = vpop.permute.xlu0 %1191  ;;  %v1408_v31 = vsel %vm1378_vm8, %v1375_v12, %v6459_v61 }
 0x2a7   : > { %v1470_v19 = vsel %vm1444_vm10, %v1437_v20, %v1192_v23  ;;  %v1441_v45 = vsel %vm1411_vm9, %v1408_v31, %v6460_v5 }
 0x2a8   : > { %v1270_v13 = vpop.permute.xlu1 %1269 }
 0x2a9   : > { %v1534_v63 = vsel %vm1510_vm12, %v1501_v21, %v1270_v13 }
 0x2aa   : > { %4022 = vmatmul.mubr.msk.bf16.gmra.mrb[20].mxu0 %vm1563_vm13, %v1534_v63  ;;  %v1236_v0 = vpop.permute.xlu0 %1235 }
 0x2ab   : > { %v1503_v56 = vsel %vm1477_vm11, %v1470_v19, %v1236_v0 }
 0x2ac   : > { %v1194_v16 = vpop.permute.xlu1 %1193 }
 0x2ad   : > { %v1472_v35 = vsel %vm1444_vm10, %v1439_v40, %v1194_v16 }
 0x2ae   : > { %v1272_v30 = vpop.permute.xlu0 %1271 }
 0x2af   : > { %v1536_v60 = vsel %vm1510_vm12, %v1503_v56, %v1272_v30 }
 0x2b0   : > { %v1238_v51 = vpop.permute.xlu1 %1237  ;;  %4025 = vmatprep.mubr.msk.bf16.mxu0 %vm1563_vm13, %v1536_v60 }
 0x2b1   : > { %v1505_v38 = vsel %vm1477_vm11, %v1472_v35, %v1238_v51 }
 0x2b2   : > { %v1165_v27 = vpop.permute.xlu0 %1164 }
 0x2b3   : > { %v4053_v39 = vpop.f32.mrb[12].mxu1  ;;  %v1443_v57 = vsel %vm1411_vm9, %v1410_v4, %v1165_v27 }
 0x2b4   : > { %v1274_v53 = vpop.permute.xlu1 %1273  ;;  %v3086_v2 = vpop.f32.mrb[13].mxu1 }
 0x2b5   : > { %v1538_v47 = vsel %vm1510_vm12, %v1505_v38, %v1274_v53  ;;  %3221 = vrot.lane.b32.xlu1 %v3086_v2, %s4116_s12  ;;  %v4054_v9 = vpop.f32.mrb[14].mxu1 }
 0x2b6   : > { %4026 = vmatmul.mubr.msk.bf16.gmra.mrb[24].mxu0 %vm1563_vm13, %v1538_v47  ;;  %v3089_v59 = vpop.f32.mrb[15].mxu1  ;;  %v1198_v7 = vpop.permute.xlu0 %1197 }
 0x2b7   : > { %3223 = vrot.lane.b32.xlu0 %v3089_v59, %s4116_s12  ;;  %v1476_v23 = vsel %vm1444_vm10, %v1443_v57, %v1198_v7 }
 0x2b8   : > { %v1196_v1 = vpop.permute.xlu1 %1195 }
 0x2b9   : > { %3225 = vrot.lane.b32.xlu1 %v4053_v39, %s4116_s12  ;;  %v1474_v18 = vsel %vm1444_vm10, %v1441_v45, %v1196_v1 }
 0x2ba   : > { %v1242_v36 = vpop.permute.xlu0 %1241 }
 0x2bb   : > { %3227 = vrot.lane.b32.xlu0 %v4054_v9, %s4116_s12  ;;  %v1509_v46 = vsel %vm1477_vm11, %v1476_v23, %v1242_v36 }
 0x2bc   : > { %v1240_v22 = vpop.permute.xlu1 %1239 }
 0x2bd   : > { %v1507_v21 = vsel %vm1477_vm11, %v1474_v18, %v1240_v22 }
 0x2be   : > { %v1278_v17 = vpop.permute.xlu0 %1277 }
 0x2bf   : > { %v1542_v28 = vsel %vm1510_vm12, %v1509_v46, %v1278_v17 }
 0x2c0   : > { %v1276_v13 = vpop.permute.xlu1 %1275 }
 0x2c1   : > { %v1540_v48 = vsel %vm1510_vm12, %v1507_v21, %v1276_v13 }
 0x2c2   : > { %4029 = vmatprep.mubr.msk.bf16.mxu0 %vm1563_vm13, %v1540_v48 }
 0x2c3   : > { %4030 = vmatmul.mubr.msk.bf16.gmra.mrb[28].mxu0 %vm1563_vm13, %v1542_v28 }
 0x2c7   : > { %v3198_v60 = vpop.permute.xlu1 %3197 }
 0x2c9   : > { %v3200_v52 = vpop.permute.xlu0 %3199 }
 0x2cb   : > { %v3202_v44 = vpop.permute.xlu1 %3201 }
 0x2cd   : > { %v3204_v42 = vpop.permute.xlu0 %3203 }
 0x2d3   : > { %v4057_v63 = vpop.f32.mrb[16].mxu1 }
 0x2d4   : > { %v3102_v29 = vpop.f32.mrb[17].mxu1 }
 0x2d5   : > { %3229 = vrot.lane.b32.xlu1 %v3102_v29, %s4116_s12  ;;  %v4058_v11 = vpop.f32.mrb[18].mxu1 }
 0x2d6   : > { %v3105_v0 = vpop.f32.mrb[19].mxu1 }
 0x2d7   : > { %3231 = vrot.lane.b32.xlu0 %v3105_v0, %s4116_s12 }
 0x2d9   : > { %3233 = vrot.lane.b32.xlu1 %v4057_v63, %s4116_s12 }
 0x2db   : > { %3235 = vrot.lane.b32.xlu0 %v4058_v11, %s4116_s12 }
 0x2e7   : > { %v3206_v7 = vpop.permute.xlu1 %3205 }
 0x2e9   : > { %v3208_v26 = vpop.permute.xlu0 %3207 }
 0x2eb   : > { %v3210_v22 = vpop.permute.xlu1 %3209 }
 0x2ed   : > { %v3212_v23 = vpop.permute.xlu0 %3211 }
 0x2f3   : > { %v4061_v37 = vpop.f32.mrb[20].mxu1 }
 0x2f4   : > { %v3118_v62 = vpop.f32.mrb[21].mxu1 }
 0x2f5   : > { %3237 = vrot.lane.b32.xlu1 %v3118_v62, %s4116_s12  ;;  %v4062_v41 = vpop.f32.mrb[22].mxu1 }
 0x2f6   : > { %v3121_v20 = vpop.f32.mrb[23].mxu1 }
 0x2f7   : > { %3239 = vrot.lane.b32.xlu0 %v3121_v20, %s4116_s12 }
 0x2f9   : > { %3241 = vrot.lane.b32.xlu1 %v4061_v37, %s4116_s12 }
 0x2fb   : > { %3243 = vrot.lane.b32.xlu0 %v4062_v41, %s4116_s12 }
 0x307   : > { %v3214_v41 = vpop.permute.xlu1 %3213 }
 0x313   : > { %v4065_v16 = vpop.f32.mrb[24].mxu1 }
 0x314   : > { %v3134_v19 = vpop.f32.mrb[25].mxu1 }
 0x315   : > { %3245 = vrot.lane.b32.xlu1 %v3134_v19, %s4116_s12  ;;  %v4066_v10 = vpop.f32.mrb[26].mxu1 }
 0x316   : > { %v3137_v50 = vpop.f32.mrb[27].mxu1 }
 0x317   : > { %3247 = vrot.lane.b32.xlu0 %v3137_v50, %s4116_s12 }
 0x319   : > { %3249 = vrot.lane.b32.xlu1 %v4065_v16, %s4116_s12 }
 0x31b   : > { %3251 = vrot.lane.b32.xlu0 %v4066_v10, %s4116_s12 }
 0x337   : > { %v4069_v56 = vpop.f32.mrb[28].mxu1 }
 0x338   : > { %v3150_v30 = vpop.f32.mrb[29].mxu1 }
 0x339   : > { %3253 = vrot.lane.b32.xlu1 %v3150_v30, %s4116_s12  ;;  %v4070_v6 = vpop.f32.mrb[30].mxu1 }
 0x33a   : > { %v3153_v15 = vpop.f32.mrb[31].mxu1 }
 0x33b   : > { %3255 = vrot.lane.b32.xlu0 %v3153_v15, %s4116_s12 }
 0x33d   : > { %3257 = vrot.lane.b32.xlu1 %v4069_v56, %s4116_s12  ;;  %v3216_v56 = vpop.permute.xlu0 %3215 }
 0x33f   : > { %3259 = vrot.lane.b32.xlu0 %v4070_v6, %s4116_s12  ;;  %s3767_s12 = sshll.u32 %s6462_s25, 1 }
 0x340   : > { %s309_s8 = scalar_lea.vmem %s6202_s7, %s3767_s12 }
 0x341   : > { %v4003_v51 = vpop.f32.mrb[0].mxu0 }
 0x342   : > { %v3295_v32 = vsel %vm1312_vm6, %v4003_v51, %v3202_v44  ;;  %v1634_v34 = vpop.f32.mrb[1].mxu0 }
 0x343   : > { %v3847_v40 = vpack.c.bf16 %v3295_v32, %v3295_v32  ;;  %v3293_v27 = vsel %vm1312_vm6, %v1634_v34, %v3198_v60  ;;  %v4004_v35 = vpop.f32.mrb[2].mxu0  ;;  %v3557_v9 = vmul.f32 %v3295_v32, %v3295_v32  ;;  %v3489_v25 = vsel %vm1378_vm8, %v3295_v32, 0.0 }
 0x344   : > { %v3845_v39 = vpack.c.bf16 %v3293_v27, %v3293_v27  ;;  %v3296_v38 = vsel %vm1312_vm6, %v4004_v35, %v3204_v42  ;;  %v1637_v53 = vpop.f32.mrb[3].mxu0  ;;  %v3555_v2 = vmul.f32 %v3293_v27, %v3293_v27  ;;  %v3486_v1 = vsel %vm1378_vm8, %v3293_v27, 0.0  ;;  %v3218_v42 = vpop.permute.xlu1 %3217 }
 0x345   : > { %3456 = vst.msk [vmem:[%s6026_s28 + $0x8] sm:$0xf] %vm3453_vm14, %v3847_v40  ;;  %v3848_v47 = vpack.c.bf16 %v3296_v38, %v3296_v38  ;;  %v3294_v59 = vsel %vm1312_vm6, %v1637_v53, %v3200_v52  ;;  %v3558_v49 = vmul.f32 %v3296_v38, %v3296_v38  ;;  %v3590_v58 = vsel %vm1378_vm8, %v3557_v9, 0.0  ;;  %v3220_v53 = vpop.permute.xlu0 %3219 }
 0x346   : > { %3454 = vst.msk [vmem:[%s6026_s28] sm:$0xf] %vm3453_vm14, %v3845_v39  ;;  %v3846_v14 = vpack.c.bf16 %v3294_v59, %v3294_v59  ;;  %v3487_v54 = vsel %vm1378_vm8, %v3294_v59, 0.0  ;;  %v3556_v43 = vmul.f32 %v3294_v59, %v3294_v59  ;;  %v3587_v36 = vsel %vm1378_vm8, %v3555_v2, 0.0 }
 0x347   : > { %3457 = vst.msk [vmem:[%s6026_s28 + $0xc] sm:$0xf] %vm3453_vm14, %v3848_v47  ;;  %v3488_v33 = vadd.f32 %v3487_v54, %v3486_v1  ;;  %v3491_v12 = vsel %vm1378_vm8, %v3296_v38, 0.0  ;;  %v3592_v61 = vsel %vm1378_vm8, %v3558_v49, 0.0 }
 0x348   : > { %3455 = vst.msk [vmem:[%s6026_s28 + $0x4] sm:$0xf] %vm3453_vm14, %v3846_v14  ;;  %v3588_v8 = vsel %vm1378_vm8, %v3556_v43, 0.0  ;;  %v3222_v49 = vpop.permute.xlu1 %3221 }
 0x349   : > { %v3490_v24 = vadd.f32 %v3489_v25, %v3488_v33  ;;  %v3589_v55 = vadd.f32 %v3588_v8, %v3587_v36 }
 0x34b   : > { %v3591_v3 = vadd.f32 %v3590_v58, %v3589_v55  ;;  %v3492_v4 = vadd.f32 %v3491_v12, %v3490_v24 }
 0x34d   : > { %v4007_v31 = vpop.f32.mrb[4].mxu0  ;;  %v3593_v45 = vadd.f32 %v3592_v61, %v3591_v3  ;;  %v3224_v3 = vpop.permute.xlu0 %3223 }
 0x34e   : > { %v3299_v57 = vsel %vm1312_vm6, %v4007_v31, %v3210_v22  ;;  %v1650_v5 = vpop.f32.mrb[5].mxu0 }
 0x34f   : > { %v3851_v17 = vpack.c.bf16 %v3299_v57, %v3299_v57  ;;  %v3297_v18 = vsel %vm1312_vm6, %v1650_v5, %v3206_v7  ;;  %v4008_v46 = vpop.f32.mrb[6].mxu0  ;;  %v3561_v0 = vmul.f32 %v3299_v57, %v3299_v57  ;;  %v3497_v30 = vsel %vm1378_vm8, %v3299_v57, 0.0 }
 0x350   : > { %v3849_v21 = vpack.c.bf16 %v3297_v18, %v3297_v18  ;;  %v3493_v13 = vsel %vm1378_vm8, %v3297_v18, 0.0  ;;  %v3559_v28 = vmul.f32 %v3297_v18, %v3297_v18  ;;  %v3300_v48 = vsel %vm1312_vm6, %v4008_v46, %v3212_v23  ;;  %v1653_v63 = vpop.f32.mrb[7].mxu0  ;;  %v3226_v18 = vpop.permute.xlu1 %3225 }
 0x351   : > { %3460 = vst.msk [vmem:[%s6026_s28 + $0x18] sm:$0xf] %vm3453_vm14, %v3851_v17  ;;  %v3494_v29 = vadd.f32 %v3493_v13, %v3492_v4  ;;  %v3852_v11 = vpack.c.bf16 %v3300_v48, %v3300_v48  ;;  %v3298_v62 = vsel %vm1312_vm6, %v1653_v63, %v3208_v26  ;;  %v3562_v6 = vmul.f32 %v3300_v48, %v3300_v48  ;;  %v3228_v63 = vpop.permute.xlu0 %3227 }
 0x352   : > { %3458 = vst.msk [vmem:[%s6026_s28 + $0x10] sm:$0xf] %vm3453_vm14, %v3849_v21  ;;  %v3594_v37 = vsel %vm1378_vm8, %v3559_v28, 0.0  ;;  %v3850_v16 = vpack.c.bf16 %v3298_v62, %v3298_v62  ;;  %v3495_v19 = vsel %vm1378_vm8, %v3298_v62, 0.0  ;;  %v3560_v10 = vmul.f32 %v3298_v62, %v3298_v62 }
 0x353   : > { %v3595_v20 = vadd.f32 %v3594_v37, %v3593_v45  ;;  %3461 = vst.msk [vmem:[%s6026_s28 + $0x1c] sm:$0xf] %vm3453_vm14, %v3852_v11  ;;  %v3496_v50 = vadd.f32 %v3495_v19, %v3494_v29  ;;  %v3598_v44 = vsel %vm1378_vm8, %v3561_v0, 0.0  ;;  %v3499_v51 = vsel %vm1378_vm8, %v3300_v48, 0.0 }
 0x354   : > { %3459 = vst.msk [vmem:[%s6026_s28 + $0x14] sm:$0xf] %vm3453_vm14, %v3850_v16  ;;  %v3596_v15 = vsel %vm1378_vm8, %v3560_v10, 0.0  ;;  %v3600_v40 = vsel %vm1378_vm8, %v3562_v6, 0.0  ;;  %v3230_v6 = vpop.permute.xlu1 %3229 }
 0x355   : > { %v3498_v60 = vadd.f32 %v3497_v30, %v3496_v50  ;;  %v3597_v52 = vadd.f32 %v3596_v15, %v3595_v20 }
 0x357   : > { %v3599_v32 = vadd.f32 %v3598_v44, %v3597_v52  ;;  %v3500_v34 = vadd.f32 %v3499_v51, %v3498_v60 }
 0x359   : > { %v4011_v27 = vpop.f32.mrb[8].mxu0  ;;  %v3601_v38 = vadd.f32 %v3600_v40, %v3599_v32  ;;  %v3232_v32 = vpop.permute.xlu0 %3231 }
 0x35a   : > { %v3303_v35 = vsel %vm1312_vm6, %v4011_v27, %v3218_v42  ;;  %v1666_v39 = vpop.f32.mrb[9].mxu0 }
 0x35b   : > { %v3855_v2 = vpack.c.bf16 %v3303_v35, %v3303_v35  ;;  %v3301_v47 = vsel %vm1312_vm6, %v1666_v39, %v3214_v41  ;;  %v4012_v9 = vpop.f32.mrb[10].mxu0  ;;  %v3565_v26 = vmul.f32 %v3303_v35, %v3303_v35  ;;  %v3505_v4 = vsel %vm1378_vm8, %v3303_v35, 0.0 }
 0x35c   : > { %v3853_v59 = vpack.c.bf16 %v3301_v47, %v3301_v47  ;;  %v3501_v7 = vsel %vm1378_vm8, %v3301_v47, 0.0  ;;  %v3563_v1 = vmul.f32 %v3301_v47, %v3301_v47  ;;  %v3304_v14 = vsel %vm1312_vm6, %v4012_v9, %v3220_v53  ;;  %v1669_v54 = vpop.f32.mrb[11].mxu0  ;;  %v3234_v47 = vpop.permute.xlu1 %3233 }
 0x35d   : > { %3464 = vst.msk [vmem:[%s6026_s28 + $0x28] sm:$0xf] %vm3453_vm14, %v3855_v2  ;;  %v3502_v43 = vadd.f32 %v3501_v7, %v3500_v34  ;;  %v3856_v33 = vpack.c.bf16 %v3304_v14, %v3304_v14  ;;  %v3302_v36 = vsel %vm1312_vm6, %v1669_v54, %v3216_v56  ;;  %v3566_v22 = vmul.f32 %v3304_v14, %v3304_v14  ;;  %v3236_v54 = vpop.permute.xlu0 %3235 }
 0x35e   : > { %3462 = vst.msk [vmem:[%s6026_s28 + $0x20] sm:$0xf] %vm3453_vm14, %v3853_v59  ;;  %v3602_v25 = vsel %vm1378_vm8, %v3563_v1, 0.0  ;;  %v3854_v24 = vpack.c.bf16 %v3302_v36, %v3302_v36  ;;  %v3503_v55 = vsel %vm1378_vm8, %v3302_v36, 0.0  ;;  %v3564_v58 = vmul.f32 %v3302_v36, %v3302_v36 }
 0x35f   : > { %v3603_v8 = vadd.f32 %v3602_v25, %v3601_v38  ;;  %3465 = vst.msk [vmem:[%s6026_s28 + $0x2c] sm:$0xf] %vm3453_vm14, %v3856_v33  ;;  %v3504_v12 = vadd.f32 %v3503_v55, %v3502_v43  ;;  %v3606_v5 = vsel %vm1378_vm8, %v3565_v26, 0.0  ;;  %v3507_v45 = vsel %vm1378_vm8, %v3304_v14, 0.0 }
 0x360   : > { %3463 = vst.msk [vmem:[%s6026_s28 + $0x24] sm:$0xf] %vm3453_vm14, %v3854_v24  ;;  %v3604_v61 = vsel %vm1378_vm8, %v3564_v58, 0.0  ;;  %v3608_v46 = vsel %vm1378_vm8, %v3566_v22, 0.0 }
 0x361   : > { %v3506_v31 = vadd.f32 %v3505_v4, %v3504_v12  ;;  %v3605_v57 = vadd.f32 %v3604_v61, %v3603_v8 }
 0x363   : > { %v3607_v23 = vadd.f32 %v3606_v5, %v3605_v57  ;;  %v3508_v17 = vadd.f32 %v3507_v45, %v3506_v31 }
 0x365   : > { %v4015_v21 = vpop.f32.mrb[12].mxu0  ;;  %v3609_v48 = vadd.f32 %v3608_v46, %v3607_v23 }
 0x366   : > { %v3307_v13 = vsel %vm1312_vm6, %v4015_v21, %v3226_v18  ;;  %v1682_v28 = vpop.f32.mrb[13].mxu0 }
 0x367   : > { %v3859_v29 = vpack.c.bf16 %v3307_v13, %v3307_v13  ;;  %v3305_v11 = vsel %vm1312_vm6, %v1682_v28, %v3222_v49  ;;  %v4016_v0 = vpop.f32.mrb[14].mxu0  ;;  %v3569_v50 = vmul.f32 %v3307_v13, %v3307_v13  ;;  %v3513_v34 = vsel %vm1378_vm8, %v3307_v13, 0.0  ;;  %v3238_v22 = vpop.permute.xlu1 %3237 }
 0x368   : > { %v3857_v37 = vpack.c.bf16 %v3305_v11, %v3305_v11  ;;  %v3509_v62 = vsel %vm1378_vm8, %v3305_v11, 0.0  ;;  %v3567_v41 = vmul.f32 %v3305_v11, %v3305_v11  ;;  %v3308_v20 = vsel %vm1312_vm6, %v4016_v0, %v3228_v63  ;;  %v1685_v16 = vpop.f32.mrb[15].mxu0 }
 0x369   : > { %3468 = vst.msk [vmem:[%s6026_s28 + $0x38] sm:$0xf] %vm3453_vm14, %v3859_v29  ;;  %v3510_v19 = vadd.f32 %v3509_v62, %v3508_v17  ;;  %v3860_v10 = vpack.c.bf16 %v3308_v20, %v3308_v20  ;;  %v3306_v30 = vsel %vm1312_vm6, %v1685_v16, %v3224_v3  ;;  %v3570_v42 = vmul.f32 %v3308_v20, %v3308_v20  ;;  %v3240_v23 = vpop.permute.xlu0 %3239 }
 0x36a   : > { %3466 = vst.msk [vmem:[%s6026_s28 + $0x30] sm:$0xf] %vm3453_vm14, %v3857_v37  ;;  %v3610_v56 = vsel %vm1378_vm8, %v3567_v41, 0.0  ;;  %v3858_v60 = vpack.c.bf16 %v3306_v30, %v3306_v30  ;;  %v3511_v52 = vsel %vm1378_vm8, %v3306_v30, 0.0  ;;  %v3568_v44 = vmul.f32 %v3306_v30, %v3306_v30 }
 0x36b   : > { %v3611_v15 = vadd.f32 %v3610_v56, %v3609_v48  ;;  %3469 = vst.msk [vmem:[%s6026_s28 + $0x3c] sm:$0xf] %vm3453_vm14, %v3860_v10  ;;  %v3512_v51 = vadd.f32 %v3511_v52, %v3510_v19  ;;  %v3614_v39 = vsel %vm1378_vm8, %v3569_v50, 0.0  ;;  %v3515_v38 = vsel %vm1378_vm8, %v3308_v20, 0.0  ;;  %v3242_v11 = vpop.permute.xlu1 %3241 }
 0x36c   : > { %3467 = vst.msk [vmem:[%s6026_s28 + $0x34] sm:$0xf] %vm3453_vm14, %v3858_v60  ;;  %v3612_v40 = vsel %vm1378_vm8, %v3568_v44, 0.0  ;;  %v3616_v9 = vsel %vm1378_vm8, %v3570_v42, 0.0 }
 0x36d   : > { %v3514_v27 = vadd.f32 %v3513_v34, %v3512_v51  ;;  %v3613_v35 = vadd.f32 %v3612_v40, %v3611_v15  ;;  %v3244_v16 = vpop.permute.xlu0 %3243 }
 0x36f   : > { %v3615_v53 = vadd.f32 %v3614_v39, %v3613_v35  ;;  %v3516_v2 = vadd.f32 %v3515_v38, %v3514_v27 }
 0x371   : > { %v4019_v59 = vpop.f32.mrb[16].mxu0  ;;  %v3617_v14 = vadd.f32 %v3616_v9, %v3615_v53 }
 0x372   : > { %v3311_v7 = vsel %vm1312_vm6, %v4019_v59, %v3234_v47  ;;  %v1698_v1 = vpop.f32.mrb[17].mxu0 }
 0x373   : > { %v3863_v43 = vpack.c.bf16 %v3311_v7, %v3311_v7  ;;  %v3309_v33 = vsel %vm1312_vm6, %v1698_v1, %v3230_v6  ;;  %v4020_v26 = vpop.f32.mrb[18].mxu0  ;;  %v3573_v12 = vmul.f32 %v3311_v7, %v3311_v7  ;;  %v3521_v17 = vsel %vm1378_vm8, %v3311_v7, 0.0 }
 0x374   : > { %v3861_v25 = vpack.c.bf16 %v3309_v33, %v3309_v33  ;;  %v3517_v36 = vsel %vm1378_vm8, %v3309_v33, 0.0  ;;  %v3571_v49 = vmul.f32 %v3309_v33, %v3309_v33  ;;  %v3312_v8 = vsel %vm1312_vm6, %v4020_v26, %v3236_v54  ;;  %v1701_v24 = vpop.f32.mrb[19].mxu0 }
 0x375   : > { %3472 = vst.msk [vmem:[%s6026_s28 + $0x48] sm:$0xf] %vm3453_vm14, %v3863_v43  ;;  %v3518_v55 = vadd.f32 %v3517_v36, %v3516_v2  ;;  %v3864_v58 = vpack.c.bf16 %v3312_v8, %v3312_v8  ;;  %v3310_v4 = vsel %vm1312_vm6, %v1701_v24, %v3232_v32  ;;  %v3574_v18 = vmul.f32 %v3312_v8, %v3312_v8 }
 0x376   : > { %3470 = vst.msk [vmem:[%s6026_s28 + $0x40] sm:$0xf] %vm3453_vm14, %v3861_v25  ;;  %v3618_v3 = vsel %vm1378_vm8, %v3571_v49, 0.0  ;;  %v3862_v31 = vpack.c.bf16 %v3310_v4, %v3310_v4  ;;  %v3519_v57 = vsel %vm1378_vm8, %v3310_v4, 0.0  ;;  %v3572_v5 = vmul.f32 %v3310_v4, %v3310_v4 }
 0x377   : > { %v3619_v61 = vadd.f32 %v3618_v3, %v3617_v14  ;;  %3473 = vst.msk [vmem:[%s6026_s28 + $0x4c] sm:$0xf] %vm3453_vm14, %v3864_v58  ;;  %v3520_v45 = vadd.f32 %v3519_v57, %v3518_v55  ;;  %v3622_v28 = vsel %vm1378_vm8, %v3573_v12, 0.0  ;;  %v3523_v48 = vsel %vm1378_vm8, %v3312_v8, 0.0 }
 0x378   : > { %3471 = vst.msk [vmem:[%s6026_s28 + $0x44] sm:$0xf] %vm3453_vm14, %v3862_v31  ;;  %v3620_v46 = vsel %vm1378_vm8, %v3572_v5, 0.0  ;;  %v3624_v0 = vsel %vm1378_vm8, %v3574_v18, 0.0 }
 0x379   : > { %v3522_v21 = vadd.f32 %v3521_v17, %v3520_v45  ;;  %v3621_v13 = vadd.f32 %v3620_v46, %v3619_v61 }
 0x37b   : > { %v3623_v63 = vadd.f32 %v3622_v28, %v3621_v13  ;;  %v3524_v29 = vadd.f32 %v3523_v48, %v3522_v21 }
 0x37d   : > { %v4023_v37 = vpop.f32.mrb[20].mxu0  ;;  %v3625_v20 = vadd.f32 %v3624_v0, %v3623_v63 }
 0x37e   : > { %v3315_v62 = vsel %vm1312_vm6, %v4023_v37, %v3242_v11  ;;  %v1714_v41 = vpop.f32.mrb[21].mxu0 }
 0x37f   : > { %v3867_v19 = vpack.c.bf16 %v3315_v62, %v3315_v62  ;;  %v3313_v10 = vsel %vm1312_vm6, %v1714_v41, %v3238_v22  ;;  %v4024_v50 = vpop.f32.mrb[22].mxu0  ;;  %v3577_v51 = vmul.f32 %v3315_v62, %v3315_v62  ;;  %v3529_v38 = vsel %vm1378_vm8, %v3315_v62, 0.0 }
 0x380   : > { %v3865_v56 = vpack.c.bf16 %v3313_v10, %v3313_v10  ;;  %v3525_v30 = vsel %vm1378_vm8, %v3313_v10, 0.0  ;;  %v3575_v6 = vmul.f32 %v3313_v10, %v3313_v10  ;;  %v3316_v15 = vsel %vm1312_vm6, %v4024_v50, %v3244_v16  ;;  %v1717_v60 = vpop.f32.mrb[23].mxu0 }
 0x381   : > { %3476 = vst.msk [vmem:[%s6026_s28 + $0x58] sm:$0xf] %vm3453_vm14, %v3867_v19  ;;  %v3526_v52 = vadd.f32 %v3525_v30, %v3524_v29  ;;  %v3868_v44 = vpack.c.bf16 %v3316_v15, %v3316_v15  ;;  %v3314_v34 = vsel %vm1312_vm6, %v1717_v60, %v3240_v23  ;;  %v3578_v53 = vmul.f32 %v3316_v15, %v3316_v15 }
 0x382   : > { %3474 = vst.msk [vmem:[%s6026_s28 + $0x50] sm:$0xf] %vm3453_vm14, %v3865_v56  ;;  %v3626_v32 = vsel %vm1378_vm8, %v3575_v6, 0.0  ;;  %v3866_v40 = vpack.c.bf16 %v3314_v34, %v3314_v34  ;;  %v3527_v27 = vsel %vm1378_vm8, %v3314_v34, 0.0  ;;  %v3576_v35 = vmul.f32 %v3314_v34, %v3314_v34 }
 0x383   : > { %v3627_v42 = vadd.f32 %v3626_v32, %v3625_v20  ;;  %3477 = vst.msk [vmem:[%s6026_s28 + $0x5c] sm:$0xf] %vm3453_vm14, %v3868_v44  ;;  %v3528_v39 = vadd.f32 %v3527_v27, %v3526_v52  ;;  %v3630_v59 = vsel %vm1378_vm8, %v3577_v51, 0.0  ;;  %v3531_v7 = vsel %vm1378_vm8, %v3316_v15, 0.0 }
 0x384   : > { %3475 = vst.msk [vmem:[%s6026_s28 + $0x54] sm:$0xf] %vm3453_vm14, %v3866_v40  ;;  %v3628_v2 = vsel %vm1378_vm8, %v3576_v35, 0.0  ;;  %v3632_v43 = vsel %vm1378_vm8, %v3578_v53, 0.0 }
 0x385   : > { %v3530_v47 = vadd.f32 %v3529_v38, %v3528_v39  ;;  %v3629_v9 = vadd.f32 %v3628_v2, %v3627_v42 }
 0x387   : > { %v3246_v1 = vpop.permute.xlu1 %3245  ;;  %v3631_v14 = vadd.f32 %v3630_v59, %v3629_v9  ;;  %v3532_v54 = vadd.f32 %v3531_v7, %v3530_v47 }
 0x389   : > { %v4027_v33 = vpop.f32.mrb[24].mxu0  ;;  %v3248_v26 = vpop.permute.xlu0 %3247  ;;  %v3633_v36 = vadd.f32 %v3632_v43, %v3631_v14 }
 0x38a   : > { %v1730_v25 = vpop.f32.mrb[25].mxu0 }
 0x38b   : > { %v3317_v49 = vsel %vm1312_vm6, %v1730_v25, %v3246_v1  ;;  %v4028_v8 = vpop.f32.mrb[26].mxu0  ;;  %v3250_v24 = vpop.permute.xlu1 %3249 }
 0x38c   : > { %v3869_v55 = vpack.c.bf16 %v3317_v49, %v3317_v49  ;;  %v3533_v58 = vsel %vm1378_vm8, %v3317_v49, 0.0  ;;  %v3579_v12 = vmul.f32 %v3317_v49, %v3317_v49  ;;  %v1733_v3 = vpop.f32.mrb[27].mxu0  ;;  %v3319_v4 = vsel %vm1312_vm6, %v4027_v33, %v3250_v24 }
 0x38d   : > { %v3534_v22 = vadd.f32 %v3533_v58, %v3532_v54  ;;  %v3318_v61 = vsel %vm1312_vm6, %v1733_v3, %v3248_v26  ;;  %v3871_v31 = vpack.c.bf16 %v3319_v4, %v3319_v4  ;;  %v3537_v57 = vsel %vm1378_vm8, %v3319_v4, 0.0  ;;  %v3252_v5 = vpop.permute.xlu0 %3251 }
 0x38e   : > { %3478 = vst.msk [vmem:[%s6026_s28 + $0x60] sm:$0xf] %vm3453_vm14, %v3869_v55  ;;  %v3634_v45 = vsel %vm1378_vm8, %v3579_v12, 0.0  ;;  %v3870_v23 = vpack.c.bf16 %v3318_v61, %v3318_v61  ;;  %v3535_v17 = vsel %vm1378_vm8, %v3318_v61, 0.0  ;;  %v3580_v18 = vmul.f32 %v3318_v61, %v3318_v61 }
 0x38f   : > { %v3635_v46 = vadd.f32 %v3634_v45, %v3633_v36  ;;  %v3536_v21 = vadd.f32 %v3535_v17, %v3534_v22  ;;  %3480 = vst.msk [vmem:[%s6026_s28 + $0x68] sm:$0xf] %vm3453_vm14, %v3871_v31  ;;  %v3581_v13 = vmul.f32 %v3319_v4, %v3319_v4  ;;  %v3320_v28 = vsel %vm1312_vm6, %v4028_v8, %v3252_v5 }
 0x390   : > { %3479 = vst.msk [vmem:[%s6026_s28 + $0x64] sm:$0xf] %vm3453_vm14, %v3870_v23  ;;  %v3636_v48 = vsel %vm1378_vm8, %v3580_v18, 0.0  ;;  %v3872_v63 = vpack.c.bf16 %v3320_v28, %v3320_v28  ;;  %v3539_v29 = vsel %vm1378_vm8, %v3320_v28, 0.0  ;;  %v3582_v11 = vmul.f32 %v3320_v28, %v3320_v28 }
 0x391   : > { %v3637_v0 = vadd.f32 %v3636_v48, %v3635_v46  ;;  %v3538_v37 = vadd.f32 %v3537_v57, %v3536_v21  ;;  %v3638_v62 = vsel %vm1378_vm8, %v3581_v13, 0.0 }
 0x392   : > { %3481 = vst.msk [vmem:[%s6026_s28 + $0x6c] sm:$0xf] %vm3453_vm14, %v3872_v63  ;;  %v3640_v41 = vsel %vm1378_vm8, %v3582_v11, 0.0 }
 0x393   : > { %v3639_v20 = vadd.f32 %v3638_v62, %v3637_v0  ;;  %v3540_v16 = vadd.f32 %v3539_v29, %v3538_v37 }
 0x395   : > { %v3641_v19 = vadd.f32 %v3640_v41, %v3639_v20 }
 0x396   : > { %v4031_v10 = vpop.f32.mrb[28].mxu0 }
 0x397   : > { %v1746_v50 = vpop.f32.mrb[29].mxu0 }
 0x398   : > { %v4032_v56 = vpop.f32.mrb[30].mxu0 }
 0x399   : > { %v1749_v30 = vpop.f32.mrb[31].mxu0 }
 0x3ab   : > { %v3254_v6 = vpop.permute.xlu1 %3253 }
 0x3ac   : > { %v3321_v15 = vsel %vm1312_vm6, %v1746_v50, %v3254_v6 }
 0x3ad   : > { %v3873_v60 = vpack.c.bf16 %v3321_v15, %v3321_v15  ;;  %v3541_v52 = vsel %vm1378_vm8, %v3321_v15, 0.0  ;;  %v3583_v44 = vmul.f32 %v3321_v15, %v3321_v15  ;;  %v3256_v51 = vpop.permute.xlu0 %3255 }
 0x3ae   : > { %v3542_v32 = vadd.f32 %v3541_v52, %v3540_v16  ;;  %v3322_v34 = vsel %vm1312_vm6, %v1749_v30, %v3256_v51 }
 0x3af   : > { %3482 = vst.msk [vmem:[%s6026_s28 + $0x70] sm:$0xf] %vm3453_vm14, %v3873_v60  ;;  %v3642_v42 = vsel %vm1378_vm8, %v3583_v44, 0.0  ;;  %v3874_v40 = vpack.c.bf16 %v3322_v34, %v3322_v34  ;;  %v3543_v27 = vsel %vm1378_vm8, %v3322_v34, 0.0  ;;  %v3584_v35 = vmul.f32 %v3322_v34, %v3322_v34  ;;  %v3258_v39 = vpop.permute.xlu1 %3257 }
 0x3b0   : > { %v3643_v38 = vadd.f32 %v3642_v42, %v3641_v19  ;;  %v3544_v53 = vadd.f32 %v3543_v27, %v3542_v32  ;;  %v3323_v2 = vsel %vm1312_vm6, %v4031_v10, %v3258_v39 }
 0x3b1   : > { %3483 = vst.msk [vmem:[%s6026_s28 + $0x74] sm:$0xf] %vm3453_vm14, %v3874_v40  ;;  %v3644_v47 = vsel %vm1378_vm8, %v3584_v35, 0.0  ;;  %v3875_v9 = vpack.c.bf16 %v3323_v2, %v3323_v2  ;;  %v3545_v59 = vsel %vm1378_vm8, %v3323_v2, 0.0  ;;  %v3585_v7 = vmul.f32 %v3323_v2, %v3323_v2  ;;  %v3260_v1 = vpop.permute.xlu0 %3259 }
 0x3b2   : > { %v3645_v14 = vadd.f32 %v3644_v47, %v3643_v38  ;;  %v3546_v54 = vadd.f32 %v3545_v59, %v3544_v53  ;;  %v3324_v43 = vsel %vm1312_vm6, %v4032_v56, %v3260_v1 }
 0x3b3   : > { %3484 = vst.msk [vmem:[%s6026_s28 + $0x78] sm:$0xf] %vm3453_vm14, %v3875_v9  ;;  %v3646_v33 = vsel %vm1378_vm8, %v3585_v7, 0.0  ;;  %v3876_v26 = vpack.c.bf16 %v3324_v43, %v3324_v43  ;;  %v3547_v25 = vsel %vm1378_vm8, %v3324_v43, 0.0  ;;  %v3586_v36 = vmul.f32 %v3324_v43, %v3324_v43 }
 0x3b4   : > { %v3647_v49 = vadd.f32 %v3646_v33, %v3645_v14  ;;  %v3548_v8 = vadd.f32 %v3547_v25, %v3546_v54 }
 0x3b5   : > { %3485 = vst.msk [vmem:[%s6026_s28 + $0x7c] sm:$0xf] %vm3453_vm14, %v3876_v26  ;;  %v3648_v24 = vsel %vm1378_vm8, %v3586_v36, 0.0 }
 0x3b6   : > { %v3549_v55 = vrot.slane %v3548_v8, 4  ;;  %v3649_v58 = vadd.f32 %v3648_v24, %v3647_v49 }
 0x3b8   : > { %v3550_v12 = vadd.f32 %v3549_v55, %v3548_v8  ;;  %v3650_v3 = vrot.slane %v3649_v58, 4 }
 0x3ba   : > { %v3551_v4 = vrot.slane %v3550_v12, 2  ;;  %v3651_v22 = vadd.f32 %v3650_v3, %v3649_v58 }
 0x3bc   : > { %v3552_v61 = vadd.f32 %v3551_v4, %v3550_v12  ;;  %v3652_v31 = vrot.slane %v3651_v22, 2 }
 0x3be   : > { %v3553_v57 = vrot.slane %v3552_v61, 1  ;;  %v3653_v5 = vadd.f32 %v3652_v31, %v3651_v22 }
 0x3c0   : > { %v3654_v45 = vrot.slane %v3653_v5, 1  ;;  %v3554_v23 = vadd.f32 %v3553_v57, %v3552_v61 }
 0x3c2   : > { %v3655_v17 = vadd.f32 %v3654_v45, %v3653_v5 }
 0x3c4   : > { %v3657_v18 = vsel %vm3656_vm15, %v3554_v23, %v3655_v17 }
 0x3c5   : > { %3659 = vst.msk [vmem:[%s309_s8] sm:$0x3] %vm3658_vm0, %v3657_v18 }
 0x3c6 PF: > { %s18_s24 = sadd.s32 1, %s4111_s24  }
 0x3c7   : > { %p15_p4 = scmp.ge.s32.totalorder %s18_s24, 4  }
 0x3c9   :  { %17 = sbr.rel (!%p15_p4) target bundleno = 1 (0x1), region = 89 }

// kernel: inception_forward.3
= control target key start
LH: loop header
LB: loop body
LE: loop exit
PB: predicated region body
PF: predicated region fallthrough
CT: control target
= control target key end

     0   :  { %s4905_s24 = smov 0   ;;  %s6631_s0 = inlined_call_operand.vmem [shape: bf16[2,18,18,4], index: 0, kind: input, shape index: {}]   ;;  %s6632_s1 = inlined_call_operand.vmem [shape: bf16[4,16], index: 1, kind: input, shape index: {}]   ;;  %s6633_s2 = inlined_call_operand.vmem [shape: bf16[4,8], index: 2, kind: input, shape index: {}]   ;;  %s6634_s3 = inlined_call_operand.vmem [shape: bf16[2,16,16,8], index: 3, kind: output, shape index: {0}]   ;;  %s6635_s4 = inlined_call_operand.vmem [shape: bf16[2,16,16,4], index: 4, kind: output, shape index: {1}]   ;;  %s6636_s5 = inlined_call_operand.vmem [shape: bf16[2,16,16,4], index: 5, kind: output, shape index: {2}]   ;;  %s6637_s6 = inlined_call_operand.vmem [shape: bf16[2,16,16,8], index: 6, kind: output, shape index: {3}]   ;;  %s6638_s7 = inlined_call_operand.vmem [shape: f32[2,2,24], index: 7, kind: output, shape index: {4}]  }
   0x1 LB: > { %s4317_s25 = sadd.s32 4294967295, %s4860_s24   ;;  %p4321_p0 = scmp.ge.s32.totalorder %s4860_s24, 1  ;;  %s4860_s24 = sphi %s4905_s24, %s18_s24  }
   0x2   : > { %p246_p1 = scmp.lt.s32.totalorder %s4860_s24, 3 }
   0x4   : > { %p247_p2 = pnand %p4321_p0, %p246_p1 }
   0x5   : > { %v763_v0 = vld [vmem:[%s6632_s1] sm:$0x3] (!%p247_p2)  ;;  %vm861_vm0 = vcmask (!%p247_p2), 1041408   ;;  %p297_p3 = scmp.lt.s32.totalorder (!%p247_p2), %s4317_s25, 1  ;;  %vm376_vm1 = vsmask.f32 (!%p247_p2), 3328 }
   0x6   : > { %250 = sbr.rel (%p247_p2) target bundleno = 719 (0x2cf), region = 32  ;;  %4840 = vmatprep.subr.msk.bf16.mxu0 (!%p247_p2), %vm861_vm0, %v763_v0  ;;  %v863_v1 = vsel (!%p247_p2), %vm861_vm0, %v763_v0, 0  ;;  %v2902_v2 = vld [vmem:[%s6633_s2] sm:$0x3] (!%p247_p2)  ;;  %vm377_vm2 = vsmask.f32 (!%p247_p2), 7440 }
   0x7   : > { %4773 = vmatpush3.bf16.msra.mxu0 (!%p247_p2), %v863_v1  ;;  %4841 = vmatprep.subr.msk.bf16.mxu1 (!%p247_p2), %vm861_vm0, %v2902_v2  ;;  %v3032_v3 = vsel (!%p247_p2), %vm861_vm0, %v2902_v2, 0  ;;  %vm1586_vm3 = vcmask (!%p247_p2), 1042432   ;;  %vm1587_vm4 = vcmask (!%p247_p2), 1046532   ;;  %vm812_vm5 = vcmask (!%p247_p2), 31744   ;;  %vm4942_vm7 = vmor (!%p247_p2), %vm376_vm1, %vm377_vm2  ;;  %s4862_s15 = smov (!%p247_p2), 116   ;;  %s4863_s16 = smov (!%p247_p2), 120  }
   0x8   : > { %4807 = vmatpush3.bf16.msra.mxu1 (!%p247_p2), %v3032_v3  ;;  %vm4933_vm6 = vmor (!%p247_p2), %vm1586_vm3, %vm1587_vm4  ;;  %vm3323_vm8 = vcmask (!%p247_p2), 60416   ;;  %vm3773_vm9 = vcmask (!%p247_p2), 130048   ;;  %vm3843_vm10 = vcmask (!%p247_p2), 64512   ;;  %vm3452_vm11 = vcmask (!%p247_p2), 27648   ;;  %s4864_s28 = smov (!%p247_p2), 16  }
   0x9   : > { %vm4128_vm12 = vcmask (!%p247_p2), 1040384   ;;  %vm4130_vm13 = vcmask (!%p247_p2), 189440  }
   0xd   : > { %s6644_s25 = smov (!%p297_p3, %s4317_s25), 1 }
   0xe   : > { %s4842_s30 = smul.u32 216, %s6644_s25  ;;  %s5765_s11 = sshll.u32 %s6644_s25, 7 }
   0xf   : > { %s5780_s14 = scalar_lea.vmem %s6634_s3, %s5765_s11  ;;  %s6010_s19 = scalar_lea.vmem %s6637_s6, %s5765_s11 }
  0x10   : > { %s4925_s10 = scalar_lea.vmem %s6631_s0, %s4842_s30  ;;  %s6396_s22 = scalar_lea.vmem %s6636_s5, %s5765_s11 }
  0x11   : > { %v4332_v4 = vld [vmem:[%s4925_s10 + $0xc] sm:$0xf]  ;;  %v4333_v5 = vld [vmem:[%s4925_s10 + $0x10] sm:$0xf]  ;;  %v4334_v6 = vld [vmem:[%s4925_s10 + $0x14] sm:$0x1]  ;;  %s6402_s27 = scalar_lea.vmem %s6635_s4, %s5765_s11 }
  0x12   : > { %v380_v7 = vshrl.u32 %v4332_v4, 16  ;;  %v383_v8 = vshll.u32 %v4332_v4, 16  ;;  %v389_v9 = vshll.u32 %v4333_v5, 16  ;;  %v393_v10 = vshrl.u32 %v4333_v5, 16  ;;  %v4460_v12 = vld [vmem:[%s4925_s10 + $0xc] sm:$0xe] }
  0x13   : > { %v399_v11 = vshll.u32 %v4334_v6, 16  ;;  %v1927_v13 = vrot.slane %v4333_v5, 5  ;;  %v4335_v19 = vld [vmem:[%s4925_s10 + $0x18] sm:$0xf]  ;;  %v4476_v21 = vrot.slane %v4460_v12, 9  ;;  %v1930_v23 = vrot.slane %v4334_v6, 5 }
  0x14   : > { %v382_v14 = vrot.slane %v380_v7, 4  ;;  %v385_v15 = vrot.slane %v383_v8, 5  ;;  %v391_v16 = vrot.slane %v389_v9, 5  ;;  %v395_v17 = vrot.slane %v393_v10, 4  ;;  %v4336_v24 = vld [vmem:[%s4925_s10 + $0x1c] sm:$0xf] }
  0x15   : > { %v401_v20 = vrot.slane %v399_v11, 5  ;;  %v1929_v22 = vrot.slane %v1927_v13, 4  ;;  %v4337_v27 = vld [vmem:[%s4925_s10 + $0x20] sm:$0x1]  ;;  %v404_v28 = vshrl.u32 %v4335_v19, 16  ;;  %v407_v29 = vshll.u32 %v4335_v19, 16 }
  0x16   : > { %v386_v25 = vor.u32 %v385_v15, %v382_v14  ;;  %v396_v26 = vor.u32 %v395_v17, %v391_v16  ;;  %v4428_v31 = vld [vmem:[%s4925_s10 + $0xc] sm:$0xf]  ;;  %v1928_v32 = vsel %vm4933_vm6, %v4476_v21, %v1927_v13  ;;  %v413_v34 = vshll.u32 %v4336_v24, 16  ;;  %v4461_v36 = vld [vmem:[%s4925_s10 + $0x18] sm:$0xe]  ;;  %s4331_s29 = sshll.u32 %s6644_s25, 1 }
  0x17   : > { %v1931_v33 = vsel %vm4933_vm6, %v1929_v22, %v1930_v23  ;;  %v417_v35 = vshrl.u32 %v4336_v24, 16  ;;  %v4429_v39 = vld [vmem:[%s4925_s10 + $0x10] sm:$0xf]  ;;  %v406_v40 = vrot.slane %v404_v28, 4  ;;  %v409_v41 = vrot.slane %v407_v29, 5  ;;  %s325_s9 = scalar_lea.vmem %s6638_s7, %s4331_s29 }
  0x18   : > { %v387_v37 = vrot.slane %v386_v25, 4  ;;  %v397_v38 = vrot.slane %v396_v26, 4  ;;  %v415_v42 = vrot.slane %v413_v34, 5  ;;  %v423_v44 = vshll.u32 %v4337_v27, 16  ;;  %v4338_v54 = vld [vmem:[%s4925_s10 + $0x24] sm:$0xf] }
  0x19   : > { %v419_v43 = vrot.slane %v417_v35, 4  ;;  %v4477_v45 = vrot.slane %v4461_v36, 9  ;;  %v410_v48 = vor.u32 %v409_v41, %v406_v40  ;;  %v1934_v49 = vrot.slane %v4336_v24, 5  ;;  %v4339_v55 = vld [vmem:[%s4925_s10 + $0x28] sm:$0xf] }
  0x1a   : > { %v392_v46 = vsel %vm4942_vm7, %v387_v37, %v391_v16  ;;  %v402_v47 = vsel %vm4942_vm7, %v397_v38, %v401_v20  ;;  %v425_v57 = vrot.slane %v423_v44, 5  ;;  %v4430_v58 = vld [vmem:[%s4925_s10 + $0x18] sm:$0xf]  ;;  %v4431_v0 = vld [vmem:[%s4925_s10 + $0x1c] sm:$0xf]  ;;  %v1937_v1 = vrot.slane %v4337_v27, 5 }
  0x1b   : > { %v4380_v50 = vcombine.low %v392_v46, %v402_v47  ;;  %v1829_v51 = vmax.bf16 %v4428_v31, %v392_v46  ;;  %v1830_v52 = vmax.bf16 %v4429_v39, %v402_v47  ;;  %v420_v53 = vor.u32 %v419_v43, %v415_v42  ;;  %v4340_v3 = vld [vmem:[%s4925_s10 + $0x2c] sm:$0x1]  ;;  %v4462_v11 = vld [vmem:[%s4925_s10 + $0x24] sm:$0xe]  ;;  %v4341_v16 = vld [vmem:[%s4925_s10 + $0x30] sm:$0xf] }
  0x1c   : > { %v411_v56 = vrot.slane %v410_v48, 4  ;;  %v1935_v59 = vsel %vm4933_vm6, %v4477_v45, %v1934_v49  ;;  %v1936_v60 = vrot.slane %v1934_v49, 4  ;;  %v428_v4 = vshrl.u32 %v4338_v54, 16  ;;  %v4342_v26 = vld [vmem:[%s4925_s10 + $0x34] sm:$0xf] }
  0x1d   : > { %4774 = vmatprep.mubr.msk.bf16.mxu0 %vm812_vm5, %v4380_v50  ;;  %v4963_v61 = vmax.bf16 %v1928_v32, %v1829_v51  ;;  %v4965_v62 = vmax.bf16 %v1931_v33, %v1830_v52  ;;  %v421_v63 = vrot.slane %v420_v53, 4  ;;  %v431_v5 = vshll.u32 %v4338_v54, 16  ;;  %v4343_v31 = vld [vmem:[%s4925_s10 + $0x38] sm:$0x1]  ;;  %v4432_v34 = vld [vmem:[%s4925_s10 + $0x24] sm:$0xf] }
  0x1e   : > { %v416_v2 = vsel %vm4942_vm7, %v411_v56, %v415_v42  ;;  %v437_v6 = vshll.u32 %v4339_v55, 16  ;;  %v1938_v9 = vsel %vm4933_vm6, %v1936_v60, %v1937_v1  ;;  %v441_v10 = vshrl.u32 %v4339_v55, 16  ;;  %v4433_v39 = vld [vmem:[%s4925_s10 + $0x28] sm:$0xf]  ;;  %v4463_v47 = vld [vmem:[%s4925_s10 + $0x30] sm:$0xe] }
  0x1f   : > { %v426_v7 = vsel %vm4942_vm7, %v421_v63, %v425_v57  ;;  %v1831_v8 = vmax.bf16 %v4430_v58, %v416_v2  ;;  %v430_v14 = vrot.slane %v428_v4, 4  ;;  %v433_v15 = vrot.slane %v431_v5, 5  ;;  %v4344_v52 = vld [vmem:[%s4925_s10 + $0x3c] sm:$0xf] }
  0x20   : > { %v4381_v12 = vcombine.low %v416_v2, %v426_v7  ;;  %v1832_v13 = vmax.bf16 %v4431_v0, %v426_v7  ;;  %v439_v19 = vrot.slane %v437_v6, 5  ;;  %v443_v20 = vrot.slane %v441_v10, 4  ;;  %v4345_v0 = vld [vmem:[%s4925_s10 + $0x40] sm:$0xf] }
  0x21   : > { %v4977_v17 = vmax.bf16 %v1935_v59, %v1831_v8  ;;  %v447_v21 = vshll.u32 %v4340_v3, 16  ;;  %v434_v23 = vor.u32 %v433_v15, %v430_v14  ;;  %v4478_v24 = vrot.slane %v4462_v11, 9  ;;  %v4434_v59 = vld [vmem:[%s4925_s10 + $0x30] sm:$0xf]  ;;  %v4464_v15 = vld [vmem:[%s4925_s10 + $0x3c] sm:$0xe] }
  0x22   : > { %4775 = vmatmul.mubr.msk.bf16.vlgmr.msra.gmra.mrb[0].mxu0 %vm812_vm5, %v4381_v12  ;;  %v4980_v22 = vmax.bf16 %v1938_v9, %v1832_v13  ;;  %v1941_v25 = vrot.slane %v4339_v55, 5  ;;  %v444_v27 = vor.u32 %v443_v20, %v439_v19  ;;  %v1944_v29 = vrot.slane %v4340_v3, 5  ;;  %v4435_v3 = vld [vmem:[%s4925_s10 + $0x34] sm:$0xf]  ;;  %v4346_v9 = vld [vmem:[%s4925_s10 + $0x44] sm:$0x1] }
  0x23   : > { %v449_v28 = vrot.slane %v447_v21, 5  ;;  %v452_v32 = vshrl.u32 %v4341_v16, 16  ;;  %v435_v33 = vrot.slane %v434_v23, 4  ;;  %v455_v37 = vshll.u32 %v4341_v16, 16 }
  0x24   : > { %v1942_v35 = vsel %vm4933_vm6, %v4478_v24, %v1941_v25  ;;  %v1943_v36 = vrot.slane %v1941_v25, 4  ;;  %v445_v38 = vrot.slane %v444_v27, 4  ;;  %v461_v41 = vshll.u32 %v4342_v26, 16  ;;  %v4347_v27 = vld [vmem:[%s4925_s10 + $0x48] sm:$0xf] }
  0x25   : > { %v454_v40 = vrot.slane %v452_v32, 4  ;;  %v465_v42 = vshrl.u32 %v4342_v26, 16  ;;  %v440_v43 = vsel %vm4942_vm7, %v435_v33, %v439_v19  ;;  %v457_v45 = vrot.slane %v455_v37, 5  ;;  %v4348_v33 = vld [vmem:[%s4925_s10 + $0x4c] sm:$0xf] }
  0x26   : > { %v1945_v44 = vsel %vm4933_vm6, %v1943_v36, %v1944_v29  ;;  %v471_v46 = vshll.u32 %v4343_v31, 16  ;;  %v450_v48 = vsel %vm4942_vm7, %v445_v38, %v449_v28  ;;  %v1833_v49 = vmax.bf16 %v4432_v34, %v440_v43  ;;  %v4436_v36 = vld [vmem:[%s4925_s10 + $0x3c] sm:$0xf] }
  0x27   : > { %v463_v50 = vrot.slane %v461_v41, 5  ;;  %v467_v51 = vrot.slane %v465_v42, 4  ;;  %v4382_v53 = vcombine.low %v440_v43, %v450_v48  ;;  %v1834_v54 = vmax.bf16 %v4433_v39, %v450_v48  ;;  %v4437_v41 = vld [vmem:[%s4925_s10 + $0x40] sm:$0xf] }
  0x28   : > { %v458_v55 = vor.u32 %v457_v45, %v454_v40  ;;  %v473_v56 = vrot.slane %v471_v46, 5  ;;  %v4996_v57 = vmax.bf16 %v1942_v35, %v1833_v49  ;;  %v4479_v60 = vrot.slane %v4463_v47, 9  ;;  %v4349_v47 = vld [vmem:[%s4925_s10 + $0x50] sm:$0x1] }
  0x29   : > { %v468_v58 = vor.u32 %v467_v51, %v463_v50  ;;  %v1948_v63 = vrot.slane %v4342_v26, 5  ;;  %4778 = vmatprep.mubr.msk.bf16.mxu0 %vm812_vm5, %v4382_v53  ;;  %v5001_v1 = vmax.bf16 %v1945_v44, %v1834_v54  ;;  %v1951_v4 = vrot.slane %v4343_v31, 5  ;;  %v4465_v53 = vld [vmem:[%s4925_s10 + $0x48] sm:$0xe] }
  0x2a   : > { %v459_v2 = vrot.slane %v458_v55, 4  ;;  %v476_v5 = vshrl.u32 %v4344_v52, 16  ;;  %v479_v10 = vshll.u32 %v4344_v52, 16  ;;  %v485_v13 = vshll.u32 %v4345_v0, 16 }
  0x2b   : > { %v469_v6 = vrot.slane %v468_v58, 4  ;;  %v1949_v7 = vsel %vm4933_vm6, %v4479_v60, %v1948_v63  ;;  %v1950_v8 = vrot.slane %v1948_v63, 4  ;;  %v489_v14 = vshrl.u32 %v4345_v0, 16 }
  0x2c   : > { %v464_v11 = vsel %vm4942_vm7, %v459_v2, %v463_v50  ;;  %v478_v12 = vrot.slane %v476_v5, 4  ;;  %v481_v21 = vrot.slane %v479_v10, 5  ;;  %v487_v25 = vrot.slane %v485_v13, 5  ;;  %v4350_v2 = vld [vmem:[%s4925_s10 + $0x54] sm:$0xf] }
  0x2d   : > { %v474_v16 = vsel %vm4942_vm7, %v469_v6, %v473_v56  ;;  %v1835_v19 = vmax.bf16 %v4434_v59, %v464_v11  ;;  %v1952_v20 = vsel %vm4933_vm6, %v1950_v8, %v1951_v4  ;;  %v491_v26 = vrot.slane %v489_v14, 4 }
  0x2e   : > { %v4383_v23 = vcombine.low %v464_v11, %v474_v16  ;;  %v1836_v24 = vmax.bf16 %v4435_v3, %v474_v16  ;;  %v482_v29 = vor.u32 %v481_v21, %v478_v12  ;;  %v495_v31 = vshll.u32 %v4346_v9, 16  ;;  %v4438_v11 = vld [vmem:[%s4925_s10 + $0x48] sm:$0xf]  ;;  %v4352_v16 = vld [vmem:[%s4925_s10 + $0x5c] sm:$0x1] }
  0x2f   : > { %v5015_v28 = vmax.bf16 %v1949_v7, %v1835_v19  ;;  %v4480_v32 = vrot.slane %v4464_v15, 9  ;;  %v492_v35 = vor.u32 %v491_v26, %v487_v25  ;;  %v1955_v37 = vrot.slane %v4345_v0, 5  ;;  %v4351_v7 = vld [vmem:[%s4925_s10 + $0x58] sm:$0xf] }
  0x30   : > { %4779 = vmatmul.mubr.msk.bf16.gmra.mrb[4].mxu0 %vm812_vm5, %v4383_v23  ;;  %v5019_v34 = vmax.bf16 %v1952_v20, %v1836_v24  ;;  %v1958_v38 = vrot.slane %v4346_v9, 5  ;;  %v483_v39 = vrot.slane %v482_v29, 4  ;;  %v497_v40 = vrot.slane %v495_v31, 5  ;;  %v4439_v23 = vld [vmem:[%s4925_s10 + $0x4c] sm:$0xf] }
  0x31   : > { %v500_v42 = vshrl.u32 %v4347_v27, 16  ;;  %v503_v43 = vshll.u32 %v4347_v27, 16  ;;  %v493_v44 = vrot.slane %v492_v35, 4  ;;  %v1956_v45 = vsel %vm4933_vm6, %v4480_v32, %v1955_v37  ;;  %v4466_v32 = vld [vmem:[%s4925_s10 + $0x54] sm:$0xe] }
  0x32   : > { %v1957_v46 = vrot.slane %v1955_v37, 4  ;;  %v509_v48 = vshll.u32 %v4348_v33, 16  ;;  %v488_v49 = vsel %vm4942_vm7, %v483_v39, %v487_v25  ;;  %v513_v52 = vshrl.u32 %v4348_v33, 16 }
  0x33   : > { %v502_v50 = vrot.slane %v500_v42, 4  ;;  %v505_v51 = vrot.slane %v503_v43, 5  ;;  %v498_v54 = vsel %vm4942_vm7, %v493_v44, %v497_v40  ;;  %v1837_v55 = vmax.bf16 %v4436_v36, %v488_v49 }
  0x34   : > { %v1959_v56 = vsel %vm4933_vm6, %v1957_v46, %v1958_v38  ;;  %v511_v58 = vrot.slane %v509_v48, 5  ;;  %v4384_v59 = vcombine.low %v488_v49, %v498_v54  ;;  %v1838_v60 = vmax.bf16 %v4437_v41, %v498_v54  ;;  %v4353_v38 = vld [vmem:[%s4925_s10 + $0x60] sm:$0xf]  ;;  %v4440_v54 = vld [vmem:[%s4925_s10 + $0x54] sm:$0xf] }
  0x35   : > { %v506_v63 = vor.u32 %v505_v51, %v502_v50  ;;  %v515_v0 = vrot.slane %v513_v52, 4  ;;  %v5034_v3 = vmax.bf16 %v1956_v45, %v1837_v55  ;;  %v519_v4 = vshll.u32 %v4349_v47, 16  ;;  %v4355_v51 = vld [vmem:[%s4925_s10 + $0x68] sm:$0x1] }
  0x36   : > { %v4481_v5 = vrot.slane %v4465_v53, 9  ;;  %v1962_v6 = vrot.slane %v4348_v33, 5  ;;  %4782 = vmatprep.mubr.msk.bf16.mxu0 %vm812_vm5, %v4384_v59  ;;  %v5038_v8 = vmax.bf16 %v1959_v56, %v1838_v60  ;;  %v1965_v12 = vrot.slane %v4349_v47, 5  ;;  %v4354_v47 = vld [vmem:[%s4925_s10 + $0x64] sm:$0xf] }
  0x37   : > { %v507_v9 = vrot.slane %v506_v63, 4  ;;  %v516_v10 = vor.u32 %v515_v0, %v511_v58  ;;  %v521_v13 = vrot.slane %v519_v4, 5  ;;  %v524_v19 = vshrl.u32 %v4350_v2, 16  ;;  %v4441_v60 = vld [vmem:[%s4925_s10 + $0x58] sm:$0xf] }
  0x38   : > { %v1963_v14 = vsel %vm4933_vm6, %v4481_v5, %v1962_v6  ;;  %v1964_v15 = vrot.slane %v1962_v6, 4  ;;  %v527_v24 = vshll.u32 %v4350_v2, 16  ;;  %v533_v25 = vshll.u32 %v4351_v7, 16 }
  0x39   : > { %v512_v20 = vsel %vm4942_vm7, %v507_v9, %v511_v58  ;;  %v517_v21 = vrot.slane %v516_v10, 4  ;;  %v526_v29 = vrot.slane %v524_v19, 4  ;;  %v537_v31 = vshrl.u32 %v4351_v7, 16  ;;  %v4467_v9 = vld [vmem:[%s4925_s10 + $0x60] sm:$0xe] }
  0x3a   : > { %v1839_v26 = vmax.bf16 %v4438_v11, %v512_v20  ;;  %v1966_v27 = vsel %vm4933_vm6, %v1964_v15, %v1965_v12  ;;  %v529_v35 = vrot.slane %v527_v24, 5  ;;  %v535_v36 = vrot.slane %v533_v25, 5  ;;  %v4442_v24 = vld [vmem:[%s4925_s10 + $0x60] sm:$0xf] }
  0x3b   : > { %v522_v33 = vsel %vm4942_vm7, %v517_v21, %v521_v13  ;;  %v543_v37 = vshll.u32 %v4352_v16, 16  ;;  %v539_v42 = vrot.slane %v537_v31, 4  ;;  %v4482_v45 = vrot.slane %v4466_v32, 9  ;;  %v4443_v32 = vld [vmem:[%s4925_s10 + $0x64] sm:$0xf] }
  0x3c   : > { %v4385_v39 = vcombine.low %v512_v20, %v522_v33  ;;  %v1840_v40 = vmax.bf16 %v4439_v23, %v522_v33  ;;  %v5053_v41 = vmax.bf16 %v1963_v14, %v1839_v26  ;;  %v530_v43 = vor.u32 %v529_v35, %v526_v29  ;;  %v4356_v14 = vld [vmem:[%s4925_s10 + $0x6c] sm:$0xf] }
  0x3d   : > { %v545_v44 = vrot.slane %v543_v37, 5  ;;  %v1969_v46 = vrot.slane %v4351_v7, 5  ;;  %v540_v49 = vor.u32 %v539_v42, %v535_v36  ;;  %v1972_v50 = vrot.slane %v4352_v16, 5 }
  0x3e   : > { %4783 = vmatmul.mubr.msk.bf16.gmra.mrb[8].mxu0 %vm812_vm5, %v4385_v39  ;;  %v5057_v48 = vmax.bf16 %v1966_v27, %v1840_v40  ;;  %v548_v52 = vshrl.u32 %v4353_v38, 16  ;;  %v531_v53 = vrot.slane %v530_v43, 4  ;;  %v551_v58 = vshll.u32 %v4353_v38, 16  ;;  %v4357_v27 = vld [vmem:[%s4925_s10 + $0x70] sm:$0xf] }
  0x3f   : > { %v1970_v55 = vsel %vm4933_vm6, %v4482_v45, %v1969_v46  ;;  %v1971_v56 = vrot.slane %v1969_v46, 4  ;;  %v541_v59 = vrot.slane %v540_v49, 4  ;;  %v557_v0 = vshll.u32 %v4354_v47, 16  ;;  %v4358_v39 = vld [vmem:[%s4925_s10 + $0x74] sm:$0x1] }
  0x40   : > { %v550_v63 = vrot.slane %v548_v52, 4  ;;  %v561_v2 = vshrl.u32 %v4354_v47, 16  ;;  %v536_v4 = vsel %vm4942_vm7, %v531_v53, %v535_v36  ;;  %v553_v6 = vrot.slane %v551_v58, 5  ;;  %v4468_v46 = vld [vmem:[%s4925_s10 + $0x6c] sm:$0xe] }
  0x41   : > { %v1973_v5 = vsel %vm4933_vm6, %v1971_v56, %v1972_v50  ;;  %v567_v7 = vshll.u32 %v4355_v51, 16  ;;  %v546_v10 = vsel %vm4942_vm7, %v541_v59, %v545_v44  ;;  %v1841_v11 = vmax.bf16 %v4440_v54, %v536_v4  ;;  %v4359_v56 = vld [vmem:[%s4925_s10 + $0x78] sm:$0xf] }
  0x42   : > { %v559_v12 = vrot.slane %v557_v0, 5  ;;  %v563_v13 = vrot.slane %v561_v2, 4  ;;  %v4386_v15 = vcombine.low %v536_v4, %v546_v10  ;;  %v1842_v16 = vmax.bf16 %v4441_v60, %v546_v10  ;;  %v4360_v0 = vld [vmem:[%s4925_s10 + $0x7c] sm:$0xf] }
  0x43   : > { %v554_v19 = vor.u32 %v553_v6, %v550_v63  ;;  %v569_v20 = vrot.slane %v567_v7, 5  ;;  %v5072_v21 = vmax.bf16 %v1970_v55, %v1841_v11  ;;  %v4483_v25 = vrot.slane %v4467_v9, 9  ;;  %v4445_v11 = vld [vmem:[%s4925_s10 + $0x70] sm:$0xf] }
  0x44   : > { %v564_v23 = vor.u32 %v563_v13, %v559_v12  ;;  %v1976_v26 = vrot.slane %v4354_v47, 5  ;;  %4786 = vmatprep.mubr.msk.bf16.mxu0 %vm812_vm5, %v4386_v15  ;;  %v5077_v29 = vmax.bf16 %v1973_v5, %v1842_v16  ;;  %v1979_v33 = vrot.slane %v4355_v51, 5  ;;  %v4444_v5 = vld [vmem:[%s4925_s10 + $0x6c] sm:$0xf] }
  0x45   : > { %v555_v31 = vrot.slane %v554_v19, 4  ;;  %v572_v35 = vshrl.u32 %v4356_v14, 16  ;;  %v575_v40 = vshll.u32 %v4356_v14, 16  ;;  %v581_v44 = vshll.u32 %v4357_v27, 16  ;;  %v4361_v19 = vld [vmem:[%s4925_s10 + $0x80] sm:$0x1] }
  0x46   : > { %v565_v36 = vrot.slane %v564_v23, 4  ;;  %v1977_v37 = vsel %vm4933_vm6, %v4483_v25, %v1976_v26  ;;  %v1978_v38 = vrot.slane %v1976_v26, 4  ;;  %v585_v45 = vshrl.u32 %v4357_v27, 16 }
  0x47   : > { %v560_v42 = vsel %vm4942_vm7, %v555_v31, %v559_v12  ;;  %v574_v43 = vrot.slane %v572_v35, 4  ;;  %v577_v51 = vrot.slane %v575_v40, 5  ;;  %v583_v54 = vrot.slane %v581_v44, 5  ;;  %v1026_v40 = vld [vmem:[%s4925_s10] sm:$0xf] }
  0x48   : > { %v570_v47 = vsel %vm4942_vm7, %v565_v36, %v569_v20  ;;  %v1843_v49 = vmax.bf16 %v4442_v24, %v560_v42  ;;  %v1980_v50 = vsel %vm4933_vm6, %v1978_v38, %v1979_v33  ;;  %v587_v55 = vrot.slane %v585_v45, 4 }
  0x49   : > { %v4387_v52 = vcombine.low %v560_v42, %v570_v47  ;;  %v1844_v53 = vmax.bf16 %v4443_v32, %v570_v47  ;;  %v578_v59 = vor.u32 %v577_v51, %v574_v43  ;;  %v591_v60 = vshll.u32 %v4358_v39, 16  ;;  %v4446_v51 = vld [vmem:[%s4925_s10 + $0x78] sm:$0xf] }
  0x4a   : > { %v5091_v58 = vmax.bf16 %v1977_v37, %v1843_v49  ;;  %v4484_v63 = vrot.slane %v4468_v46, 9  ;;  %v588_v4 = vor.u32 %v587_v55, %v583_v54  ;;  %v1983_v6 = vrot.slane %v4357_v27, 5  ;;  %v4469_v27 = vld [vmem:[%s4925_s10 + $0x78] sm:$0xe]  ;;  %v1027_v46 = vld [vmem:[%s4925_s10 + $0x4] sm:$0xf] }
  0x4b   : > { %4787 = vmatmul.mubr.msk.bf16.gmra.mrb[12].mxu0 %vm812_vm5, %v4387_v52  ;;  %v5095_v2 = vmax.bf16 %v1980_v50, %v1844_v53  ;;  %v1986_v7 = vrot.slane %v4358_v39, 5  ;;  %v579_v9 = vrot.slane %v578_v59, 4  ;;  %v593_v10 = vrot.slane %v591_v60, 5 }
  0x4c   : > { %v596_v12 = vshrl.u32 %v4359_v56, 16  ;;  %v599_v13 = vshll.u32 %v4359_v56, 16  ;;  %v589_v14 = vrot.slane %v588_v4, 4  ;;  %v1984_v15 = vsel %vm4933_vm6, %v4484_v63, %v1983_v6  ;;  %v1028_v56 = vld [vmem:[%s4925_s10 + $0x8] sm:$0x1] }
  0x4d   : > { %v1985_v16 = vrot.slane %v1983_v6, 4  ;;  %v605_v20 = vshll.u32 %v4360_v0, 16  ;;  %v584_v23 = vsel %vm4942_vm7, %v579_v9, %v583_v54  ;;  %v609_v26 = vshrl.u32 %v4360_v0, 16 }
  0x4e   : > { %v598_v24 = vrot.slane %v596_v12, 4  ;;  %v601_v25 = vrot.slane %v599_v13, 5  ;;  %v594_v31 = vsel %vm4942_vm7, %v589_v14, %v593_v10  ;;  %v1845_v32 = vmax.bf16 %v4444_v5, %v584_v23 }
  0x4f   : > { %v1987_v33 = vsel %vm4933_vm6, %v1985_v16, %v1986_v7  ;;  %v607_v35 = vrot.slane %v605_v20, 5  ;;  %v4388_v36 = vcombine.low %v584_v23, %v594_v31  ;;  %v1846_v37 = vmax.bf16 %v4445_v11, %v594_v31  ;;  %v1522_v11 = vld [vmem:[%s4925_s10] sm:$0xe]  ;;  %v4492_v16 = vld [vmem:[%s4925_s10 + $0x18] sm:$0xf] }
  0x50   : > { %v602_v38 = vor.u32 %v601_v25, %v598_v24  ;;  %v611_v39 = vrot.slane %v609_v26, 4  ;;  %v5110_v42 = vmax.bf16 %v1984_v15, %v1845_v32  ;;  %v615_v43 = vshll.u32 %v4361_v19, 16  ;;  %v4493_v32 = vld [vmem:[%s4925_s10 + $0x1c] sm:$0xf] }
  0x51   : > { %v4485_v44 = vrot.slane %v4469_v27, 9  ;;  %v1990_v45 = vrot.slane %v4360_v0, 5  ;;  %4790 = vmatprep.mubr.msk.bf16.mxu0 %vm812_vm5, %v4388_v36  ;;  %v5114_v47 = vmax.bf16 %v1987_v33, %v1846_v37  ;;  %v1993_v52 = vrot.slane %v4361_v19, 5  ;;  %v4447_v0 = vld [vmem:[%s4925_s10 + $0x7c] sm:$0xf] }
  0x52   : > { %v603_v49 = vrot.slane %v602_v38, 4  ;;  %v612_v50 = vor.u32 %v611_v39, %v607_v35  ;;  %v617_v53 = vrot.slane %v615_v43, 5  ;;  %v1075_v59 = vshrl.u32 %v1026_v40, 16  ;;  %v4494_v37 = vld [vmem:[%s4925_s10 + $0x20] sm:$0x1] }
  0x53   : > { %v1991_v54 = vsel %vm4933_vm6, %v4485_v44, %v1990_v45  ;;  %v1992_v55 = vrot.slane %v1990_v45, 4  ;;  %v1078_v4 = vshll.u32 %v1026_v40, 16  ;;  %v1084_v5 = vshll.u32 %v1027_v46, 16 }
  0x54   : > { %v608_v60 = vsel %vm4942_vm7, %v603_v49, %v607_v35  ;;  %v613_v63 = vrot.slane %v612_v50, 4  ;;  %v1077_v9 = vrot.slane %v1075_v59, 4  ;;  %v1088_v10 = vshrl.u32 %v1027_v46, 16 }
  0x55   : > { %v1847_v6 = vmax.bf16 %v4446_v51, %v608_v60  ;;  %v1994_v7 = vsel %vm4933_vm6, %v1992_v55, %v1993_v52  ;;  %v1080_v13 = vrot.slane %v1078_v4, 5  ;;  %v1086_v14 = vrot.slane %v1084_v5, 5  ;;  %v1029_v5 = vld [vmem:[%s4925_s10 + $0xc] sm:$0xf] }
  0x56   : > { %v618_v12 = vsel %vm4942_vm7, %v613_v63, %v617_v53  ;;  %v1094_v15 = vshll.u32 %v1028_v56, 16  ;;  %v1090_v24 = vrot.slane %v1088_v10, 4  ;;  %v4412_v27 = vrot.slane %v1522_v11, 9  ;;  %v4540_v53 = vld [vmem:[%s4925_s10 + $0x18] sm:$0xe] }
  0x57   : > { %v4389_v19 = vcombine.low %v608_v60, %v618_v12  ;;  %v1848_v20 = vmax.bf16 %v4447_v0, %v618_v12  ;;  %v5129_v23 = vmax.bf16 %v1991_v54, %v1847_v6  ;;  %v1081_v25 = vor.u32 %v1080_v13, %v1077_v9 }
  0x58   : > { %v1096_v26 = vrot.slane %v1094_v15, 5  ;;  %v1591_v31 = vrot.slane %v1027_v46, 5  ;;  %v1091_v35 = vor.u32 %v1090_v24, %v1086_v14  ;;  %v1594_v36 = vrot.slane %v1028_v56, 5 }
  0x59   : > { %4791 = vmatmul.mubr.msk.bf16.gmra.mrb[16].mxu0 %vm812_vm5, %v4389_v19  ;;  %v5133_v33 = vmax.bf16 %v1994_v7, %v1848_v20  ;;  %v2151_v38 = vshrl.u32 %v4492_v16, 16  ;;  %v1082_v39 = vrot.slane %v1081_v25, 4  ;;  %v2154_v45 = vshll.u32 %v4492_v16, 16  ;;  %v1030_v20 = vld [vmem:[%s4925_s10 + $0x10] sm:$0xf] }
  0x5a   : > { %v1592_v43 = vsel %vm4933_vm6, %v4412_v27, %v1591_v31  ;;  %v1593_v44 = vrot.slane %v1591_v31, 4  ;;  %v1092_v49 = vrot.slane %v1091_v35, 4  ;;  %v2160_v51 = vshll.u32 %v4493_v32, 16  ;;  %v1031_v31 = vld [vmem:[%s4925_s10 + $0x14] sm:$0x1] }
  0x5b   : > { %v2153_v50 = vrot.slane %v2151_v38, 4  ;;  %v2164_v52 = vshrl.u32 %v4493_v32, 16  ;;  %v1087_v54 = vsel %vm4942_vm7, %v1082_v39, %v1086_v14  ;;  %v2156_v56 = vrot.slane %v2154_v45, 5  ;;  %v1523_v39 = vld [vmem:[%s4925_s10 + $0xc] sm:$0xe] }
  0x5c   : > { %v1595_v55 = vsel %vm4933_vm6, %v1593_v44, %v1594_v36  ;;  %v2170_v59 = vshll.u32 %v4494_v37, 16  ;;  %v1097_v60 = vsel %vm4942_vm7, %v1092_v49, %v1096_v26  ;;  %v1490_v63 = vmax.bf16 %v1087_v54, %v1026_v40 }
  0x5d   : > { %v2162_v0 = vrot.slane %v2160_v51, 5  ;;  %v2166_v4 = vrot.slane %v2164_v52, 4  ;;  %v1491_v6 = vmax.bf16 %v1097_v60, %v1027_v46  ;;  %v2157_v7 = vor.u32 %v2156_v56, %v2153_v50  ;;  %v4495_v56 = vld [vmem:[%s4925_s10 + $0x24] sm:$0xf] }
  0x5e   : > { %v2172_v9 = vrot.slane %v2170_v59, 5  ;;  %v4556_v10 = vrot.slane %v4540_v53, 9  ;;  %v1733_v11 = vmax.bf16 %v1592_v43, %v1490_v63  ;;  %v2664_v13 = vrot.slane %v4493_v32, 5 }
  0x5f   : > { %v2167_v12 = vor.u32 %v2166_v4, %v2162_v0  ;;  %v2667_v14 = vrot.slane %v4494_v37, 5  ;;  %v1734_v15 = vmax.bf16 %v1595_v55, %v1491_v6  ;;  %v2158_v19 = vrot.slane %v2157_v7, 4 }
  0x60   : > { %v1099_v24 = vshrl.u32 %v1029_v5, 16  ;;  %v1102_v25 = vshll.u32 %v1029_v5, 16  ;;  %v2665_v40 = vsel %vm4933_vm6, %v4556_v10, %v2664_v13  ;;  %v2666_v27 = vrot.slane %v2664_v13, 4 }
  0x61   : > { %v2168_v26 = vrot.slane %v2167_v12, 4  ;;  %v2838_v46 = vmax.bf16 %v4963_v61, %v1733_v11  ;;  %v2163_v35 = vsel %vm4942_vm7, %v2158_v19, %v2162_v0  ;;  %v2839_v36 = vmax.bf16 %v4965_v62, %v1734_v15  ;;  %v4496_v0 = vld [vmem:[%s4925_s10 + $0x28] sm:$0xf]  ;;  %v4497_v12 = vld [vmem:[%s4925_s10 + $0x2c] sm:$0x1] }
  0x62   : > { %v1101_v37 = vrot.slane %v1099_v24, 4  ;;  %v1104_v38 = vrot.slane %v1102_v25, 5  ;;  %v2566_v44 = vmax.bf16 %v4492_v16, %v2163_v35  ;;  %v2668_v45 = vsel %vm4933_vm6, %v2666_v27, %v2667_v14  ;;  %v4541_v25 = vld [vmem:[%s4925_s10 + $0x24] sm:$0xe] }
  0x63   : > { %v2173_v43 = vsel %vm4942_vm7, %v2168_v26, %v2172_v9  ;;  %v1108_v49 = vshll.u32 %v1030_v20, 16  ;;  %v1112_v51 = vshrl.u32 %v1030_v20, 16  ;;  %v1118_v52 = vshll.u32 %v1031_v31, 16 }
  0x64   : > { %v2567_v61 = vmax.bf16 %v4493_v32, %v2173_v43  ;;  %v1105_v50 = vor.u32 %v1104_v38, %v1101_v37  ;;  %v2806_v53 = vmax.bf16 %v2665_v40, %v2566_v44  ;;  %v4413_v62 = vrot.slane %v1523_v39, 9  ;;  %v4362_v44 = vld [vmem:[%s4925_s10 + $0x84] sm:$0xf] }
  0x65   : > { %v1110_v54 = vrot.slane %v1108_v49, 5  ;;  %v1598_v55 = vrot.slane %v1030_v20, 5  ;;  %v1114_v63 = vrot.slane %v1112_v51, 4  ;;  %v1120_v16 = vrot.slane %v1118_v52, 5  ;;  %v4363_v51 = vld [vmem:[%s4925_s10 + $0x88] sm:$0xf] }
  0x66   : > { %v2807_v59 = vmax.bf16 %v2668_v45, %v2567_v61  ;;  %v1106_v60 = vrot.slane %v1105_v50, 4  ;;  %v2870_v4 = vmax.bf16 %v2838_v46, %v2806_v53  ;;  %v1601_v7 = vrot.slane %v1031_v31, 5 }
  0x67   : > { %v1599_v6 = vsel %vm4933_vm6, %v4413_v62, %v1598_v55  ;;  %v1600_v32 = vrot.slane %v1598_v55, 4  ;;  %v1115_v11 = vor.u32 %v1114_v63, %v1110_v54  ;;  %v2175_v13 = vshrl.u32 %v4495_v56, 16 }
  0x68   : > { %v2871_v9 = vmax.bf16 %v2839_v36, %v2807_v59  ;;  %v1111_v10 = vsel %vm4942_vm7, %v1106_v60, %v1110_v54  ;;  %v2178_v19 = vshll.u32 %v4495_v56, 16  ;;  %v2184_v24 = vshll.u32 %v4496_v0, 16  ;;  %v4364_v60 = vld [vmem:[%s4925_s10 + $0x8c] sm:$0x1] }
  0x69   : > { %v1492_v14 = vmax.bf16 %v1111_v10, %v1029_v5  ;;  %v1602_v15 = vsel %vm4933_vm6, %v1600_v32, %v1601_v7  ;;  %v1116_v40 = vrot.slane %v1115_v11, 4  ;;  %v2177_v27 = vrot.slane %v2175_v13, 4  ;;  %v4470_v7 = vld [vmem:[%s4925_s10 + $0x84] sm:$0xe] }
  0x6a   : > { %v4572_v26 = vcombine.low %v2870_v4, %v2871_v9  ;;  %v2188_v46 = vshrl.u32 %v4496_v0, 16  ;;  %v2180_v35 = vrot.slane %v2178_v19, 5  ;;  %v2186_v36 = vrot.slane %v2184_v24, 5  ;;  %v4365_v19 = vld [vmem:[%s4925_s10 + $0x90] sm:$0xf] }
  0x6b   : > { %v1735_v31 = vmax.bf16 %v1599_v6, %v1492_v14  ;;  %v2194_v37 = vshll.u32 %v4497_v12, 16  ;;  %v1121_v5 = vsel %vm4942_vm7, %v1116_v40, %v1120_v16  ;;  %v4557_v39 = vrot.slane %v4541_v25, 9 }
  0x6c   : > { %4808 = vmatprep.mubr.msk.bf16.mxu1 %vm812_vm5, %v4572_v26  ;;  %v2190_v38 = vrot.slane %v2188_v46, 4  ;;  %v2671_v43 = vrot.slane %v4496_v0, 5  ;;  %v1493_v45 = vmax.bf16 %v1121_v5, %v1030_v20  ;;  %v2181_v49 = vor.u32 %v2180_v35, %v2177_v27 }
  0x6d   : > { %v2196_v61 = vrot.slane %v2194_v37, 5  ;;  %v2674_v50 = vrot.slane %v4497_v12, 5  ;;  %v2840_v62 = vmax.bf16 %v4977_v17, %v1735_v31  ;;  %v620_v63 = vshrl.u32 %v4362_v44, 16  ;;  %v4448_v31 = vld [vmem:[%s4925_s10 + $0x84] sm:$0xf] }
  0x6e   : > { %v2191_v52 = vor.u32 %v2190_v38, %v2186_v36  ;;  %v2672_v53 = vsel %vm4933_vm6, %v4557_v39, %v2671_v43  ;;  %v2673_v54 = vrot.slane %v2671_v43, 4  ;;  %v1736_v55 = vmax.bf16 %v1602_v15, %v1493_v45  ;;  %v4366_v38 = vld [vmem:[%s4925_s10 + $0x94] sm:$0xf] }
  0x6f   : > { %v2182_v59 = vrot.slane %v2181_v49, 4  ;;  %v623_v16 = vshll.u32 %v4362_v44, 16  ;;  %v629_v6 = vshll.u32 %v4363_v51, 16  ;;  %v633_v32 = vshrl.u32 %v4363_v51, 16  ;;  %v4449_v44 = vld [vmem:[%s4925_s10 + $0x88] sm:$0xf] }
  0x70   : > { %v2192_v4 = vrot.slane %v2191_v52, 4  ;;  %v2675_v20 = vsel %vm4933_vm6, %v2673_v54, %v2674_v50  ;;  %v2841_v10 = vmax.bf16 %v4980_v22, %v1736_v55  ;;  %v622_v17 = vrot.slane %v620_v63, 4  ;;  %v4367_v50 = vld [vmem:[%s4925_s10 + $0x98] sm:$0x1] }
  0x71   : > { %v2187_v9 = vsel %vm4942_vm7, %v2182_v59, %v2186_v36  ;;  %v625_v11 = vrot.slane %v623_v16, 5  ;;  %v631_v14 = vrot.slane %v629_v6, 5  ;;  %v635_v15 = vrot.slane %v633_v32, 4  ;;  %v4471_v59 = vld [vmem:[%s4925_s10 + $0x90] sm:$0xe] }
  0x72   : > { %v2197_v12 = vsel %vm4942_vm7, %v2192_v4, %v2196_v61  ;;  %v2568_v13 = vmax.bf16 %v4495_v56, %v2187_v9  ;;  %v639_v26 = vshll.u32 %v4364_v60, 16  ;;  %v4486_v40 = vrot.slane %v4470_v7, 9 }
  0x73   : > { %v2569_v24 = vmax.bf16 %v4496_v0, %v2197_v12  ;;  %v626_v25 = vor.u32 %v625_v11, %v622_v17  ;;  %v636_v46 = vor.u32 %v635_v15, %v631_v14  ;;  %v1997_v22 = vrot.slane %v4363_v51, 5 }
  0x74   : > { %v2808_v27 = vmax.bf16 %v2672_v53, %v2568_v13  ;;  %v2000_v35 = vrot.slane %v4364_v60, 5  ;;  %v641_v5 = vrot.slane %v639_v26, 5  ;;  %v644_v56 = vshrl.u32 %v4365_v19, 16  ;;  %v1033_v13 = vld [vmem:[%s4925_s10 + $0x1c] sm:$0xf] }
  0x75   : > { %v2809_v36 = vmax.bf16 %v2675_v20, %v2569_v24  ;;  %v627_v37 = vrot.slane %v626_v25, 4  ;;  %v637_v43 = vrot.slane %v636_v46, 4  ;;  %v1998_v0 = vsel %vm4933_vm6, %v4486_v40, %v1997_v22  ;;  %v5201_v20 = vld [vmem:[%s4925_s10 + $0x18] sm:$0xf]  ;;  %v1034_v24 = vld [vmem:[%s4925_s10 + $0x20] sm:$0x1] }
  0x76   : > { %v2872_v39 = vmax.bf16 %v2840_v62, %v2808_v27  ;;  %v1999_v45 = vrot.slane %v1997_v22, 4  ;;  %v646_v51 = vrot.slane %v644_v56, 4  ;;  %v647_v52 = vshll.u32 %v4365_v19, 16  ;;  %v4450_v40 = vld [vmem:[%s4925_s10 + $0x90] sm:$0xf] }
  0x77   : > { %v2873_v49 = vmax.bf16 %v2841_v10, %v2809_v36  ;;  %v632_v61 = vsel %vm4942_vm7, %v627_v37, %v631_v14  ;;  %v642_v53 = vsel %vm4942_vm7, %v637_v43, %v641_v5  ;;  %v653_v55 = vshll.u32 %v4366_v38, 16  ;;  %v1524_v5 = vld [vmem:[%s4925_s10 + $0x18] sm:$0xe] }
  0x78   : > { %v1849_v54 = vmax.bf16 %v4448_v31, %v632_v61  ;;  %v2001_v62 = vsel %vm4933_vm6, %v1999_v45, %v2000_v35  ;;  %v4390_v63 = vcombine.low %v632_v61, %v642_v53  ;;  %v1850_v16 = vmax.bf16 %v4449_v44, %v642_v53 }
  0x79   : > { %v4573_v60 = vcombine.low %v2872_v39, %v2873_v49  ;;  %v649_v4 = vrot.slane %v647_v52, 5  ;;  %v655_v32 = vrot.slane %v653_v55, 5  ;;  %v657_v7 = vshrl.u32 %v4366_v38, 16 }
  0x7a   : > { %v5203_v6 = vmax.bf16 %v1998_v0, %v1849_v54  ;;  %v663_v9 = vshll.u32 %v4367_v50, 16  ;;  %4794 = vmatprep.mubr.msk.bf16.mxu0 %vm812_vm5, %v4390_v63  ;;  %v5207_v10 = vmax.bf16 %v2001_v62, %v1850_v16  ;;  %v4487_v11 = vrot.slane %v4471_v59, 9  ;;  %v4451_v0 = vld [vmem:[%s4925_s10 + $0x94] sm:$0xf]  ;;  %v4498_v54 = vld [vmem:[%s4925_s10 + $0x30] sm:$0xf] }
  0x7b   : > { %4809 = vmatmul.mubr.msk.bf16.vlgmr.msra.gmra.mrb[0].mxu1 %vm812_vm5, %v4573_v60  ;;  %v650_v17 = vor.u32 %v649_v4, %v646_v51  ;;  %v2004_v12 = vrot.slane %v4366_v38, 5  ;;  %v659_v14 = vrot.slane %v657_v7, 4  ;;  %v2007_v19 = vrot.slane %v4367_v50, 5  ;;  %v4499_v63 = vld [vmem:[%s4925_s10 + $0x34] sm:$0xf] }
  0x7c   : > { %v665_v15 = vrot.slane %v663_v9, 5  ;;  %v1123_v25 = vshrl.u32 %v5201_v20, 16  ;;  %v1126_v31 = vshll.u32 %v5201_v20, 16  ;;  %v1132_v36 = vshll.u32 %v1033_v13, 16 }
  0x7d   : > { %v651_v26 = vrot.slane %v650_v17, 4  ;;  %v2005_v27 = vsel %vm4933_vm6, %v4487_v11, %v2004_v12  ;;  %v2006_v46 = vrot.slane %v2004_v12, 4  ;;  %v660_v22 = vor.u32 %v659_v14, %v655_v32 }
  0x7e   : > { %v1125_v35 = vrot.slane %v1123_v25, 4  ;;  %v1136_v37 = vshrl.u32 %v1033_v13, 16  ;;  %v1128_v39 = vrot.slane %v1126_v31, 5  ;;  %v1142_v43 = vshll.u32 %v1034_v24, 16 }
  0x7f   : > { %v656_v38 = vsel %vm4942_vm7, %v651_v26, %v655_v32  ;;  %v2008_v56 = vsel %vm4933_vm6, %v2006_v46, %v2007_v19  ;;  %v661_v44 = vrot.slane %v660_v22, 4  ;;  %v1134_v49 = vrot.slane %v1132_v36, 5  ;;  %v4500_v19 = vld [vmem:[%s4925_s10 + $0x38] sm:$0x1]  ;;  %v4542_v26 = vld [vmem:[%s4925_s10 + $0x30] sm:$0xe] }
  0x80   : > { %v1851_v45 = vmax.bf16 %v4450_v40, %v656_v38  ;;  %v1138_v61 = vrot.slane %v1136_v37, 4  ;;  %v1129_v50 = vor.u32 %v1128_v39, %v1125_v35  ;;  %v1144_v51 = vrot.slane %v1142_v43, 5  ;;  %v1035_v43 = vld [vmem:[%s4925_s10 + $0x24] sm:$0xf] }
  0x81   : > { %v4414_v52 = vrot.slane %v1524_v5, 9  ;;  %v1605_v53 = vrot.slane %v1033_v13, 5  ;;  %v666_v62 = vsel %vm4942_vm7, %v661_v44, %v665_v15  ;;  %v1608_v60 = vrot.slane %v1034_v24, 5 }
  0x82   : > { %v5225_v55 = vmax.bf16 %v2005_v27, %v1851_v45  ;;  %v1139_v59 = vor.u32 %v1138_v61, %v1134_v49  ;;  %v4391_v16 = vcombine.low %v656_v38, %v666_v62  ;;  %v1852_v4 = vmax.bf16 %v4451_v0, %v666_v62 }
  0x83   : > { %v1130_v32 = vrot.slane %v1129_v50, 4  ;;  %v1606_v7 = vsel %vm4933_vm6, %v4414_v52, %v1605_v53  ;;  %v1607_v17 = vrot.slane %v1605_v53, 4  ;;  %v2199_v11 = vshrl.u32 %v4498_v54, 16  ;;  %v1037_v52 = vld [vmem:[%s4925_s10 + $0x2c] sm:$0x1] }
  0x84   : > { %v1140_v9 = vrot.slane %v1139_v59, 4  ;;  %v2202_v12 = vshll.u32 %v4498_v54, 16  ;;  %4795 = vmatmul.mubr.msk.bf16.gmra.mrb[20].mxu0 %vm812_vm5, %v4391_v16  ;;  %v5231_v14 = vmax.bf16 %v2008_v56, %v1852_v4  ;;  %v2208_v24 = vshll.u32 %v4499_v63, 16 }
  0x85   : > { %v1135_v15 = vsel %vm4942_vm7, %v1130_v32, %v1134_v49  ;;  %v2212_v25 = vshrl.u32 %v4499_v63, 16  ;;  %v1609_v46 = vsel %vm4933_vm6, %v1607_v17, %v1608_v60  ;;  %v2201_v31 = vrot.slane %v2199_v11, 4  ;;  %v1036_v49 = vld [vmem:[%s4925_s10 + $0x28] sm:$0xf] }
  0x86   : > { %v1145_v40 = vsel %vm4942_vm7, %v1140_v9, %v1144_v51  ;;  %v1494_v27 = vmax.bf16 %v1135_v15, %v5201_v20  ;;  %v2204_v35 = vrot.slane %v2202_v12, 5  ;;  %v2210_v36 = vrot.slane %v2208_v24, 5  ;;  %v1525_v9 = vld [vmem:[%s4925_s10 + $0x24] sm:$0xe] }
  0x87   : > { %v1495_v22 = vmax.bf16 %v1145_v40, %v1033_v13  ;;  %v2214_v37 = vrot.slane %v2212_v25, 4  ;;  %v2218_v38 = vshll.u32 %v4500_v19, 16  ;;  %v4558_v56 = vrot.slane %v4542_v26, 9  ;;  %v4501_v25 = vld [vmem:[%s4925_s10 + $0x3c] sm:$0xf] }
  0x88   : > { %v1737_v5 = vmax.bf16 %v1606_v7, %v1494_v27  ;;  %v2678_v39 = vrot.slane %v4499_v63, 5  ;;  %v2205_v0 = vor.u32 %v2204_v35, %v2201_v31  ;;  %v2681_v20 = vrot.slane %v4500_v19, 5 }
  0x89   : > { %v1738_v44 = vmax.bf16 %v1609_v46, %v1495_v22  ;;  %v2215_v45 = vor.u32 %v2214_v37, %v2210_v36  ;;  %v2220_v61 = vrot.slane %v2218_v38, 5  ;;  %v1147_v60 = vshrl.u32 %v1035_v43, 16  ;;  %v4502_v37 = vld [vmem:[%s4925_s10 + $0x40] sm:$0xf] }
  0x8a   : > { %v2679_v50 = vsel %vm4933_vm6, %v4558_v56, %v2678_v39  ;;  %v2680_v13 = vrot.slane %v2678_v39, 4  ;;  %v2842_v51 = vmax.bf16 %v4996_v57, %v1737_v5  ;;  %v2206_v53 = vrot.slane %v2205_v0, 4  ;;  %v4503_v0 = vld [vmem:[%s4925_s10 + $0x44] sm:$0x1] }
  0x8b   : > { %v2216_v62 = vrot.slane %v2215_v45, 4  ;;  %v2843_v59 = vmax.bf16 %v5001_v1, %v1738_v44  ;;  %v1150_v4 = vshll.u32 %v1035_v43, 16  ;;  %v1156_v32 = vshll.u32 %v1036_v49, 16 }
  0x8c   : > { %v2682_v16 = vsel %vm4933_vm6, %v2680_v13, %v2681_v20  ;;  %v1160_v7 = vshrl.u32 %v1036_v49, 16  ;;  %v2211_v17 = vsel %vm4942_vm7, %v2206_v53, %v2210_v36  ;;  %v1149_v11 = vrot.slane %v1147_v60, 4 }
  0x8d   : > { %v2221_v57 = vsel %vm4942_vm7, %v2216_v62, %v2220_v61  ;;  %v1166_v12 = vshll.u32 %v1037_v52, 16  ;;  %v2570_v15 = vmax.bf16 %v4498_v54, %v2211_v17  ;;  %v1152_v1 = vrot.slane %v1150_v4, 5 }
  0x8e   : > { %v2571_v19 = vmax.bf16 %v4499_v63, %v2221_v57  ;;  %v1158_v24 = vrot.slane %v1156_v32, 5  ;;  %v1162_v26 = vrot.slane %v1160_v7, 4  ;;  %v4415_v27 = vrot.slane %v1525_v9, 9  ;;  %v4368_v7 = vld [vmem:[%s4925_s10 + $0x9c] sm:$0xf] }
  0x8f   : > { %v1168_v40 = vrot.slane %v1166_v12, 5  ;;  %v1612_v46 = vrot.slane %v1036_v49, 5  ;;  %v2810_v31 = vmax.bf16 %v2679_v50, %v2570_v15  ;;  %v1153_v35 = vor.u32 %v1152_v1, %v1149_v11 }
  0x90   : > { %v2811_v22 = vmax.bf16 %v2682_v16, %v2571_v19  ;;  %v1615_v36 = vrot.slane %v1037_v52, 5  ;;  %v1163_v5 = vor.u32 %v1162_v26, %v1158_v24  ;;  %v2223_v63 = vshrl.u32 %v4501_v25, 16  ;;  %v4543_v52 = vld [vmem:[%s4925_s10 + $0x3c] sm:$0xe] }
  0x91   : > { %v1613_v38 = vsel %vm4933_vm6, %v4415_v27, %v1612_v46  ;;  %v1614_v54 = vrot.slane %v1612_v46, 4  ;;  %v2874_v56 = vmax.bf16 %v2842_v51, %v2810_v31  ;;  %v1154_v44 = vrot.slane %v1153_v35, 4 }
  0x92   : > { %v2875_v39 = vmax.bf16 %v2843_v59, %v2811_v22  ;;  %v2226_v45 = vshll.u32 %v4501_v25, 16  ;;  %v1164_v20 = vrot.slane %v1163_v5, 4  ;;  %v2225_v50 = vrot.slane %v2223_v63, 4  ;;  %v4370_v22 = vld [vmem:[%s4925_s10 + $0xa4] sm:$0x1] }
  0x93   : > { %v1616_v61 = vsel %vm4933_vm6, %v1614_v54, %v1615_v36  ;;  %v2232_v13 = vshll.u32 %v4502_v37, 16  ;;  %v1159_v62 = vsel %vm4942_vm7, %v1154_v44, %v1158_v24  ;;  %v2236_v16 = vshrl.u32 %v4502_v37, 16  ;;  %v4472_v36 = vld [vmem:[%s4925_s10 + $0x9c] sm:$0xe] }
  0x94   : > { %v4574_v53 = vcombine.low %v2874_v56, %v2875_v39  ;;  %v2228_v60 = vrot.slane %v2226_v45, 5  ;;  %v1169_v51 = vsel %vm4942_vm7, %v1164_v20, %v1168_v40  ;;  %v1496_v59 = vmax.bf16 %v1159_v62, %v1035_v43  ;;  %v4369_v43 = vld [vmem:[%s4925_s10 + $0xa0] sm:$0xf] }
  0x95   : > { %v2234_v4 = vrot.slane %v2232_v13, 5  ;;  %v2242_v32 = vshll.u32 %v4503_v0, 16  ;;  %v1497_v9 = vmax.bf16 %v1169_v51, %v1036_v49  ;;  %v2238_v57 = vrot.slane %v2236_v16, 4  ;;  %v4372_v51 = vld [vmem:[%s4925_s10 + $0xac] sm:$0xf] }
  0x96   : > { %4812 = vmatprep.mubr.msk.bf16.mxu1 %vm812_vm5, %v4574_v53  ;;  %v2229_v17 = vor.u32 %v2228_v60, %v2225_v50  ;;  %v4559_v11 = vrot.slane %v4543_v52, 9  ;;  %v1739_v12 = vmax.bf16 %v1613_v38, %v1496_v59  ;;  %v2685_v19 = vrot.slane %v4502_v37, 5  ;;  %v4371_v50 = vld [vmem:[%s4925_s10 + $0xa8] sm:$0xf] }
  0x97   : > { %v2244_v15 = vrot.slane %v2242_v32, 5  ;;  %v2688_v1 = vrot.slane %v4503_v0, 5  ;;  %v1740_v24 = vmax.bf16 %v1616_v61, %v1497_v9  ;;  %v2239_v40 = vor.u32 %v2238_v57, %v2234_v4 }
  0x98   : > { %v2230_v26 = vrot.slane %v2229_v17, 4  ;;  %v668_v27 = vshrl.u32 %v4368_v7, 16  ;;  %v2686_v46 = vsel %vm4933_vm6, %v4559_v11, %v2685_v19  ;;  %v2687_v31 = vrot.slane %v2685_v19, 4  ;;  %v4373_v11 = vld [vmem:[%s4925_s10 + $0xb0] sm:$0x1] }
  0x99   : > { %v2844_v49 = vmax.bf16 %v5015_v28, %v1739_v12  ;;  %v671_v35 = vshll.u32 %v4368_v7, 16  ;;  %v2240_v38 = vrot.slane %v2239_v40, 4  ;;  %v2845_v54 = vmax.bf16 %v5019_v34, %v1740_v24  ;;  %v4452_v7 = vld [vmem:[%s4925_s10 + $0x9c] sm:$0xf] }
  0x9a   : > { %v2235_v5 = vsel %vm4942_vm7, %v2230_v26, %v2234_v4  ;;  %v670_v63 = vrot.slane %v668_v27, 4  ;;  %v2689_v39 = vsel %vm4933_vm6, %v2687_v31, %v2688_v1  ;;  %v677_v0 = vshll.u32 %v4369_v43, 16  ;;  %v4473_v26 = vld [vmem:[%s4925_s10 + $0xa8] sm:$0xe] }
  0x9b   : > { %v2572_v56 = vmax.bf16 %v4501_v25, %v2235_v5  ;;  %v673_v44 = vrot.slane %v671_v35, 5  ;;  %v2245_v28 = vsel %vm4942_vm7, %v2240_v38, %v2244_v15  ;;  %v681_v45 = vshrl.u32 %v4369_v43, 16  ;;  %v1038_v5 = vld [vmem:[%s4925_s10 + $0x30] sm:$0xf] }
  0x9c   : > { %v687_v20 = vshll.u32 %v4370_v22, 16  ;;  %v4488_v61 = vrot.slane %v4472_v36, 9  ;;  %v2573_v13 = vmax.bf16 %v4502_v37, %v2245_v28  ;;  %v679_v53 = vrot.slane %v677_v0, 5 }
  0x9d   : > { %v2812_v52 = vmax.bf16 %v2686_v46, %v2572_v56  ;;  %v674_v34 = vor.u32 %v673_v44, %v670_v63  ;;  %v683_v25 = vrot.slane %v681_v45, 4  ;;  %v2011_v60 = vrot.slane %v4369_v43, 5  ;;  %v4453_v43 = vld [vmem:[%s4925_s10 + $0xa0] sm:$0xf] }
  0x9e   : > { %v689_v62 = vrot.slane %v687_v20, 5  ;;  %v2014_v16 = vrot.slane %v4370_v22, 5  ;;  %v2813_v59 = vmax.bf16 %v2689_v39, %v2573_v13  ;;  %v692_v9 = vshrl.u32 %v4371_v50, 16  ;;  %v5301_v39 = vld [vmem:[%s4925_s10 + $0x34] sm:$0xf] }
  0x9f   : > { %v2876_v4 = vmax.bf16 %v2844_v49, %v2812_v52  ;;  %v675_v32 = vrot.slane %v674_v34, 4  ;;  %v684_v17 = vor.u32 %v683_v25, %v679_v53  ;;  %v2012_v37 = vsel %vm4933_vm6, %v4488_v61, %v2011_v60  ;;  %v4454_v61 = vld [vmem:[%s4925_s10 + $0xa8] sm:$0xf]  ;;  %v1040_v25 = vld [vmem:[%s4925_s10 + $0x38] sm:$0x1] }
  0xa0   : > { %v2013_v57 = vrot.slane %v2011_v60, 4  ;;  %v695_v12 = vshll.u32 %v4371_v50, 16  ;;  %v2877_v15 = vmax.bf16 %v2845_v54, %v2813_v59  ;;  %v694_v1 = vrot.slane %v692_v9, 4  ;;  %v4455_v9 = vld [vmem:[%s4925_s10 + $0xac] sm:$0xf] }
  0xa1   : > { %v680_v19 = vsel %vm4942_vm7, %v675_v32, %v679_v53  ;;  %v701_v24 = vshll.u32 %v4372_v51, 16  ;;  %v685_v40 = vrot.slane %v684_v17, 4  ;;  %v705_v35 = vshrl.u32 %v4372_v51, 16 }
  0xa2   : > { %v1853_v27 = vmax.bf16 %v4452_v7, %v680_v19  ;;  %v2015_v46 = vsel %vm4933_vm6, %v2013_v57, %v2014_v16  ;;  %v697_v31 = vrot.slane %v695_v12, 5  ;;  %v4575_v49 = vcombine.low %v2876_v4, %v2877_v15  ;;  %v1526_v16 = vld [vmem:[%s4925_s10 + $0x30] sm:$0xe] }
  0xa3   : > { %v703_v22 = vrot.slane %v701_v24, 5  ;;  %v711_v36 = vshll.u32 %v4373_v11, 16  ;;  %v690_v38 = vsel %vm4942_vm7, %v685_v40, %v689_v62  ;;  %v4489_v56 = vrot.slane %v4473_v26, 9 }
  0xa4   : > { %v5298_v54 = vmax.bf16 %v2012_v37, %v1853_v27  ;;  %v698_v63 = vor.u32 %v697_v31, %v694_v1  ;;  %4813 = vmatmul.mubr.msk.bf16.gmra.mrb[4].mxu1 %vm812_vm5, %v4575_v49  ;;  %v4392_v44 = vcombine.low %v680_v19, %v690_v38  ;;  %v1854_v0 = vmax.bf16 %v4453_v43, %v690_v38  ;;  %v4504_v43 = vld [vmem:[%s4925_s10 + $0x48] sm:$0xf] }
  0xa5   : > { %v707_v28 = vrot.slane %v705_v35, 4  ;;  %v713_v45 = vrot.slane %v711_v36, 5  ;;  %v2018_v50 = vrot.slane %v4372_v51, 5  ;;  %v2021_v13 = vrot.slane %v4373_v11, 5 }
  0xa6   : > { %v699_v20 = vrot.slane %v698_v63, 4  ;;  %v1171_v52 = vshrl.u32 %v1038_v5, 16  ;;  %4798 = vmatprep.mubr.msk.bf16.mxu0 %vm812_vm5, %v4392_v44  ;;  %v5306_v34 = vmax.bf16 %v2015_v46, %v1854_v0  ;;  %v1174_v62 = vshll.u32 %v1038_v5, 16  ;;  %v4506_v0 = vld [vmem:[%s4925_s10 + $0x50] sm:$0x1] }
  0xa7   : > { %v708_v53 = vor.u32 %v707_v28, %v703_v22  ;;  %v1180_v60 = vshll.u32 %v5301_v39, 16  ;;  %v2019_v4 = vsel %vm4933_vm6, %v4489_v56, %v2018_v50  ;;  %v2020_v51 = vrot.slane %v2018_v50, 4 }
  0xa8   : > { %v704_v59 = vsel %vm4942_vm7, %v699_v20, %v703_v22  ;;  %v1173_v32 = vrot.slane %v1171_v52, 4  ;;  %v1176_v37 = vrot.slane %v1174_v62, 5  ;;  %v1184_v12 = vshrl.u32 %v5301_v39, 16  ;;  %v4505_v22 = vld [vmem:[%s4925_s10 + $0x4c] sm:$0xf] }
  0xa9   : > { %v709_v7 = vrot.slane %v708_v53, 4  ;;  %v1855_v17 = vmax.bf16 %v4454_v61, %v704_v59  ;;  %v1182_v57 = vrot.slane %v1180_v60, 5  ;;  %v2022_v11 = vsel %vm4933_vm6, %v2020_v51, %v2021_v13  ;;  %v4544_v20 = vld [vmem:[%s4925_s10 + $0x48] sm:$0xe] }
  0xaa   : > { %v1190_v15 = vshll.u32 %v1040_v25, 16  ;;  %v4416_v19 = vrot.slane %v1526_v16, 9  ;;  %v1177_v26 = vor.u32 %v1176_v37, %v1173_v32  ;;  %v1619_v40 = vrot.slane %v5301_v39, 5  ;;  %v1041_v37 = vld [vmem:[%s4925_s10 + $0x3c] sm:$0xf] }
  0xab   : > { %v714_v1 = vsel %vm4942_vm7, %v709_v7, %v713_v45  ;;  %v5321_v24 = vmax.bf16 %v2019_v4, %v1855_v17  ;;  %v1186_v31 = vrot.slane %v1184_v12, 4  ;;  %v1622_v63 = vrot.slane %v1040_v25, 5 }
  0xac   : > { %v4393_v27 = vcombine.low %v704_v59, %v714_v1  ;;  %v1856_v46 = vmax.bf16 %v4455_v9, %v714_v1  ;;  %v1192_v49 = vrot.slane %v1190_v15, 5  ;;  %v1178_v35 = vrot.slane %v1177_v26, 4  ;;  %v1042_v15 = vld [vmem:[%s4925_s10 + $0x40] sm:$0xf] }
  0xad   : > { %v1620_v36 = vsel %vm4933_vm6, %v4416_v19, %v1619_v40  ;;  %v1621_v38 = vrot.slane %v1619_v40, 4  ;;  %v1187_v44 = vor.u32 %v1186_v31, %v1182_v57  ;;  %v2247_v28 = vshrl.u32 %v4504_v43, 16 }
  0xae   : > { %4799 = vmatmul.mubr.msk.bf16.gmra.mrb[24].mxu0 %vm812_vm5, %v4393_v27  ;;  %v5329_v56 = vmax.bf16 %v2022_v11, %v1856_v46  ;;  %v2250_v45 = vshll.u32 %v4504_v43, 16  ;;  %v1183_v61 = vsel %vm4942_vm7, %v1178_v35, %v1182_v57  ;;  %v2256_v13 = vshll.u32 %v4505_v22, 16 }
  0xaf   : > { %v1623_v50 = vsel %vm4933_vm6, %v1621_v38, %v1622_v63  ;;  %v2260_v52 = vshrl.u32 %v4505_v22, 16  ;;  %v1188_v53 = vrot.slane %v1187_v44, 4  ;;  %v1498_v25 = vmax.bf16 %v1183_v61, %v1038_v5  ;;  %v1527_v44 = vld [vmem:[%s4925_s10 + $0x3c] sm:$0xe] }
  0xb0   : > { %v2249_v62 = vrot.slane %v2247_v28, 4  ;;  %v2252_v60 = vrot.slane %v2250_v45, 5  ;;  %v2258_v16 = vrot.slane %v2256_v13, 5  ;;  %v2266_v4 = vshll.u32 %v4506_v0, 16 }
  0xb1   : > { %v2262_v59 = vrot.slane %v2260_v52, 4  ;;  %v4560_v51 = vrot.slane %v4544_v20, 9  ;;  %v1193_v32 = vsel %vm4942_vm7, %v1188_v53, %v1192_v49  ;;  %v1741_v7 = vmax.bf16 %v1620_v36, %v1498_v25  ;;  %v1043_v36 = vld [vmem:[%s4925_s10 + $0x44] sm:$0x1] }
  0xb2   : > { %v2253_v9 = vor.u32 %v2252_v60, %v2249_v62  ;;  %v2692_v17 = vrot.slane %v4505_v22, 5  ;;  %v1499_v57 = vmax.bf16 %v1193_v32, %v5301_v39  ;;  %v2268_v12 = vrot.slane %v2266_v4, 5  ;;  %v4507_v60 = vld [vmem:[%s4925_s10 + $0x54] sm:$0xf] }
  0xb3   : > { %v2263_v11 = vor.u32 %v2262_v59, %v2258_v16  ;;  %v2695_v5 = vrot.slane %v4506_v0, 5  ;;  %v2846_v40 = vmax.bf16 %v5034_v3, %v1741_v7  ;;  %v1195_v31 = vshrl.u32 %v1041_v37, 16 }
  0xb4   : > { %v2254_v19 = vrot.slane %v2253_v9, 4  ;;  %v2693_v1 = vsel %vm4933_vm6, %v4560_v51, %v2692_v17  ;;  %v2694_v26 = vrot.slane %v2692_v17, 4  ;;  %v1742_v27 = vmax.bf16 %v1623_v50, %v1499_v57 }
  0xb5   : > { %v2264_v46 = vrot.slane %v2263_v11, 4  ;;  %v1198_v49 = vshll.u32 %v1041_v37, 16  ;;  %v1204_v38 = vshll.u32 %v1042_v15, 16  ;;  %v1208_v63 = vshrl.u32 %v1042_v15, 16  ;;  %v4509_v11 = vld [vmem:[%s4925_s10 + $0x5c] sm:$0x1] }
  0xb6   : > { %v2259_v35 = vsel %vm4942_vm7, %v2254_v19, %v2258_v16  ;;  %v2696_v39 = vsel %vm4933_vm6, %v2694_v26, %v2695_v5  ;;  %v2847_v3 = vmax.bf16 %v5038_v8, %v1742_v27  ;;  %v1197_v45 = vrot.slane %v1195_v31, 4  ;;  %v4545_v27 = vld [vmem:[%s4925_s10 + $0x54] sm:$0xe] }
  0xb7   : > { %v2269_v0 = vsel %vm4942_vm7, %v2264_v46, %v2268_v12  ;;  %v2574_v28 = vmax.bf16 %v4504_v43, %v2259_v35  ;;  %v1200_v61 = vrot.slane %v1198_v49, 5  ;;  %v1206_v50 = vrot.slane %v1204_v38, 5  ;;  %v4508_v43 = vld [vmem:[%s4925_s10 + $0x58] sm:$0xf] }
  0xb8   : > { %v2575_v20 = vmax.bf16 %v4505_v22, %v2269_v0  ;;  %v1210_v13 = vrot.slane %v1208_v63, 4  ;;  %v1214_v53 = vshll.u32 %v1043_v36, 16  ;;  %v4417_v25 = vrot.slane %v1527_v44, 9 }
  0xb9   : > { %v2814_v52 = vmax.bf16 %v2693_v1, %v2574_v28  ;;  %v1626_v62 = vrot.slane %v1042_v15, 5  ;;  %v1201_v59 = vor.u32 %v1200_v61, %v1197_v45  ;;  %v1629_v51 = vrot.slane %v1043_v36, 5 }
  0xba   : > { %v2815_v16 = vmax.bf16 %v2696_v39, %v2575_v20  ;;  %v1211_v4 = vor.u32 %v1210_v13, %v1206_v50  ;;  %v1216_v7 = vrot.slane %v1214_v53, 5  ;;  %v2271_v12 = vshrl.u32 %v4507_v60, 16  ;;  %v4375_v13 = vld [vmem:[%s4925_s10 + $0xb8] sm:$0xf] }
  0xbb   : > { %v2878_v32 = vmax.bf16 %v2846_v40, %v2814_v52  ;;  %v1627_v8 = vsel %vm4933_vm6, %v4417_v25, %v1626_v62  ;;  %v1628_v22 = vrot.slane %v1626_v62, 4  ;;  %v1202_v17 = vrot.slane %v1201_v59, 4  ;;  %v4376_v25 = vld [vmem:[%s4925_s10 + $0xbc] sm:$0x1] }
  0xbc   : > { %v2879_v9 = vmax.bf16 %v2847_v3, %v2815_v16  ;;  %v1212_v57 = vrot.slane %v1211_v4, 4  ;;  %v2274_v19 = vshll.u32 %v4507_v60, 16  ;;  %v2280_v1 = vshll.u32 %v4508_v43, 16  ;;  %v4374_v3 = vld [vmem:[%s4925_s10 + $0xb4] sm:$0xf] }
  0xbd   : > { %v1630_v5 = vsel %vm4933_vm6, %v1628_v22, %v1629_v51  ;;  %v2284_v26 = vshrl.u32 %v4508_v43, 16  ;;  %v1207_v40 = vsel %vm4942_vm7, %v1202_v17, %v1206_v50  ;;  %v2273_v49 = vrot.slane %v2271_v12, 4  ;;  %v4474_v22 = vld [vmem:[%s4925_s10 + $0xb4] sm:$0xe] }
  0xbe   : > { %v4576_v46 = vcombine.low %v2878_v32, %v2879_v9  ;;  %v1217_v31 = vsel %vm4942_vm7, %v1212_v57, %v1216_v7  ;;  %v1500_v35 = vmax.bf16 %v1207_v40, %v1041_v37  ;;  %v2276_v36 = vrot.slane %v2274_v19, 5  ;;  %v4377_v19 = vld [vmem:[%s4925_s10 + $0xc0] sm:$0xf] }
  0xbf   : > { %v1501_v39 = vmax.bf16 %v1217_v31, %v1042_v15  ;;  %v2282_v38 = vrot.slane %v2280_v1, 5  ;;  %v2286_v63 = vrot.slane %v2284_v26, 4  ;;  %v2290_v44 = vshll.u32 %v4509_v11, 16 }
  0xc0   : > { %4816 = vmatprep.mubr.msk.bf16.mxu1 %vm812_vm5, %v4576_v46  ;;  %v4561_v0 = vrot.slane %v4545_v27, 9  ;;  %v2699_v28 = vrot.slane %v4508_v43, 5  ;;  %v1743_v45 = vmax.bf16 %v1627_v8, %v1500_v35  ;;  %v2277_v61 = vor.u32 %v2276_v36, %v2273_v49 }
  0xc1   : > { %v1744_v20 = vmax.bf16 %v1630_v5, %v1501_v39  ;;  %v2702_v50 = vrot.slane %v4509_v11, 5  ;;  %v2287_v52 = vor.u32 %v2286_v63, %v2282_v38  ;;  %v2292_v53 = vrot.slane %v2290_v44, 5 }
  0xc2   : > { %v2700_v37 = vsel %vm4933_vm6, %v4561_v0, %v2699_v28  ;;  %v2701_v15 = vrot.slane %v2699_v28, 4  ;;  %v2278_v62 = vrot.slane %v2277_v61, 4  ;;  %v2848_v16 = vmax.bf16 %v5053_v41, %v1743_v45  ;;  %v4456_v28 = vld [vmem:[%s4925_s10 + $0xb4] sm:$0xf]  ;;  %v4457_v61 = vld [vmem:[%s4925_s10 + $0xb8] sm:$0xf] }
  0xc3   : > { %v2849_v59 = vmax.bf16 %v5057_v48, %v1744_v20  ;;  %v716_v4 = vshrl.u32 %v4374_v3, 16  ;;  %v2288_v51 = vrot.slane %v2287_v52, 4  ;;  %v719_v7 = vshll.u32 %v4374_v3, 16 }
  0xc4   : > { %v2703_v32 = vsel %vm4933_vm6, %v2701_v15, %v2702_v50  ;;  %v725_v8 = vshll.u32 %v4375_v13, 16  ;;  %v2283_v9 = vsel %vm4942_vm7, %v2278_v62, %v2282_v38  ;;  %v729_v57 = vshrl.u32 %v4375_v13, 16  ;;  %v4378_v38 = vld [vmem:[%s4925_s10 + $0xc4] sm:$0xf]  ;;  %v4475_v62 = vld [vmem:[%s4925_s10 + $0xc0] sm:$0xe] }
  0xc5   : > { %v718_v17 = vrot.slane %v716_v4, 4  ;;  %v735_v11 = vshll.u32 %v4376_v25, 16  ;;  %v2293_v41 = vsel %vm4942_vm7, %v2288_v51, %v2292_v53  ;;  %v2576_v12 = vmax.bf16 %v4507_v60, %v2283_v9  ;;  %v1044_v9 = vld [vmem:[%s4925_s10 + $0x48] sm:$0xf] }
  0xc6   : > { %v721_v48 = vrot.slane %v719_v7, 5  ;;  %v727_v5 = vrot.slane %v725_v8, 5  ;;  %v2577_v1 = vmax.bf16 %v4508_v43, %v2293_v41  ;;  %v731_v26 = vrot.slane %v729_v57, 4  ;;  %v4458_v41 = vld [vmem:[%s4925_s10 + $0xc0] sm:$0xf] }
  0xc7   : > { %v737_v27 = vrot.slane %v735_v11, 5  ;;  %v4490_v46 = vrot.slane %v4474_v22, 9  ;;  %v2816_v40 = vmax.bf16 %v2700_v37, %v2576_v12  ;;  %v2025_v49 = vrot.slane %v4375_v13, 5  ;;  %v4379_v37 = vld [vmem:[%s4925_s10 + $0xc8] sm:$0x1] }
  0xc8   : > { %v722_v31 = vor.u32 %v721_v48, %v718_v17  ;;  %v2028_v35 = vrot.slane %v4376_v25, 5  ;;  %v2817_v39 = vmax.bf16 %v2703_v32, %v2577_v1  ;;  %v732_v36 = vor.u32 %v731_v26, %v727_v5  ;;  %v1045_v26 = vld [vmem:[%s4925_s10 + $0x4c] sm:$0xf] }
  0xc9   : > { %v740_v63 = vshrl.u32 %v4377_v19, 16  ;;  %v743_v44 = vshll.u32 %v4377_v19, 16  ;;  %v2880_v60 = vmax.bf16 %v2848_v16, %v2816_v40  ;;  %v2026_v43 = vsel %vm4933_vm6, %v4490_v46, %v2025_v49  ;;  %v1046_v40 = vld [vmem:[%s4925_s10 + $0x50] sm:$0x1] }
  0xca   : > { %v723_v0 = vrot.slane %v722_v31, 4  ;;  %v2027_v3 = vrot.slane %v2025_v49, 4  ;;  %v2881_v45 = vmax.bf16 %v2849_v59, %v2817_v39  ;;  %v733_v20 = vrot.slane %v732_v36, 4  ;;  %v4459_v39 = vld [vmem:[%s4925_s10 + $0xc4] sm:$0xf] }
  0xcb   : > { %v742_v50 = vrot.slane %v740_v63, 4  ;;  %v745_v13 = vrot.slane %v743_v44, 5  ;;  %v749_v15 = vshll.u32 %v4378_v38, 16  ;;  %v753_v25 = vshrl.u32 %v4378_v38, 16 }
  0xcc   : > { %v728_v52 = vsel %vm4942_vm7, %v723_v0, %v727_v5  ;;  %v2029_v53 = vsel %vm4933_vm6, %v2027_v3, %v2028_v35  ;;  %v4577_v16 = vcombine.low %v2880_v60, %v2881_v45  ;;  %v738_v59 = vsel %vm4942_vm7, %v733_v20, %v737_v27 }
  0xcd   : > { %v1857_v4 = vmax.bf16 %v4456_v28, %v728_v52  ;;  %v746_v51 = vor.u32 %v745_v13, %v742_v50  ;;  %v4394_v32 = vcombine.low %v728_v52, %v738_v59  ;;  %v1858_v7 = vmax.bf16 %v4457_v61, %v738_v59  ;;  %v4510_v50 = vld [vmem:[%s4925_s10 + $0x60] sm:$0xf]  ;;  %v4511_v59 = vld [vmem:[%s4925_s10 + $0x64] sm:$0xf] }
  0xce   : > { %v751_v8 = vrot.slane %v749_v15, 5  ;;  %v755_v22 = vrot.slane %v753_v25, 4  ;;  %4817 = vmatmul.mubr.msk.bf16.gmra.mrb[8].mxu1 %vm812_vm5, %v4577_v16  ;;  %v759_v11 = vshll.u32 %v4379_v37, 16  ;;  %v4491_v12 = vrot.slane %v4475_v62, 9 }
  0xcf   : > { %v5397_v17 = vmax.bf16 %v2026_v43, %v1857_v4  ;;  %v747_v57 = vrot.slane %v746_v51, 4  ;;  %4802 = vmatprep.mubr.msk.bf16.mxu0 %vm812_vm5, %v4394_v32  ;;  %v5401_v48 = vmax.bf16 %v2029_v53, %v1858_v7  ;;  %v2032_v19 = vrot.slane %v4378_v38, 5  ;;  %v1528_v43 = vld [vmem:[%s4925_s10 + $0x48] sm:$0xe] }
  0xd0   : > { %v756_v5 = vor.u32 %v755_v22, %v751_v8  ;;  %v2035_v1 = vrot.slane %v4379_v37, 5  ;;  %v761_v46 = vrot.slane %v759_v11, 5  ;;  %v1219_v31 = vshrl.u32 %v1044_v9, 16  ;;  %v4512_v11 = vld [vmem:[%s4925_s10 + $0x68] sm:$0x1] }
  0xd1   : > { %v752_v27 = vsel %vm4942_vm7, %v747_v57, %v751_v8  ;;  %v1222_v49 = vshll.u32 %v1044_v9, 16  ;;  %v2033_v63 = vsel %vm4933_vm6, %v4491_v12, %v2032_v19  ;;  %v2034_v44 = vrot.slane %v2032_v19, 4  ;;  %v4546_v12 = vld [vmem:[%s4925_s10 + $0x60] sm:$0xe] }
  0xd2   : > { %v757_v35 = vrot.slane %v756_v5, 4  ;;  %v1859_v36 = vmax.bf16 %v4458_v41, %v752_v27  ;;  %v1221_v60 = vrot.slane %v1219_v31, 4  ;;  %v1228_v0 = vshll.u32 %v1045_v26, 16 }
  0xd3   : > { %v1224_v38 = vrot.slane %v1222_v49, 5  ;;  %v1232_v28 = vshrl.u32 %v1045_v26, 16  ;;  %v2036_v45 = vsel %vm4933_vm6, %v2034_v44, %v2035_v1  ;;  %v1238_v61 = vshll.u32 %v1046_v40, 16 }
  0xd4   : > { %v762_v3 = vsel %vm4942_vm7, %v757_v35, %v761_v46  ;;  %v5415_v20 = vmax.bf16 %v2033_v63, %v1859_v36  ;;  %v1230_v37 = vrot.slane %v1228_v0, 5  ;;  %v4418_v62 = vrot.slane %v1528_v43, 9 }
  0xd5   : > { %v4395_v13 = vcombine.low %v752_v27, %v762_v3  ;;  %v1860_v52 = vmax.bf16 %v4459_v39, %v762_v3  ;;  %v1225_v53 = vor.u32 %v1224_v38, %v1221_v60  ;;  %v1234_v15 = vrot.slane %v1232_v28, 4  ;;  %v1047_v28 = vld [vmem:[%s4925_s10 + $0x54] sm:$0xf] }
  0xd6   : > { %v1240_v25 = vrot.slane %v1238_v61, 5  ;;  %v1633_v16 = vrot.slane %v1045_v26, 5  ;;  %v1636_v32 = vrot.slane %v1046_v40, 5  ;;  %v2295_v7 = vshrl.u32 %v4510_v50, 16  ;;  %v1048_v61 = vld [vmem:[%s4925_s10 + $0x58] sm:$0xf] }
  0xd7   : > { %4803 = vmatmul.mubr.msk.bf16.gmra.mrb[28].mxu0 %vm812_vm5, %v4395_v13  ;;  %v5420_v4 = vmax.bf16 %v2036_v45, %v1860_v52  ;;  %v1226_v51 = vrot.slane %v1225_v53, 4  ;;  %v1235_v8 = vor.u32 %v1234_v15, %v1230_v37  ;;  %v2298_v41 = vshll.u32 %v4510_v50, 16 }
  0xd8   : > { %v1634_v22 = vsel %vm4933_vm6, %v4418_v62, %v1633_v16  ;;  %v1635_v57 = vrot.slane %v1633_v16, 4  ;;  %v2297_v19 = vrot.slane %v2295_v7, 4  ;;  %v2304_v1 = vshll.u32 %v4511_v59, 16 }
  0xd9   : > { %v1231_v5 = vsel %vm4942_vm7, %v1226_v51, %v1230_v37  ;;  %v2308_v27 = vshrl.u32 %v4511_v59, 16  ;;  %v1236_v46 = vrot.slane %v1235_v8, 4  ;;  %v2300_v49 = vrot.slane %v2298_v41, 5 }
  0xda   : > { %v1502_v31 = vmax.bf16 %v1231_v5, %v1044_v9  ;;  %v1637_v40 = vsel %vm4933_vm6, %v1635_v57, %v1636_v32  ;;  %v2306_v35 = vrot.slane %v2304_v1, 5  ;;  %v2314_v36 = vshll.u32 %v4512_v11, 16  ;;  %v1049_v32 = vld [vmem:[%s4925_s10 + $0x5c] sm:$0x1] }
  0xdb   : > { %v2310_v39 = vrot.slane %v2308_v27, 4  ;;  %v4562_v63 = vrot.slane %v4546_v12, 9  ;;  %v1241_v44 = vsel %vm4942_vm7, %v1236_v46, %v1240_v25  ;;  %v2301_v38 = vor.u32 %v2300_v49, %v2297_v19  ;;  %v4513_v49 = vld [vmem:[%s4925_s10 + $0x6c] sm:$0xf] }
  0xdc   : > { %v1745_v60 = vmax.bf16 %v1634_v22, %v1502_v31  ;;  %v2706_v0 = vrot.slane %v4511_v59, 5  ;;  %v1503_v43 = vmax.bf16 %v1241_v44, %v1045_v26  ;;  %v2316_v9 = vrot.slane %v2314_v36, 5  ;;  %v1529_v22 = vld [vmem:[%s4925_s10 + $0x54] sm:$0xe] }
  0xdd   : > { %v2311_v3 = vor.u32 %v2310_v39, %v2306_v35  ;;  %v2709_v45 = vrot.slane %v4512_v11, 5  ;;  %v2302_v13 = vrot.slane %v2301_v38, 4  ;;  %v1243_v62 = vshrl.u32 %v1047_v28, 16 }
  0xde   : > { %v2707_v52 = vsel %vm4933_vm6, %v4562_v63, %v2706_v0  ;;  %v2708_v53 = vrot.slane %v2706_v0, 4  ;;  %v2850_v37 = vmax.bf16 %v5072_v21, %v1745_v60  ;;  %v1746_v15 = vmax.bf16 %v1637_v40, %v1503_v43 }
  0xdf   : > { %v2312_v25 = vrot.slane %v2311_v3, 4  ;;  %v1246_v16 = vshll.u32 %v1047_v28, 16  ;;  %v2307_v51 = vsel %vm4942_vm7, %v2302_v13, %v2306_v35  ;;  %v1252_v7 = vshll.u32 %v1048_v61, 16  ;;  %v4515_v3 = vld [vmem:[%s4925_s10 + $0x74] sm:$0x1] }
  0xe0   : > { %v2710_v26 = vsel %vm4933_vm6, %v2708_v53, %v2709_v45  ;;  %v1256_v8 = vshrl.u32 %v1048_v61, 16  ;;  %v2578_v11 = vmax.bf16 %v4510_v50, %v2307_v51  ;;  %v2851_v21 = vmax.bf16 %v5077_v29, %v1746_v15  ;;  %v4514_v50 = vld [vmem:[%s4925_s10 + $0x70] sm:$0xf]  ;;  %v4547_v15 = vld [vmem:[%s4925_s10 + $0x6c] sm:$0xe] }
  0xe1   : > { %v2317_v57 = vsel %vm4942_vm7, %v2312_v25, %v2316_v9  ;;  %v1245_v41 = vrot.slane %v1243_v62, 4  ;;  %v1248_v5 = vrot.slane %v1246_v16, 5  ;;  %v1254_v19 = vrot.slane %v1252_v7, 5 }
  0xe2   : > { %v2579_v12 = vmax.bf16 %v4511_v59, %v2317_v57  ;;  %v1258_v1 = vrot.slane %v1256_v8, 4  ;;  %v2818_v27 = vmax.bf16 %v2707_v52, %v2578_v11  ;;  %v1262_v46 = vshll.u32 %v1049_v32, 16 }
  0xe3   : > { %v4419_v31 = vrot.slane %v1529_v22, 9  ;;  %v1640_v40 = vrot.slane %v1048_v61, 5  ;;  %v1249_v39 = vor.u32 %v1248_v5, %v1245_v41  ;;  %v1643_v63 = vrot.slane %v1049_v32, 5 }
  0xe4   : > { %v2819_v35 = vmax.bf16 %v2710_v26, %v2579_v12  ;;  %v1259_v36 = vor.u32 %v1258_v1, %v1254_v19  ;;  %v2882_v44 = vmax.bf16 %v2850_v37, %v2818_v27  ;;  %v1264_v60 = vrot.slane %v1262_v46, 5  ;;  %v1051_v1 = vld [vmem:[%s4925_s10 + $0x64] sm:$0xf] }
  0xe5   : > { %v1641_v29 = vsel %vm4933_vm6, %v4419_v31, %v1640_v40  ;;  %v1642_v59 = vrot.slane %v1640_v40, 4  ;;  %v1250_v0 = vrot.slane %v1249_v39, 4  ;;  %v2319_v9 = vshrl.u32 %v4513_v49, 16  ;;  %v1052_v31 = vld [vmem:[%s4925_s10 + $0x68] sm:$0x1] }
  0xe6   : > { %v2883_v38 = vmax.bf16 %v2851_v21, %v2819_v35  ;;  %v1260_v43 = vrot.slane %v1259_v36, 4  ;;  %v2322_v13 = vshll.u32 %v4513_v49, 16  ;;  %v2328_v52 = vshll.u32 %v4514_v50, 16  ;;  %v1050_v21 = vld [vmem:[%s4925_s10 + $0x60] sm:$0xf] }
  0xe7   : > { %v1644_v45 = vsel %vm4933_vm6, %v1642_v59, %v1643_v63  ;;  %v2332_v53 = vshrl.u32 %v4514_v50, 16  ;;  %v1255_v37 = vsel %vm4942_vm7, %v1250_v0, %v1254_v19  ;;  %v2321_v16 = vrot.slane %v2319_v9, 4  ;;  %v1530_v59 = vld [vmem:[%s4925_s10 + $0x60] sm:$0xe] }
  0xe8   : > { %v4578_v25 = vcombine.low %v2882_v44, %v2883_v38  ;;  %v1265_v62 = vsel %vm4942_vm7, %v1260_v43, %v1264_v60  ;;  %v1504_v51 = vmax.bf16 %v1255_v37, %v1047_v28  ;;  %v2324_v32 = vrot.slane %v2322_v13, 5  ;;  %v4516_v13 = vld [vmem:[%s4925_s10 + $0x78] sm:$0xf] }
  0xe9   : > { %v1505_v26 = vmax.bf16 %v1265_v62, %v1048_v61  ;;  %v2330_v7 = vrot.slane %v2328_v52, 5  ;;  %v2334_v8 = vrot.slane %v2332_v53, 4  ;;  %v2338_v22 = vshll.u32 %v4515_v3, 16 }
  0xea   : > { %4820 = vmatprep.mubr.msk.bf16.mxu1 %vm812_vm5, %v4578_v25  ;;  %v4563_v57 = vrot.slane %v4547_v15, 9  ;;  %v2713_v11 = vrot.slane %v4514_v50, 5  ;;  %v1747_v41 = vmax.bf16 %v1641_v29, %v1504_v51  ;;  %v2325_v5 = vor.u32 %v2324_v32, %v2321_v16 }
  0xeb   : > { %v1748_v12 = vmax.bf16 %v1644_v45, %v1505_v26  ;;  %v2716_v19 = vrot.slane %v4515_v3, 5  ;;  %v2335_v27 = vor.u32 %v2334_v8, %v2330_v7  ;;  %v2340_v46 = vrot.slane %v2338_v22, 5 }
  0xec   : > { %v2714_v28 = vsel %vm4933_vm6, %v4563_v57, %v2713_v11  ;;  %v2715_v61 = vrot.slane %v2713_v11, 4  ;;  %v2326_v40 = vrot.slane %v2325_v5, 4  ;;  %v2852_v35 = vmax.bf16 %v5091_v58, %v1747_v41  ;;  %v4518_v5 = vld [vmem:[%s4925_s10 + $0x80] sm:$0x1] }
  0xed   : > { %v2853_v39 = vmax.bf16 %v5095_v2, %v1748_v12  ;;  %v1267_v36 = vshrl.u32 %v1050_v21, 16  ;;  %v2336_v63 = vrot.slane %v2335_v27, 4  ;;  %v1270_v60 = vshll.u32 %v1050_v21, 16 }
  0xee   : > { %v2717_v44 = vsel %vm4933_vm6, %v2715_v61, %v2716_v19  ;;  %v1276_v29 = vshll.u32 %v1051_v1, 16  ;;  %v2331_v38 = vsel %vm4942_vm7, %v2326_v40, %v2330_v7  ;;  %v1280_v43 = vshrl.u32 %v1051_v1, 16  ;;  %v4517_v7 = vld [vmem:[%s4925_s10 + $0x7c] sm:$0xf] }
  0xef   : > { %v1269_v0 = vrot.slane %v1267_v36, 4  ;;  %v1286_v3 = vshll.u32 %v1052_v31, 16  ;;  %v2341_v58 = vsel %vm4942_vm7, %v2336_v63, %v2340_v46  ;;  %v2580_v9 = vmax.bf16 %v4513_v49, %v2331_v38 }
  0xf0   : > { %v1272_v2 = vrot.slane %v1270_v60, 5  ;;  %v1278_v45 = vrot.slane %v1276_v29, 5  ;;  %v2581_v52 = vmax.bf16 %v4514_v50, %v2341_v58  ;;  %v1282_v53 = vrot.slane %v1280_v43, 4 }
  0xf1   : > { %v1288_v15 = vrot.slane %v1286_v3, 5  ;;  %v4420_v25 = vrot.slane %v1530_v59, 9  ;;  %v2820_v37 = vmax.bf16 %v2714_v28, %v2580_v9  ;;  %v1647_v16 = vrot.slane %v1051_v1, 5 }
  0xf2   : > { %v1273_v62 = vor.u32 %v1272_v2, %v1269_v0  ;;  %v1650_v51 = vrot.slane %v1052_v31, 5  ;;  %v2821_v26 = vmax.bf16 %v2717_v44, %v2581_v52  ;;  %v1283_v32 = vor.u32 %v1282_v53, %v1278_v45  ;;  %v1053_v52 = vld [vmem:[%s4925_s10 + $0x6c] sm:$0xf] }
  0xf3   : > { %v2343_v8 = vshrl.u32 %v4516_v13, 16  ;;  %v2346_v22 = vshll.u32 %v4516_v13, 16  ;;  %v2884_v57 = vmax.bf16 %v2852_v35, %v2820_v37  ;;  %v1648_v11 = vsel %vm4933_vm6, %v4420_v25, %v1647_v16  ;;  %v4548_v35 = vld [vmem:[%s4925_s10 + $0x78] sm:$0xe]  ;;  %v1054_v37 = vld [vmem:[%s4925_s10 + $0x70] sm:$0xf] }
  0xf4   : > { %v1274_v49 = vrot.slane %v1273_v62, 4  ;;  %v1649_v50 = vrot.slane %v1647_v16, 4  ;;  %v2885_v41 = vmax.bf16 %v2853_v39, %v2821_v26  ;;  %v1284_v12 = vrot.slane %v1283_v32, 4  ;;  %v1055_v26 = vld [vmem:[%s4925_s10 + $0x74] sm:$0x1] }
  0xf5   : > { %v2345_v19 = vrot.slane %v2343_v8, 4  ;;  %v2348_v27 = vrot.slane %v2346_v22, 5  ;;  %v5478_v46 = vpop.f32.mrb[0].mxu0  ;;  %v2352_v31 = vshll.u32 %v4517_v7, 16  ;;  %v2356_v40 = vshrl.u32 %v4517_v7, 16 }
  0xf6   : > { %v1279_v28 = vsel %vm4942_vm7, %v1274_v49, %v1278_v45  ;;  %v1651_v61 = vsel %vm4933_vm6, %v1649_v50, %v1650_v51  ;;  %v5485_v36 = vpop.f32.mrb[1].mxu0  ;;  %v4579_v63 = vcombine.low %v2884_v57, %v2885_v41  ;;  %v1289_v39 = vsel %vm4942_vm7, %v1284_v12, %v1288_v15  ;;  %v1531_v12 = vld [vmem:[%s4925_s10 + $0x6c] sm:$0xe] }
  0xf7   : > { %v1506_v44 = vmax.bf16 %v1279_v28, %v1050_v21  ;;  %v2349_v60 = vor.u32 %v2348_v27, %v2345_v19  ;;  %v5489_v29 = vpop.f32.mrb[2].mxu0  ;;  %v1507_v59 = vmax.bf16 %v1289_v39, %v1051_v1  ;;  %v2354_v38 = vrot.slane %v2352_v31, 5 }
  0xf8   : > { %v2358_v0 = vrot.slane %v2356_v40, 4  ;;  %v2362_v43 = vshll.u32 %v4518_v5, 16  ;;  %v5491_v3 = vpop.f32.mrb[3].mxu0  ;;  %4821 = vmatmul.mubr.msk.bf16.gmra.mrb[12].mxu1 %vm812_vm5, %v4579_v63  ;;  %v4564_v2 = vrot.slane %v4548_v35, 9  ;;  %v2720_v45 = vrot.slane %v4517_v7, 5 }
  0xf9   : > { %v1749_v58 = vmax.bf16 %v1648_v11, %v1506_v44  ;;  %v2350_v9 = vrot.slane %v2349_v60, 4  ;;  %v1750_v53 = vmax.bf16 %v1651_v61, %v1507_v59  ;;  %v2723_v25 = vrot.slane %v4518_v5, 5  ;;  %v4520_v44 = vld [vmem:[%s4925_s10 + $0x88] sm:$0xf] }
  0xfa   : > { %v2359_v21 = vor.u32 %v2358_v0, %v2354_v38  ;;  %v2364_v15 = vrot.slane %v2362_v43, 5  ;;  %v2721_v62 = vsel %vm4933_vm6, %v4564_v2, %v2720_v45  ;;  %v2722_v16 = vrot.slane %v2720_v45, 4 }
  0xfb   : > { %v2355_v1 = vsel %vm4942_vm7, %v2350_v9, %v2354_v38  ;;  %v2854_v51 = vmax.bf16 %v5110_v42, %v1749_v58  ;;  %v2855_v22 = vmax.bf16 %v5114_v47, %v1750_v53  ;;  %v1291_v57 = vshrl.u32 %v1053_v52, 16  ;;  %v4519_v47 = vld [vmem:[%s4925_s10 + $0x84] sm:$0xf] }
  0xfc   : > { %v2360_v32 = vrot.slane %v2359_v21, 4  ;;  %v2582_v8 = vmax.bf16 %v4516_v13, %v2355_v1  ;;  %v2724_v49 = vsel %vm4933_vm6, %v2722_v16, %v2723_v25  ;;  %v1294_v11 = vshll.u32 %v1053_v52, 16  ;;  %v4521_v21 = vld [vmem:[%s4925_s10 + $0x8c] sm:$0x1] }
  0xfd   : > { %v1300_v50 = vshll.u32 %v1054_v37, 16  ;;  %v1304_v41 = vshrl.u32 %v1054_v37, 16  ;;  %v1293_v42 = vrot.slane %v1291_v57, 4  ;;  %v1310_v27 = vshll.u32 %v1055_v26, 16 }
  0xfe   : > { %v2365_v5 = vsel %vm4942_vm7, %v2360_v32, %v2364_v15  ;;  %v2822_v19 = vmax.bf16 %v2721_v62, %v2582_v8  ;;  %v1296_v13 = vrot.slane %v1294_v11, 5  ;;  %v4421_v63 = vrot.slane %v1531_v12, 9 }
  0xff   : > { %v2583_v28 = vmax.bf16 %v4517_v7, %v2365_v5  ;;  %v1302_v61 = vrot.slane %v1300_v50, 5  ;;  %v1306_v31 = vrot.slane %v1304_v41, 4  ;;  %v1312_v35 = vrot.slane %v1310_v27, 5 }
 0x100   : > { %v2886_v40 = vmax.bf16 %v2854_v51, %v2822_v19  ;;  %v1654_v39 = vrot.slane %v1054_v37, 5  ;;  %v1297_v59 = vor.u32 %v1296_v13, %v1293_v42  ;;  %v1657_v0 = vrot.slane %v1055_v26, 5  ;;  %v4549_v26 = vld [vmem:[%s4925_s10 + $0x84] sm:$0xe]  ;;  %v5527_v19 = vld [vmem:[%s4925_s10 + $0x78] sm:$0xf] }
 0x101   : > { %v2823_v60 = vmax.bf16 %v2724_v49, %v2583_v28  ;;  %v1307_v38 = vor.u32 %v1306_v31, %v1302_v61  ;;  %v2367_v7 = vshrl.u32 %v4519_v47, 16  ;;  %v2370_v9 = vshll.u32 %v4519_v47, 16 }
 0x102   : > { %v1655_v43 = vsel %vm4933_vm6, %v4421_v63, %v1654_v39  ;;  %v1656_v58 = vrot.slane %v1654_v39, 4  ;;  %v1298_v45 = vrot.slane %v1297_v59, 4  ;;  %v2376_v15 = vshll.u32 %v4520_v44, 16  ;;  %v1058_v59 = vld [vmem:[%s4925_s10 + $0x80] sm:$0x1] }
 0x103   : > { %v2887_v2 = vmax.bf16 %v2855_v22, %v2823_v60  ;;  %v1308_v53 = vrot.slane %v1307_v38, 4  ;;  %v5513_v25 = vpop.f32.mrb[4].mxu0  ;;  %v2369_v62 = vrot.slane %v2367_v7, 4  ;;  %v2372_v16 = vrot.slane %v2370_v9, 5  ;;  %v1532_v9 = vld [vmem:[%s4925_s10 + $0x78] sm:$0xe] }
 0x104   : > { %v1658_v1 = vsel %vm4933_vm6, %v1656_v58, %v1657_v0  ;;  %v2380_v51 = vshrl.u32 %v4520_v44, 16  ;;  %v5518_v32 = vpop.f32.mrb[5].mxu0  ;;  %v1303_v22 = vsel %vm4942_vm7, %v1298_v45, %v1302_v61  ;;  %v2378_v49 = vrot.slane %v2376_v15, 5 }
 0x105   : > { %v4580_v8 = vcombine.low %v2886_v40, %v2887_v2  ;;  %v1313_v57 = vsel %vm4942_vm7, %v1308_v53, %v1312_v35  ;;  %v5524_v11 = vpop.f32.mrb[6].mxu0  ;;  %v1508_v50 = vmax.bf16 %v1303_v22, %v1053_v52  ;;  %v2373_v12 = vor.u32 %v2372_v16, %v2369_v62  ;;  %v1057_v52 = vld [vmem:[%s4925_s10 + $0x7c] sm:$0xf] }
 0x106   : > { %v1509_v41 = vmax.bf16 %v1313_v57, %v1054_v37  ;;  %v2382_v5 = vrot.slane %v2380_v51, 4  ;;  %v5529_v42 = vpop.f32.mrb[7].mxu0  ;;  %v2386_v27 = vshll.u32 %v4521_v21, 16  ;;  %v4565_v28 = vrot.slane %v4549_v26, 9 }
 0x107   : > { %4824 = vmatprep.mubr.msk.bf16.mxu1 %vm812_vm5, %v4580_v8  ;;  %v2727_v13 = vrot.slane %v4520_v44, 5  ;;  %v2730_v61 = vrot.slane %v4521_v21, 5  ;;  %v1751_v31 = vmax.bf16 %v1655_v43, %v1508_v50  ;;  %v2374_v35 = vrot.slane %v2373_v12, 4  ;;  %v4523_v50 = vld [vmem:[%s4925_s10 + $0x94] sm:$0xf] }
 0x108   : > { %v1752_v40 = vmax.bf16 %v1658_v1, %v1509_v41  ;;  %v2383_v63 = vor.u32 %v2382_v5, %v2378_v49  ;;  %v2388_v37 = vrot.slane %v2386_v27, 5  ;;  %v1315_v38 = vshrl.u32 %v5527_v19, 16 }
 0x109   : > { %v2728_v39 = vsel %vm4933_vm6, %v4565_v28, %v2727_v13  ;;  %v2729_v60 = vrot.slane %v2727_v13, 4  ;;  %v2379_v0 = vsel %vm4942_vm7, %v2374_v35, %v2378_v49  ;;  %v2856_v7 = vmax.bf16 %v5129_v23, %v1751_v31  ;;  %v4524_v35 = vld [vmem:[%s4925_s10 + $0x98] sm:$0x1] }
 0x10a   : > { %v2384_v58 = vrot.slane %v2383_v63, 4  ;;  %v2857_v43 = vmax.bf16 %v5133_v33, %v1752_v40  ;;  %v2584_v2 = vmax.bf16 %v4519_v47, %v2379_v0  ;;  %v1317_v53 = vrot.slane %v1315_v38, 4  ;;  %v5548_v33 = vld [vmem:[%s4925_s10 + $0x90] sm:$0xf] }
 0x10b   : > { %v2731_v45 = vsel %vm4933_vm6, %v2729_v60, %v2730_v61  ;;  %v1318_v21 = vshll.u32 %v5527_v19, 16  ;;  %v1324_v1 = vshll.u32 %v1057_v52, 16  ;;  %v1328_v62 = vshrl.u32 %v1057_v52, 16 }
 0x10c   : > { %v2389_v15 = vsel %vm4942_vm7, %v2384_v58, %v2388_v37  ;;  %v1334_v16 = vshll.u32 %v1058_v59, 16  ;;  %v2824_v26 = vmax.bf16 %v2728_v39, %v2584_v2  ;;  %v4422_v8 = vrot.slane %v1532_v9, 9  ;;  %v4550_v58 = vld [vmem:[%s4925_s10 + $0x90] sm:$0xe] }
 0x10d   : > { %v2585_v51 = vmax.bf16 %v4520_v44, %v2389_v15  ;;  %v1320_v23 = vrot.slane %v1318_v21, 5  ;;  %v1326_v47 = vrot.slane %v1324_v1, 5  ;;  %v1330_v22 = vrot.slane %v1328_v62, 4 }
 0x10e   : > { %v1336_v57 = vrot.slane %v1334_v16, 5  ;;  %v1661_v49 = vrot.slane %v1057_v52, 5  ;;  %v2888_v12 = vmax.bf16 %v2856_v7, %v2824_v26  ;;  %v1664_v27 = vrot.slane %v1058_v59, 5 }
 0x10f   : > { %v2825_v41 = vmax.bf16 %v2731_v45, %v2585_v51  ;;  %v1321_v5 = vor.u32 %v1320_v23, %v1317_v53  ;;  %v1331_v28 = vor.u32 %v1330_v22, %v1326_v47  ;;  %v2391_v61 = vshrl.u32 %v5548_v33, 16 }
 0x110   : > { %v1662_v44 = vsel %vm4933_vm6, %v4422_v8, %v1661_v49  ;;  %v1663_v13 = vrot.slane %v1661_v49, 4  ;;  %v2394_v63 = vshll.u32 %v5548_v33, 16  ;;  %v2400_v37 = vshll.u32 %v4523_v50, 16 }
 0x111   : > { %v2889_v31 = vmax.bf16 %v2857_v43, %v2825_v41  ;;  %v1322_v40 = vrot.slane %v1321_v5, 4  ;;  %v5556_v39 = vpop.f32.mrb[8].mxu0  ;;  %v1332_v60 = vrot.slane %v1331_v28, 4  ;;  %v2393_v59 = vrot.slane %v2391_v61, 4  ;;  %v1061_v61 = vld [vmem:[%s4925_s10 + $0x8c] sm:$0x1] }
 0x112   : > { %v1665_v38 = vsel %vm4933_vm6, %v1663_v13, %v1664_v27  ;;  %v2404_v0 = vshrl.u32 %v4523_v50, 16  ;;  %v5561_v7 = vpop.f32.mrb[9].mxu0  ;;  %v2396_v2 = vrot.slane %v2394_v63, 5  ;;  %v2402_v45 = vrot.slane %v2400_v37, 5 }
 0x113   : > { %v4581_v9 = vcombine.low %v2888_v12, %v2889_v31  ;;  %v1327_v43 = vsel %vm4942_vm7, %v1322_v40, %v1326_v47  ;;  %v5565_v53 = vpop.f32.mrb[10].mxu0  ;;  %v1337_v21 = vsel %vm4942_vm7, %v1332_v60, %v1336_v57  ;;  %v2410_v62 = vshll.u32 %v4524_v35, 16  ;;  %v1059_v47 = vld [vmem:[%s4925_s10 + $0x84] sm:$0xf]  ;;  %v5575_v57 = vld [vmem:[%s4925_s10 + $0x88] sm:$0xf] }
 0x114   : > { %v1510_v15 = vmax.bf16 %v1327_v43, %v5527_v19  ;;  %v2406_v1 = vrot.slane %v2404_v0, 4  ;;  %v5570_v16 = vpop.f32.mrb[11].mxu0  ;;  %v1511_v51 = vmax.bf16 %v1337_v21, %v1057_v52  ;;  %v2397_v26 = vor.u32 %v2396_v2, %v2393_v59  ;;  %v1533_v60 = vld [vmem:[%s4925_s10 + $0x84] sm:$0xe] }
 0x115   : > { %4825 = vmatmul.mubr.msk.bf16.gmra.mrb[16].mxu1 %vm812_vm5, %v4581_v9  ;;  %v4566_v23 = vrot.slane %v4550_v58, 9  ;;  %v2734_v8 = vrot.slane %v4523_v50, 5  ;;  %v2412_v41 = vrot.slane %v2410_v62, 5  ;;  %v2737_v12 = vrot.slane %v4524_v35, 5 }
 0x116   : > { %v1753_v22 = vmax.bf16 %v1662_v44, %v1510_v15  ;;  %v2407_v49 = vor.u32 %v2406_v1, %v2402_v45  ;;  %v1754_v19 = vmax.bf16 %v1665_v38, %v1511_v51  ;;  %v2398_v5 = vrot.slane %v2397_v26, 4  ;;  %v4525_v1 = vld [vmem:[%s4925_s10 + $0x9c] sm:$0xf] }
 0x117   : > { %v2735_v27 = vsel %vm4933_vm6, %v4566_v23, %v2734_v8  ;;  %v2736_v28 = vrot.slane %v2734_v8, 4  ;;  %v1339_v31 = vshrl.u32 %v1059_v47, 16  ;;  %v1342_v40 = vshll.u32 %v1059_v47, 16 }
 0x118   : > { %v2408_v13 = vrot.slane %v2407_v49, 4  ;;  %v2858_v52 = vmax.bf16 %v5203_v6, %v1753_v22  ;;  %v2403_v44 = vsel %vm4942_vm7, %v2398_v5, %v2402_v45  ;;  %v2859_v63 = vmax.bf16 %v5207_v10, %v1754_v19  ;;  %v4527_v5 = vld [vmem:[%s4925_s10 + $0xa4] sm:$0x1] }
 0x119   : > { %v2738_v35 = vsel %vm4933_vm6, %v2736_v28, %v2737_v12  ;;  %v1348_v37 = vshll.u32 %v5575_v57, 16  ;;  %v2586_v6 = vmax.bf16 %v5548_v33, %v2403_v44  ;;  %v1341_v59 = vrot.slane %v1339_v31, 4  ;;  %v4526_v33 = vld [vmem:[%s4925_s10 + $0xa0] sm:$0xf]  ;;  %v4551_v44 = vld [vmem:[%s4925_s10 + $0x9c] sm:$0xe] }
 0x11a   : > { %v2413_v38 = vsel %vm4942_vm7, %v2408_v13, %v2412_v41  ;;  %v1344_v0 = vrot.slane %v1342_v40, 5  ;;  %v1352_v43 = vshrl.u32 %v5575_v57, 16  ;;  %v1358_v2 = vshll.u32 %v1061_v61, 16 }
 0x11b   : > { %v2587_v58 = vmax.bf16 %v4523_v50, %v2413_v38  ;;  %v1350_v9 = vrot.slane %v1348_v37, 5  ;;  %v2826_v45 = vmax.bf16 %v2735_v27, %v2586_v6  ;;  %v4423_v10 = vrot.slane %v1533_v60, 9 }
 0x11c   : > { %v1345_v21 = vor.u32 %v1344_v0, %v1341_v59  ;;  %v1668_v15 = vrot.slane %v5575_v57, 5  ;;  %v1354_v51 = vrot.slane %v1352_v43, 4  ;;  %v1360_v26 = vrot.slane %v1358_v2, 5 }
 0x11d   : > { %v2827_v62 = vmax.bf16 %v2738_v35, %v2587_v58  ;;  %v1671_v23 = vrot.slane %v1061_v61, 5  ;;  %v2890_v8 = vmax.bf16 %v2858_v52, %v2826_v45  ;;  %v2415_v27 = vshrl.u32 %v4525_v1, 16 }
 0x11e   : > { %v1346_v22 = vrot.slane %v1345_v21, 4  ;;  %v1669_v50 = vsel %vm4933_vm6, %v4423_v10, %v1668_v15  ;;  %v1670_v49 = vrot.slane %v1668_v15, 4  ;;  %v5597_v41 = vpop.f32.mrb[12].mxu0  ;;  %v1355_v19 = vor.u32 %v1354_v51, %v1350_v9  ;;  %v1062_v10 = vld [vmem:[%s4925_s10 + $0x90] sm:$0xf] }
 0x11f   : > { %v2891_v12 = vmax.bf16 %v2859_v63, %v2827_v62  ;;  %v2418_v28 = vshll.u32 %v4525_v1, 16  ;;  %v5600_v13 = vpop.f32.mrb[13].mxu0  ;;  %v2424_v31 = vshll.u32 %v4526_v33, 16  ;;  %v2428_v40 = vshrl.u32 %v4526_v33, 16 }
 0x120   : > { %v1351_v61 = vsel %vm4942_vm7, %v1346_v22, %v1350_v9  ;;  %v1672_v52 = vsel %vm4933_vm6, %v1670_v49, %v1671_v23  ;;  %v5607_v35 = vpop.f32.mrb[14].mxu0  ;;  %v1356_v63 = vrot.slane %v1355_v19, 4  ;;  %v2417_v38 = vrot.slane %v2415_v27, 4  ;;  %v1063_v23 = vld [vmem:[%s4925_s10 + $0x94] sm:$0xf] }
 0x121   : > { %v4582_v37 = vcombine.low %v2890_v8, %v2891_v12  ;;  %v1512_v60 = vmax.bf16 %v1351_v61, %v1059_v47  ;;  %v5609_v6 = vpop.f32.mrb[15].mxu0  ;;  %v2420_v59 = vrot.slane %v2418_v28, 5  ;;  %v2426_v0 = vrot.slane %v2424_v31, 5  ;;  %v1064_v27 = vld [vmem:[%s4925_s10 + $0x98] sm:$0x1] }
 0x122   : > { %v2430_v58 = vrot.slane %v2428_v40, 4  ;;  %v2434_v9 = vshll.u32 %v4527_v5, 16  ;;  %v1361_v43 = vsel %vm4942_vm7, %v1356_v63, %v1360_v26  ;;  %v4567_v45 = vrot.slane %v4551_v44, 9  ;;  %v1534_v44 = vld [vmem:[%s4925_s10 + $0x90] sm:$0xe] }
 0x123   : > { %4828 = vmatprep.mubr.msk.bf16.mxu1 %vm812_vm5, %v4582_v37  ;;  %v1755_v2 = vmax.bf16 %v1669_v50, %v1512_v60  ;;  %v2741_v21 = vrot.slane %v4526_v33, 5  ;;  %v1513_v47 = vmax.bf16 %v1361_v43, %v5575_v57  ;;  %v2421_v15 = vor.u32 %v2420_v59, %v2417_v38 }
 0x124   : > { %v2431_v62 = vor.u32 %v2430_v58, %v2426_v0  ;;  %v2436_v51 = vrot.slane %v2434_v9, 5  ;;  %v2744_v49 = vrot.slane %v4527_v5, 5  ;;  %v1363_v28 = vshrl.u32 %v1062_v10, 16 }
 0x125   : > { %v2742_v8 = vsel %vm4933_vm6, %v4567_v45, %v2741_v21  ;;  %v2743_v22 = vrot.slane %v2741_v21, 4  ;;  %v2860_v12 = vmax.bf16 %v5225_v55, %v1755_v2  ;;  %v1756_v26 = vmax.bf16 %v1672_v52, %v1513_v47  ;;  %v5630_v45 = vld [vmem:[%s4925_s10 + $0xa8] sm:$0xf] }
 0x126   : > { %v2422_v50 = vrot.slane %v2421_v15, 4  ;;  %v2432_v19 = vrot.slane %v2431_v62, 4  ;;  %v1366_v61 = vshll.u32 %v1062_v10, 16  ;;  %v1372_v31 = vshll.u32 %v1063_v23, 16  ;;  %v4529_v62 = vld [vmem:[%s4925_s10 + $0xac] sm:$0xf] }
 0x127   : > { %v2745_v57 = vsel %vm4933_vm6, %v2743_v22, %v2744_v49  ;;  %v1376_v40 = vshrl.u32 %v1063_v23, 16  ;;  %v2861_v55 = vmax.bf16 %v5231_v14, %v1756_v26  ;;  %v1365_v52 = vrot.slane %v1363_v28, 4 }
 0x128   : > { %v2427_v37 = vsel %vm4942_vm7, %v2422_v50, %v2426_v0  ;;  %v2437_v5 = vsel %vm4942_vm7, %v2432_v19, %v2436_v51  ;;  %v1368_v38 = vrot.slane %v1366_v61, 5  ;;  %v1374_v59 = vrot.slane %v1372_v31, 5  ;;  %v4530_v19 = vld [vmem:[%s4925_s10 + $0xb0] sm:$0x1] }
 0x129   : > { %v2588_v63 = vmax.bf16 %v4525_v1, %v2427_v37  ;;  %v2589_v60 = vmax.bf16 %v4526_v33, %v2437_v5  ;;  %v1378_v58 = vrot.slane %v1376_v40, 4  ;;  %v1382_v9 = vshll.u32 %v1064_v27, 16  ;;  %v4552_v40 = vld [vmem:[%s4925_s10 + $0xa8] sm:$0xe] }
 0x12a   : > { %v4424_v43 = vrot.slane %v1534_v44, 9  ;;  %v1675_v2 = vrot.slane %v1063_v23, 5  ;;  %v1369_v47 = vor.u32 %v1368_v38, %v1365_v52  ;;  %v1678_v15 = vrot.slane %v1064_v27, 5 }
 0x12b   : > { %v2828_v21 = vmax.bf16 %v2742_v8, %v2588_v63  ;;  %v2829_v0 = vmax.bf16 %v2745_v57, %v2589_v60  ;;  %v1379_v51 = vor.u32 %v1378_v58, %v1374_v59  ;;  %v1384_v14 = vrot.slane %v1382_v9, 5  ;;  %v5654_v9 = vld [vmem:[%s4925_s10 + $0x9c] sm:$0xf] }
 0x12c   : > { %v1676_v1 = vsel %vm4933_vm6, %v4424_v43, %v1675_v2  ;;  %v1677_v33 = vrot.slane %v1675_v2, 4  ;;  %v5635_v22 = vpop.f32.mrb[16].mxu0  ;;  %v1370_v50 = vrot.slane %v1369_v47, 4  ;;  %v2439_v28 = vshrl.u32 %v5630_v45, 16 }
 0x12d   : > { %v2892_v49 = vmax.bf16 %v2860_v12, %v2828_v21  ;;  %v2893_v26 = vmax.bf16 %v2861_v55, %v2829_v0  ;;  %v5639_v8 = vpop.f32.mrb[17].mxu0  ;;  %v1380_v27 = vrot.slane %v1379_v51, 4  ;;  %v2442_v61 = vshll.u32 %v5630_v45, 16 }
 0x12e   : > { %v1679_v57 = vsel %vm4933_vm6, %v1677_v33, %v1678_v15  ;;  %v2448_v31 = vshll.u32 %v4529_v62, 16  ;;  %v5645_v44 = vpop.f32.mrb[18].mxu0  ;;  %v1375_v12 = vsel %vm4942_vm7, %v1370_v50, %v1374_v59  ;;  %v2441_v5 = vrot.slane %v2439_v28, 4 }
 0x12f   : > { %v4583_v37 = vcombine.low %v2892_v49, %v2893_v26  ;;  %v2452_v55 = vshrl.u32 %v4529_v62, 16  ;;  %v5649_v52 = vpop.f32.mrb[19].mxu0  ;;  %v1385_v63 = vsel %vm4942_vm7, %v1380_v27, %v1384_v14  ;;  %v1514_v60 = vmax.bf16 %v1375_v12, %v1062_v10  ;;  %v1066_v49 = vld [vmem:[%s4925_s10 + $0xa0] sm:$0xf] }
 0x130   : > { %v2444_v38 = vrot.slane %v2442_v61, 5  ;;  %v2450_v58 = vrot.slane %v2448_v31, 5  ;;  %v1515_v43 = vmax.bf16 %v1385_v63, %v1063_v23  ;;  %v2458_v21 = vshll.u32 %v4530_v19, 16  ;;  %v1067_v61 = vld [vmem:[%s4925_s10 + $0xa4] sm:$0x1] }
 0x131   : > { %4829 = vmatmul.mubr.msk.bf16.gmra.mrb[20].mxu1 %vm812_vm5, %v4583_v37  ;;  %v2454_v2 = vrot.slane %v2452_v55, 4  ;;  %v4568_v59 = vrot.slane %v4552_v40, 9  ;;  %v1757_v0 = vmax.bf16 %v1676_v1, %v1514_v60  ;;  %v2748_v15 = vrot.slane %v4529_v62, 5 }
 0x132   : > { %v2445_v47 = vor.u32 %v2444_v38, %v2441_v5  ;;  %v2751_v51 = vrot.slane %v4530_v19, 5  ;;  %v1758_v33 = vmax.bf16 %v1679_v57, %v1515_v43  ;;  %v2460_v10 = vrot.slane %v2458_v21, 5  ;;  %v1535_v57 = vld [vmem:[%s4925_s10 + $0x9c] sm:$0xe]  ;;  %v5674_v38 = vld [vmem:[%s4925_s10 + $0xb4] sm:$0xf] }
 0x133   : > { %v2455_v14 = vor.u32 %v2454_v2, %v2450_v58  ;;  %v1387_v26 = vshrl.u32 %v5654_v9, 16  ;;  %v2749_v28 = vsel %vm4933_vm6, %v4568_v59, %v2748_v15  ;;  %v2750_v23 = vrot.slane %v2748_v15, 4 }
 0x134   : > { %v2446_v50 = vrot.slane %v2445_v47, 4  ;;  %v2862_v27 = vmax.bf16 %v5298_v54, %v1757_v0  ;;  %v2863_v31 = vmax.bf16 %v5306_v34, %v1758_v33  ;;  %v1390_v19 = vshll.u32 %v5654_v9, 16 }
 0x135   : > { %v2456_v1 = vrot.slane %v2455_v14, 4  ;;  %v1389_v40 = vrot.slane %v1387_v26, 4  ;;  %v2752_v12 = vsel %vm4933_vm6, %v2750_v23, %v2751_v51  ;;  %v1396_v5 = vshll.u32 %v1066_v49, 16 }
 0x136   : > { %v2451_v37 = vsel %vm4942_vm7, %v2446_v50, %v2450_v58  ;;  %v1400_v55 = vshrl.u32 %v1066_v49, 16  ;;  %v1392_v60 = vrot.slane %v1390_v19, 5  ;;  %v1406_v34 = vshll.u32 %v1067_v61, 16 }
 0x137   : > { %v2461_v63 = vsel %vm4942_vm7, %v2456_v1, %v2460_v10  ;;  %v2590_v54 = vmax.bf16 %v5630_v45, %v2451_v37  ;;  %v1398_v2 = vrot.slane %v1396_v5, 5  ;;  %v4425_v59 = vrot.slane %v1535_v57, 9  ;;  %v4532_v10 = vld [vmem:[%s4925_s10 + $0xb8] sm:$0xf]  ;;  %v4533_v57 = vld [vmem:[%s4925_s10 + $0xbc] sm:$0x1] }
 0x138   : > { %v2591_v43 = vmax.bf16 %v4529_v62, %v2461_v63  ;;  %v1402_v21 = vrot.slane %v1400_v55, 4  ;;  %v1393_v0 = vor.u32 %v1392_v60, %v1389_v40  ;;  %v1408_v47 = vrot.slane %v1406_v34, 5  ;;  %v4553_v5 = vld [vmem:[%s4925_s10 + $0xb4] sm:$0xe] }
 0x139   : > { %v2830_v58 = vmax.bf16 %v2749_v28, %v2590_v54  ;;  %v1682_v15 = vrot.slane %v1066_v49, 5  ;;  %v1685_v14 = vrot.slane %v1067_v61, 5  ;;  %v2463_v45 = vshrl.u32 %v5674_v38, 16 }
 0x13a   : > { %v2831_v51 = vmax.bf16 %v2752_v12, %v2591_v43  ;;  %v1403_v33 = vor.u32 %v1402_v21, %v1398_v2  ;;  %v1394_v50 = vrot.slane %v1393_v0, 4  ;;  %v2466_v40 = vshll.u32 %v5674_v38, 16 }
 0x13b   : > { %v2894_v26 = vmax.bf16 %v2862_v27, %v2830_v58  ;;  %v1683_v62 = vsel %vm4933_vm6, %v4425_v59, %v1682_v15  ;;  %v1684_v23 = vrot.slane %v1682_v15, 4  ;;  %v2465_v28 = vrot.slane %v2463_v45, 4  ;;  %v1068_v15 = vld [vmem:[%s4925_s10 + $0xa8] sm:$0xf] }
 0x13c   : > { %v2895_v1 = vmax.bf16 %v2863_v31, %v2831_v51  ;;  %v1404_v19 = vrot.slane %v1403_v33, 4  ;;  %v1399_v37 = vsel %vm4942_vm7, %v1394_v50, %v1398_v2  ;;  %v2472_v12 = vshll.u32 %v4532_v10, 16 }
 0x13d   : > { %v1686_v61 = vsel %vm4933_vm6, %v1684_v23, %v1685_v14  ;;  %v2476_v27 = vshrl.u32 %v4532_v10, 16  ;;  %v1516_v31 = vmax.bf16 %v1399_v37, %v5654_v9  ;;  %v2468_v54 = vrot.slane %v2466_v40, 5  ;;  %v1069_v9 = vld [vmem:[%s4925_s10 + $0xac] sm:$0xf] }
 0x13e   : > { %v4584_v55 = vcombine.low %v2894_v26, %v2895_v1  ;;  %v1409_v63 = vsel %vm4942_vm7, %v1404_v19, %v1408_v47  ;;  %v2474_v34 = vrot.slane %v2472_v12, 5  ;;  %v2482_v21 = vshll.u32 %v4533_v57, 16  ;;  %v1070_v1 = vld [vmem:[%s4925_s10 + $0xb0] sm:$0x1]  ;;  %v1536_v12 = vld [vmem:[%s4925_s10 + $0xa8] sm:$0xe] }
 0x13f   : > { %v1517_v60 = vmax.bf16 %v1409_v63, %v1066_v49  ;;  %v2478_v43 = vrot.slane %v2476_v27, 4  ;;  %v1759_v2 = vmax.bf16 %v1683_v62, %v1516_v31  ;;  %v2469_v59 = vor.u32 %v2468_v54, %v2465_v28 }
 0x140   : > { %4832 = vmatprep.mubr.msk.bf16.mxu1 %vm812_vm5, %v4584_v55  ;;  %v4569_v58 = vrot.slane %v4553_v5, 9  ;;  %v2755_v0 = vrot.slane %v4532_v10, 5  ;;  %v2484_v14 = vrot.slane %v2482_v21, 5  ;;  %v2758_v47 = vrot.slane %v4533_v57, 5 }
 0x141   : > { %v1760_v51 = vmax.bf16 %v1686_v61, %v1517_v60  ;;  %v2479_v33 = vor.u32 %v2478_v43, %v2474_v34  ;;  %v2470_v45 = vrot.slane %v2469_v59, 4  ;;  %v2864_v50 = vmax.bf16 %v5321_v24, %v1759_v2  ;;  %v4534_v2 = vld [vmem:[%s4925_s10 + $0xc0] sm:$0xf] }
 0x142   : > { %v2756_v49 = vsel %vm4933_vm6, %v4569_v58, %v2755_v0  ;;  %v2757_v26 = vrot.slane %v2755_v0, 4  ;;  %v1411_v19 = vshrl.u32 %v1068_v15, 16  ;;  %v1414_v28 = vshll.u32 %v1068_v15, 16 }
 0x143   : > { %v2480_v23 = vrot.slane %v2479_v33, 4  ;;  %v2865_v62 = vmax.bf16 %v5329_v56, %v1760_v51  ;;  %v2475_v40 = vsel %vm4942_vm7, %v2470_v45, %v2474_v34  ;;  %v1420_v37 = vshll.u32 %v1069_v9, 16  ;;  %v4535_v33 = vld [vmem:[%s4925_s10 + $0xc4] sm:$0xf] }
 0x144   : > { %v2759_v57 = vsel %vm4933_vm6, %v2757_v26, %v2758_v47  ;;  %v1424_v61 = vshrl.u32 %v1069_v9, 16  ;;  %v2592_v24 = vmax.bf16 %v5674_v38, %v2475_v40  ;;  %v1413_v56 = vrot.slane %v1411_v19, 4  ;;  %v4536_v40 = vld [vmem:[%s4925_s10 + $0xc8] sm:$0x1] }
 0x145   : > { %v2485_v27 = vsel %vm4942_vm7, %v2480_v23, %v2484_v14  ;;  %v1416_v5 = vrot.slane %v1414_v28, 5  ;;  %v1422_v63 = vrot.slane %v1420_v37, 5  ;;  %v1430_v54 = vshll.u32 %v1070_v1, 16 }
 0x146   : > { %v2593_v55 = vmax.bf16 %v4532_v10, %v2485_v27  ;;  %v1426_v31 = vrot.slane %v1424_v61, 4  ;;  %v2832_v60 = vmax.bf16 %v2756_v49, %v2592_v24  ;;  %v4426_v43 = vrot.slane %v1536_v12, 9 }
 0x147   : > { %v1417_v34 = vor.u32 %v1416_v5, %v1413_v56  ;;  %v1689_v21 = vrot.slane %v1069_v9, 5  ;;  %v1432_v0 = vrot.slane %v1430_v54, 5  ;;  %v1692_v51 = vrot.slane %v1070_v1, 5 }
 0x148   : > { %v2833_v59 = vmax.bf16 %v2759_v57, %v2593_v55  ;;  %v1427_v58 = vor.u32 %v1426_v31, %v1422_v63  ;;  %v2896_v38 = vmax.bf16 %v2864_v50, %v2832_v60  ;;  %v2487_v49 = vshrl.u32 %v4534_v2, 16  ;;  %v4554_v50 = vld [vmem:[%s4925_s10 + $0xc0] sm:$0xe]  ;;  %v5720_v60 = vld [vmem:[%s4925_s10 + $0xb4] sm:$0xf] }
 0x149   : > { %v1418_v14 = vrot.slane %v1417_v34, 4  ;;  %v1690_v10 = vsel %vm4933_vm6, %v4426_v43, %v1689_v21  ;;  %v1691_v47 = vrot.slane %v1689_v21, 4  ;;  %v2490_v23 = vshll.u32 %v4534_v2, 16 }
 0x14a   : > { %v2897_v45 = vmax.bf16 %v2865_v62, %v2833_v59  ;;  %v1428_v26 = vrot.slane %v1427_v58, 4  ;;  %v2496_v57 = vshll.u32 %v4535_v33, 16  ;;  %v2500_v1 = vshrl.u32 %v4535_v33, 16  ;;  %v5725_v58 = vld [vmem:[%s4925_s10 + $0xb8] sm:$0xf] }
 0x14b   : > { %v1423_v19 = vsel %vm4942_vm7, %v1418_v14, %v1422_v63  ;;  %v1693_v28 = vsel %vm4933_vm6, %v1691_v47, %v1692_v51  ;;  %v2489_v62 = vrot.slane %v2487_v49, 4  ;;  %v2492_v24 = vrot.slane %v2490_v23, 5 }
 0x14c   : > { %v4585_v37 = vcombine.low %v2896_v38, %v2897_v45  ;;  %v1433_v61 = vsel %vm4942_vm7, %v1428_v26, %v1432_v0  ;;  %v1518_v12 = vmax.bf16 %v1423_v19, %v1068_v15  ;;  %v2498_v56 = vrot.slane %v2496_v57, 5 }
 0x14d   : > { %v1519_v27 = vmax.bf16 %v1433_v61, %v1069_v9  ;;  %v2502_v5 = vrot.slane %v2500_v1, 4  ;;  %v2506_v63 = vshll.u32 %v4536_v40, 16  ;;  %v4570_v31 = vrot.slane %v4554_v50, 9  ;;  %v1537_v1 = vld [vmem:[%s4925_s10 + $0xb4] sm:$0xe] }
 0x14e   : > { %4833 = vmatmul.mubr.msk.bf16.gmra.mrb[24].mxu1 %vm812_vm5, %v4585_v37  ;;  %v1761_v55 = vmax.bf16 %v1690_v10, %v1518_v12  ;;  %v2762_v54 = vrot.slane %v4535_v33, 5  ;;  %v5722_v34 = vpop.f32.mrb[0].mxu1  ;;  %v2493_v21 = vor.u32 %v2492_v24, %v2489_v62  ;;  %v2765_v59 = vrot.slane %v4536_v40, 5  ;;  %v1073_v10 = vld [vmem:[%s4925_s10 + $0xbc] sm:$0x1] }
 0x14f   : > { %v1762_v43 = vmax.bf16 %v1693_v28, %v1519_v27  ;;  %v2503_v15 = vor.u32 %v2502_v5, %v2498_v56  ;;  %v5727_v9 = vpop.f32.mrb[1].mxu1  ;;  %v2508_v0 = vrot.slane %v2506_v63, 5  ;;  %v1435_v23 = vshrl.u32 %v5720_v60, 16  ;;  %v4537_v5 = vld [vmem:[%s4925_s10 + $0xcc] sm:$0xf] }
 0x150   : > { %v2763_v51 = vsel %vm4933_vm6, %v4570_v31, %v2762_v54  ;;  %v2764_v38 = vrot.slane %v2762_v54, 4  ;;  %v2866_v14 = vmax.bf16 %v5397_v17, %v1761_v55  ;;  %v5733_v47 = vpop.f32.mrb[2].mxu1  ;;  %v2494_v45 = vrot.slane %v2493_v21, 4 }
 0x151   : > { %v2504_v26 = vrot.slane %v2503_v15, 4  ;;  %v2867_v49 = vmax.bf16 %v5401_v48, %v1762_v43  ;;  %v5737_v19 = vpop.f32.mrb[3].mxu1  ;;  %v1438_v40 = vshll.u32 %v5720_v60, 16  ;;  %v1444_v57 = vshll.u32 %v5725_v58, 16 }
 0x152   : > { %v2766_v28 = vsel %vm4933_vm6, %v2764_v38, %v2765_v59  ;;  %v1448_v17 = vshrl.u32 %v5725_v58, 16  ;;  %v2499_v50 = vsel %vm4942_vm7, %v2494_v45, %v2498_v56  ;;  %v1437_v37 = vrot.slane %v1435_v23, 4  ;;  %v4538_v59 = vld [vmem:[%s4925_s10 + $0xd0] sm:$0xf] }
 0x153   : > { %v2509_v48 = vsel %vm4942_vm7, %v2504_v26, %v2508_v0  ;;  %v1454_v61 = vshll.u32 %v1073_v10, 16  ;;  %v2594_v12 = vmax.bf16 %v4534_v2, %v2499_v50  ;;  %v1440_v27 = vrot.slane %v1438_v40, 5  ;;  %v4539_v40 = vld [vmem:[%s4925_s10 + $0xd4] sm:$0x1]  ;;  %v4555_v50 = vld [vmem:[%s4925_s10 + $0xcc] sm:$0xe] }
 0x154   : > { %v2595_v62 = vmax.bf16 %v4535_v33, %v2509_v48  ;;  %v1446_v24 = vrot.slane %v1444_v57, 5  ;;  %v1450_v55 = vrot.slane %v1448_v17, 4  ;;  %v4427_v31 = vrot.slane %v1537_v1, 9 }
 0x155   : > { %v1456_v63 = vrot.slane %v1454_v61, 5  ;;  %v1696_v54 = vrot.slane %v5725_v58, 5  ;;  %v2834_v43 = vmax.bf16 %v2763_v51, %v2594_v12  ;;  %v1441_v56 = vor.u32 %v1440_v27, %v1437_v37 }
 0x156   : > { %v2835_v21 = vmax.bf16 %v2766_v28, %v2595_v62  ;;  %v1699_v15 = vrot.slane %v1073_v10, 5  ;;  %v1451_v0 = vor.u32 %v1450_v55, %v1446_v24  ;;  %v2511_v38 = vshrl.u32 %v4537_v5, 16 }
 0x157   : > { %v1697_v2 = vsel %vm4933_vm6, %v4427_v31, %v1696_v54  ;;  %v1698_v33 = vrot.slane %v1696_v54, 4  ;;  %v2898_v45 = vmax.bf16 %v2866_v14, %v2834_v43  ;;  %v1442_v23 = vrot.slane %v1441_v56, 4  ;;  %v5755_v17 = vpop.f32.mrb[20].mxu0 }
 0x158   : > { %v2899_v26 = vmax.bf16 %v2867_v49, %v2835_v21  ;;  %v2514_v57 = vshll.u32 %v4537_v5, 16  ;;  %v1452_v51 = vrot.slane %v1451_v0, 4  ;;  %v2513_v28 = vrot.slane %v2511_v38, 4  ;;  %v5760_v48 = vpop.f32.mrb[21].mxu0 }
 0x159   : > { %v1700_v10 = vsel %vm4933_vm6, %v1698_v33, %v1699_v15  ;;  %v2520_v1 = vshll.u32 %v4538_v59, 16  ;;  %v1447_v14 = vsel %vm4942_vm7, %v1442_v23, %v1446_v24  ;;  %v2524_v49 = vshrl.u32 %v4538_v59, 16  ;;  %v5767_v12 = vpop.f32.mrb[22].mxu0 }
 0x15a   : > { %v4586_v37 = vcombine.low %v2898_v45, %v2899_v26  ;;  %v2516_v61 = vrot.slane %v2514_v57, 5  ;;  %v1457_v62 = vsel %vm4942_vm7, %v1452_v51, %v1456_v63  ;;  %v1520_v27 = vmax.bf16 %v1447_v14, %v5720_v60  ;;  %v5772_v54 = vpop.f32.mrb[23].mxu0 }
 0x15b   : > { %v2522_v55 = vrot.slane %v2520_v1, 5  ;;  %v2530_v31 = vshll.u32 %v4539_v40, 16  ;;  %v1521_v24 = vmax.bf16 %v1457_v62, %v5725_v58  ;;  %v2526_v21 = vrot.slane %v2524_v49, 4 }
 0x15c   : > { %4836 = vmatprep.mubr.msk.bf16.mxu1 %vm812_vm5, %v4586_v37  ;;  %v2517_v43 = vor.u32 %v2516_v61, %v2513_v28  ;;  %v4571_v56 = vrot.slane %v4555_v50, 9  ;;  %v1763_v15 = vmax.bf16 %v1697_v2, %v1520_v27  ;;  %v2769_v0 = vrot.slane %v4538_v59, 5 }
 0x15d   : > { %v2772_v33 = vrot.slane %v4539_v40, 5  ;;  %v2527_v63 = vor.u32 %v2526_v21, %v2522_v55  ;;  %v2532_v38 = vrot.slane %v2530_v31, 5  ;;  %v4676_v45 = vpack.c.bf16 %v5478_v46, %v5478_v46 }
 0x15e   : > { %v2518_v60 = vrot.slane %v2517_v43, 4  ;;  %v1764_v26 = vmax.bf16 %v1700_v10, %v1521_v24  ;;  %v2771_v58 = vrot.slane %v2769_v0, 4  ;;  %v2770_v40 = vsel %vm4933_vm6, %v4571_v56, %v2769_v0 }
 0x15f   : > { %v2528_v23 = vrot.slane %v2527_v63, 4  ;;  %3326 = vst.msk [vmem:[%s5780_s14 + $0x8] sm:$0xf] %vm3323_vm8, %v4676_v45  ;;  %3489 = vrot.lane.b32.xlu0 %v4676_v45, %s4862_s15  ;;  %3360 = vrot.lane.b32.xlu1 %v4676_v45, %s4863_s16  ;;  %v2868_v10 = vmax.bf16 %v5415_v20, %v1763_v15  ;;  %v3920_v1 = vmul.f32 %v5478_v46, %v5478_v46  ;;  %v3777_v30 = vsel %vm3773_vm9, %v5478_v46, 0.0 }
 0x160   : > { %v2523_v2 = vsel %vm4942_vm7, %v2518_v60, %v2522_v55  ;;  %v2773_v51 = vsel %vm4933_vm6, %v2771_v58, %v2772_v33  ;;  %v4674_v50 = vpack.c.bf16 %v5485_v36, %v5485_v36  ;;  %v3918_v37 = vmul.f32 %v5485_v36, %v5485_v36 }
 0x161   : > { %v2596_v57 = vmax.bf16 %v4537_v5, %v2523_v2  ;;  %v2533_v28 = vsel %vm4942_vm7, %v2528_v23, %v2532_v38  ;;  %v2869_v18 = vmax.bf16 %v5420_v4, %v1764_v26  ;;  %v4677_v20 = vpack.c.bf16 %v5489_v29, %v5489_v29 }
 0x162   : > { %v2597_v5 = vmax.bf16 %v4538_v59, %v2533_v28  ;;  %3324 = vst.msk [vmem:[%s5780_s14] sm:$0xf] %vm3323_vm8, %v4674_v50  ;;  %v3774_v61 = vsel %vm3773_vm9, %v5485_v36, 0.0  ;;  %v3921_v49 = vmul.f32 %v5489_v29, %v5489_v29  ;;  %v4675_v59 = vpack.c.bf16 %v5491_v3, %v5491_v3 }
 0x163   : > { %v2836_v14 = vmax.bf16 %v2770_v40, %v2596_v57  ;;  %3356 = vrot.lane.b32.xlu0 %v4674_v50, %s4863_s16  ;;  %3327 = vst.msk [vmem:[%s5780_s14 + $0xc] sm:$0xf] %vm3323_vm8, %v4677_v20  ;;  %v3775_v46 = vsel %vm3773_vm9, %v5491_v3, 0.0  ;;  %v3919_v27 = vmul.f32 %v5491_v3, %v5491_v3  ;;  %3362 = vrot.lane.b32.xlu1 %v4677_v20, %s4863_s16  ;;  %v3953_v36 = vsel %vm3773_vm9, %v3920_v1, 0.0 }
 0x164   : > { %v2837_v4 = vmax.bf16 %v2773_v51, %v2597_v5  ;;  %v3950_v55 = vsel %vm3773_vm9, %v3918_v37, 0.0  ;;  %3325 = vst.msk [vmem:[%s5780_s14 + $0x4] sm:$0xf] %vm3323_vm8, %v4675_v59  ;;  %v3776_v31 = vadd.f32 %v3775_v46, %v3774_v61  ;;  %v5830_v24 = vpack.c.bf16 %v5513_v25, %v5513_v25 }
 0x165   : > { %v2900_v62 = vmax.bf16 %v2868_v10, %v2836_v14  ;;  %v3779_v21 = vsel %vm3773_vm9, %v5489_v29, 0.0  ;;  %v3951_v3 = vsel %vm3773_vm9, %v3919_v27, 0.0  ;;  %v5837_v56 = vpack.c.bf16 %v5518_v32, %v5518_v32 }
 0x166   : > { %v2901_v43 = vmax.bf16 %v2869_v18, %v2837_v4  ;;  %v3778_v15 = vadd.f32 %v3777_v30, %v3776_v31  ;;  %v3952_v0 = vadd.f32 %v3951_v3, %v3950_v55  ;;  %3330 = vst.msk [vmem:[%s5780_s14 + $0x18] sm:$0xf] %vm3323_vm8, %v5830_v24  ;;  %v3924_v33 = vmul.f32 %v5513_v25, %v5513_v25 }
 0x167   : > { %v3922_v60 = vmul.f32 %v5518_v32, %v5518_v32  ;;  %3485 = vrot.lane.b32.xlu0 %v4674_v50, %s4862_s15  ;;  %v3955_v63 = vsel %vm3773_vm9, %v3921_v49, 0.0  ;;  %3328 = vst.msk [vmem:[%s5780_s14 + $0x10] sm:$0xf] %vm3323_vm8, %v5837_v56  ;;  %v3781_v38 = vsel %vm3773_vm9, %v5518_v32, 0.0  ;;  %v4681_v45 = vpack.c.bf16 %v5524_v11, %v5524_v11  ;;  %3491 = vrot.lane.b32.xlu1 %v4677_v20, %s4862_s15 }
 0x168   : > { %v4587_v29 = vcombine.low %v2900_v62, %v2901_v43  ;;  %v3954_v26 = vadd.f32 %v3953_v36, %v3952_v0  ;;  %v3780_v58 = vadd.f32 %v3779_v21, %v3778_v15  ;;  %v3925_v23 = vmul.f32 %v5524_v11, %v5524_v11 }
 0x169   : > { %v3957_v2 = vsel %vm3773_vm9, %v3922_v60, 0.0  ;;  %3331 = vst.msk [vmem:[%s5780_s14 + $0x1c] sm:$0xf] %vm3323_vm8, %v4681_v45  ;;  %v5864_v32 = vpack.c.bf16 %v5529_v42, %v5529_v42  ;;  %v3783_v40 = vsel %vm3773_vm9, %v5529_v42, 0.0  ;;  %v3923_v57 = vmul.f32 %v5529_v42, %v5529_v42 }
 0x16a   : > { %4837 = vmatmul.mubr.msk.bf16.gmra.mrb[28].mxu1 %vm812_vm5, %v4587_v29  ;;  %v5872_v51 = vpack.c.bf16 %v5556_v39, %v5556_v39  ;;  %v3785_v10 = vsel %vm3773_vm9, %v5513_v25, 0.0  ;;  %v3961_v28 = vsel %vm3773_vm9, %v3924_v33, 0.0  ;;  %v3782_v1 = vadd.f32 %v3781_v38, %v3780_v58 }
 0x16b   : > { %v3956_v50 = vadd.f32 %v3955_v63, %v3954_v26  ;;  %3358 = vrot.lane.b32.xlu0 %v4675_v59, %s4863_s16  ;;  %v3787_v37 = vsel %vm3773_vm9, %v5524_v11, 0.0  ;;  %3329 = vst.msk [vmem:[%s5780_s14 + $0x14] sm:$0xf] %vm3323_vm8, %v5864_v32  ;;  %v3959_v42 = vsel %vm3773_vm9, %v3923_v57, 0.0  ;;  %3487 = vrot.lane.b32.xlu1 %v4675_v59, %s4862_s15  ;;  %v3928_v25 = vmul.f32 %v5556_v39, %v5556_v39 }
 0x16c   : > { %3334 = vst.msk [vmem:[%s5780_s14 + $0x28] sm:$0xf] %vm3323_vm8, %v5872_v51  ;;  %v5892_v5 = vpack.c.bf16 %v5561_v7, %v5561_v7  ;;  %v3784_v11 = vadd.f32 %v3783_v40, %v3782_v1  ;;  %v3926_v18 = vmul.f32 %v5561_v7, %v5561_v7  ;;  %v5898_v20 = vpack.c.bf16 %v5565_v53, %v5565_v53 }
 0x16d   : > { %v3958_v14 = vadd.f32 %v3957_v2, %v3956_v50  ;;  %v3963_v30 = vsel %vm3773_vm9, %v3925_v23, 0.0  ;;  %v3793_v61 = vsel %vm3773_vm9, %v5556_v39, 0.0  ;;  %v3929_v49 = vmul.f32 %v5565_v53, %v5565_v53 }
 0x16e   : > { %3332 = vst.msk [vmem:[%s5780_s14 + $0x20] sm:$0xf] %vm3323_vm8, %v5892_v5  ;;  %v5910_v59 = vpack.c.bf16 %v5570_v16, %v5570_v16  ;;  %v3786_v4 = vadd.f32 %v3785_v10, %v3784_v11  ;;  %v3969_v46 = vsel %vm3773_vm9, %v3928_v25, 0.0  ;;  %v3789_v27 = vsel %vm3773_vm9, %v5561_v7, 0.0  ;;  %3335 = vst.msk [vmem:[%s5780_s14 + $0x2c] sm:$0xf] %vm3323_vm8, %v5898_v20 }
 0x16f   : > { %v3960_v62 = vadd.f32 %v3959_v42, %v3958_v14  ;;  %3368 = vrot.lane.b32.xlu0 %v5830_v24, %s4863_s16  ;;  %v3965_v39 = vsel %vm3773_vm9, %v3926_v18, 0.0  ;;  %v3795_v36 = vsel %vm3773_vm9, %v5565_v53, 0.0  ;;  %3370 = vrot.lane.b32.xlu1 %v4681_v45, %s4863_s16  ;;  %v3927_v55 = vmul.f32 %v5570_v16, %v5570_v16 }
 0x170   : > { %3333 = vst.msk [vmem:[%s5780_s14 + $0x24] sm:$0xf] %vm3323_vm8, %v5910_v59  ;;  %v5931_v7 = vpack.c.bf16 %v5597_v41, %v5597_v41  ;;  %v3788_v43 = vadd.f32 %v3787_v37, %v3786_v4  ;;  %v3932_v21 = vmul.f32 %v5597_v41, %v5597_v41  ;;  %v5937_v53 = vpack.c.bf16 %v5600_v13, %v5600_v13 }
 0x171   : > { %v3962_v31 = vadd.f32 %v3961_v28, %v3960_v62  ;;  %v3971_v3 = vsel %vm3773_vm9, %v3929_v49, 0.0  ;;  %v3791_v15 = vsel %vm3773_vm9, %v5570_v16, 0.0  ;;  %v3930_v0 = vmul.f32 %v5600_v13, %v5600_v13 }
 0x172   : > { %3338 = vst.msk [vmem:[%s5780_s14 + $0x38] sm:$0xf] %vm3323_vm8, %v5931_v7  ;;  %v5949_v33 = vpack.c.bf16 %v5607_v35, %v5607_v35  ;;  %v3790_v60 = vadd.f32 %v3789_v27, %v3788_v43  ;;  %v3967_v63 = vsel %vm3773_vm9, %v3927_v55, 0.0  ;;  %v5956_v16 = vsel %vm3773_vm9, %v5597_v41, 0.0  ;;  %3336 = vst.msk [vmem:[%s5780_s14 + $0x30] sm:$0xf] %vm3323_vm8, %v5937_v53 }
 0x173   : > { %v3964_v29 = vadd.f32 %v3963_v30, %v3962_v31  ;;  %3497 = vrot.lane.b32.xlu0 %v5830_v24, %s4862_s15  ;;  %3499 = vrot.lane.b32.xlu1 %v4681_v45, %s4862_s15  ;;  %v5963_v38 = vsel %vm3773_vm9, %v3932_v21, 0.0  ;;  %v3797_v26 = vsel %vm3773_vm9, %v5600_v13, 0.0  ;;  %v3933_v24 = vmul.f32 %v5607_v35, %v5607_v35 }
 0x174   : > { %3339 = vst.msk [vmem:[%s5780_s14 + $0x3c] sm:$0xf] %vm3323_vm8, %v5949_v33  ;;  %v5974_v41 = vpack.c.bf16 %v5609_v6, %v5609_v6  ;;  %v3792_v45 = vadd.f32 %v3791_v15, %v3790_v60  ;;  %v3931_v2 = vmul.f32 %v5609_v6, %v5609_v6  ;;  %v5980_v13 = vpack.c.bf16 %v5635_v22, %v5635_v22 }
 0x175   : > { %v3966_v58 = vadd.f32 %v3965_v39, %v3964_v29  ;;  %v3973_v23 = vsel %vm3773_vm9, %v3930_v0, 0.0  ;;  %v5985_v40 = vsel %vm3773_vm9, %v5607_v35, 0.0  ;;  %v3936_v57 = vmul.f32 %v5635_v22, %v5635_v22 }
 0x176   : > { %3337 = vst.msk [vmem:[%s5780_s14 + $0x34] sm:$0xf] %vm3323_vm8, %v5974_v41  ;;  %v5994_v10 = vpack.c.bf16 %v5639_v8, %v5639_v8  ;;  %v3794_v28 = vadd.f32 %v3793_v61, %v3792_v45  ;;  %v5997_v50 = vsel %vm3773_vm9, %v3933_v24, 0.0  ;;  %v3799_v35 = vsel %vm3773_vm9, %v5609_v6, 0.0  ;;  %3342 = vst.msk [vmem:[%s5780_s14 + $0x48] sm:$0xf] %vm3323_vm8, %v5980_v13 }
 0x177   : > { %v3968_v1 = vadd.f32 %v3967_v63, %v3966_v58  ;;  %3364 = vrot.lane.b32.xlu0 %v5837_v56, %s4863_s16  ;;  %v6012_v37 = vpop.f32.mrb[4].mxu1  ;;  %3366 = vrot.lane.b32.xlu1 %v5864_v32, %s4863_s16  ;;  %v3975_v42 = vsel %vm3773_vm9, %v3931_v2, 0.0  ;;  %v6019_v25 = vsel %vm3773_vm9, %v5635_v22, 0.0  ;;  %v3934_v6 = vmul.f32 %v5639_v8, %v5639_v8 }
 0x178   : > { %3340 = vst.msk [vmem:[%s5780_s14 + $0x40] sm:$0xf] %vm3323_vm8, %v5994_v10  ;;  %v4708_v14 = vpack.c.bf16 %v5722_v34, %v5722_v34  ;;  %v6028_v11 = vpop.f32.mrb[5].mxu1  ;;  %v3796_v30 = vadd.f32 %v3795_v36, %v3794_v28  ;;  %v3805_v61 = vsel %vm3773_vm9, %v5639_v8, 0.0  ;;  %v4021_v22 = vmul.f32 %v5722_v34, %v5722_v34 }
 0x179   : > { %v3970_v18 = vadd.f32 %v3969_v46, %v3968_v1  ;;  %v6034_v49 = vpop.f32.mrb[6].mxu1  ;;  %v6037_v4 = vsel %vm3773_vm9, %v3936_v57, 0.0  ;;  %v6043_v62 = vpack.c.bf16 %v5645_v44, %v5645_v44  ;;  %v3937_v46 = vmul.f32 %v5645_v44, %v5645_v44 }
 0x17a   : > { %3743 = vst.msk [vmem:[%s6010_s19 + $0x8] sm:$0xf] %vm3323_vm8, %v4708_v14  ;;  %v6047_v8 = vpop.f32.mrb[7].mxu1  ;;  %v3798_v27 = vadd.f32 %v3797_v26, %v3796_v30  ;;  %v3847_v36 = vsel %vm3843_vm10, %v5722_v34, 0.0  ;;  %v4706_v55 = vpack.c.bf16 %v5727_v9, %v5727_v9  ;;  %v3981_v31 = vsel %vm3773_vm9, %v3934_v6, 0.0 }
 0x17b   : > { %v3972_v39 = vadd.f32 %v3971_v3, %v3970_v18  ;;  %3493 = vrot.lane.b32.xlu0 %v5837_v56, %s4862_s15  ;;  %3495 = vrot.lane.b32.xlu1 %v5864_v32, %s4862_s15  ;;  %3343 = vst.msk [vmem:[%s5780_s14 + $0x4c] sm:$0xf] %vm3323_vm8, %v6043_v62  ;;  %v6063_v43 = vsel %vm3773_vm9, %v5645_v44, 0.0  ;;  %v4019_v56 = vmul.f32 %v5727_v9, %v5727_v9  ;;  %v4054_v32 = vsel %vm3843_vm10, %v4021_v22, 0.0 }
 0x17c   : > { %v4709_v34 = vpack.c.bf16 %v5733_v47, %v5733_v47  ;;  %v3800_v3 = vadd.f32 %v3799_v35, %v3798_v27  ;;  %v6071_v15 = vsel %vm3773_vm9, %v3937_v46, 0.0  ;;  %3741 = vst.msk [vmem:[%s6010_s19] sm:$0xf] %vm3323_vm8, %v4706_v55  ;;  %v3844_v44 = vsel %vm3843_vm10, %v5727_v9, 0.0 }
 0x17d   : > { %v3974_v21 = vadd.f32 %v3973_v23, %v3972_v39  ;;  %v3849_v0 = vsel %vm3843_vm10, %v5733_v47, 0.0  ;;  %v4022_v60 = vmul.f32 %v5733_v47, %v5733_v47  ;;  %v6085_v29 = vpack.c.bf16 %v5649_v52, %v5649_v52 }
 0x17e   : > { %3744 = vst.msk [vmem:[%s6010_s19 + $0xc] sm:$0xf] %vm3323_vm8, %v4709_v34  ;;  %v3802_v63 = vadd.f32 %v5956_v16, %v3800_v3  ;;  %v4051_v24 = vsel %vm3843_vm10, %v4019_v56, 0.0  ;;  %v4707_v9 = vpack.c.bf16 %v5737_v19, %v5737_v19  ;;  %v3935_v47 = vmul.f32 %v5649_v52, %v5649_v52 }
 0x17f   : > { %v3976_v26 = vadd.f32 %v3975_v42, %v3974_v21  ;;  %3376 = vrot.lane.b32.xlu0 %v5872_v51, %s4863_s16  ;;  %3378 = vrot.lane.b32.xlu1 %v5898_v20, %s4863_s16  ;;  %3341 = vst.msk [vmem:[%s5780_s14 + $0x44] sm:$0xf] %vm3323_vm8, %v6085_v29  ;;  %v3845_v16 = vsel %vm3843_vm10, %v5737_v19, 0.0  ;;  %v4020_v58 = vmul.f32 %v5737_v19, %v5737_v19  ;;  %v3807_v28 = vsel %vm3773_vm9, %v5649_v52, 0.0 }
 0x180   : > { %v6106_v45 = vpack.c.bf16 %v5755_v17, %v5755_v17  ;;  %v3804_v57 = vadd.f32 %v5985_v40, %v3802_v63  ;;  %3742 = vst.msk [vmem:[%s6010_s19 + $0x4] sm:$0xf] %vm3323_vm8, %v4707_v9  ;;  %v3846_v1 = vadd.f32 %v3845_v16, %v3844_v44  ;;  %v4056_v19 = vsel %vm3843_vm10, %v4022_v60, 0.0 }
 0x181   : > { %v6108_v2 = vpop.f32.mrb[24].mxu0  ;;  %v3978_v23 = vadd.f32 %v5963_v38, %v3976_v26  ;;  %v4052_v42 = vsel %vm3843_vm10, %v4020_v58, 0.0  ;;  %v3940_v38 = vmul.f32 %v5755_v17, %v5755_v17  ;;  %v6127_v40 = vpack.c.bf16 %v5760_v48, %v5760_v48 }
 0x182   : > { %v6116_v35 = vpop.f32.mrb[25].mxu0  ;;  %3346 = vst.msk [vmem:[%s5780_s14 + $0x58] sm:$0xf] %vm3323_vm8, %v6106_v45  ;;  %v3806_v6 = vadd.f32 %v3805_v61, %v3804_v57  ;;  %v3848_v18 = vadd.f32 %v3847_v36, %v3846_v1  ;;  %v4053_v30 = vadd.f32 %v4052_v42, %v4051_v24  ;;  %v3983_v46 = vsel %vm3773_vm9, %v3935_v47, 0.0 }
 0x183   : > { %v6129_v52 = vpop.f32.mrb[26].mxu0  ;;  %v3980_v14 = vadd.f32 %v5997_v50, %v3978_v23  ;;  %3505 = vrot.lane.b32.xlu0 %v5872_v51, %s4862_s15  ;;  %3507 = vrot.lane.b32.xlu1 %v5898_v20, %s4862_s15  ;;  %v3817_v27 = vsel %vm3773_vm9, %v5755_v17, 0.0  ;;  %3344 = vst.msk [vmem:[%s5780_s14 + $0x50] sm:$0xf] %vm3323_vm8, %v6127_v40  ;;  %v3938_v50 = vmul.f32 %v5760_v48, %v5760_v48  ;;  %v3813_v55 = vsel %vm3773_vm9, %v5760_v48, 0.0 }
 0x184   : > { %v6134_v22 = vpop.f32.mrb[27].mxu0  ;;  %v4712_v51 = vpack.c.bf16 %v6012_v37, %v6012_v37  ;;  %v3808_v39 = vadd.f32 %v3807_v28, %v3806_v6  ;;  %v4055_v36 = vadd.f32 %v4054_v32, %v4053_v30  ;;  %v3993_v20 = vsel %vm3773_vm9, %v3940_v38, 0.0 }
 0x185   : > { %v3982_v61 = vadd.f32 %v3981_v31, %v3980_v14  ;;  %v3855_v17 = vsel %vm3843_vm10, %v6012_v37, 0.0  ;;  %v4025_v56 = vmul.f32 %v6012_v37, %v6012_v37  ;;  %v6159_v34 = vpack.c.bf16 %v5767_v12, %v5767_v12 }
 0x186   : > { %3747 = vst.msk [vmem:[%s6010_s19 + $0x18] sm:$0xf] %vm3323_vm8, %v4712_v51  ;;  %v3810_v31 = vadd.f32 %v6019_v25, %v3808_v39  ;;  %v3989_v48 = vsel %vm3773_vm9, %v3938_v50, 0.0  ;;  %v4710_v3 = vpack.c.bf16 %v6028_v11, %v6028_v11  ;;  %v3819_v37 = vsel %vm3773_vm9, %v5767_v12, 0.0 }
 0x187   : > { %v3984_v21 = vadd.f32 %v3983_v46, %v3982_v61  ;;  %3372 = vrot.lane.b32.xlu0 %v5892_v5, %s4863_s16  ;;  %3347 = vst.msk [vmem:[%s5780_s14 + $0x5c] sm:$0xf] %vm3323_vm8, %v6159_v34  ;;  %v3850_v32 = vadd.f32 %v3849_v0, %v3848_v18  ;;  %v3851_v25 = vsel %vm3843_vm10, %v6028_v11, 0.0  ;;  %v4023_v44 = vmul.f32 %v6028_v11, %v6028_v11 }
 0x188   : > { %3374 = vrot.lane.b32.xlu1 %v5910_v59, %s4863_s16  ;;  %v3812_v63 = vadd.f32 %v6063_v43, %v3810_v31  ;;  %3745 = vst.msk [vmem:[%s6010_s19 + $0x10] sm:$0xf] %vm3323_vm8, %v4710_v3  ;;  %v4057_v26 = vadd.f32 %v4056_v19, %v4055_v36  ;;  %v4713_v0 = vpack.c.bf16 %v6034_v49, %v6034_v49  ;;  %v4062_v24 = vsel %vm3843_vm10, %v4025_v56, 0.0 }
 0x189   : > { %v3986_v60 = vadd.f32 %v6037_v4, %v3984_v21  ;;  %v3941_v9 = vmul.f32 %v5767_v12, %v5767_v12  ;;  %v3852_v11 = vadd.f32 %v3851_v25, %v3850_v32  ;;  %v4058_v47 = vsel %vm3843_vm10, %v4023_v44, 0.0 }
 0x18a   : > { %v3814_v16 = vadd.f32 %v3813_v55, %v3812_v63  ;;  %v4059_v58 = vadd.f32 %v4058_v47, %v4057_v26  ;;  %3748 = vst.msk [vmem:[%s6010_s19 + $0x1c] sm:$0xf] %vm3323_vm8, %v4713_v0  ;;  %v6193_v43 = vpack.c.bf16 %v5772_v54, %v5772_v54  ;;  %v4026_v12 = vmul.f32 %v6034_v49, %v6034_v49 }
 0x18b   : > { %v3988_v4 = vadd.f32 %v6071_v15, %v3986_v60  ;;  %3501 = vrot.lane.b32.xlu0 %v5892_v5, %s4862_s15  ;;  %v3815_v23 = vsel %vm3773_vm9, %v5772_v54, 0.0  ;;  %v3939_v15 = vmul.f32 %v5772_v54, %v5772_v54  ;;  %v4711_v57 = vpack.c.bf16 %v6047_v8, %v6047_v8 }
 0x18c   : > { %3503 = vrot.lane.b32.xlu1 %v5910_v59, %s4862_s15  ;;  %3345 = vst.msk [vmem:[%s5780_s14 + $0x54] sm:$0xf] %vm3323_vm8, %v6193_v43  ;;  %v3816_v5 = vadd.f32 %v3815_v23, %v3814_v16  ;;  %v3853_v1 = vsel %vm3843_vm10, %v6047_v8, 0.0  ;;  %v4024_v19 = vmul.f32 %v6047_v8, %v6047_v8  ;;  %v3995_v54 = vsel %vm3773_vm9, %v3941_v9, 0.0 }
 0x18d   : > { %v3990_v28 = vadd.f32 %v3989_v48, %v3988_v4  ;;  %v3991_v42 = vsel %vm3773_vm9, %v3939_v15, 0.0  ;;  %3746 = vst.msk [vmem:[%s6010_s19 + $0x14] sm:$0xf] %vm3323_vm8, %v4711_v57  ;;  %v3854_v38 = vadd.f32 %v3853_v1, %v3852_v11  ;;  %v6220_v59 = vpack.c.bf16 %v6108_v2, %v6108_v2 }
 0x18e   : > { %v3857_v6 = vsel %vm3843_vm10, %v6034_v49, 0.0  ;;  %v3818_v14 = vadd.f32 %v3817_v27, %v3816_v5  ;;  %v4060_v30 = vsel %vm3843_vm10, %v4024_v19, 0.0  ;;  %v6232_v50 = vpack.c.bf16 %v6116_v35, %v6116_v35 }
 0x18f   : > { %v3992_v18 = vadd.f32 %v3991_v42, %v3990_v28  ;;  %3384 = vrot.lane.b32.xlu0 %v5931_v7, %s4863_s16  ;;  %v3856_v8 = vadd.f32 %v3855_v17, %v3854_v38  ;;  %v4061_v46 = vadd.f32 %v4060_v30, %v4059_v58  ;;  %3350 = vst.msk [vmem:[%s5780_s14 + $0x68] sm:$0xf] %vm3323_vm8, %v6220_v59  ;;  %v3821_v49 = vsel %vm3773_vm9, %v6116_v35, 0.0 }
 0x190   : > { %3386 = vrot.lane.b32.xlu1 %v5949_v33, %s4863_s16  ;;  %v4064_v27 = vsel %vm3843_vm10, %v4026_v12, 0.0  ;;  %v3820_v61 = vadd.f32 %v3819_v37, %v3818_v14  ;;  %v3942_v39 = vmul.f32 %v6116_v35, %v6116_v35  ;;  %v3944_v55 = vmul.f32 %v6108_v2, %v6108_v2  ;;  %3348 = vst.msk [vmem:[%s5780_s14 + $0x60] sm:$0xf] %vm3323_vm8, %v6232_v50 }
 0x191   : > { %v3994_v51 = vadd.f32 %v3993_v20, %v3992_v18  ;;  %v4063_v36 = vadd.f32 %v4062_v24, %v4061_v46  ;;  %v6248_v17 = vpack.c.bf16 %v6129_v52, %v6129_v52  ;;  %v3858_v21 = vadd.f32 %v3857_v6, %v3856_v8 }
 0x192   : > { %v3822_v56 = vadd.f32 %v3821_v49, %v3820_v61  ;;  %v3997_v20 = vsel %vm3773_vm9, %v3942_v39, 0.0  ;;  %v3825_v35 = vsel %vm3773_vm9, %v6108_v2, 0.0  ;;  %v6260_v3 = vpack.c.bf16 %v6134_v22, %v6134_v22 }
 0x193   : > { %v3996_v31 = vadd.f32 %v3995_v54, %v3994_v51  ;;  %3513 = vrot.lane.b32.xlu0 %v5931_v7, %s4862_s15  ;;  %3351 = vst.msk [vmem:[%s5780_s14 + $0x6c] sm:$0xf] %vm3323_vm8, %v6248_v17  ;;  %v4065_v48 = vadd.f32 %v4064_v27, %v4063_v36  ;;  %v3823_v37 = vsel %vm3773_vm9, %v6134_v22, 0.0  ;;  %v3945_v7 = vmul.f32 %v6129_v52, %v6129_v52 }
 0x194   : > { %3515 = vrot.lane.b32.xlu1 %v5949_v33, %s4862_s15  ;;  %v3824_v25 = vadd.f32 %v3823_v37, %v3822_v56  ;;  %v3943_v2 = vmul.f32 %v6134_v22, %v6134_v22  ;;  %v3827_v44 = vsel %vm3773_vm9, %v6129_v52, 0.0  ;;  %3349 = vst.msk [vmem:[%s5780_s14 + $0x64] sm:$0xf] %vm3323_vm8, %v6260_v3  ;;  %v4001_v60 = vsel %vm3773_vm9, %v3944_v55, 0.0 }
 0x195   : > { %v3998_v32 = vadd.f32 %v3997_v20, %v3996_v31  ;;  %v4003_v22 = vsel %vm3773_vm9, %v3945_v7, 0.0 }
 0x196   : > { %v3826_v63 = vadd.f32 %v3825_v35, %v3824_v25  ;;  %v3999_v26 = vsel %vm3773_vm9, %v3943_v2, 0.0 }
 0x197   : > { %3380 = vrot.lane.b32.xlu0 %v5937_v53, %s4863_s16  ;;  %v4000_v33 = vadd.f32 %v3999_v26, %v3998_v32 }
 0x198   : > { %3382 = vrot.lane.b32.xlu1 %v5974_v41, %s4863_s16  ;;  %v3828_v0 = vadd.f32 %v3827_v44, %v3826_v63 }
 0x199   : > { %v4002_v52 = vadd.f32 %v4001_v60, %v4000_v33 }
 0x19b   : > { %3509 = vrot.lane.b32.xlu0 %v5937_v53, %s4862_s15  ;;  %v4004_v24 = vadd.f32 %v4003_v22, %v4002_v52 }
 0x19c   : > { %3511 = vrot.lane.b32.xlu1 %v5974_v41, %s4862_s15 }
 0x19f   : > { %3392 = vrot.lane.b32.xlu0 %v5980_v13, %s4863_s16 }
 0x1a0   : > { %3394 = vrot.lane.b32.xlu1 %v6043_v62, %s4863_s16 }
 0x1a1   : > { %v4818_v9 = vpop.f32.mrb[8].mxu1 }
 0x1a2   : > { %v4716_v11 = vpack.c.bf16 %v4818_v9, %v4818_v9  ;;  %v3100_v47 = vpop.f32.mrb[9].mxu1  ;;  %v4029_v41 = vmul.f32 %v4818_v9, %v4818_v9  ;;  %v3863_v57 = vsel %vm3843_vm10, %v4818_v9, 0.0 }
 0x1a3   : > { %v4714_v16 = vpack.c.bf16 %v3100_v47, %v3100_v47  ;;  %v3859_v4 = vsel %vm3843_vm10, %v3100_v47, 0.0  ;;  %v4027_v58 = vmul.f32 %v3100_v47, %v3100_v47  ;;  %v4819_v53 = vpop.f32.mrb[10].mxu1  ;;  %3521 = vrot.lane.b32.xlu0 %v5980_v13, %s4862_s15 }
 0x1a4   : > { %3751 = vst.msk [vmem:[%s6010_s19 + $0x28] sm:$0xf] %vm3323_vm8, %v4716_v11  ;;  %v3860_v12 = vadd.f32 %v3859_v4, %v3858_v21  ;;  %v4717_v23 = vpack.c.bf16 %v4819_v53, %v4819_v53  ;;  %v3103_v15 = vpop.f32.mrb[11].mxu1  ;;  %3523 = vrot.lane.b32.xlu1 %v6043_v62, %s4862_s15  ;;  %v4030_v19 = vmul.f32 %v4819_v53, %v4819_v53  ;;  %v3865_v38 = vsel %vm3843_vm10, %v4819_v53, 0.0 }
 0x1a5   : > { %3749 = vst.msk [vmem:[%s6010_s19 + $0x20] sm:$0xf] %vm3323_vm8, %v4714_v16  ;;  %v4066_v28 = vsel %vm3843_vm10, %v4027_v58, 0.0  ;;  %v4715_v5 = vpack.c.bf16 %v3103_v15, %v3103_v15  ;;  %v3861_v1 = vsel %vm3843_vm10, %v3103_v15, 0.0  ;;  %v4028_v42 = vmul.f32 %v3103_v15, %v3103_v15 }
 0x1a6   : > { %v4067_v13 = vadd.f32 %v4066_v28, %v4065_v48  ;;  %3752 = vst.msk [vmem:[%s6010_s19 + $0x2c] sm:$0xf] %vm3323_vm8, %v4717_v23  ;;  %v3862_v54 = vadd.f32 %v3861_v1, %v3860_v12  ;;  %v4070_v62 = vsel %vm3843_vm10, %v4029_v41, 0.0  ;;  %v4072_v8 = vsel %vm3843_vm10, %v4030_v19, 0.0 }
 0x1a7   : > { %3750 = vst.msk [vmem:[%s6010_s19 + $0x24] sm:$0xf] %vm3323_vm8, %v4715_v5  ;;  %3388 = vrot.lane.b32.xlu0 %v5994_v10, %s4863_s16  ;;  %v4068_v14 = vsel %vm3843_vm10, %v4028_v42, 0.0 }
 0x1a8   : > { %v3864_v6 = vadd.f32 %v3863_v57, %v3862_v54  ;;  %3390 = vrot.lane.b32.xlu1 %v6085_v29, %s4863_s16  ;;  %v4069_v18 = vadd.f32 %v4068_v14, %v4067_v13 }
 0x1aa   : > { %v4804_v30 = vpop.f32.mrb[28].mxu0  ;;  %v3866_v27 = vadd.f32 %v3865_v38, %v3864_v6  ;;  %v4071_v51 = vadd.f32 %v4070_v62, %v4069_v18 }
 0x1ab   : > { %v6314_v46 = vpack.c.bf16 %v4804_v30, %v4804_v30  ;;  %v1011_v49 = vpop.f32.mrb[29].mxu0  ;;  %3517 = vrot.lane.b32.xlu0 %v5994_v10, %s4862_s15  ;;  %v3948_v56 = vmul.f32 %v4804_v30, %v4804_v30  ;;  %v3833_v35 = vsel %vm3773_vm9, %v4804_v30, 0.0 }
 0x1ac   : > { %v6316_v61 = vpack.c.bf16 %v1011_v49, %v1011_v49  ;;  %v3829_v39 = vsel %vm3773_vm9, %v1011_v49, 0.0  ;;  %v3946_v36 = vmul.f32 %v1011_v49, %v1011_v49  ;;  %v4805_v55 = vpop.f32.mrb[30].mxu0  ;;  %3519 = vrot.lane.b32.xlu1 %v6085_v29, %s4862_s15  ;;  %v4073_v10 = vadd.f32 %v4072_v8, %v4071_v51 }
 0x1ad   : > { %3354 = vst.msk [vmem:[%s5780_s14 + $0x78] sm:$0xf] %vm3323_vm8, %v6314_v46  ;;  %v3830_v31 = vadd.f32 %v3829_v39, %v3828_v0  ;;  %v6324_v20 = vpack.c.bf16 %v4805_v55, %v4805_v55  ;;  %v1014_v21 = vpop.f32.mrb[31].mxu0  ;;  %v3949_v7 = vmul.f32 %v4805_v55, %v4805_v55  ;;  %v4009_v44 = vsel %vm3773_vm9, %v3948_v56, 0.0 }
 0x1ae   : > { %3352 = vst.msk [vmem:[%s5780_s14 + $0x70] sm:$0xf] %vm3323_vm8, %v6316_v61  ;;  %v4005_v48 = vsel %vm3773_vm9, %v3946_v36, 0.0  ;;  %v6333_v37 = vpack.c.bf16 %v1014_v21, %v1014_v21  ;;  %v3831_v25 = vsel %vm3773_vm9, %v1014_v21, 0.0  ;;  %v3947_v2 = vmul.f32 %v1014_v21, %v1014_v21 }
 0x1af   : > { %v4006_v32 = vadd.f32 %v4005_v48, %v4004_v24  ;;  %3355 = vst.msk [vmem:[%s5780_s14 + $0x7c] sm:$0xf] %vm3323_vm8, %v6324_v20  ;;  %v3832_v29 = vadd.f32 %v3831_v25, %v3830_v31  ;;  %3400 = vrot.lane.b32.xlu0 %v6106_v45, %s4863_s16  ;;  %v3835_v60 = vsel %vm3773_vm9, %v4805_v55, 0.0  ;;  %v4011_v22 = vsel %vm3773_vm9, %v3949_v7, 0.0 }
 0x1b0   : > { %3353 = vst.msk [vmem:[%s5780_s14 + $0x74] sm:$0xf] %vm3323_vm8, %v6333_v37  ;;  %v4007_v63 = vsel %vm3773_vm9, %v3947_v2, 0.0  ;;  %3402 = vrot.lane.b32.xlu1 %v6159_v34, %s4863_s16 }
 0x1b1   : > { %v3834_v26 = vadd.f32 %v3833_v35, %v3832_v29  ;;  %v4008_v33 = vadd.f32 %v4007_v63, %v4006_v32 }
 0x1b3   : > { %v6350_v0 = vadd.f32 %v3835_v60, %v3834_v26  ;;  %v4010_v52 = vadd.f32 %v4009_v44, %v4008_v33  ;;  %3529 = vrot.lane.b32.xlu0 %v6106_v45, %s4862_s15 }
 0x1b4   : > { %3531 = vrot.lane.b32.xlu1 %v6159_v34, %s4862_s15 }
 0x1b5   : > { %v6356_v24 = vadd.f32 %v4011_v22, %v4010_v52 }
 0x1b7   : > { %3396 = vrot.lane.b32.xlu0 %v6127_v40, %s4863_s16 }
 0x1b8   : > { %3398 = vrot.lane.b32.xlu1 %v6193_v43, %s4863_s16 }
 0x1bb   : > { %3525 = vrot.lane.b32.xlu0 %v6127_v40, %s4862_s15 }
 0x1bc   : > { %3527 = vrot.lane.b32.xlu1 %v6193_v43, %s4862_s15 }
 0x1bf   : > { %3408 = vrot.lane.b32.xlu0 %v6220_v59, %s4863_s16 }
 0x1c0   : > { %3410 = vrot.lane.b32.xlu1 %v6248_v17, %s4863_s16 }
 0x1c3   : > { %3537 = vrot.lane.b32.xlu0 %v6220_v59, %s4862_s15 }
 0x1c4   : > { %3539 = vrot.lane.b32.xlu1 %v6248_v17, %s4862_s15 }
 0x1c7   : > { %3404 = vrot.lane.b32.xlu0 %v6232_v50, %s4863_s16 }
 0x1c8   : > { %3406 = vrot.lane.b32.xlu1 %v6260_v3, %s4863_s16 }
 0x1cb   : > { %v4822_v45 = vpop.f32.mrb[12].mxu1  ;;  %3533 = vrot.lane.b32.xlu0 %v6232_v50, %s4862_s15 }
 0x1cc   : > { %v4720_v40 = vpack.c.bf16 %v4822_v45, %v4822_v45  ;;  %v3116_v34 = vpop.f32.mrb[13].mxu1  ;;  %3535 = vrot.lane.b32.xlu1 %v6260_v3, %s4862_s15  ;;  %v4033_v11 = vmul.f32 %v4822_v45, %v4822_v45  ;;  %v3871_v50 = vsel %vm3843_vm10, %v4822_v45, 0.0 }
 0x1cd   : > { %v4718_v43 = vpack.c.bf16 %v3116_v34, %v3116_v34  ;;  %v3867_v59 = vsel %vm3843_vm10, %v3116_v34, 0.0  ;;  %v4031_v17 = vmul.f32 %v3116_v34, %v3116_v34  ;;  %v4823_v9 = vpop.f32.mrb[14].mxu1 }
 0x1ce   : > { %3755 = vst.msk [vmem:[%s6010_s19 + $0x38] sm:$0xf] %vm3323_vm8, %v4720_v40  ;;  %v3868_v47 = vadd.f32 %v3867_v59, %v3866_v27  ;;  %v4721_v16 = vpack.c.bf16 %v4823_v9, %v4823_v9  ;;  %v3119_v4 = vpop.f32.mrb[15].mxu1  ;;  %v4034_v12 = vmul.f32 %v4823_v9, %v4823_v9  ;;  %v3873_v57 = vsel %vm3843_vm10, %v4823_v9, 0.0 }
 0x1cf   : > { %3753 = vst.msk [vmem:[%s6010_s19 + $0x30] sm:$0xf] %vm3323_vm8, %v4718_v43  ;;  %v4074_v3 = vsel %vm3843_vm10, %v4031_v17, 0.0  ;;  %v4719_v58 = vpack.c.bf16 %v3119_v4, %v3119_v4  ;;  %v3869_v53 = vsel %vm3843_vm10, %v3119_v4, 0.0  ;;  %3416 = vrot.lane.b32.xlu0 %v6314_v46, %s4863_s16  ;;  %v4032_v15 = vmul.f32 %v3119_v4, %v3119_v4 }
 0x1d0   : > { %v4075_v41 = vadd.f32 %v4074_v3, %v4073_v10  ;;  %3756 = vst.msk [vmem:[%s6010_s19 + $0x3c] sm:$0xf] %vm3323_vm8, %v4721_v16  ;;  %v3870_v23 = vadd.f32 %v3869_v53, %v3868_v47  ;;  %3418 = vrot.lane.b32.xlu1 %v6324_v20, %s4863_s16  ;;  %v4078_v1 = vsel %vm3843_vm10, %v4033_v11, 0.0  ;;  %v4080_v42 = vsel %vm3843_vm10, %v4034_v12, 0.0 }
 0x1d1   : > { %3754 = vst.msk [vmem:[%s6010_s19 + $0x34] sm:$0xf] %vm3323_vm8, %v4719_v58  ;;  %v3490_v28 = vpop.permute.xlu0 %3489  ;;  %v3361_v5 = vpop.permute.xlu1 %3360  ;;  %v4076_v19 = vsel %vm3843_vm10, %v4032_v15, 0.0 }
 0x1d2   : > { %v3872_v13 = vadd.f32 %v3871_v50, %v3870_v23  ;;  %3583 = vst.msk [vmem:[%s6396_s22 + $0x8] sm:$0xf] %vm3452_vm11, %v3490_v28  ;;  %3455 = vst.msk [vmem:[%s6402_s27 + $0x8] sm:$0xf] %vm3452_vm11, %v3361_v5  ;;  %v4077_v54 = vadd.f32 %v4076_v19, %v4075_v41 }
 0x1d3   : > { %3412 = vrot.lane.b32.xlu0 %v6316_v61, %s4863_s16 }
 0x1d4   : > { %v3874_v38 = vadd.f32 %v3873_v57, %v3872_v13  ;;  %3414 = vrot.lane.b32.xlu1 %v6333_v37, %s4863_s16  ;;  %v4079_v62 = vadd.f32 %v4078_v1, %v4077_v54 }
 0x1d5   : > { %v3357_v6 = vpop.permute.xlu0 %3356  ;;  %v3363_v14 = vpop.permute.xlu1 %3362 }
 0x1d6   : > { %3453 = vst.msk [vmem:[%s6402_s27] sm:$0xf] %vm3452_vm11, %v3357_v6  ;;  %v4081_v18 = vadd.f32 %v4080_v42, %v4079_v62  ;;  %3456 = vst.msk [vmem:[%s6402_s27 + $0xc] sm:$0xf] %vm3452_vm11, %v3363_v14 }
 0x1d7   : > { %3541 = vrot.lane.b32.xlu0 %v6316_v61, %s4862_s15 }
 0x1d8   : > { %3543 = vrot.lane.b32.xlu1 %v6333_v37, %s4862_s15 }
 0x1d9   : > { %v3486_v30 = vpop.permute.xlu0 %3485  ;;  %v3492_v8 = vpop.permute.xlu1 %3491 }
 0x1da   : > { %3581 = vst.msk [vmem:[%s6396_s22] sm:$0xf] %vm3452_vm11, %v3486_v30  ;;  %3584 = vst.msk [vmem:[%s6396_s22 + $0xc] sm:$0xf] %vm3452_vm11, %v3492_v8 }
 0x1dd   : > { %v3359_v49 = vpop.permute.xlu0 %3358  ;;  %v3488_v27 = vpop.permute.xlu1 %3487 }
 0x1de   : > { %3454 = vst.msk [vmem:[%s6402_s27 + $0x4] sm:$0xf] %vm3452_vm11, %v3359_v49  ;;  %3582 = vst.msk [vmem:[%s6396_s22 + $0x4] sm:$0xf] %vm3452_vm11, %v3488_v27 }
 0x1e1   : > { %v3369_v51 = vpop.permute.xlu0 %3368  ;;  %v3371_v61 = vpop.permute.xlu1 %3370 }
 0x1e2   : > { %3459 = vst.msk [vmem:[%s6402_s27 + $0x18] sm:$0xf] %vm3452_vm11, %v3369_v51  ;;  %3460 = vst.msk [vmem:[%s6402_s27 + $0x1c] sm:$0xf] %vm3452_vm11, %v3371_v61 }
 0x1e5   : > { %v3498_v39 = vpop.permute.xlu0 %3497  ;;  %v3500_v36 = vpop.permute.xlu1 %3499 }
 0x1e6   : > { %3587 = vst.msk [vmem:[%s6396_s22 + $0x18] sm:$0xf] %vm3452_vm11, %v3498_v39  ;;  %3588 = vst.msk [vmem:[%s6396_s22 + $0x1c] sm:$0xf] %vm3452_vm11, %v3500_v36 }
 0x1e8   : > { %v4826_v55 = vpop.f32.mrb[16].mxu1 }
 0x1e9   : > { %v4724_v56 = vpack.c.bf16 %v4826_v55, %v4826_v55  ;;  %v3132_v31 = vpop.f32.mrb[17].mxu1  ;;  %v3365_v37 = vpop.permute.xlu0 %3364  ;;  %v4037_v32 = vmul.f32 %v4826_v55, %v4826_v55  ;;  %v3879_v44 = vsel %vm3843_vm10, %v4826_v55, 0.0 }
 0x1ea   : > { %v4722_v21 = vpack.c.bf16 %v3132_v31, %v3132_v31  ;;  %v3875_v35 = vsel %vm3843_vm10, %v3132_v31, 0.0  ;;  %v4035_v48 = vmul.f32 %v3132_v31, %v3132_v31  ;;  %v4827_v10 = vpop.f32.mrb[18].mxu1  ;;  %3457 = vst.msk [vmem:[%s6402_s27 + $0x10] sm:$0xf] %vm3452_vm11, %v3365_v37  ;;  %v3367_v29 = vpop.permute.xlu1 %3366 }
 0x1eb   : > { %3759 = vst.msk [vmem:[%s6010_s19 + $0x48] sm:$0xf] %vm3323_vm8, %v4724_v56  ;;  %v3876_v7 = vadd.f32 %v3875_v35, %v3874_v38  ;;  %v4725_v25 = vpack.c.bf16 %v4827_v10, %v4827_v10  ;;  %v3135_v2 = vpop.f32.mrb[19].mxu1  ;;  %v4038_v22 = vmul.f32 %v4827_v10, %v4827_v10  ;;  %v3881_v40 = vsel %vm3843_vm10, %v4827_v10, 0.0 }
 0x1ec   : > { %3757 = vst.msk [vmem:[%s6010_s19 + $0x40] sm:$0xf] %vm3323_vm8, %v4722_v21  ;;  %v4082_v60 = vsel %vm3843_vm10, %v4035_v48, 0.0  ;;  %v4723_v63 = vpack.c.bf16 %v3135_v2, %v3135_v2  ;;  %v3877_v26 = vsel %vm3843_vm10, %v3135_v2, 0.0  ;;  %v4036_v45 = vmul.f32 %v3135_v2, %v3135_v2 }
 0x1ed   : > { %3458 = vst.msk [vmem:[%s6402_s27 + $0x14] sm:$0xf] %vm3452_vm11, %v3367_v29  ;;  %v4083_v33 = vadd.f32 %v4082_v60, %v4081_v18  ;;  %v3878_v52 = vadd.f32 %v3877_v26, %v3876_v7  ;;  %v3494_v34 = vpop.permute.xlu0 %3493  ;;  %v4086_v43 = vsel %vm3843_vm10, %v4037_v32, 0.0  ;;  %v4088_v47 = vsel %vm3843_vm10, %v4038_v22, 0.0 }
 0x1ee   : > { %3760 = vst.msk [vmem:[%s6010_s19 + $0x4c] sm:$0xf] %vm3323_vm8, %v4725_v25  ;;  %3758 = vst.msk [vmem:[%s6010_s19 + $0x44] sm:$0xf] %vm3323_vm8, %v4723_v63  ;;  %v4084_v17 = vsel %vm3843_vm10, %v4036_v45, 0.0  ;;  %v3496_v9 = vpop.permute.xlu1 %3495 }
 0x1ef   : > { %v3880_v59 = vadd.f32 %v3879_v44, %v3878_v52  ;;  %3585 = vst.msk [vmem:[%s6396_s22 + $0x10] sm:$0xf] %vm3452_vm11, %v3494_v34  ;;  %v4085_v11 = vadd.f32 %v4084_v17, %v4083_v33  ;;  %3586 = vst.msk [vmem:[%s6396_s22 + $0x14] sm:$0xf] %vm3452_vm11, %v3496_v9 }
 0x1f1   : > { %v3882_v16 = vadd.f32 %v3881_v40, %v3880_v59  ;;  %v4087_v4 = vadd.f32 %v4086_v43, %v4085_v11  ;;  %v3377_v50 = vpop.permute.xlu0 %3376 }
 0x1f2   : > { %3463 = vst.msk [vmem:[%s6402_s27 + $0x28] sm:$0xf] %vm3452_vm11, %v3377_v50  ;;  %v3379_v3 = vpop.permute.xlu1 %3378 }
 0x1f3   : > { %v4089_v58 = vadd.f32 %v4088_v47, %v4087_v4  ;;  %3464 = vst.msk [vmem:[%s6402_s27 + $0x2c] sm:$0xf] %vm3452_vm11, %v3379_v3 }
 0x1f5   : > { %v3506_v53 = vpop.permute.xlu0 %3505 }
 0x1f6   : > { %3591 = vst.msk [vmem:[%s6396_s22 + $0x28] sm:$0xf] %vm3452_vm11, %v3506_v53  ;;  %v3508_v41 = vpop.permute.xlu1 %3507 }
 0x1f7   : > { %3592 = vst.msk [vmem:[%s6396_s22 + $0x2c] sm:$0xf] %vm3452_vm11, %v3508_v41 }
 0x1f9   : > { %v3373_v12 = vpop.permute.xlu0 %3372 }
 0x1fa   : > { %3461 = vst.msk [vmem:[%s6402_s27 + $0x20] sm:$0xf] %vm3452_vm11, %v3373_v12  ;;  %v3375_v23 = vpop.permute.xlu1 %3374 }
 0x1fb   : > { %3462 = vst.msk [vmem:[%s6402_s27 + $0x24] sm:$0xf] %vm3452_vm11, %v3375_v23 }
 0x1fd   : > { %v3502_v15 = vpop.permute.xlu0 %3501 }
 0x1fe   : > { %3589 = vst.msk [vmem:[%s6396_s22 + $0x20] sm:$0xf] %vm3452_vm11, %v3502_v15  ;;  %v3504_v57 = vpop.permute.xlu1 %3503 }
 0x1ff   : > { %3590 = vst.msk [vmem:[%s6396_s22 + $0x24] sm:$0xf] %vm3452_vm11, %v3504_v57 }
 0x201   : > { %v3385_v28 = vpop.permute.xlu0 %3384 }
 0x202   : > { %3467 = vst.msk [vmem:[%s6402_s27 + $0x38] sm:$0xf] %vm3452_vm11, %v3385_v28  ;;  %v3387_v5 = vpop.permute.xlu1 %3386 }
 0x203   : > { %3468 = vst.msk [vmem:[%s6402_s27 + $0x3c] sm:$0xf] %vm3452_vm11, %v3387_v5 }
 0x204   : > { %v4830_v1 = vpop.f32.mrb[20].mxu1 }
 0x205   : > { %v4728_v13 = vpack.c.bf16 %v4830_v1, %v4830_v1  ;;  %v3148_v19 = vpop.f32.mrb[21].mxu1  ;;  %v3514_v6 = vpop.permute.xlu0 %3513  ;;  %v4041_v14 = vmul.f32 %v4830_v1, %v4830_v1  ;;  %v3887_v27 = vsel %vm3843_vm10, %v4830_v1, 0.0 }
 0x206   : > { %v4726_v54 = vpack.c.bf16 %v3148_v19, %v3148_v19  ;;  %v3883_v42 = vsel %vm3843_vm10, %v3148_v19, 0.0  ;;  %v4039_v38 = vmul.f32 %v3148_v19, %v3148_v19  ;;  %v4831_v62 = vpop.f32.mrb[22].mxu1  ;;  %3595 = vst.msk [vmem:[%s6396_s22 + $0x38] sm:$0xf] %vm3452_vm11, %v3514_v6  ;;  %v3516_v49 = vpop.permute.xlu1 %3515 }
 0x207   : > { %3763 = vst.msk [vmem:[%s6010_s19 + $0x58] sm:$0xf] %vm3323_vm8, %v4728_v13  ;;  %v3884_v18 = vadd.f32 %v3883_v42, %v3882_v16  ;;  %v4729_v30 = vpack.c.bf16 %v4831_v62, %v4831_v62  ;;  %v3151_v8 = vpop.f32.mrb[23].mxu1  ;;  %v4042_v55 = vmul.f32 %v4831_v62, %v4831_v62  ;;  %v3889_v21 = vsel %vm3843_vm10, %v4831_v62, 0.0 }
 0x208   : > { %3761 = vst.msk [vmem:[%s6010_s19 + $0x50] sm:$0xf] %vm3323_vm8, %v4726_v54  ;;  %v4090_v51 = vsel %vm3843_vm10, %v4039_v38, 0.0  ;;  %v4727_v61 = vpack.c.bf16 %v3151_v8, %v3151_v8  ;;  %v3885_v39 = vsel %vm3843_vm10, %v3151_v8, 0.0  ;;  %v4040_v31 = vmul.f32 %v3151_v8, %v3151_v8 }
 0x209   : > { %3596 = vst.msk [vmem:[%s6396_s22 + $0x3c] sm:$0xf] %vm3452_vm11, %v3516_v49  ;;  %v4091_v36 = vadd.f32 %v4090_v51, %v4089_v58  ;;  %v3886_v56 = vadd.f32 %v3885_v39, %v3884_v18  ;;  %v3381_v35 = vpop.permute.xlu0 %3380  ;;  %v4094_v48 = vsel %vm3843_vm10, %v4041_v14, 0.0  ;;  %v4096_v25 = vsel %vm3843_vm10, %v4042_v55, 0.0 }
 0x20a   : > { %3764 = vst.msk [vmem:[%s6010_s19 + $0x5c] sm:$0xf] %vm3323_vm8, %v4729_v30  ;;  %3762 = vst.msk [vmem:[%s6010_s19 + $0x54] sm:$0xf] %vm3323_vm8, %v4727_v61  ;;  %v4092_v37 = vsel %vm3843_vm10, %v4040_v31, 0.0  ;;  %v3383_v32 = vpop.permute.xlu1 %3382 }
 0x20b   : > { %v3888_v10 = vadd.f32 %v3887_v27, %v3886_v56  ;;  %3465 = vst.msk [vmem:[%s6402_s27 + $0x30] sm:$0xf] %vm3452_vm11, %v3381_v35  ;;  %v4093_v7 = vadd.f32 %v4092_v37, %v4091_v36  ;;  %3466 = vst.msk [vmem:[%s6402_s27 + $0x34] sm:$0xf] %vm3452_vm11, %v3383_v32 }
 0x20d   : > { %v3890_v2 = vadd.f32 %v3889_v21, %v3888_v10  ;;  %v4095_v29 = vadd.f32 %v4094_v48, %v4093_v7  ;;  %v3510_v44 = vpop.permute.xlu0 %3509 }
 0x20e   : > { %3593 = vst.msk [vmem:[%s6396_s22 + $0x30] sm:$0xf] %vm3452_vm11, %v3510_v44  ;;  %v3512_v60 = vpop.permute.xlu1 %3511 }
 0x20f   : > { %v4097_v63 = vadd.f32 %v4096_v25, %v4095_v29  ;;  %3594 = vst.msk [vmem:[%s6396_s22 + $0x34] sm:$0xf] %vm3452_vm11, %v3512_v60 }
 0x211   : > { %v3393_v26 = vpop.permute.xlu0 %3392 }
 0x212   : > { %3471 = vst.msk [vmem:[%s6402_s27 + $0x48] sm:$0xf] %vm3452_vm11, %v3393_v26  ;;  %v3395_v33 = vpop.permute.xlu1 %3394 }
 0x213   : > { %3472 = vst.msk [vmem:[%s6402_s27 + $0x4c] sm:$0xf] %vm3452_vm11, %v3395_v33 }
 0x215   : > { %v3522_v22 = vpop.permute.xlu0 %3521 }
 0x216   : > { %3599 = vst.msk [vmem:[%s6396_s22 + $0x48] sm:$0xf] %vm3452_vm11, %v3522_v22  ;;  %v3524_v52 = vpop.permute.xlu1 %3523 }
 0x217   : > { %3600 = vst.msk [vmem:[%s6396_s22 + $0x4c] sm:$0xf] %vm3452_vm11, %v3524_v52 }
 0x219   : > { %v3389_v45 = vpop.permute.xlu0 %3388 }
 0x21a   : > { %3469 = vst.msk [vmem:[%s6402_s27 + $0x40] sm:$0xf] %vm3452_vm11, %v3389_v45  ;;  %v3391_v40 = vpop.permute.xlu1 %3390 }
 0x21b   : > { %3470 = vst.msk [vmem:[%s6402_s27 + $0x44] sm:$0xf] %vm3452_vm11, %v3391_v40 }
 0x21d   : > { %v3518_v34 = vpop.permute.xlu0 %3517 }
 0x21e   : > { %3597 = vst.msk [vmem:[%s6396_s22 + $0x40] sm:$0xf] %vm3452_vm11, %v3518_v34  ;;  %v3520_v43 = vpop.permute.xlu1 %3519 }
 0x21f   : > { %3598 = vst.msk [vmem:[%s6396_s22 + $0x44] sm:$0xf] %vm3452_vm11, %v3520_v43 }
 0x221   : > { %v4834_v59 = vpop.f32.mrb[24].mxu1  ;;  %v3401_v11 = vpop.permute.xlu0 %3400 }
 0x222   : > { %v4732_v17 = vpack.c.bf16 %v4834_v59, %v4834_v59  ;;  %v3164_v9 = vpop.f32.mrb[25].mxu1  ;;  %3475 = vst.msk [vmem:[%s6402_s27 + $0x58] sm:$0xf] %vm3452_vm11, %v3401_v11  ;;  %v3403_v3 = vpop.permute.xlu1 %3402  ;;  %v4045_v58 = vmul.f32 %v4834_v59, %v4834_v59  ;;  %v3895_v23 = vsel %vm3843_vm10, %v4834_v59, 0.0 }
 0x223   : > { %v4730_v47 = vpack.c.bf16 %v3164_v9, %v3164_v9  ;;  %v3891_v16 = vsel %vm3843_vm10, %v3164_v9, 0.0  ;;  %v4043_v4 = vmul.f32 %v3164_v9, %v3164_v9  ;;  %v4835_v50 = vpop.f32.mrb[26].mxu1  ;;  %3476 = vst.msk [vmem:[%s6402_s27 + $0x5c] sm:$0xf] %vm3452_vm11, %v3403_v3 }
 0x224   : > { %3767 = vst.msk [vmem:[%s6010_s19 + $0x68] sm:$0xf] %vm3323_vm8, %v4732_v17  ;;  %v3892_v53 = vadd.f32 %v3891_v16, %v3890_v2  ;;  %v4733_v41 = vpack.c.bf16 %v4835_v50, %v4835_v50  ;;  %v3167_v12 = vpop.f32.mrb[27].mxu1  ;;  %v4046_v1 = vmul.f32 %v4835_v50, %v4835_v50  ;;  %v3897_v42 = vsel %vm3843_vm10, %v4835_v50, 0.0 }
 0x225   : > { %3765 = vst.msk [vmem:[%s6010_s19 + $0x60] sm:$0xf] %vm3323_vm8, %v4730_v47  ;;  %v4098_v15 = vsel %vm3843_vm10, %v4043_v4, 0.0  ;;  %v4731_v57 = vpack.c.bf16 %v3167_v12, %v3167_v12  ;;  %v3893_v28 = vsel %vm3843_vm10, %v3167_v12, 0.0  ;;  %v4044_v19 = vmul.f32 %v3167_v12, %v3167_v12  ;;  %v3530_v54 = vpop.permute.xlu0 %3529 }
 0x226   : > { %v4099_v5 = vadd.f32 %v4098_v15, %v4097_v63  ;;  %3768 = vst.msk [vmem:[%s6010_s19 + $0x6c] sm:$0xf] %vm3323_vm8, %v4733_v41  ;;  %v3894_v13 = vadd.f32 %v3893_v28, %v3892_v53  ;;  %v3532_v38 = vpop.permute.xlu1 %3531  ;;  %v4102_v62 = vsel %vm3843_vm10, %v4045_v58, 0.0  ;;  %v4104_v30 = vsel %vm3843_vm10, %v4046_v1, 0.0 }
 0x227   : > { %3766 = vst.msk [vmem:[%s6010_s19 + $0x64] sm:$0xf] %vm3323_vm8, %v4731_v57  ;;  %v4100_v14 = vsel %vm3843_vm10, %v4044_v19, 0.0 }
 0x228   : > { %3603 = vst.msk [vmem:[%s6396_s22 + $0x58] sm:$0xf] %vm3452_vm11, %v3530_v54  ;;  %v3896_v6 = vadd.f32 %v3895_v23, %v3894_v13  ;;  %3604 = vst.msk [vmem:[%s6396_s22 + $0x5c] sm:$0xf] %vm3452_vm11, %v3532_v38  ;;  %v4101_v18 = vadd.f32 %v4100_v14, %v4099_v5 }
 0x229   : > { %v3397_v49 = vpop.permute.xlu0 %3396 }
 0x22a   : > { %v3898_v8 = vadd.f32 %v3897_v42, %v3896_v6  ;;  %v4103_v27 = vadd.f32 %v4102_v62, %v4101_v18  ;;  %3473 = vst.msk [vmem:[%s6402_s27 + $0x50] sm:$0xf] %vm3452_vm11, %v3397_v49  ;;  %v3399_v51 = vpop.permute.xlu1 %3398  ;;  %v4013_v49 = vrot.slane %v6356_v24, 4 }
 0x22b   : > { %3474 = vst.msk [vmem:[%s6402_s27 + $0x54] sm:$0xf] %vm3452_vm11, %v3399_v51 }
 0x22c   : > { %v4105_v61 = vadd.f32 %v4104_v30, %v4103_v27  ;;  %v3837_v27 = vrot.slane %v6350_v0, 4  ;;  %v4014_v51 = vadd.f32 %v4013_v49, %v6356_v24 }
 0x22d   : > { %v3526_v39 = vpop.permute.xlu0 %3525 }
 0x22e   : > { %3601 = vst.msk [vmem:[%s6396_s22 + $0x50] sm:$0xf] %vm3452_vm11, %v3526_v39  ;;  %v3528_v36 = vpop.permute.xlu1 %3527  ;;  %v4015_v39 = vrot.slane %v4014_v51, 2 }
 0x22f   : > { %3602 = vst.msk [vmem:[%s6396_s22 + $0x54] sm:$0xf] %vm3452_vm11, %v3528_v36 }
 0x231   : > { %v3409_v55 = vpop.permute.xlu0 %3408 }
 0x232   : > { %3479 = vst.msk [vmem:[%s6402_s27 + $0x68] sm:$0xf] %vm3452_vm11, %v3409_v55  ;;  %v3411_v56 = vpop.permute.xlu1 %3410  ;;  %v4016_v55 = vadd.f32 %v4015_v39, %v4014_v51 }
 0x233   : > { %3480 = vst.msk [vmem:[%s6402_s27 + $0x6c] sm:$0xf] %vm3452_vm11, %v3411_v56 }
 0x235   : > { %v3538_v31 = vpop.permute.xlu0 %3537 }
 0x236   : > { %3607 = vst.msk [vmem:[%s6396_s22 + $0x68] sm:$0xf] %vm3452_vm11, %v3538_v31  ;;  %v3540_v21 = vpop.permute.xlu1 %3539  ;;  %v4017_v31 = vrot.slane %v4016_v55, 1 }
 0x237   : > { %3608 = vst.msk [vmem:[%s6396_s22 + $0x6c] sm:$0xf] %vm3452_vm11, %v3540_v21 }
 0x239   : > { %v3405_v35 = vpop.permute.xlu0 %3404 }
 0x23a   : > { %3477 = vst.msk [vmem:[%s6402_s27 + $0x60] sm:$0xf] %vm3452_vm11, %v3405_v35  ;;  %v3407_v48 = vpop.permute.xlu1 %3406 }
 0x23b   : > { %3478 = vst.msk [vmem:[%s6402_s27 + $0x64] sm:$0xf] %vm3452_vm11, %v3407_v48 }
 0x23d   : > { %v4838_v10 = vpop.f32.mrb[28].mxu1  ;;  %v3534_v37 = vpop.permute.xlu0 %3533 }
 0x23e   : > { %v4736_v32 = vpack.c.bf16 %v4838_v10, %v4838_v10  ;;  %v3180_v7 = vpop.f32.mrb[29].mxu1  ;;  %3605 = vst.msk [vmem:[%s6396_s22 + $0x60] sm:$0xf] %vm3452_vm11, %v3534_v37  ;;  %v3536_v25 = vpop.permute.xlu1 %3535  ;;  %v4049_v63 = vmul.f32 %v4838_v10, %v4838_v10  ;;  %v3903_v52 = vsel %vm3843_vm10, %v4838_v10, 0.0 }
 0x23f   : > { %v4734_v2 = vpack.c.bf16 %v3180_v7, %v3180_v7  ;;  %v3899_v29 = vsel %vm3843_vm10, %v3180_v7, 0.0  ;;  %v4047_v44 = vmul.f32 %v3180_v7, %v3180_v7  ;;  %v4839_v60 = vpop.f32.mrb[30].mxu1  ;;  %3606 = vst.msk [vmem:[%s6396_s22 + $0x64] sm:$0xf] %vm3452_vm11, %v3536_v25 }
 0x240   : > { %3771 = vst.msk [vmem:[%s6010_s19 + $0x78] sm:$0xf] %vm3323_vm8, %v4736_v32  ;;  %v3900_v26 = vadd.f32 %v3899_v29, %v3898_v8  ;;  %v4737_v33 = vpack.c.bf16 %v4839_v60, %v4839_v60  ;;  %v3183_v22 = vpop.f32.mrb[31].mxu1  ;;  %v4050_v17 = vmul.f32 %v4839_v60, %v4839_v60  ;;  %v3905_v16 = vsel %vm3843_vm10, %v4839_v60, 0.0 }
 0x241   : > { %3769 = vst.msk [vmem:[%s6010_s19 + $0x70] sm:$0xf] %vm3323_vm8, %v4734_v2  ;;  %v4106_v45 = vsel %vm3843_vm10, %v4047_v44, 0.0  ;;  %v4735_v40 = vpack.c.bf16 %v3183_v22, %v3183_v22  ;;  %v3901_v34 = vsel %vm3843_vm10, %v3183_v22, 0.0  ;;  %v3417_v43 = vpop.permute.xlu0 %3416  ;;  %v4048_v11 = vmul.f32 %v3183_v22, %v3183_v22 }
 0x242   : > { %v4107_v59 = vadd.f32 %v4106_v45, %v4105_v61  ;;  %3772 = vst.msk [vmem:[%s6010_s19 + $0x7c] sm:$0xf] %vm3323_vm8, %v4737_v33  ;;  %v3902_v9 = vadd.f32 %v3901_v34, %v3900_v26  ;;  %v3419_v47 = vpop.permute.xlu1 %3418  ;;  %v4110_v4 = vsel %vm3843_vm10, %v4049_v63, 0.0  ;;  %v4112_v41 = vsel %vm3843_vm10, %v4050_v17, 0.0 }
 0x243   : > { %3483 = vst.msk [vmem:[%s6402_s27 + $0x78] sm:$0xf] %vm3452_vm11, %v3417_v43  ;;  %3484 = vst.msk [vmem:[%s6402_s27 + $0x7c] sm:$0xf] %vm3452_vm11, %v3419_v47  ;;  %v4108_v3 = vsel %vm3843_vm10, %v4048_v11, 0.0  ;;  %v3838_v61 = vadd.f32 %v3837_v27, %v6350_v0 }
 0x244   : > { %3770 = vst.msk [vmem:[%s6010_s19 + $0x74] sm:$0xf] %vm3323_vm8, %v4735_v40  ;;  %v3904_v50 = vadd.f32 %v3903_v52, %v3902_v9  ;;  %v4109_v58 = vadd.f32 %v4108_v3, %v4107_v59 }
 0x245   : > { %v3413_v53 = vpop.permute.xlu0 %3412  ;;  %v3839_v36 = vrot.slane %v3838_v61, 2 }
 0x246   : > { %v3906_v12 = vadd.f32 %v3905_v16, %v3904_v50  ;;  %3481 = vst.msk [vmem:[%s6402_s27 + $0x70] sm:$0xf] %vm3452_vm11, %v3413_v53  ;;  %v3415_v23 = vpop.permute.xlu1 %3414  ;;  %v4111_v15 = vadd.f32 %v4110_v4, %v4109_v58 }
 0x247   : > { %3482 = vst.msk [vmem:[%s6402_s27 + $0x74] sm:$0xf] %vm3452_vm11, %v3415_v23  ;;  %v3840_v56 = vadd.f32 %v3839_v36, %v3838_v61 }
 0x248   : > { %v3907_v57 = vrot.slane %v3906_v12, 4  ;;  %v4113_v28 = vadd.f32 %v4112_v41, %v4111_v15 }
 0x249   : > { %v3542_v5 = vpop.permute.xlu0 %3541  ;;  %v3841_v35 = vrot.slane %v3840_v56, 1 }
 0x24a   : > { %v3908_v1 = vadd.f32 %v3907_v57, %v3906_v12  ;;  %3609 = vst.msk [vmem:[%s6396_s22 + $0x70] sm:$0xf] %vm3452_vm11, %v3542_v5  ;;  %v3544_v13 = vpop.permute.xlu1 %3543  ;;  %v4114_v19 = vrot.slane %v4113_v28, 4 }
 0x24b   : > { %3610 = vst.msk [vmem:[%s6396_s22 + $0x74] sm:$0xf] %vm3452_vm11, %v3544_v13  ;;  %v3842_v48 = vadd.f32 %v3841_v35, %v3840_v56 }
 0x24c   : > { %v3909_v54 = vrot.slane %v3908_v1, 2  ;;  %v4115_v42 = vadd.f32 %v4114_v19, %v4113_v28 }
 0x24e   : > { %v3910_v38 = vadd.f32 %v3909_v54, %v3908_v1  ;;  %v4116_v62 = vrot.slane %v4115_v42, 2 }
 0x250   : > { %v3911_v6 = vrot.slane %v3910_v38, 1  ;;  %v4117_v14 = vadd.f32 %v4116_v62, %v4115_v42 }
 0x252   : > { %v3912_v18 = vadd.f32 %v3911_v6, %v3910_v38  ;;  %v4118_v30 = vrot.slane %v4117_v14, 1 }
 0x254   : > { %3914 = vrot.lane.b32.xlu0 %v3912_v18, %s4864_s28  ;;  %v4119_v8 = vadd.f32 %v4118_v30, %v4117_v14 }
 0x256   : > { %4121 = vrot.lane.b32.xlu1 %v4119_v8, %s4864_s28 }
 0x258   : > { %3545 = vrot.lane.b32.xlu0 %v6314_v46, %s4862_s15  ;;  %v4018_v46 = vadd.f32 %v4017_v31, %v4016_v55 }
 0x25a   : > { %3547 = vrot.lane.b32.xlu1 %v6324_v20, %s4862_s15 }
 0x2c6   : > { %v3915_v21 = vpop.permute.xlu0 %3914 }
 0x2c7   : > { %v3917_v24 = vsel %vm3773_vm9, %v3842_v48, %v3915_v21 }
 0x2c8   : > { %v4122_v20 = vpop.permute.xlu1 %4121 }
 0x2c9   : > { %v4124_v10 = vsel %vm3773_vm9, %v4018_v46, %v4122_v20 }
 0x2ca   : > { %v3546_v37 = vpop.permute.xlu0 %3545  ;;  %v4126_v0 = vrot.slane %v4124_v10, 7 }
 0x2cb   : > { %3611 = vst.msk [vmem:[%s6396_s22 + $0x78] sm:$0xf] %vm3452_vm11, %v3546_v37 }
 0x2cc   : > { %v4129_v32 = vsel %vm4128_vm12, %v3917_v24, %v4126_v0  ;;  %v3548_v7 = vpop.permute.xlu1 %3547 }
 0x2cd   : > { %4131 = vst.msk [vmem:[%s325_s9] sm:$0x3] %vm4130_vm13, %v4129_v32 }
 0x2ce   : > { %3612 = vst.msk [vmem:[%s6396_s22 + $0x7c] sm:$0xf] %vm3452_vm11, %v3548_v7 }
 0x2cf PF: > { %s18_s24 = sadd.s32 1, %s4860_s24  }
 0x2d0   : > { %p15_p4 = scmp.ge.s32.totalorder %s18_s24, 4  }
 0x2d2   :  { %17 = sbr.rel (!%p15_p4) target bundleno = 1 (0x1), region = 112 }

</bundles_post_ra>
